<compile_context>
chip_gen: v5e
topology: v5e:2x2
jax: 0.10.0
libtpu: 0.0.40
codegen_flags: <defaults>
</compile_context>

<pallas_src>
import functools

import jax
import jax.numpy as jnp
from jax.experimental import pallas as pl
from jax.experimental.pallas import tpu as pltpu

_VMEM_LIMIT = 48 * 1024 * 1024   # > scoped defaults, < v7x physical 64 MiB
_NEG = -1e30                     # additive mask bias for non-edges


def _round_up(v, m):
    return (v + m - 1) // m * m


def _tiles(n):
    """(dst_tile TM, src_tile TK).

    Small graphs: a single 32-aligned block (int8 adjacency packs 32 rows per
    sublane group).  Large graphs: fixed (256, 512) -> Kernel B's working set
    is independent of N and fits v7x's 64 MiB VMEM while staying MXU friendly.
    v5e/v6e (128 MiB VMEM) tolerate larger tiles; (256, 512) is safe on all gens.
    """
    if n <= 512:
        t = _round_up(max(n, 32), 32)
        return t, t
    return 256, 512


# ----------------------------------------------------------------------------
# Graph structure (depends only on edge_index / N -> cache across forwards)
# ----------------------------------------------------------------------------
def build_graph(edge_index, n, n_pad, tm, tk):
    """Dense int8 adjacency (adj[i, j] = 1 iff edge j -> i, self-loops added like
    PyG) + O(E) per-block edge counts for block skipping + self-looped edge list."""
    loops = jnp.arange(n, dtype=edge_index.dtype)
    ei_sl = jnp.concatenate([edge_index, jnp.stack([loops, loops])], axis=1)
    # NOTE: duplicate edges collapse into a single adjacency entry (only diverges
    # from PyG's multiset softmax if the input edge list contains duplicates).
    adj = jnp.zeros((n_pad, n_pad), jnp.int8).at[ei_sl[1], ei_sl[0]].set(1)
    diag = jnp.arange(n_pad)
    adj = adj.at[diag, diag].set(1)   # keeps padded rows well-defined; no-op for real rows

    ndt, nst = n_pad // tm, n_pad // tk
    blk = jnp.zeros((ndt * nst,), jnp.int32)
    blk = blk.at[(ei_sl[1] // tm) * nst + (ei_sl[0] // tk)].add(1)
    blk = blk.at[(diag // tm) * nst + (diag // tk)].add(1)        # all self-loops
    return adj, blk, ei_sl


# ----------------------------------------------------------------------------
# Kernel A: fused node projection  x @ [W | W*a_src | W*a_dst]
#   -> messages h (bf16, only consumed by Kernel B's MXU) + packed [a_src|a_dst]
# ----------------------------------------------------------------------------
def _project_kernel(x_ref, w_ref, h_ref, asd_ref, *, hidden):
    haug = jnp.dot(x_ref[...], w_ref[...], preferred_element_type=jnp.float32)
    h_ref[...] = haug[:, :hidden].astype(h_ref.dtype)
    asd_ref[...] = haug[:, hidden:]


def project(x_pad, w_aug, tm, hidden):
    n_pad, fin = x_pad.shape
    aw = w_aug.shape[1]
    return pl.pallas_call(
        functools.partial(_project_kernel, hidden=hidden),
        grid=(n_pad // tm,),
        in_specs=[pl.BlockSpec((tm, fin), lambda i: (i, 0)),
                  pl.BlockSpec((fin, aw), lambda i: (0, 0))],
        out_specs=(pl.BlockSpec((tm, hidden), lambda i: (i, 0)),
                   pl.BlockSpec((tm, aw - hidden), lambda i: (i, 0))),
        out_shape=(jax.ShapeDtypeStruct((n_pad, hidden), jnp.bfloat16),
                   jax.ShapeDtypeStruct((n_pad, aw - hidden), jnp.float32)),
        compiler_params=pltpu.CompilerParams(
            dimension_semantics=("parallel",),
            vmem_limit_bytes=_VMEM_LIMIT),
    )(x_pad, w_aug)


# ----------------------------------------------------------------------------
# Kernel B: GAT attention (online softmax, 2-D tiled, block-sparse skip)
#           + bias + leaky_relu(0.01) + LayerNorm, optionally fused with
#           sigmoid + GeneDecoder (fc1 -> relu -> fc2) in the layer-2 epilogue.
# ----------------------------------------------------------------------------
def _gat_kernel(blk_ref, adj_ref, h_ref, asrc_ref, adst_ref, bias_ref, g_ref,
                b_ref, *rest, heads, out_ch, num_src_tiles, decode):
    if decode:
        (w1_ref, b1_ref, w2_ref, b2_ref,
         out_ref, rec_ref, ms_ref, m_sc, s_sc, acc_sc) = rest
    else:
        out_ref, ms_ref, m_sc, s_sc, acc_sc = rest

    i = pl.program_id(0)
    k = pl.program_id(1)

    @pl.when(k == 0)
    def _init():
        m_sc[...] = jnp.full_like(m_sc, -jnp.inf)
        s_sc[...] = jnp.zeros_like(s_sc)
        acc_sc[...] = jnp.zeros_like(acc_sc)

    # block-sparse skip: no exp/VALU/MXU work for source blocks with zero edges
    @pl.when(blk_ref[i * num_src_tiles + k] > 0)
    def _compute():
        # mask hoisted out of the head loop; adj is {0,1} int8 -> additive bias
        mask_bias = (adj_ref[...].astype(jnp.float32) - 1.0) * (-_NEG)  # 0 / -1e30
        for hd in range(heads):
            e = adst_ref[hd] + asrc_ref[hd]                  # [TM,1]+[1,TK] -> [TM,TK]
            e = jnp.where(e > 0, e, 0.2 * e)                 # GAT leaky_relu(0.2)
            e = e + mask_bias
            m_prev = m_sc[hd]                                # [TM, 1]
            m_new = jnp.maximum(m_prev, jnp.max(e, axis=-1, keepdims=True))
            alpha = jnp.exp(m_prev - m_new)                  # online-softmax rescale
            p = jnp.exp(e - m_new)                           # [TM, TK]
            s_sc[hd] = alpha * s_sc[hd] + jnp.sum(p, axis=-1, keepdims=True)
            acc_sc[hd] = alpha * acc_sc[hd] + jnp.dot(
                p.astype(jnp.bfloat16), h_ref[hd],           # bf16 MXU, f32 accumulate
                preferred_element_type=jnp.float32)
            m_sc[hd] = m_new

    @pl.when(k == num_src_tiles - 1)
    def _finalize():
        outs = []
        for hd in range(heads):
            inv = 1.0 / jnp.maximum(s_sc[hd], 1e-30)         # exact (matches alphas)
            outs.append(acc_sc[hd] * inv)
        out = jnp.concatenate(outs, axis=-1) + bias_ref[...]          # [TM, hidden]
        out = jnp.where(out > 0, out, 0.01 * out)                     # F.leaky_relu
        mu = jnp.mean(out, axis=-1, keepdims=True)                    # LayerNorm
        var = jnp.mean((out - mu) ** 2, axis=-1, keepdims=True)
        out = (out - mu) * jax.lax.rsqrt(var + 1e-5)
        out = out * g_ref[...] + b_ref[...]

        if decode:                                       # layer 2: fused sigmoid+decoder
            xo = 1.0 / (1.0 + jnp.exp(-out))
            out_ref[...] = xo
            hid = jnp.dot(xo, w1_ref[...],
                          preferred_element_type=jnp.float32) + b1_ref[...]
            hid = jnp.maximum(hid, 0.0)
            rec_ref[...] = jnp.dot(hid, w2_ref[...],
                                   preferred_element_type=jnp.float32) + b2_ref[...]
        else:
            out_ref[...] = out

        # packed softmax stats [m_0..m_{H-1} | s_0..s_{H-1}]
        ms_ref[...] = jnp.concatenate(
            [m_sc[hd] for hd in range(heads)] + [s_sc[hd] for hd in range(heads)],
            axis=-1)


def gat_layer(adj, blk, h_heads, asrc_t, adst_h, bias, gamma, beta, *,
              heads, out_ch, tm, tk, decoder=None):
    n_pad = adj.shape[0]
    hidden = heads * out_ch
    ndt, nst = n_pad // tm, n_pad // tk
    decode = decoder is not None

    in_specs = [
        pl.BlockSpec((tm, tk), lambda i, k, blk: (i, k)),                 # adj (int8)
        pl.BlockSpec((heads, tk, out_ch), lambda i, k, blk: (0, k, 0)),   # msgs (bf16)
        pl.BlockSpec((heads, 1, tk), lambda i, k, blk: (0, 0, k)),        # a_src
        pl.BlockSpec((heads, tm, 1), lambda i, k, blk: (0, i, 0)),        # a_dst
        pl.BlockSpec((1, hidden), lambda i, k, blk: (0, 0)),              # bias
        pl.BlockSpec((1, hidden), lambda i, k, blk: (0, 0)),              # LN gamma
        pl.BlockSpec((1, hidden), lambda i, k, blk: (0, 0)),              # LN beta
    ]
    operands = [adj, h_heads, asrc_t, adst_h,
                bias.reshape(1, -1), gamma.reshape(1, -1), beta.reshape(1, -1)]

    if decode:
        w1, b1, w2, b2 = decoder
        mid, fexp = w1.shape[1], w2.shape[1]
        in_specs += [
            pl.BlockSpec((hidden, mid), lambda i, k, blk: (0, 0)),
            pl.BlockSpec((1, mid), lambda i, k, blk: (0, 0)),
            pl.BlockSpec((mid, fexp), lambda i, k, blk: (0, 0)),
            pl.BlockSpec((1, fexp), lambda i, k, blk: (0, 0)),
        ]
        operands += [w1, b1.reshape(1, -1), w2, b2.reshape(1, -1)]
        out_specs = (pl.BlockSpec((tm, hidden), lambda i, k, blk: (i, 0)),
                     pl.BlockSpec((tm, fexp), lambda i, k, blk: (i, 0)),
                     pl.BlockSpec((tm, 2 * heads), lambda i, k, blk: (i, 0)))
        out_shape = (jax.ShapeDtypeStruct((n_pad, hidden), jnp.float32),
                     jax.ShapeDtypeStruct((n_pad, fexp), jnp.float32),
                     jax.ShapeDtypeStruct((n_pad, 2 * heads), jnp.float32))
    else:
        out_specs = (pl.BlockSpec((tm, hidden), lambda i, k, blk: (i, 0)),
                     pl.BlockSpec((tm, 2 * heads), lambda i, k, blk: (i, 0)))
        out_shape = (jax.ShapeDtypeStruct((n_pad, hidden), jnp.float32),
                     jax.ShapeDtypeStruct((n_pad, 2 * heads), jnp.float32))

    return pl.pallas_call(
        functools.partial(_gat_kernel, heads=heads, out_ch=out_ch,
                          num_src_tiles=nst, decode=decode),
        grid_spec=pltpu.PrefetchScalarGridSpec(
            num_scalar_prefetch=1,
            grid=(ndt, nst),
            in_specs=in_specs,
            out_specs=out_specs,
            scratch_shapes=[pltpu.VMEM((heads, tm, 1), jnp.float32),      # m
                            pltpu.VMEM((heads, tm, 1), jnp.float32),      # s
                            pltpu.VMEM((heads, tm, out_ch), jnp.float32)  # acc
                            ]),
        out_shape=out_shape,
        compiler_params=pltpu.CompilerParams(
            dimension_semantics=("parallel", "arbitrary"),
            vmem_limit_bytes=_VMEM_LIMIT),
    )(blk, *operands)


# ----------------------------------------------------------------------------
# Plain-JAX helpers (cheap, O(F*H) / O(E*H) work)
# ----------------------------------------------------------------------------
def _build_w_aug(w, att_src, att_dst, heads, out_ch):
    # Fold the per-head attention projections into the node-feature matmul:
    # h_aug = x @ [W | W*a_src | W*a_dst]  -> one MXU pass instead of three.
    w_h = w.reshape(w.shape[0], heads, out_ch)
    w_src = jnp.einsum("fhc,hc->fh", w_h, att_src)          # [Fin, H]
    w_dst = jnp.einsum("fhc,hc->fh", w_h, att_dst)          # [Fin, H]
    return jnp.concatenate([w, w_src, w_dst], axis=1)       # [Fin, H*C + 2H]


def _edge_alpha(a_src, a_dst, m, s, ei):
    # Per-edge attention in PyG format from the per-node softmax statistics.
    src, dst = ei[0], ei[1]
    e = a_src[src] + a_dst[dst]                             # [E+N, H]
    e = jnp.where(e > 0, e, 0.2 * e)
    return jnp.exp(e - m[dst]) / s[dst]


# ----------------------------------------------------------------------------
# Parameter init (deterministic, xavier-uniform-style)
# ----------------------------------------------------------------------------
def xavier(key, fan_in, fan_out, shape=None):
    bound = (6.0 / (fan_in + fan_out)) ** 0.5
    if shape is None:
        shape = (fan_in, fan_out)
    return jax.random.uniform(key, shape, jnp.float32, -bound, bound)


def init_params(key, num_features_exp, hidden, heads):
    c = hidden // heads
    ks = jax.random.split(key, 10)
    return dict(
        # GATConv 1
        w1=xavier(ks[0], num_features_exp, hidden),
        a1_src=xavier(ks[1], c, heads, (heads, c)),
        a1_dst=xavier(ks[2], c, heads, (heads, c)),
        b1=jnp.zeros((hidden,), jnp.float32),
        # GATConv 2
        w2=xavier(ks[3], hidden, hidden),
        a2_src=xavier(ks[4], c, heads, (heads, c)),
        a2_dst=xavier(ks[5], c, heads, (heads, c)),
        b2=jnp.zeros((hidden,), jnp.float32),
        # LayerNorms
        ln1_g=jnp.ones((hidden,), jnp.float32), ln1_b=jnp.zeros((hidden,), jnp.float32),
        ln2_g=jnp.ones((hidden,), jnp.float32), ln2_b=jnp.zeros((hidden,), jnp.float32),
        # GeneDecoder
        fc1_w=xavier(ks[6], hidden, 2 * hidden),
        fc1_b=jnp.zeros((2 * hidden,), jnp.float32),
        fc2_w=xavier(ks[7], 2 * hidden, num_features_exp),
        fc2_b=jnp.zeros((num_features_exp,), jnp.float32),
        # merge layer exists in the module but its output is dead code in forward
        merge_w=xavier(ks[8], hidden, hidden),
        merge_b=jnp.zeros((hidden,), jnp.float32),
    )


# ----------------------------------------------------------------------------
# Full forward
# ----------------------------------------------------------------------------
def graph_merfish_forward(params, x, edge_index, *, heads, num_features_exp):
    n = x.shape[0]
    hidden = params["w1"].shape[1]
    c = hidden // heads
    tm, tk = _tiles(n)
    n_pad = _round_up(n, max(tm, tk))

    # Graph structure depends only on edge_index/N -> callers can hoist & cache
    # build_graph() across forwards; it is recomputed here for a self-contained run.
    adj, blk, ei_sl = build_graph(edge_index, n, n_pad, tm, tk)
    x_pad = jnp.zeros((n_pad, num_features_exp), jnp.float32).at[:n].set(x)

    def gat(x_in, w, a_s, a_d, b, g, bt, decoder=None):
        w_aug = _build_w_aug(w, a_s, a_d, heads, c)
        h_msg, asd = project(x_in, w_aug, tm, hidden)               # bf16, f32
        h_heads = jnp.transpose(h_msg.reshape(n_pad, heads, c), (1, 0, 2))  # [H,Np,C]
        a_src, a_dst = asd[:, :heads], asd[:, heads:]
        asrc_t = jnp.transpose(a_src).reshape(heads, 1, n_pad)
        adst_h = jnp.transpose(a_dst).reshape(heads, n_pad, 1)
        outs = gat_layer(adj, blk, h_heads, asrc_t, adst_h, b, g, bt,
                         heads=heads, out_ch=c, tm=tm, tk=tk, decoder=decoder)
        return outs, a_src, a_dst

    # ---- layer 1: GATConv + leaky_relu + LayerNorm --------------------------
    (h1, ms1), a1s, a1d = gat(x_pad, params["w1"], params["a1_src"],
                              params["a1_dst"], params["b1"],
                              params["ln1_g"], params["ln1_b"])

    # ---- layer 2: GATConv + leaky_relu + LayerNorm + sigmoid + decoder ------
    # NOTE: self.merge(x_exp) is computed then overwritten in the reference
    # forward (x = sigmoid(x_exp)); its result never reaches any output.
    (x_out_pad, rec_pad, ms2), a2s, a2d = gat(
        h1, params["w2"], params["a2_src"], params["a2_dst"], params["b2"],
        params["ln2_g"], params["ln2_b"],
        decoder=(params["fc1_w"], params["fc1_b"], params["fc2_w"], params["fc2_b"]))

    x_out = x_out_pad[:n]
    rec = rec_pad[:n]

    # ---- per-edge attention weights (only E+N values, no dense [H,N,N]) -----
    alpha1 = _edge_alpha(a1s, a1d, ms1[:, :heads], ms1[:, heads:], ei_sl)
    alpha2 = _edge_alpha(a2s, a2d, ms2[:, :heads], ms2[:, heads:], ei_sl)
    return x_out, rec, (ei_sl, alpha1), (ei_sl, alpha2)


if __name__ == "__main__":
    N = 16                  # nodes
    NUM_FEATURES_EXP = 32   # gene expression features
    HIDDEN = 32
    HEADS = 4

    key = jax.random.PRNGKey(0)
    k_x, k_p = jax.random.split(key)
    x = jax.random.normal(k_x, (N, NUM_FEATURES_EXP), jnp.float32)

    # small deterministic ring graph (both directions)
    src = jnp.concatenate([jnp.arange(N), (jnp.arange(N) + 1) % N]).astype(jnp.int32)
    dst = jnp.concatenate([(jnp.arange(N) + 1) % N, jnp.arange(N)]).astype(jnp.int32)
    edge_index = jnp.stack([src, dst])  # [2, 2N]

    params = init_params(k_p, NUM_FEATURES_EXP, HIDDEN, HEADS)

    fwd = jax.jit(functools.partial(graph_merfish_forward,
                                    heads=HEADS, num_features_exp=NUM_FEATURES_EXP))
    x_out, rec, aw1, aw2 = fwd(params, x, edge_index)
    jax.block_until_ready((x_out, rec, aw1[1], aw2[1]))

    assert x_out.shape == (N, HIDDEN)
    assert rec.shape == (N, NUM_FEATURES_EXP)
    assert aw1[1].shape == (edge_index.shape[1] + N, HEADS)
    assert bool(jnp.all(jnp.isfinite(x_out))) and bool(jnp.all(jnp.isfinite(rec)))
    # attention weights sum to 1 over incoming edges per destination/head
    rowsum = jnp.zeros((N, HEADS), jnp.float32).at[aw1[0][1]].add(aw1[1])
    assert bool(jnp.all(jnp.abs(rowsum - 1.0) < 1e-3))
    rowsum2 = jnp.zeros((N, HEADS), jnp.float32).at[aw2[0][1]].add(aw2[1])
    assert bool(jnp.all(jnp.abs(rowsum2 - 1.0) < 1e-3))
    print("KERNEL_OK")
</pallas_src>

<mosaic_0001>
module attributes {stable_mosaic.version = 11 : i64} {
  func.func @_project_kernel(%arg0: i32, %arg1: memref<32x32xf32, #tpu.memory_space<vmem>>, %arg2: memref<32x40xf32, #tpu.memory_space<vmem>>, %arg3: memref<32x32xbf16, #tpu.memory_space<vmem>>, %arg4: memref<32x8xf32, #tpu.memory_space<vmem>>) attributes {dimension_semantics = [#tpu.dimension_semantics<parallel>], iteration_bounds = array<i64: 1>, scalar_prefetch = 0 : i64, scratch_operands = 0 : i64, tpu.core_type = #tpu.core_type<tc>, window_params = [{transform_indices = @transform_0, window_bounds = array<i64: 32, 32>}, {pipeline_mode = #tpu.pipeline_mode<synchronous>, transform_indices = @transform_1, window_bounds = array<i64: 32, 40>}, {transform_indices = @transform_2, window_bounds = array<i64: 32, 32>}, {transform_indices = @transform_3, window_bounds = array<i64: 32, 8>}]} {
    %c0 = arith.constant 0 : index
    %c0_0 = arith.constant 0 : index
    %0 = vector.load %arg1[%c0, %c0_0] : memref<32x32xf32, #tpu.memory_space<vmem>>, vector<32x32xf32>
    %c0_1 = arith.constant 0 : index
    %c0_2 = arith.constant 0 : index
    %1 = vector.load %arg2[%c0_1, %c0_2] : memref<32x40xf32, #tpu.memory_space<vmem>>, vector<32x40xf32>
    %cst = arith.constant dense<0.000000e+00> : vector<32x40xf32>
    %2 = tpu.matmul %0, %1, %cst {dimension_numbers = #tpu.dot_dimension_numbers<[1], [0], [0], [1], [0, 0, 1, 1], [], []>} : vector<32x32xf32>, vector<32x40xf32>, vector<32x40xf32> -> vector<32x40xf32>
    %3 = vector.extract_strided_slice %2 {offsets = [0, 0], sizes = [32, 32], strides = [1, 1]} : vector<32x40xf32> to vector<32x32xf32>
    %4 = arith.truncf %3 : vector<32x32xf32> to vector<32x32xbf16>
    %c0_3 = arith.constant 0 : index
    %c0_4 = arith.constant 0 : index
    %5 = vector.load %arg3[%c0_3, %c0_4] : memref<32x32xbf16, #tpu.memory_space<vmem>>, vector<32x32xbf16>
    tpu.vector_store %arg3[%c0_3, %c0_4], %4 {strides = array<i32>} : memref<32x32xbf16, #tpu.memory_space<vmem>>, vector<32x32xbf16>,
    %6 = vector.extract_strided_slice %2 {offsets = [0, 32], sizes = [32, 8], strides = [1, 1]} : vector<32x40xf32> to vector<32x8xf32>
    %c0_5 = arith.constant 0 : index
    %c0_6 = arith.constant 0 : index
    %7 = vector.load %arg4[%c0_5, %c0_6] : memref<32x8xf32, #tpu.memory_space<vmem>>, vector<32x8xf32>
    tpu.vector_store %arg4[%c0_5, %c0_6], %6 {strides = array<i32>} : memref<32x8xf32, #tpu.memory_space<vmem>>, vector<32x8xf32>,
    return
  }
  func.func @transform_0(%arg0: i32) -> (i32, i32) {
    %c0_i32 = arith.constant 0 : i32
    %c0_i32_0 = arith.constant 0 : i32
    return %arg0, %c0_i32 : i32, i32
  }
  func.func @transform_1(%arg0: i32) -> (i32, i32) {
    %c0_i32 = arith.constant 0 : i32
    %c0_i32_0 = arith.constant 0 : i32
    %c0_i32_1 = arith.constant 0 : i32
    return %c0_i32, %c0_i32_0 : i32, i32
  }
  func.func @transform_2(%arg0: i32) -> (i32, i32) {
    %c0_i32 = arith.constant 0 : i32
    %c0_i32_0 = arith.constant 0 : i32
    return %arg0, %c0_i32 : i32, i32
  }
  func.func @transform_3(%arg0: i32) -> (i32, i32) {
    %c0_i32 = arith.constant 0 : i32
    %c0_i32_0 = arith.constant 0 : i32
    return %arg0, %c0_i32 : i32, i32
  }
}

module attributes {stable_mosaic.version = 11 : i64} {
  func.func @_gat_kernel(%arg0: i32, %arg1: i32, %arg2: memref<1xi32, #tpu.memory_space<smem>>, %arg3: memref<32x32xi8, #tpu.memory_space<vmem>>, %arg4: memref<4x32x8xbf16, #tpu.memory_space<vmem>>, %arg5: memref<4x1x32xf32, #tpu.memory_space<vmem>>, %arg6: memref<4x32x1xf32, #tpu.memory_space<vmem>>, %arg7: memref<1x32xf32, #tpu.memory_space<vmem>>, %arg8: memref<1x32xf32, #tpu.memory_space<vmem>>, %arg9: memref<1x32xf32, #tpu.memory_space<vmem>>, %arg10: memref<32x32xf32, #tpu.memory_space<vmem>>, %arg11: memref<32x8xf32, #tpu.memory_space<vmem>>, %arg12: memref<4x32x1xf32, #tpu.memory_space<vmem>>, %arg13: memref<4x32x1xf32, #tpu.memory_space<vmem>>, %arg14: memref<4x32x8xf32, #tpu.memory_space<vmem>>) attributes {dimension_semantics = [#tpu.dimension_semantics<parallel>, #tpu.dimension_semantics<arbitrary>], iteration_bounds = array<i64: 1, 1>, scalar_prefetch = 1 : i64, scratch_operands = 3 : i64, tpu.core_type = #tpu.core_type<tc>, window_params = [{transform_indices = @transform_0, window_bounds = array<i64: 32, 32>}, {transform_indices = @transform_1, window_bounds = array<i64: 4, 32, 8>}, {transform_indices = @transform_2, window_bounds = array<i64: 4, 1, 32>}, {transform_indices = @transform_3, window_bounds = array<i64: 4, 32, 1>}, {pipeline_mode = #tpu.pipeline_mode<synchronous>, transform_indices = @transform_4, window_bounds = array<i64: 1, 32>}, {pipeline_mode = #tpu.pipeline_mode<synchronous>, transform_indices = @transform_5, window_bounds = array<i64: 1, 32>}, {pipeline_mode = #tpu.pipeline_mode<synchronous>, transform_indices = @transform_6, window_bounds = array<i64: 1, 32>}, {transform_indices = @transform_7, window_bounds = array<i64: 32, 32>}, {transform_indices = @transform_8, window_bounds = array<i64: 32, 8>}]} {
    %c0_i32 = arith.constant 0 : i32
    %0 = arith.cmpi eq, %arg1, %c0_i32 : i32
    %1 = arith.extui %0 : i1 to i32
    %c0_i32_0 = arith.constant 0 : i32
    %2 = arith.cmpi ne, %1, %c0_i32_0 : i32
    scf.if %2 {
      %cst = arith.constant 0xFF800000 : f32
      %13 = vector.broadcast %cst : f32 to vector<4x32x1xf32>
      %c0 = arith.constant 0 : index
      %c0_5 = arith.constant 0 : index
      %c0_6 = arith.constant 0 : index
      %14 = vector.load %arg12[%c0, %c0_5, %c0_6] : memref<4x32x1xf32, #tpu.memory_space<vmem>>, vector<4x32x1xf32>
      tpu.vector_store %arg12[%c0, %c0_5, %c0_6], %13 {strides = array<i32>} : memref<4x32x1xf32, #tpu.memory_space<vmem>>, vector<4x32x1xf32>,
      %cst_7 = arith.constant 0.000000e+00 : f32
      %15 = vector.broadcast %cst_7 : f32 to vector<4x32x1xf32>
      %c0_8 = arith.constant 0 : index
      %c0_9 = arith.constant 0 : index
      %c0_10 = arith.constant 0 : index
      %16 = vector.load %arg13[%c0_8, %c0_9, %c0_10] : memref<4x32x1xf32, #tpu.memory_space<vmem>>, vector<4x32x1xf32>
      tpu.vector_store %arg13[%c0_8, %c0_9, %c0_10], %15 {strides = array<i32>} : memref<4x32x1xf32, #tpu.memory_space<vmem>>, vector<4x32x1xf32>,
      %cst_11 = arith.constant 0.000000e+00 : f32
      %17 = vector.broadcast %cst_11 : f32 to vector<4x32x8xf32>
      %c0_12 = arith.constant 0 : index
      %c0_13 = arith.constant 0 : index
      %c0_14 = arith.constant 0 : index
      %18 = vector.load %arg14[%c0_12, %c0_13, %c0_14] : memref<4x32x8xf32, #tpu.memory_space<vmem>>, vector<4x32x8xf32>
      tpu.vector_store %arg14[%c0_12, %c0_13, %c0_14], %17 {strides = array<i32>} : memref<4x32x8xf32, #tpu.memory_space<vmem>>, vector<4x32x8xf32>,
    } else {
    }
    %c1_i32 = arith.constant 1 : i32
    %3 = arith.muli %arg0, %c1_i32 : i32
    %4 = arith.addi %3, %arg1 : i32
    %5 = arith.index_cast %4 : i32 to index
    %6 = memref.load %arg2[%5] : memref<1xi32, #tpu.memory_space<smem>>
    %c0_i32_1 = arith.constant 0 : i32
    %7 = arith.cmpi sgt, %6, %c0_i32_1 : i32
    %8 = arith.extui %7 : i1 to i32
    %c0_i32_2 = arith.constant 0 : i32
    %9 = arith.cmpi ne, %8, %c0_i32_2 : i32
    scf.if %9 {
      %c0 = arith.constant 0 : index
      %c0_5 = arith.constant 0 : index
      %13 = vector.load %arg3[%c0, %c0_5] : memref<32x32xi8, #tpu.memory_space<vmem>>, vector<32x32xi8>
      %14 = arith.sitofp %13 : vector<32x32xi8> to vector<32x32xf32>
      %cst = arith.constant 1.000000e+00 : f32
      %15 = vector.broadcast %cst : f32 to vector<32x32xf32>
      %16 = arith.subf %14, %15 : vector<32x32xf32>
      %cst_6 = arith.constant 1.000000e+30 : f32
      %17 = vector.broadcast %cst_6 : f32 to vector<32x32xf32>
      %18 = arith.mulf %16, %17 : vector<32x32xf32>
      %c0_7 = arith.constant 0 : index
      %c0_8 = arith.constant 0 : index
      %c0_9 = arith.constant 0 : index
      %19 = vector.load %arg6[%c0_7, %c0_8, %c0_9] : memref<4x32x1xf32, #tpu.memory_space<vmem>>, vector<1x32x1xf32>
      %20 = vector.shape_cast %19 : vector<1x32x1xf32> to vector<32x1xf32>
      %c0_10 = arith.constant 0 : index
      %c0_11 = arith.constant 0 : index
      %c0_12 = arith.constant 0 : index
      %21 = vector.load %arg5[%c0_10, %c0_11, %c0_12] : memref<4x1x32xf32, #tpu.memory_space<vmem>>, vector<1x1x32xf32>
      %22 = vector.shape_cast %21 : vector<1x1x32xf32> to vector<1x32xf32>
      %23 = vector.broadcast %20 : vector<32x1xf32> to vector<32x32xf32>
      %24 = vector.broadcast %22 : vector<1x32xf32> to vector<32x32xf32>
      %25 = arith.addf %23, %24 : vector<32x32xf32>
      %cst_13 = arith.constant 0.000000e+00 : f32
      %26 = vector.broadcast %cst_13 : f32 to vector<32x32xf32>
      %27 = arith.cmpf ogt, %25, %26 : vector<32x32xf32>
      %cst_14 = arith.constant 2.000000e-01 : f32
      %28 = vector.broadcast %cst_14 : f32 to vector<32x32xf32>
      %29 = arith.mulf %28, %25 : vector<32x32xf32>
      %30 = arith.select %27, %25, %29 : vector<32x32xi1>, vector<32x32xf32>
      %31 = arith.addf %30, %18 : vector<32x32xf32>
      %c0_15 = arith.constant 0 : index
      %c0_16 = arith.constant 0 : index
      %c0_17 = arith.constant 0 : index
      %32 = vector.load %arg12[%c0_15, %c0_16, %c0_17] : memref<4x32x1xf32, #tpu.memory_space<vmem>>, vector<1x32x1xf32>
      %33 = vector.shape_cast %32 : vector<1x32x1xf32> to vector<32x1xf32>
      %cst_18 = arith.constant dense<0xFF800000> : vector<32xf32>
      %34 = vector.multi_reduction <maximumf>, %31, %cst_18 [1] : vector<32x32xf32> to vector<32xf32>
      %35 = vector.shape_cast %34 : vector<32xf32> to vector<32x1xf32>
      %36 = arith.maximumf %33, %35 : vector<32x1xf32>
      %37 = arith.subf %33, %36 : vector<32x1xf32>
      %38 = math.exp %37 : vector<32x1xf32>
      %39 = vector.broadcast %36 : vector<32x1xf32> to vector<32x32xf32>
      %40 = arith.subf %31, %39 : vector<32x32xf32>
      %41 = math.exp %40 : vector<32x32xf32>
      %c0_19 = arith.constant 0 : index
      %c0_20 = arith.constant 0 : index
      %c0_21 = arith.constant 0 : index
      %42 = vector.load %arg13[%c0_19, %c0_20, %c0_21] : memref<4x32x1xf32, #tpu.memory_space<vmem>>, vector<1x32x1xf32>
      %43 = vector.shape_cast %42 : vector<1x32x1xf32> to vector<32x1xf32>
      %44 = arith.mulf %38, %43 : vector<32x1xf32>
      %cst_22 = arith.constant dense<0.000000e+00> : vector<32xf32>
      %45 = vector.multi_reduction <add>, %41, %cst_22 [1] : vector<32x32xf32> to vector<32xf32>
      %46 = vector.shape_cast %45 : vector<32xf32> to vector<32x1xf32>
      %47 = arith.addf %44, %46 : vector<32x1xf32>
      %c0_23 = arith.constant 0 : index
      %c0_24 = arith.constant 0 : index
      %c0_25 = arith.constant 0 : index
      %48 = vector.load %arg13[%c0_23, %c0_24, %c0_25] : memref<4x32x1xf32, #tpu.memory_space<vmem>>, vector<1x32x1xf32>
      %49 = vector.shape_cast %48 : vector<1x32x1xf32> to vector<32x1xf32>
      %50 = vector.shape_cast %47 : vector<32x1xf32> to vector<1x32x1xf32>
      tpu.vector_store %arg13[%c0_23, %c0_24, %c0_25], %50 {strides = array<i32>} : memref<4x32x1xf32, #tpu.memory_space<vmem>>, vector<1x32x1xf32>,
      %c0_26 = arith.constant 0 : index
      %c0_27 = arith.constant 0 : index
      %c0_28 = arith.constant 0 : index
      %51 = vector.load %arg14[%c0_26, %c0_27, %c0_28] : memref<4x32x8xf32, #tpu.memory_space<vmem>>, vector<1x32x8xf32>
      %52 = vector.shape_cast %51 : vector<1x32x8xf32> to vector<32x8xf32>
      %53 = vector.broadcast %38 : vector<32x1xf32> to vector<32x8xf32>
      %54 = arith.mulf %53, %52 : vector<32x8xf32>
      %55 = arith.truncf %41 : vector<32x32xf32> to vector<32x32xbf16>
      %c0_29 = arith.constant 0 : index
      %c0_30 = arith.constant 0 : index
      %c0_31 = arith.constant 0 : index
      %56 = vector.load %arg4[%c0_29, %c0_30, %c0_31] : memref<4x32x8xbf16, #tpu.memory_space<vmem>>, vector<1x32x8xbf16>
      %57 = vector.shape_cast %56 : vector<1x32x8xbf16> to vector<32x8xbf16>
      %cst_32 = arith.constant dense<0.000000e+00> : vector<32x8xf32>
      %58 = tpu.matmul %55, %57, %cst_32 {dimension_numbers = #tpu.dot_dimension_numbers<[1], [0], [0], [1], [0, 0, 1, 1], [], []>} : vector<32x32xbf16>, vector<32x8xbf16>, vector<32x8xf32> -> vector<32x8xf32>
      %59 = arith.addf %54, %58 : vector<32x8xf32>
      %c0_33 = arith.constant 0 : index
      %c0_34 = arith.constant 0 : index
      %c0_35 = arith.constant 0 : index
      %60 = vector.load %arg14[%c0_33, %c0_34, %c0_35] : memref<4x32x8xf32, #tpu.memory_space<vmem>>, vector<1x32x8xf32>
      %61 = vector.shape_cast %60 : vector<1x32x8xf32> to vector<32x8xf32>
      %62 = vector.shape_cast %59 : vector<32x8xf32> to vector<1x32x8xf32>
      tpu.vector_store %arg14[%c0_33, %c0_34, %c0_35], %62 {strides = array<i32>} : memref<4x32x8xf32, #tpu.memory_space<vmem>>, vector<1x32x8xf32>,
      %c0_36 = arith.constant 0 : index
      %c0_37 = arith.constant 0 : index
      %c0_38 = arith.constant 0 : index
      %63 = vector.load %arg12[%c0_36, %c0_37, %c0_38] : memref<4x32x1xf32, #tpu.memory_space<vmem>>, vector<1x32x1xf32>
      %64 = vector.shape_cast %63 : vector<1x32x1xf32> to vector<32x1xf32>
      %65 = vector.shape_cast %36 : vector<32x1xf32> to vector<1x32x1xf32>
      tpu.vector_store %arg12[%c0_36, %c0_37, %c0_38], %65 {strides = array<i32>} : memref<4x32x1xf32, #tpu.memory_space<vmem>>, vector<1x32x1xf32>,
      %c1 = arith.constant 1 : index
      %c0_39 = arith.constant 0 : index
      %c0_40 = arith.constant 0 : index
      %66 = vector.load %arg6[%c1, %c0_39, %c0_40] : memref<4x32x1xf32, #tpu.memory_space<vmem>>, vector<1x32x1xf32>
      %67 = vector.shape_cast %66 : vector<1x32x1xf32> to vector<32x1xf32>
      %c1_41 = arith.constant 1 : index
      %c0_42 = arith.constant 0 : index
      %c0_43 = arith.constant 0 : index
      %68 = vector.load %arg5[%c1_41, %c0_42, %c0_43] : memref<4x1x32xf32, #tpu.memory_space<vmem>>, vector<1x1x32xf32>
      %69 = vector.shape_cast %68 : vector<1x1x32xf32> to vector<1x32xf32>
      %70 = vector.broadcast %67 : vector<32x1xf32> to vector<32x32xf32>
      %71 = vector.broadcast %69 : vector<1x32xf32> to vector<32x32xf32>
      %72 = arith.addf %70, %71 : vector<32x32xf32>
      %cst_44 = arith.constant 0.000000e+00 : f32
      %73 = vector.broadcast %cst_44 : f32 to vector<32x32xf32>
      %74 = arith.cmpf ogt, %72, %73 : vector<32x32xf32>
      %cst_45 = arith.constant 2.000000e-01 : f32
      %75 = vector.broadcast %cst_45 : f32 to vector<32x32xf32>
      %76 = arith.mulf %75, %72 : vector<32x32xf32>
      %77 = arith.select %74, %72, %76 : vector<32x32xi1>, vector<32x32xf32>
      %78 = arith.addf %77, %18 : vector<32x32xf32>
      %c1_46 = arith.constant 1 : index
      %c0_47 = arith.constant 0 : index
      %c0_48 = arith.constant 0 : index
      %79 = vector.load %arg12[%c1_46, %c0_47, %c0_48] : memref<4x32x1xf32, #tpu.memory_space<vmem>>, vector<1x32x1xf32>
      %80 = vector.shape_cast %79 : vector<1x32x1xf32> to vector<32x1xf32>
      %cst_49 = arith.constant dense<0xFF800000> : vector<32xf32>
      %81 = vector.multi_reduction <maximumf>, %78, %cst_49 [1] : vector<32x32xf32> to vector<32xf32>
      %82 = vector.shape_cast %81 : vector<32xf32> to vector<32x1xf32>
      %83 = arith.maximumf %80, %82 : vector<32x1xf32>
      %84 = arith.subf %80, %83 : vector<32x1xf32>
      %85 = math.exp %84 : vector<32x1xf32>
      %86 = vector.broadcast %83 : vector<32x1xf32> to vector<32x32xf32>
      %87 = arith.subf %78, %86 : vector<32x32xf32>
      %88 = math.exp %87 : vector<32x32xf32>
      %c1_50 = arith.constant 1 : index
      %c0_51 = arith.constant 0 : index
      %c0_52 = arith.constant 0 : index
      %89 = vector.load %arg13[%c1_50, %c0_51, %c0_52] : memref<4x32x1xf32, #tpu.memory_space<vmem>>, vector<1x32x1xf32>
      %90 = vector.shape_cast %89 : vector<1x32x1xf32> to vector<32x1xf32>
      %91 = arith.mulf %85, %90 : vector<32x1xf32>
      %cst_53 = arith.constant dense<0.000000e+00> : vector<32xf32>
      %92 = vector.multi_reduction <add>, %88, %cst_53 [1] : vector<32x32xf32> to vector<32xf32>
      %93 = vector.shape_cast %92 : vector<32xf32> to vector<32x1xf32>
      %94 = arith.addf %91, %93 : vector<32x1xf32>
      %c1_54 = arith.constant 1 : index
      %c0_55 = arith.constant 0 : index
      %c0_56 = arith.constant 0 : index
      %95 = vector.load %arg13[%c1_54, %c0_55, %c0_56] : memref<4x32x1xf32, #tpu.memory_space<vmem>>, vector<1x32x1xf32>
      %96 = vector.shape_cast %95 : vector<1x32x1xf32> to vector<32x1xf32>
      %97 = vector.shape_cast %94 : vector<32x1xf32> to vector<1x32x1xf32>
      tpu.vector_store %arg13[%c1_54, %c0_55, %c0_56], %97 {strides = array<i32>} : memref<4x32x1xf32, #tpu.memory_space<vmem>>, vector<1x32x1xf32>,
      %c1_57 = arith.constant 1 : index
      %c0_58 = arith.constant 0 : index
      %c0_59 = arith.constant 0 : index
      %98 = vector.load %arg14[%c1_57, %c0_58, %c0_59] : memref<4x32x8xf32, #tpu.memory_space<vmem>>, vector<1x32x8xf32>
      %99 = vector.shape_cast %98 : vector<1x32x8xf32> to vector<32x8xf32>
      %100 = vector.broadcast %85 : vector<32x1xf32> to vector<32x8xf32>
      %101 = arith.mulf %100, %99 : vector<32x8xf32>
      %102 = arith.truncf %88 : vector<32x32xf32> to vector<32x32xbf16>
      %c1_60 = arith.constant 1 : index
      %c0_61 = arith.constant 0 : index
      %c0_62 = arith.constant 0 : index
      %103 = vector.load %arg4[%c1_60, %c0_61, %c0_62] : memref<4x32x8xbf16, #tpu.memory_space<vmem>>, vector<1x32x8xbf16>
      %104 = vector.shape_cast %103 : vector<1x32x8xbf16> to vector<32x8xbf16>
      %cst_63 = arith.constant dense<0.000000e+00> : vector<32x8xf32>
      %105 = tpu.matmul %102, %104, %cst_63 {dimension_numbers = #tpu.dot_dimension_numbers<[1], [0], [0], [1], [0, 0, 1, 1], [], []>} : vector<32x32xbf16>, vector<32x8xbf16>, vector<32x8xf32> -> vector<32x8xf32>
      %106 = arith.addf %101, %105 : vector<32x8xf32>
      %c1_64 = arith.constant 1 : index
      %c0_65 = arith.constant 0 : index
      %c0_66 = arith.constant 0 : index
      %107 = vector.load %arg14[%c1_64, %c0_65, %c0_66] : memref<4x32x8xf32, #tpu.memory_space<vmem>>, vector<1x32x8xf32>
      %108 = vector.shape_cast %107 : vector<1x32x8xf32> to vector<32x8xf32>
      %109 = vector.shape_cast %106 : vector<32x8xf32> to vector<1x32x8xf32>
      tpu.vector_store %arg14[%c1_64, %c0_65, %c0_66], %109 {strides = array<i32>} : memref<4x32x8xf32, #tpu.memory_space<vmem>>, vector<1x32x8xf32>,
      %c1_67 = arith.constant 1 : index
      %c0_68 = arith.constant 0 : index
      %c0_69 = arith.constant 0 : index
      %110 = vector.load %arg12[%c1_67, %c0_68, %c0_69] : memref<4x32x1xf32, #tpu.memory_space<vmem>>, vector<1x32x1xf32>
      %111 = vector.shape_cast %110 : vector<1x32x1xf32> to vector<32x1xf32>
      %112 = vector.shape_cast %83 : vector<32x1xf32> to vector<1x32x1xf32>
      tpu.vector_store %arg12[%c1_67, %c0_68, %c0_69], %112 {strides = array<i32>} : memref<4x32x1xf32, #tpu.memory_space<vmem>>, vector<1x32x1xf32>,
      %c2 = arith.constant 2 : index
      %c0_70 = arith.constant 0 : index
      %c0_71 = arith.constant 0 : index
      %113 = vector.load %arg6[%c2, %c0_70, %c0_71] : memref<4x32x1xf32, #tpu.memory_space<vmem>>, vector<1x32x1xf32>
      %114 = vector.shape_cast %113 : vector<1x32x1xf32> to vector<32x1xf32>
      %c2_72 = arith.constant 2 : index
      %c0_73 = arith.constant 0 : index
      %c0_74 = arith.constant 0 : index
      %115 = vector.load %arg5[%c2_72, %c0_73, %c0_74] : memref<4x1x32xf32, #tpu.memory_space<vmem>>, vector<1x1x32xf32>
      %116 = vector.shape_cast %115 : vector<1x1x32xf32> to vector<1x32xf32>
      %117 = vector.broadcast %114 : vector<32x1xf32> to vector<32x32xf32>
      %118 = vector.broadcast %116 : vector<1x32xf32> to vector<32x32xf32>
      %119 = arith.addf %117, %118 : vector<32x32xf32>
      %cst_75 = arith.constant 0.000000e+00 : f32
      %120 = vector.broadcast %cst_75 : f32 to vector<32x32xf32>
      %121 = arith.cmpf ogt, %119, %120 : vector<32x32xf32>
      %cst_76 = arith.constant 2.000000e-01 : f32
      %122 = vector.broadcast %cst_76 : f32 to vector<32x32xf32>
      %123 = arith.mulf %122, %119 : vector<32x32xf32>
      %124 = arith.select %121, %119, %123 : vector<32x32xi1>, vector<32x32xf32>
      %125 = arith.addf %124, %18 : vector<32x32xf32>
      %c2_77 = arith.constant 2 : index
      %c0_78 = arith.constant 0 : index
      %c0_79 = arith.constant 0 : index
      %126 = vector.load %arg12[%c2_77, %c0_78, %c0_79] : memref<4x32x1xf32, #tpu.memory_space<vmem>>, vector<1x32x1xf32>
      %127 = vector.shape_cast %126 : vector<1x32x1xf32> to vector<32x1xf32>
      %cst_80 = arith.constant dense<0xFF800000> : vector<32xf32>
      %128 = vector.multi_reduction <maximumf>, %125, %cst_80 [1] : vector<32x32xf32> to vector<32xf32>
      %129 = vector.shape_cast %128 : vector<32xf32> to vector<32x1xf32>
      %130 = arith.maximumf %127, %129 : vector<32x1xf32>
      %131 = arith.subf %127, %130 : vector<32x1xf32>
      %132 = math.exp %131 : vector<32x1xf32>
      %133 = vector.broadcast %130 : vector<32x1xf32> to vector<32x32xf32>
      %134 = arith.subf %125, %133 : vector<32x32xf32>
      %135 = math.exp %134 : vector<32x32xf32>
      %c2_81 = arith.constant 2 : index
      %c0_82 = arith.constant 0 : index
      %c0_83 = arith.constant 0 : index
      %136 = vector.load %arg13[%c2_81, %c0_82, %c0_83] : memref<4x32x1xf32, #tpu.memory_space<vmem>>, vector<1x32x1xf32>
      %137 = vector.shape_cast %136 : vector<1x32x1xf32> to vector<32x1xf32>
      %138 = arith.mulf %132, %137 : vector<32x1xf32>
      %cst_84 = arith.constant dense<0.000000e+00> : vector<32xf32>
      %139 = vector.multi_reduction <add>, %135, %cst_84 [1] : vector<32x32xf32> to vector<32xf32>
      %140 = vector.shape_cast %139 : vector<32xf32> to vector<32x1xf32>
      %141 = arith.addf %138, %140 : vector<32x1xf32>
      %c2_85 = arith.constant 2 : index
      %c0_86 = arith.constant 0 : index
      %c0_87 = arith.constant 0 : index
      %142 = vector.load %arg13[%c2_85, %c0_86, %c0_87] : memref<4x32x1xf32, #tpu.memory_space<vmem>>, vector<1x32x1xf32>
      %143 = vector.shape_cast %142 : vector<1x32x1xf32> to vector<32x1xf32>
      %144 = vector.shape_cast %141 : vector<32x1xf32> to vector<1x32x1xf32>
      tpu.vector_store %arg13[%c2_85, %c0_86, %c0_87], %144 {strides = array<i32>} : memref<4x32x1xf32, #tpu.memory_space<vmem>>, vector<1x32x1xf32>,
      %c2_88 = arith.constant 2 : index
      %c0_89 = arith.constant 0 : index
      %c0_90 = arith.constant 0 : index
      %145 = vector.load %arg14[%c2_88, %c0_89, %c0_90] : memref<4x32x8xf32, #tpu.memory_space<vmem>>, vector<1x32x8xf32>
      %146 = vector.shape_cast %145 : vector<1x32x8xf32> to vector<32x8xf32>
      %147 = vector.broadcast %132 : vector<32x1xf32> to vector<32x8xf32>
      %148 = arith.mulf %147, %146 : vector<32x8xf32>
      %149 = arith.truncf %135 : vector<32x32xf32> to vector<32x32xbf16>
      %c2_91 = arith.constant 2 : index
      %c0_92 = arith.constant 0 : index
      %c0_93 = arith.constant 0 : index
      %150 = vector.load %arg4[%c2_91, %c0_92, %c0_93] : memref<4x32x8xbf16, #tpu.memory_space<vmem>>, vector<1x32x8xbf16>
      %151 = vector.shape_cast %150 : vector<1x32x8xbf16> to vector<32x8xbf16>
      %cst_94 = arith.constant dense<0.000000e+00> : vector<32x8xf32>
      %152 = tpu.matmul %149, %151, %cst_94 {dimension_numbers = #tpu.dot_dimension_numbers<[1], [0], [0], [1], [0, 0, 1, 1], [], []>} : vector<32x32xbf16>, vector<32x8xbf16>, vector<32x8xf32> -> vector<32x8xf32>
      %153 = arith.addf %148, %152 : vector<32x8xf32>
      %c2_95 = arith.constant 2 : index
      %c0_96 = arith.constant 0 : index
      %c0_97 = arith.constant 0 : index
      %154 = vector.load %arg14[%c2_95, %c0_96, %c0_97] : memref<4x32x8xf32, #tpu.memory_space<vmem>>, vector<1x32x8xf32>
      %155 = vector.shape_cast %154 : vector<1x32x8xf32> to vector<32x8xf32>
      %156 = vector.shape_cast %153 : vector<32x8xf32> to vector<1x32x8xf32>
      tpu.vector_store %arg14[%c2_95, %c0_96, %c0_97], %156 {strides = array<i32>} : memref<4x32x8xf32, #tpu.memory_space<vmem>>, vector<1x32x8xf32>,
      %c2_98 = arith.constant 2 : index
      %c0_99 = arith.constant 0 : index
      %c0_100 = arith.constant 0 : index
      %157 = vector.load %arg12[%c2_98, %c0_99, %c0_100] : memref<4x32x1xf32, #tpu.memory_space<vmem>>, vector<1x32x1xf32>
      %158 = vector.shape_cast %157 : vector<1x32x1xf32> to vector<32x1xf32>
      %159 = vector.shape_cast %130 : vector<32x1xf32> to vector<1x32x1xf32>
      tpu.vector_store %arg12[%c2_98, %c0_99, %c0_100], %159 {strides = array<i32>} : memref<4x32x1xf32, #tpu.memory_space<vmem>>, vector<1x32x1xf32>,
      %c3 = arith.constant 3 : index
      %c0_101 = arith.constant 0 : index
      %c0_102 = arith.constant 0 : index
      %160 = vector.load %arg6[%c3, %c0_101, %c0_102] : memref<4x32x1xf32, #tpu.memory_space<vmem>>, vector<1x32x1xf32>
      %161 = vector.shape_cast %160 : vector<1x32x1xf32> to vector<32x1xf32>
      %c3_103 = arith.constant 3 : index
      %c0_104 = arith.constant 0 : index
      %c0_105 = arith.constant 0 : index
      %162 = vector.load %arg5[%c3_103, %c0_104, %c0_105] : memref<4x1x32xf32, #tpu.memory_space<vmem>>, vector<1x1x32xf32>
      %163 = vector.shape_cast %162 : vector<1x1x32xf32> to vector<1x32xf32>
      %164 = vector.broadcast %161 : vector<32x1xf32> to vector<32x32xf32>
      %165 = vector.broadcast %163 : vector<1x32xf32> to vector<32x32xf32>
      %166 = arith.addf %164, %165 : vector<32x32xf32>
      %cst_106 = arith.constant 0.000000e+00 : f32
      %167 = vector.broadcast %cst_106 : f32 to vector<32x32xf32>
      %168 = arith.cmpf ogt, %166, %167 : vector<32x32xf32>
      %cst_107 = arith.constant 2.000000e-01 : f32
      %169 = vector.broadcast %cst_107 : f32 to vector<32x32xf32>
      %170 = arith.mulf %169, %166 : vector<32x32xf32>
      %171 = arith.select %168, %166, %170 : vector<32x32xi1>, vector<32x32xf32>
      %172 = arith.addf %171, %18 : vector<32x32xf32>
      %c3_108 = arith.constant 3 : index
      %c0_109 = arith.constant 0 : index
      %c0_110 = arith.constant 0 : index
      %173 = vector.load %arg12[%c3_108, %c0_109, %c0_110] : memref<4x32x1xf32, #tpu.memory_space<vmem>>, vector<1x32x1xf32>
      %174 = vector.shape_cast %173 : vector<1x32x1xf32> to vector<32x1xf32>
      %cst_111 = arith.constant dense<0xFF800000> : vector<32xf32>
      %175 = vector.multi_reduction <maximumf>, %172, %cst_111 [1] : vector<32x32xf32> to vector<32xf32>
      %176 = vector.shape_cast %175 : vector<32xf32> to vector<32x1xf32>
      %177 = arith.maximumf %174, %176 : vector<32x1xf32>
      %178 = arith.subf %174, %177 : vector<32x1xf32>
      %179 = math.exp %178 : vector<32x1xf32>
      %180 = vector.broadcast %177 : vector<32x1xf32> to vector<32x32xf32>
      %181 = arith.subf %172, %180 : vector<32x32xf32>
      %182 = math.exp %181 : vector<32x32xf32>
      %c3_112 = arith.constant 3 : index
      %c0_113 = arith.constant 0 : index
      %c0_114 = arith.constant 0 : index
      %183 = vector.load %arg13[%c3_112, %c0_113, %c0_114] : memref<4x32x1xf32, #tpu.memory_space<vmem>>, vector<1x32x1xf32>
      %184 = vector.shape_cast %183 : vector<1x32x1xf32> to vector<32x1xf32>
      %185 = arith.mulf %179, %184 : vector<32x1xf32>
      %cst_115 = arith.constant dense<0.000000e+00> : vector<32xf32>
      %186 = vector.multi_reduction <add>, %182, %cst_115 [1] : vector<32x32xf32> to vector<32xf32>
      %187 = vector.shape_cast %186 : vector<32xf32> to vector<32x1xf32>
      %188 = arith.addf %185, %187 : vector<32x1xf32>
      %c3_116 = arith.constant 3 : index
      %c0_117 = arith.constant 0 : index
      %c0_118 = arith.constant 0 : index
      %189 = vector.load %arg13[%c3_116, %c0_117, %c0_118] : memref<4x32x1xf32, #tpu.memory_space<vmem>>, vector<1x32x1xf32>
      %190 = vector.shape_cast %189 : vector<1x32x1xf32> to vector<32x1xf32>
      %191 = vector.shape_cast %188 : vector<32x1xf32> to vector<1x32x1xf32>
      tpu.vector_store %arg13[%c3_116, %c0_117, %c0_118], %191 {strides = array<i32>} : memref<4x32x1xf32, #tpu.memory_space<vmem>>, vector<1x32x1xf32>,
      %c3_119 = arith.constant 3 : index
      %c0_120 = arith.constant 0 : index
      %c0_121 = arith.constant 0 : index
      %192 = vector.load %arg14[%c3_119, %c0_120, %c0_121] : memref<4x32x8xf32, #tpu.memory_space<vmem>>, vector<1x32x8xf32>
      %193 = vector.shape_cast %192 : vector<1x32x8xf32> to vector<32x8xf32>
      %194 = vector.broadcast %179 : vector<32x1xf32> to vector<32x8xf32>
      %195 = arith.mulf %194, %193 : vector<32x8xf32>
      %196 = arith.truncf %182 : vector<32x32xf32> to vector<32x32xbf16>
      %c3_122 = arith.constant 3 : index
      %c0_123 = arith.constant 0 : index
      %c0_124 = arith.constant 0 : index
      %197 = vector.load %arg4[%c3_122, %c0_123, %c0_124] : memref<4x32x8xbf16, #tpu.memory_space<vmem>>, vector<1x32x8xbf16>
      %198 = vector.shape_cast %197 : vector<1x32x8xbf16> to vector<32x8xbf16>
      %cst_125 = arith.constant dense<0.000000e+00> : vector<32x8xf32>
      %199 = tpu.matmul %196, %198, %cst_125 {dimension_numbers = #tpu.dot_dimension_numbers<[1], [0], [0], [1], [0, 0, 1, 1], [], []>} : vector<32x32xbf16>, vector<32x8xbf16>, vector<32x8xf32> -> vector<32x8xf32>
      %200 = arith.addf %195, %199 : vector<32x8xf32>
      %c3_126 = arith.constant 3 : index
      %c0_127 = arith.constant 0 : index
      %c0_128 = arith.constant 0 : index
      %201 = vector.load %arg14[%c3_126, %c0_127, %c0_128] : memref<4x32x8xf32, #tpu.memory_space<vmem>>, vector<1x32x8xf32>
      %202 = vector.shape_cast %201 : vector<1x32x8xf32> to vector<32x8xf32>
      %203 = vector.shape_cast %200 : vector<32x8xf32> to vector<1x32x8xf32>
      tpu.vector_store %arg14[%c3_126, %c0_127, %c0_128], %203 {strides = array<i32>} : memref<4x32x8xf32, #tpu.memory_space<vmem>>, vector<1x32x8xf32>,
      %c3_129 = arith.constant 3 : index
      %c0_130 = arith.constant 0 : index
      %c0_131 = arith.constant 0 : index
      %204 = vector.load %arg12[%c3_129, %c0_130, %c0_131] : memref<4x32x1xf32, #tpu.memory_space<vmem>>, vector<1x32x1xf32>
      %205 = vector.shape_cast %204 : vector<1x32x1xf32> to vector<32x1xf32>
      %206 = vector.shape_cast %177 : vector<32x1xf32> to vector<1x32x1xf32>
      tpu.vector_store %arg12[%c3_129, %c0_130, %c0_131], %206 {strides = array<i32>} : memref<4x32x1xf32, #tpu.memory_space<vmem>>, vector<1x32x1xf32>,
    } else {
    }
    %c0_i32_3 = arith.constant 0 : i32
    %10 = arith.cmpi eq, %arg1, %c0_i32_3 : i32
    %11 = arith.extui %10 : i1 to i32
    %c0_i32_4 = arith.constant 0 : i32
    %12 = arith.cmpi ne, %11, %c0_i32_4 : i32
    scf.if %12 {
      %c0 = arith.constant 0 : index
      %c0_5 = arith.constant 0 : index
      %c0_6 = arith.constant 0 : index
      %13 = vector.load %arg13[%c0, %c0_5, %c0_6] : memref<4x32x1xf32, #tpu.memory_space<vmem>>, vector<1x32x1xf32>
      %14 = vector.shape_cast %13 : vector<1x32x1xf32> to vector<32x1xf32>
      %cst = arith.constant 1.000000e-30 : f32
      %15 = vector.broadcast %cst : f32 to vector<32x1xf32>
      %16 = arith.maximumf %14, %15 : vector<32x1xf32>
      %cst_7 = arith.constant 1.000000e+00 : f32
      %17 = vector.broadcast %cst_7 : f32 to vector<32x1xf32>
      %18 = arith.divf %17, %16 : vector<32x1xf32>
      %c0_8 = arith.constant 0 : index
      %c0_9 = arith.constant 0 : index
      %c0_10 = arith.constant 0 : index
      %19 = vector.load %arg14[%c0_8, %c0_9, %c0_10] : memref<4x32x8xf32, #tpu.memory_space<vmem>>, vector<1x32x8xf32>
      %20 = vector.shape_cast %19 : vector<1x32x8xf32> to vector<32x8xf32>
      %21 = vector.broadcast %18 : vector<32x1xf32> to vector<32x8xf32>
      %22 = arith.mulf %20, %21 : vector<32x8xf32>
      %c1 = arith.constant 1 : index
      %c0_11 = arith.constant 0 : index
      %c0_12 = arith.constant 0 : index
      %23 = vector.load %arg13[%c1, %c0_11, %c0_12] : memref<4x32x1xf32, #tpu.memory_space<vmem>>, vector<1x32x1xf32>
      %24 = vector.shape_cast %23 : vector<1x32x1xf32> to vector<32x1xf32>
      %cst_13 = arith.constant 1.000000e-30 : f32
      %25 = vector.broadcast %cst_13 : f32 to vector<32x1xf32>
      %26 = arith.maximumf %24, %25 : vector<32x1xf32>
      %cst_14 = arith.constant 1.000000e+00 : f32
      %27 = vector.broadcast %cst_14 : f32 to vector<32x1xf32>
      %28 = arith.divf %27, %26 : vector<32x1xf32>
      %c1_15 = arith.constant 1 : index
      %c0_16 = arith.constant 0 : index
      %c0_17 = arith.constant 0 : index
      %29 = vector.load %arg14[%c1_15, %c0_16, %c0_17] : memref<4x32x8xf32, #tpu.memory_space<vmem>>, vector<1x32x8xf32>
      %30 = vector.shape_cast %29 : vector<1x32x8xf32> to vector<32x8xf32>
      %31 = vector.broadcast %28 : vector<32x1xf32> to vector<32x8xf32>
      %32 = arith.mulf %30, %31 : vector<32x8xf32>
      %c2 = arith.constant 2 : index
      %c0_18 = arith.constant 0 : index
      %c0_19 = arith.constant 0 : index
      %33 = vector.load %arg13[%c2, %c0_18, %c0_19] : memref<4x32x1xf32, #tpu.memory_space<vmem>>, vector<1x32x1xf32>
      %34 = vector.shape_cast %33 : vector<1x32x1xf32> to vector<32x1xf32>
      %cst_20 = arith.constant 1.000000e-30 : f32
      %35 = vector.broadcast %cst_20 : f32 to vector<32x1xf32>
      %36 = arith.maximumf %34, %35 : vector<32x1xf32>
      %cst_21 = arith.constant 1.000000e+00 : f32
      %37 = vector.broadcast %cst_21 : f32 to vector<32x1xf32>
      %38 = arith.divf %37, %36 : vector<32x1xf32>
      %c2_22 = arith.constant 2 : index
      %c0_23 = arith.constant 0 : index
      %c0_24 = arith.constant 0 : index
      %39 = vector.load %arg14[%c2_22, %c0_23, %c0_24] : memref<4x32x8xf32, #tpu.memory_space<vmem>>, vector<1x32x8xf32>
      %40 = vector.shape_cast %39 : vector<1x32x8xf32> to vector<32x8xf32>
      %41 = vector.broadcast %38 : vector<32x1xf32> to vector<32x8xf32>
      %42 = arith.mulf %40, %41 : vector<32x8xf32>
      %c3 = arith.constant 3 : index
      %c0_25 = arith.constant 0 : index
      %c0_26 = arith.constant 0 : index
      %43 = vector.load %arg13[%c3, %c0_25, %c0_26] : memref<4x32x1xf32, #tpu.memory_space<vmem>>, vector<1x32x1xf32>
      %44 = vector.shape_cast %43 : vector<1x32x1xf32> to vector<32x1xf32>
      %cst_27 = arith.constant 1.000000e-30 : f32
      %45 = vector.broadcast %cst_27 : f32 to vector<32x1xf32>
      %46 = arith.maximumf %44, %45 : vector<32x1xf32>
      %cst_28 = arith.constant 1.000000e+00 : f32
      %47 = vector.broadcast %cst_28 : f32 to vector<32x1xf32>
      %48 = arith.divf %47, %46 : vector<32x1xf32>
      %c3_29 = arith.constant 3 : index
      %c0_30 = arith.constant 0 : index
      %c0_31 = arith.constant 0 : index
      %49 = vector.load %arg14[%c3_29, %c0_30, %c0_31] : memref<4x32x8xf32, #tpu.memory_space<vmem>>, vector<1x32x8xf32>
      %50 = vector.shape_cast %49 : vector<1x32x8xf32> to vector<32x8xf32>
      %51 = vector.broadcast %48 : vector<32x1xf32> to vector<32x8xf32>
      %52 = arith.mulf %50, %51 : vector<32x8xf32>
      %53 = tpu.concatenate %22, %32, %42, %52 in 1 : vector<32x8xf32>, vector<32x8xf32>, vector<32x8xf32>, vector<32x8xf32> -> vector<32x32xf32>
      %c0_32 = arith.constant 0 : index
      %c0_33 = arith.constant 0 : index
      %54 = vector.load %arg7[%c0_32, %c0_33] : memref<1x32xf32, #tpu.memory_space<vmem>>, vector<1x32xf32>
      %55 = vector.broadcast %54 : vector<1x32xf32> to vector<32x32xf32>
      %56 = arith.addf %53, %55 : vector<32x32xf32>
      %cst_34 = arith.constant 0.000000e+00 : f32
      %57 = vector.broadcast %cst_34 : f32 to vector<32x32xf32>
      %58 = arith.cmpf ogt, %56, %57 : vector<32x32xf32>
      %cst_35 = arith.constant 0.00999999977 : f32
      %59 = vector.broadcast %cst_35 : f32 to vector<32x32xf32>
      %60 = arith.mulf %59, %56 : vector<32x32xf32>
      %61 = arith.select %58, %56, %60 : vector<32x32xi1>, vector<32x32xf32>
      %cst_36 = arith.constant dense<0.000000e+00> : vector<32xf32>
      %62 = vector.multi_reduction <add>, %61, %cst_36 [1] : vector<32x32xf32> to vector<32xf32>
      %63 = vector.shape_cast %62 : vector<32xf32> to vector<32x1xf32>
      %cst_37 = arith.constant 3.200000e+01 : f32
      %64 = vector.broadcast %cst_37 : f32 to vector<32x1xf32>
      %65 = arith.divf %63, %64 : vector<32x1xf32>
      %66 = vector.broadcast %65 : vector<32x1xf32> to vector<32x32xf32>
      %67 = arith.subf %61, %66 : vector<32x32xf32>
      %68 = arith.mulf %67, %67 : vector<32x32xf32>
      %cst_38 = arith.constant dense<0.000000e+00> : vector<32xf32>
      %69 = vector.multi_reduction <add>, %68, %cst_38 [1] : vector<32x32xf32> to vector<32xf32>
      %70 = vector.shape_cast %69 : vector<32xf32> to vector<32x1xf32>
      %cst_39 = arith.constant 3.200000e+01 : f32
      %71 = vector.broadcast %cst_39 : f32 to vector<32x1xf32>
      %72 = arith.divf %70, %71 : vector<32x1xf32>
      %73 = vector.broadcast %65 : vector<32x1xf32> to vector<32x32xf32>
      %74 = arith.subf %61, %73 : vector<32x32xf32>
      %cst_40 = arith.constant 9.99999974E-6 : f32
      %75 = vector.broadcast %cst_40 : f32 to vector<32x1xf32>
      %76 = arith.addf %72, %75 : vector<32x1xf32>
      %77 = math.rsqrt %76 : vector<32x1xf32>
      %78 = vector.broadcast %77 : vector<32x1xf32> to vector<32x32xf32>
      %79 = arith.mulf %74, %78 : vector<32x32xf32>
      %c0_41 = arith.constant 0 : index
      %c0_42 = arith.constant 0 : index
      %80 = vector.load %arg8[%c0_41, %c0_42] : memref<1x32xf32, #tpu.memory_space<vmem>>, vector<1x32xf32>
      %81 = vector.broadcast %80 : vector<1x32xf32> to vector<32x32xf32>
      %82 = arith.mulf %79, %81 : vector<32x32xf32>
      %c0_43 = arith.constant 0 : index
      %c0_44 = arith.constant 0 : index
      %83 = vector.load %arg9[%c0_43, %c0_44] : memref<1x32xf32, #tpu.memory_space<vmem>>, vector<1x32xf32>
      %84 = vector.broadcast %83 : vector<1x32xf32> to vector<32x32xf32>
      %85 = arith.addf %82, %84 : vector<32x32xf32>
      %c0_45 = arith.constant 0 : index
      %c0_46 = arith.constant 0 : index
      %86 = vector.load %arg10[%c0_45, %c0_46] : memref<32x32xf32, #tpu.memory_space<vmem>>, vector<32x32xf32>
      tpu.vector_store %arg10[%c0_45, %c0_46], %85 {strides = array<i32>} : memref<32x32xf32, #tpu.memory_space<vmem>>, vector<32x32xf32>,
      %c0_47 = arith.constant 0 : index
      %c0_48 = arith.constant 0 : index
      %c0_49 = arith.constant 0 : index
      %87 = vector.load %arg12[%c0_47, %c0_48, %c0_49] : memref<4x32x1xf32, #tpu.memory_space<vmem>>, vector<1x32x1xf32>
      %88 = vector.shape_cast %87 : vector<1x32x1xf32> to vector<32x1xf32>
      %c1_50 = arith.constant 1 : index
      %c0_51 = arith.constant 0 : index
      %c0_52 = arith.constant 0 : index
      %89 = vector.load %arg12[%c1_50, %c0_51, %c0_52] : memref<4x32x1xf32, #tpu.memory_space<vmem>>, vector<1x32x1xf32>
      %90 = vector.shape_cast %89 : vector<1x32x1xf32> to vector<32x1xf32>
      %c2_53 = arith.constant 2 : index
      %c0_54 = arith.constant 0 : index
      %c0_55 = arith.constant 0 : index
      %91 = vector.load %arg12[%c2_53, %c0_54, %c0_55] : memref<4x32x1xf32, #tpu.memory_space<vmem>>, vector<1x32x1xf32>
      %92 = vector.shape_cast %91 : vector<1x32x1xf32> to vector<32x1xf32>
      %c3_56 = arith.constant 3 : index
      %c0_57 = arith.constant 0 : index
      %c0_58 = arith.constant 0 : index
      %93 = vector.load %arg12[%c3_56, %c0_57, %c0_58] : memref<4x32x1xf32, #tpu.memory_space<vmem>>, vector<1x32x1xf32>
      %94 = vector.shape_cast %93 : vector<1x32x1xf32> to vector<32x1xf32>
      %c0_59 = arith.constant 0 : index
      %c0_60 = arith.constant 0 : index
      %c0_61 = arith.constant 0 : index
      %95 = vector.load %arg13[%c0_59, %c0_60, %c0_61] : memref<4x32x1xf32, #tpu.memory_space<vmem>>, vector<1x32x1xf32>
      %96 = vector.shape_cast %95 : vector<1x32x1xf32> to vector<32x1xf32>
      %c1_62 = arith.constant 1 : index
      %c0_63 = arith.constant 0 : index
      %c0_64 = arith.constant 0 : index
      %97 = vector.load %arg13[%c1_62, %c0_63, %c0_64] : memref<4x32x1xf32, #tpu.memory_space<vmem>>, vector<1x32x1xf32>
      %98 = vector.shape_cast %97 : vector<1x32x1xf32> to vector<32x1xf32>
      %c2_65 = arith.constant 2 : index
      %c0_66 = arith.constant 0 : index
      %c0_67 = arith.constant 0 : index
      %99 = vector.load %arg13[%c2_65, %c0_66, %c0_67] : memref<4x32x1xf32, #tpu.memory_space<vmem>>, vector<1x32x1xf32>
      %100 = vector.shape_cast %99 : vector<1x32x1xf32> to vector<32x1xf32>
      %c3_68 = arith.constant 3 : index
      %c0_69 = arith.constant 0 : index
      %c0_70 = arith.constant 0 : index
      %101 = vector.load %arg13[%c3_68, %c0_69, %c0_70] : memref<4x32x1xf32, #tpu.memory_space<vmem>>, vector<1x32x1xf32>
      %102 = vector.shape_cast %101 : vector<1x32x1xf32> to vector<32x1xf32>
      %103 = tpu.concatenate %88, %90, %92, %94, %96, %98, %100, %102 in 1 : vector<32x1xf32>, vector<32x1xf32>, vector<32x1xf32>, vector<32x1xf32>, vector<32x1xf32>, vector<32x1xf32>, vector<32x1xf32>, vector<32x1xf32> -> vector<32x8xf32>
      %c0_71 = arith.constant 0 : index
      %c0_72 = arith.constant 0 : index
      %104 = vector.load %arg11[%c0_71, %c0_72] : memref<32x8xf32, #tpu.memory_space<vmem>>, vector<32x8xf32>
      tpu.vector_store %arg11[%c0_71, %c0_72], %103 {strides = array<i32>} : memref<32x8xf32, #tpu.memory_space<vmem>>, vector<32x8xf32>,
    } else {
    }
    return
  }
  func.func @transform_0(%arg0: i32, %arg1: i32, %arg2: memref<1xi32, #tpu.memory_space<smem>>) -> (i32, i32) {
    %c0_i32 = arith.constant 0 : i32
    return %arg0, %arg1 : i32, i32
  }
  func.func @transform_1(%arg0: i32, %arg1: i32, %arg2: memref<1xi32, #tpu.memory_space<smem>>) -> (i32, i32, i32) {
    %c0_i32 = arith.constant 0 : i32
    %c0_i32_0 = arith.constant 0 : i32
    %c0_i32_1 = arith.constant 0 : i32
    return %c0_i32, %arg1, %c0_i32_0 : i32, i32, i32
  }
  func.func @transform_2(%arg0: i32, %arg1: i32, %arg2: memref<1xi32, #tpu.memory_space<smem>>) -> (i32, i32, i32) {
    %c0_i32 = arith.constant 0 : i32
    %c0_i32_0 = arith.constant 0 : i32
    %c0_i32_1 = arith.constant 0 : i32
    return %c0_i32, %c0_i32_0, %arg1 : i32, i32, i32
  }
  func.func @transform_3(%arg0: i32, %arg1: i32, %arg2: memref<1xi32, #tpu.memory_space<smem>>) -> (i32, i32, i32) {
    %c0_i32 = arith.constant 0 : i32
    %c0_i32_0 = arith.constant 0 : i32
    %c0_i32_1 = arith.constant 0 : i32
    return %c0_i32, %arg0, %c0_i32_0 : i32, i32, i32
  }
  func.func @transform_4(%arg0: i32, %arg1: i32, %arg2: memref<1xi32, #tpu.memory_space<smem>>) -> (i32, i32) {
    %c0_i32 = arith.constant 0 : i32
    %c0_i32_0 = arith.constant 0 : i32
    %c0_i32_1 = arith.constant 0 : i32
    return %c0_i32, %c0_i32_0 : i32, i32
  }
  func.func @transform_5(%arg0: i32, %arg1: i32, %arg2: memref<1xi32, #tpu.memory_space<smem>>) -> (i32, i32) {
    %c0_i32 = arith.constant 0 : i32
    %c0_i32_0 = arith.constant 0 : i32
    %c0_i32_1 = arith.constant 0 : i32
    return %c0_i32, %c0_i32_0 : i32, i32
  }
  func.func @transform_6(%arg0: i32, %arg1: i32, %arg2: memref<1xi32, #tpu.memory_space<smem>>) -> (i32, i32) {
    %c0_i32 = arith.constant 0 : i32
    %c0_i32_0 = arith.constant 0 : i32
    %c0_i32_1 = arith.constant 0 : i32
    return %c0_i32, %c0_i32_0 : i32, i32
  }
  func.func @transform_7(%arg0: i32, %arg1: i32, %arg2: memref<1xi32, #tpu.memory_space<smem>>) -> (i32, i32) {
    %c0_i32 = arith.constant 0 : i32
    %c0_i32_0 = arith.constant 0 : i32
    return %arg0, %c0_i32 : i32, i32
  }
  func.func @transform_8(%arg0: i32, %arg1: i32, %arg2: memref<1xi32, #tpu.memory_space<smem>>) -> (i32, i32) {
    %c0_i32 = arith.constant 0 : i32
    %c0_i32_0 = arith.constant 0 : i32
    return %arg0, %c0_i32 : i32, i32
  }
}

module attributes {stable_mosaic.version = 11 : i64} {
  func.func @_gat_kernel(%arg0: i32, %arg1: i32, %arg2: memref<1xi32, #tpu.memory_space<smem>>, %arg3: memref<32x32xi8, #tpu.memory_space<vmem>>, %arg4: memref<4x32x8xbf16, #tpu.memory_space<vmem>>, %arg5: memref<4x1x32xf32, #tpu.memory_space<vmem>>, %arg6: memref<4x32x1xf32, #tpu.memory_space<vmem>>, %arg7: memref<1x32xf32, #tpu.memory_space<vmem>>, %arg8: memref<1x32xf32, #tpu.memory_space<vmem>>, %arg9: memref<1x32xf32, #tpu.memory_space<vmem>>, %arg10: memref<32x64xf32, #tpu.memory_space<vmem>>, %arg11: memref<1x64xf32, #tpu.memory_space<vmem>>, %arg12: memref<64x32xf32, #tpu.memory_space<vmem>>, %arg13: memref<1x32xf32, #tpu.memory_space<vmem>>, %arg14: memref<32x32xf32, #tpu.memory_space<vmem>>, %arg15: memref<32x32xf32, #tpu.memory_space<vmem>>, %arg16: memref<32x8xf32, #tpu.memory_space<vmem>>, %arg17: memref<4x32x1xf32, #tpu.memory_space<vmem>>, %arg18: memref<4x32x1xf32, #tpu.memory_space<vmem>>, %arg19: memref<4x32x8xf32, #tpu.memory_space<vmem>>) attributes {dimension_semantics = [#tpu.dimension_semantics<parallel>, #tpu.dimension_semantics<arbitrary>], iteration_bounds = array<i64: 1, 1>, scalar_prefetch = 1 : i64, scratch_operands = 3 : i64, tpu.core_type = #tpu.core_type<tc>, window_params = [{transform_indices = @transform_0, window_bounds = array<i64: 32, 32>}, {transform_indices = @transform_1, window_bounds = array<i64: 4, 32, 8>}, {transform_indices = @transform_2, window_bounds = array<i64: 4, 1, 32>}, {transform_indices = @transform_3, window_bounds = array<i64: 4, 32, 1>}, {pipeline_mode = #tpu.pipeline_mode<synchronous>, transform_indices = @transform_4, window_bounds = array<i64: 1, 32>}, {pipeline_mode = #tpu.pipeline_mode<synchronous>, transform_indices = @transform_5, window_bounds = array<i64: 1, 32>}, {pipeline_mode = #tpu.pipeline_mode<synchronous>, transform_indices = @transform_6, window_bounds = array<i64: 1, 32>}, {pipeline_mode = #tpu.pipeline_mode<synchronous>, transform_indices = @transform_7, window_bounds = array<i64: 32, 64>}, {pipeline_mode = #tpu.pipeline_mode<synchronous>, transform_indices = @transform_8, window_bounds = array<i64: 1, 64>}, {pipeline_mode = #tpu.pipeline_mode<synchronous>, transform_indices = @transform_9, window_bounds = array<i64: 64, 32>}, {pipeline_mode = #tpu.pipeline_mode<synchronous>, transform_indices = @transform_10, window_bounds = array<i64: 1, 32>}, {transform_indices = @transform_11, window_bounds = array<i64: 32, 32>}, {transform_indices = @transform_12, window_bounds = array<i64: 32, 32>}, {transform_indices = @transform_13, window_bounds = array<i64: 32, 8>}]} {
    %c0_i32 = arith.constant 0 : i32
    %0 = arith.cmpi eq, %arg1, %c0_i32 : i32
    %1 = arith.extui %0 : i1 to i32
    %c0_i32_0 = arith.constant 0 : i32
    %2 = arith.cmpi ne, %1, %c0_i32_0 : i32
    scf.if %2 {
      %cst = arith.constant 0xFF800000 : f32
      %13 = vector.broadcast %cst : f32 to vector<4x32x1xf32>
      %c0 = arith.constant 0 : index
      %c0_5 = arith.constant 0 : index
      %c0_6 = arith.constant 0 : index
      %14 = vector.load %arg17[%c0, %c0_5, %c0_6] : memref<4x32x1xf32, #tpu.memory_space<vmem>>, vector<4x32x1xf32>
      tpu.vector_store %arg17[%c0, %c0_5, %c0_6], %13 {strides = array<i32>} : memref<4x32x1xf32, #tpu.memory_space<vmem>>, vector<4x32x1xf32>,
      %cst_7 = arith.constant 0.000000e+00 : f32
      %15 = vector.broadcast %cst_7 : f32 to vector<4x32x1xf32>
      %c0_8 = arith.constant 0 : index
      %c0_9 = arith.constant 0 : index
      %c0_10 = arith.constant 0 : index
      %16 = vector.load %arg18[%c0_8, %c0_9, %c0_10] : memref<4x32x1xf32, #tpu.memory_space<vmem>>, vector<4x32x1xf32>
      tpu.vector_store %arg18[%c0_8, %c0_9, %c0_10], %15 {strides = array<i32>} : memref<4x32x1xf32, #tpu.memory_space<vmem>>, vector<4x32x1xf32>,
      %cst_11 = arith.constant 0.000000e+00 : f32
      %17 = vector.broadcast %cst_11 : f32 to vector<4x32x8xf32>
      %c0_12 = arith.constant 0 : index
      %c0_13 = arith.constant 0 : index
      %c0_14 = arith.constant 0 : index
      %18 = vector.load %arg19[%c0_12, %c0_13, %c0_14] : memref<4x32x8xf32, #tpu.memory_space<vmem>>, vector<4x32x8xf32>
      tpu.vector_store %arg19[%c0_12, %c0_13, %c0_14], %17 {strides = array<i32>} : memref<4x32x8xf32, #tpu.memory_space<vmem>>, vector<4x32x8xf32>,
    } else {
    }
    %c1_i32 = arith.constant 1 : i32
    %3 = arith.muli %arg0, %c1_i32 : i32
    %4 = arith.addi %3, %arg1 : i32
    %5 = arith.index_cast %4 : i32 to index
    %6 = memref.load %arg2[%5] : memref<1xi32, #tpu.memory_space<smem>>
    %c0_i32_1 = arith.constant 0 : i32
    %7 = arith.cmpi sgt, %6, %c0_i32_1 : i32
    %8 = arith.extui %7 : i1 to i32
    %c0_i32_2 = arith.constant 0 : i32
    %9 = arith.cmpi ne, %8, %c0_i32_2 : i32
    scf.if %9 {
      %c0 = arith.constant 0 : index
      %c0_5 = arith.constant 0 : index
      %13 = vector.load %arg3[%c0, %c0_5] : memref<32x32xi8, #tpu.memory_space<vmem>>, vector<32x32xi8>
      %14 = arith.sitofp %13 : vector<32x32xi8> to vector<32x32xf32>
      %cst = arith.constant 1.000000e+00 : f32
      %15 = vector.broadcast %cst : f32 to vector<32x32xf32>
      %16 = arith.subf %14, %15 : vector<32x32xf32>
      %cst_6 = arith.constant 1.000000e+30 : f32
      %17 = vector.broadcast %cst_6 : f32 to vector<32x32xf32>
      %18 = arith.mulf %16, %17 : vector<32x32xf32>
      %c0_7 = arith.constant 0 : index
      %c0_8 = arith.constant 0 : index
      %c0_9 = arith.constant 0 : index
      %19 = vector.load %arg6[%c0_7, %c0_8, %c0_9] : memref<4x32x1xf32, #tpu.memory_space<vmem>>, vector<1x32x1xf32>
      %20 = vector.shape_cast %19 : vector<1x32x1xf32> to vector<32x1xf32>
      %c0_10 = arith.constant 0 : index
      %c0_11 = arith.constant 0 : index
      %c0_12 = arith.constant 0 : index
      %21 = vector.load %arg5[%c0_10, %c0_11, %c0_12] : memref<4x1x32xf32, #tpu.memory_space<vmem>>, vector<1x1x32xf32>
      %22 = vector.shape_cast %21 : vector<1x1x32xf32> to vector<1x32xf32>
      %23 = vector.broadcast %20 : vector<32x1xf32> to vector<32x32xf32>
      %24 = vector.broadcast %22 : vector<1x32xf32> to vector<32x32xf32>
      %25 = arith.addf %23, %24 : vector<32x32xf32>
      %cst_13 = arith.constant 0.000000e+00 : f32
      %26 = vector.broadcast %cst_13 : f32 to vector<32x32xf32>
      %27 = arith.cmpf ogt, %25, %26 : vector<32x32xf32>
      %cst_14 = arith.constant 2.000000e-01 : f32
      %28 = vector.broadcast %cst_14 : f32 to vector<32x32xf32>
      %29 = arith.mulf %28, %25 : vector<32x32xf32>
      %30 = arith.select %27, %25, %29 : vector<32x32xi1>, vector<32x32xf32>
      %31 = arith.addf %30, %18 : vector<32x32xf32>
      %c0_15 = arith.constant 0 : index
      %c0_16 = arith.constant 0 : index
      %c0_17 = arith.constant 0 : index
      %32 = vector.load %arg17[%c0_15, %c0_16, %c0_17] : memref<4x32x1xf32, #tpu.memory_space<vmem>>, vector<1x32x1xf32>
      %33 = vector.shape_cast %32 : vector<1x32x1xf32> to vector<32x1xf32>
      %cst_18 = arith.constant dense<0xFF800000> : vector<32xf32>
      %34 = vector.multi_reduction <maximumf>, %31, %cst_18 [1] : vector<32x32xf32> to vector<32xf32>
      %35 = vector.shape_cast %34 : vector<32xf32> to vector<32x1xf32>
      %36 = arith.maximumf %33, %35 : vector<32x1xf32>
      %37 = arith.subf %33, %36 : vector<32x1xf32>
      %38 = math.exp %37 : vector<32x1xf32>
      %39 = vector.broadcast %36 : vector<32x1xf32> to vector<32x32xf32>
      %40 = arith.subf %31, %39 : vector<32x32xf32>
      %41 = math.exp %40 : vector<32x32xf32>
      %c0_19 = arith.constant 0 : index
      %c0_20 = arith.constant 0 : index
      %c0_21 = arith.constant 0 : index
      %42 = vector.load %arg18[%c0_19, %c0_20, %c0_21] : memref<4x32x1xf32, #tpu.memory_space<vmem>>, vector<1x32x1xf32>
      %43 = vector.shape_cast %42 : vector<1x32x1xf32> to vector<32x1xf32>
      %44 = arith.mulf %38, %43 : vector<32x1xf32>
      %cst_22 = arith.constant dense<0.000000e+00> : vector<32xf32>
      %45 = vector.multi_reduction <add>, %41, %cst_22 [1] : vector<32x32xf32> to vector<32xf32>
      %46 = vector.shape_cast %45 : vector<32xf32> to vector<32x1xf32>
      %47 = arith.addf %44, %46 : vector<32x1xf32>
      %c0_23 = arith.constant 0 : index
      %c0_24 = arith.constant 0 : index
      %c0_25 = arith.constant 0 : index
      %48 = vector.load %arg18[%c0_23, %c0_24, %c0_25] : memref<4x32x1xf32, #tpu.memory_space<vmem>>, vector<1x32x1xf32>
      %49 = vector.shape_cast %48 : vector<1x32x1xf32> to vector<32x1xf32>
      %50 = vector.shape_cast %47 : vector<32x1xf32> to vector<1x32x1xf32>
      tpu.vector_store %arg18[%c0_23, %c0_24, %c0_25], %50 {strides = array<i32>} : memref<4x32x1xf32, #tpu.memory_space<vmem>>, vector<1x32x1xf32>,
      %c0_26 = arith.constant 0 : index
      %c0_27 = arith.constant 0 : index
      %c0_28 = arith.constant 0 : index
      %51 = vector.load %arg19[%c0_26, %c0_27, %c0_28] : memref<4x32x8xf32, #tpu.memory_space<vmem>>, vector<1x32x8xf32>
      %52 = vector.shape_cast %51 : vector<1x32x8xf32> to vector<32x8xf32>
      %53 = vector.broadcast %38 : vector<32x1xf32> to vector<32x8xf32>
      %54 = arith.mulf %53, %52 : vector<32x8xf32>
      %55 = arith.truncf %41 : vector<32x32xf32> to vector<32x32xbf16>
      %c0_29 = arith.constant 0 : index
      %c0_30 = arith.constant 0 : index
      %c0_31 = arith.constant 0 : index
      %56 = vector.load %arg4[%c0_29, %c0_30, %c0_31] : memref<4x32x8xbf16, #tpu.memory_space<vmem>>, vector<1x32x8xbf16>
      %57 = vector.shape_cast %56 : vector<1x32x8xbf16> to vector<32x8xbf16>
      %cst_32 = arith.constant dense<0.000000e+00> : vector<32x8xf32>
      %58 = tpu.matmul %55, %57, %cst_32 {dimension_numbers = #tpu.dot_dimension_numbers<[1], [0], [0], [1], [0, 0, 1, 1], [], []>} : vector<32x32xbf16>, vector<32x8xbf16>, vector<32x8xf32> -> vector<32x8xf32>
      %59 = arith.addf %54, %58 : vector<32x8xf32>
      %c0_33 = arith.constant 0 : index
      %c0_34 = arith.constant 0 : index
      %c0_35 = arith.constant 0 : index
      %60 = vector.load %arg19[%c0_33, %c0_34, %c0_35] : memref<4x32x8xf32, #tpu.memory_space<vmem>>, vector<1x32x8xf32>
      %61 = vector.shape_cast %60 : vector<1x32x8xf32> to vector<32x8xf32>
      %62 = vector.shape_cast %59 : vector<32x8xf32> to vector<1x32x8xf32>
      tpu.vector_store %arg19[%c0_33, %c0_34, %c0_35], %62 {strides = array<i32>} : memref<4x32x8xf32, #tpu.memory_space<vmem>>, vector<1x32x8xf32>,
      %c0_36 = arith.constant 0 : index
      %c0_37 = arith.constant 0 : index
      %c0_38 = arith.constant 0 : index
      %63 = vector.load %arg17[%c0_36, %c0_37, %c0_38] : memref<4x32x1xf32, #tpu.memory_space<vmem>>, vector<1x32x1xf32>
      %64 = vector.shape_cast %63 : vector<1x32x1xf32> to vector<32x1xf32>
      %65 = vector.shape_cast %36 : vector<32x1xf32> to vector<1x32x1xf32>
      tpu.vector_store %arg17[%c0_36, %c0_37, %c0_38], %65 {strides = array<i32>} : memref<4x32x1xf32, #tpu.memory_space<vmem>>, vector<1x32x1xf32>,
      %c1 = arith.constant 1 : index
      %c0_39 = arith.constant 0 : index
      %c0_40 = arith.constant 0 : index
      %66 = vector.load %arg6[%c1, %c0_39, %c0_40] : memref<4x32x1xf32, #tpu.memory_space<vmem>>, vector<1x32x1xf32>
      %67 = vector.shape_cast %66 : vector<1x32x1xf32> to vector<32x1xf32>
      %c1_41 = arith.constant 1 : index
      %c0_42 = arith.constant 0 : index
      %c0_43 = arith.constant 0 : index
      %68 = vector.load %arg5[%c1_41, %c0_42, %c0_43] : memref<4x1x32xf32, #tpu.memory_space<vmem>>, vector<1x1x32xf32>
      %69 = vector.shape_cast %68 : vector<1x1x32xf32> to vector<1x32xf32>
      %70 = vector.broadcast %67 : vector<32x1xf32> to vector<32x32xf32>
      %71 = vector.broadcast %69 : vector<1x32xf32> to vector<32x32xf32>
      %72 = arith.addf %70, %71 : vector<32x32xf32>
      %cst_44 = arith.constant 0.000000e+00 : f32
      %73 = vector.broadcast %cst_44 : f32 to vector<32x32xf32>
      %74 = arith.cmpf ogt, %72, %73 : vector<32x32xf32>
      %cst_45 = arith.constant 2.000000e-01 : f32
      %75 = vector.broadcast %cst_45 : f32 to vector<32x32xf32>
      %76 = arith.mulf %75, %72 : vector<32x32xf32>
      %77 = arith.select %74, %72, %76 : vector<32x32xi1>, vector<32x32xf32>
      %78 = arith.addf %77, %18 : vector<32x32xf32>
      %c1_46 = arith.constant 1 : index
      %c0_47 = arith.constant 0 : index
      %c0_48 = arith.constant 0 : index
      %79 = vector.load %arg17[%c1_46, %c0_47, %c0_48] : memref<4x32x1xf32, #tpu.memory_space<vmem>>, vector<1x32x1xf32>
      %80 = vector.shape_cast %79 : vector<1x32x1xf32> to vector<32x1xf32>
      %cst_49 = arith.constant dense<0xFF800000> : vector<32xf32>
      %81 = vector.multi_reduction <maximumf>, %78, %cst_49 [1] : vector<32x32xf32> to vector<32xf32>
      %82 = vector.shape_cast %81 : vector<32xf32> to vector<32x1xf32>
      %83 = arith.maximumf %80, %82 : vector<32x1xf32>
      %84 = arith.subf %80, %83 : vector<32x1xf32>
      %85 = math.exp %84 : vector<32x1xf32>
      %86 = vector.broadcast %83 : vector<32x1xf32> to vector<32x32xf32>
      %87 = arith.subf %78, %86 : vector<32x32xf32>
      %88 = math.exp %87 : vector<32x32xf32>
      %c1_50 = arith.constant 1 : index
      %c0_51 = arith.constant 0 : index
      %c0_52 = arith.constant 0 : index
      %89 = vector.load %arg18[%c1_50, %c0_51, %c0_52] : memref<4x32x1xf32, #tpu.memory_space<vmem>>, vector<1x32x1xf32>
      %90 = vector.shape_cast %89 : vector<1x32x1xf32> to vector<32x1xf32>
      %91 = arith.mulf %85, %90 : vector<32x1xf32>
      %cst_53 = arith.constant dense<0.000000e+00> : vector<32xf32>
      %92 = vector.multi_reduction <add>, %88, %cst_53 [1] : vector<32x32xf32> to vector<32xf32>
      %93 = vector.shape_cast %92 : vector<32xf32> to vector<32x1xf32>
      %94 = arith.addf %91, %93 : vector<32x1xf32>
      %c1_54 = arith.constant 1 : index
      %c0_55 = arith.constant 0 : index
      %c0_56 = arith.constant 0 : index
      %95 = vector.load %arg18[%c1_54, %c0_55, %c0_56] : memref<4x32x1xf32, #tpu.memory_space<vmem>>, vector<1x32x1xf32>
      %96 = vector.shape_cast %95 : vector<1x32x1xf32> to vector<32x1xf32>
      %97 = vector.shape_cast %94 : vector<32x1xf32> to vector<1x32x1xf32>
      tpu.vector_store %arg18[%c1_54, %c0_55, %c0_56], %97 {strides = array<i32>} : memref<4x32x1xf32, #tpu.memory_space<vmem>>, vector<1x32x1xf32>,
      %c1_57 = arith.constant 1 : index
      %c0_58 = arith.constant 0 : index
      %c0_59 = arith.constant 0 : index
      %98 = vector.load %arg19[%c1_57, %c0_58, %c0_59] : memref<4x32x8xf32, #tpu.memory_space<vmem>>, vector<1x32x8xf32>
      %99 = vector.shape_cast %98 : vector<1x32x8xf32> to vector<32x8xf32>
      %100 = vector.broadcast %85 : vector<32x1xf32> to vector<32x8xf32>
      %101 = arith.mulf %100, %99 : vector<32x8xf32>
      %102 = arith.truncf %88 : vector<32x32xf32> to vector<32x32xbf16>
      %c1_60 = arith.constant 1 : index
      %c0_61 = arith.constant 0 : index
      %c0_62 = arith.constant 0 : index
      %103 = vector.load %arg4[%c1_60, %c0_61, %c0_62] : memref<4x32x8xbf16, #tpu.memory_space<vmem>>, vector<1x32x8xbf16>
      %104 = vector.shape_cast %103 : vector<1x32x8xbf16> to vector<32x8xbf16>
      %cst_63 = arith.constant dense<0.000000e+00> : vector<32x8xf32>
      %105 = tpu.matmul %102, %104, %cst_63 {dimension_numbers = #tpu.dot_dimension_numbers<[1], [0], [0], [1], [0, 0, 1, 1], [], []>} : vector<32x32xbf16>, vector<32x8xbf16>, vector<32x8xf32> -> vector<32x8xf32>
      %106 = arith.addf %101, %105 : vector<32x8xf32>
      %c1_64 = arith.constant 1 : index
      %c0_65 = arith.constant 0 : index
      %c0_66 = arith.constant 0 : index
      %107 = vector.load %arg19[%c1_64, %c0_65, %c0_66] : memref<4x32x8xf32, #tpu.memory_space<vmem>>, vector<1x32x8xf32>
      %108 = vector.shape_cast %107 : vector<1x32x8xf32> to vector<32x8xf32>
      %109 = vector.shape_cast %106 : vector<32x8xf32> to vector<1x32x8xf32>
      tpu.vector_store %arg19[%c1_64, %c0_65, %c0_66], %109 {strides = array<i32>} : memref<4x32x8xf32, #tpu.memory_space<vmem>>, vector<1x32x8xf32>,
      %c1_67 = arith.constant 1 : index
      %c0_68 = arith.constant 0 : index
      %c0_69 = arith.constant 0 : index
      %110 = vector.load %arg17[%c1_67, %c0_68, %c0_69] : memref<4x32x1xf32, #tpu.memory_space<vmem>>, vector<1x32x1xf32>
      %111 = vector.shape_cast %110 : vector<1x32x1xf32> to vector<32x1xf32>
      %112 = vector.shape_cast %83 : vector<32x1xf32> to vector<1x32x1xf32>
      tpu.vector_store %arg17[%c1_67, %c0_68, %c0_69], %112 {strides = array<i32>} : memref<4x32x1xf32, #tpu.memory_space<vmem>>, vector<1x32x1xf32>,
      %c2 = arith.constant 2 : index
      %c0_70 = arith.constant 0 : index
      %c0_71 = arith.constant 0 : index
      %113 = vector.load %arg6[%c2, %c0_70, %c0_71] : memref<4x32x1xf32, #tpu.memory_space<vmem>>, vector<1x32x1xf32>
      %114 = vector.shape_cast %113 : vector<1x32x1xf32> to vector<32x1xf32>
      %c2_72 = arith.constant 2 : index
      %c0_73 = arith.constant 0 : index
      %c0_74 = arith.constant 0 : index
      %115 = vector.load %arg5[%c2_72, %c0_73, %c0_74] : memref<4x1x32xf32, #tpu.memory_space<vmem>>, vector<1x1x32xf32>
      %116 = vector.shape_cast %115 : vector<1x1x32xf32> to vector<1x32xf32>
      %117 = vector.broadcast %114 : vector<32x1xf32> to vector<32x32xf32>
      %118 = vector.broadcast %116 : vector<1x32xf32> to vector<32x32xf32>
      %119 = arith.addf %117, %118 : vector<32x32xf32>
      %cst_75 = arith.constant 0.000000e+00 : f32
      %120 = vector.broadcast %cst_75 : f32 to vector<32x32xf32>
      %121 = arith.cmpf ogt, %119, %120 : vector<32x32xf32>
      %cst_76 = arith.constant 2.000000e-01 : f32
      %122 = vector.broadcast %cst_76 : f32 to vector<32x32xf32>
      %123 = arith.mulf %122, %119 : vector<32x32xf32>
      %124 = arith.select %121, %119, %123 : vector<32x32xi1>, vector<32x32xf32>
      %125 = arith.addf %124, %18 : vector<32x32xf32>
      %c2_77 = arith.constant 2 : index
      %c0_78 = arith.constant 0 : index
      %c0_79 = arith.constant 0 : index
      %126 = vector.load %arg17[%c2_77, %c0_78, %c0_79] : memref<4x32x1xf32, #tpu.memory_space<vmem>>, vector<1x32x1xf32>
      %127 = vector.shape_cast %126 : vector<1x32x1xf32> to vector<32x1xf32>
      %cst_80 = arith.constant dense<0xFF800000> : vector<32xf32>
      %128 = vector.multi_reduction <maximumf>, %125, %cst_80 [1] : vector<32x32xf32> to vector<32xf32>
      %129 = vector.shape_cast %128 : vector<32xf32> to vector<32x1xf32>
      %130 = arith.maximumf %127, %129 : vector<32x1xf32>
      %131 = arith.subf %127, %130 : vector<32x1xf32>
      %132 = math.exp %131 : vector<32x1xf32>
      %133 = vector.broadcast %130 : vector<32x1xf32> to vector<32x32xf32>
      %134 = arith.subf %125, %133 : vector<32x32xf32>
      %135 = math.exp %134 : vector<32x32xf32>
      %c2_81 = arith.constant 2 : index
      %c0_82 = arith.constant 0 : index
      %c0_83 = arith.constant 0 : index
      %136 = vector.load %arg18[%c2_81, %c0_82, %c0_83] : memref<4x32x1xf32, #tpu.memory_space<vmem>>, vector<1x32x1xf32>
      %137 = vector.shape_cast %136 : vector<1x32x1xf32> to vector<32x1xf32>
      %138 = arith.mulf %132, %137 : vector<32x1xf32>
      %cst_84 = arith.constant dense<0.000000e+00> : vector<32xf32>
      %139 = vector.multi_reduction <add>, %135, %cst_84 [1] : vector<32x32xf32> to vector<32xf32>
      %140 = vector.shape_cast %139 : vector<32xf32> to vector<32x1xf32>
      %141 = arith.addf %138, %140 : vector<32x1xf32>
      %c2_85 = arith.constant 2 : index
      %c0_86 = arith.constant 0 : index
      %c0_87 = arith.constant 0 : index
      %142 = vector.load %arg18[%c2_85, %c0_86, %c0_87] : memref<4x32x1xf32, #tpu.memory_space<vmem>>, vector<1x32x1xf32>
      %143 = vector.shape_cast %142 : vector<1x32x1xf32> to vector<32x1xf32>
      %144 = vector.shape_cast %141 : vector<32x1xf32> to vector<1x32x1xf32>
      tpu.vector_store %arg18[%c2_85, %c0_86, %c0_87], %144 {strides = array<i32>} : memref<4x32x1xf32, #tpu.memory_space<vmem>>, vector<1x32x1xf32>,
      %c2_88 = arith.constant 2 : index
      %c0_89 = arith.constant 0 : index
      %c0_90 = arith.constant 0 : index
      %145 = vector.load %arg19[%c2_88, %c0_89, %c0_90] : memref<4x32x8xf32, #tpu.memory_space<vmem>>, vector<1x32x8xf32>
      %146 = vector.shape_cast %145 : vector<1x32x8xf32> to vector<32x8xf32>
      %147 = vector.broadcast %132 : vector<32x1xf32> to vector<32x8xf32>
      %148 = arith.mulf %147, %146 : vector<32x8xf32>
      %149 = arith.truncf %135 : vector<32x32xf32> to vector<32x32xbf16>
      %c2_91 = arith.constant 2 : index
      %c0_92 = arith.constant 0 : index
      %c0_93 = arith.constant 0 : index
      %150 = vector.load %arg4[%c2_91, %c0_92, %c0_93] : memref<4x32x8xbf16, #tpu.memory_space<vmem>>, vector<1x32x8xbf16>
      %151 = vector.shape_cast %150 : vector<1x32x8xbf16> to vector<32x8xbf16>
      %cst_94 = arith.constant dense<0.000000e+00> : vector<32x8xf32>
      %152 = tpu.matmul %149, %151, %cst_94 {dimension_numbers = #tpu.dot_dimension_numbers<[1], [0], [0], [1], [0, 0, 1, 1], [], []>} : vector<32x32xbf16>, vector<32x8xbf16>, vector<32x8xf32> -> vector<32x8xf32>
      %153 = arith.addf %148, %152 : vector<32x8xf32>
      %c2_95 = arith.constant 2 : index
      %c0_96 = arith.constant 0 : index
      %c0_97 = arith.constant 0 : index
      %154 = vector.load %arg19[%c2_95, %c0_96, %c0_97] : memref<4x32x8xf32, #tpu.memory_space<vmem>>, vector<1x32x8xf32>
      %155 = vector.shape_cast %154 : vector<1x32x8xf32> to vector<32x8xf32>
      %156 = vector.shape_cast %153 : vector<32x8xf32> to vector<1x32x8xf32>
      tpu.vector_store %arg19[%c2_95, %c0_96, %c0_97], %156 {strides = array<i32>} : memref<4x32x8xf32, #tpu.memory_space<vmem>>, vector<1x32x8xf32>,
      %c2_98 = arith.constant 2 : index
      %c0_99 = arith.constant 0 : index
      %c0_100 = arith.constant 0 : index
      %157 = vector.load %arg17[%c2_98, %c0_99, %c0_100] : memref<4x32x1xf32, #tpu.memory_space<vmem>>, vector<1x32x1xf32>
      %158 = vector.shape_cast %157 : vector<1x32x1xf32> to vector<32x1xf32>
      %159 = vector.shape_cast %130 : vector<32x1xf32> to vector<1x32x1xf32>
      tpu.vector_store %arg17[%c2_98, %c0_99, %c0_100], %159 {strides = array<i32>} : memref<4x32x1xf32, #tpu.memory_space<vmem>>, vector<1x32x1xf32>,
      %c3 = arith.constant 3 : index
      %c0_101 = arith.constant 0 : index
      %c0_102 = arith.constant 0 : index
      %160 = vector.load %arg6[%c3, %c0_101, %c0_102] : memref<4x32x1xf32, #tpu.memory_space<vmem>>, vector<1x32x1xf32>
      %161 = vector.shape_cast %160 : vector<1x32x1xf32> to vector<32x1xf32>
      %c3_103 = arith.constant 3 : index
      %c0_104 = arith.constant 0 : index
      %c0_105 = arith.constant 0 : index
      %162 = vector.load %arg5[%c3_103, %c0_104, %c0_105] : memref<4x1x32xf32, #tpu.memory_space<vmem>>, vector<1x1x32xf32>
      %163 = vector.shape_cast %162 : vector<1x1x32xf32> to vector<1x32xf32>
      %164 = vector.broadcast %161 : vector<32x1xf32> to vector<32x32xf32>
      %165 = vector.broadcast %163 : vector<1x32xf32> to vector<32x32xf32>
      %166 = arith.addf %164, %165 : vector<32x32xf32>
      %cst_106 = arith.constant 0.000000e+00 : f32
      %167 = vector.broadcast %cst_106 : f32 to vector<32x32xf32>
      %168 = arith.cmpf ogt, %166, %167 : vector<32x32xf32>
      %cst_107 = arith.constant 2.000000e-01 : f32
      %169 = vector.broadcast %cst_107 : f32 to vector<32x32xf32>
      %170 = arith.mulf %169, %166 : vector<32x32xf32>
      %171 = arith.select %168, %166, %170 : vector<32x32xi1>, vector<32x32xf32>
      %172 = arith.addf %171, %18 : vector<32x32xf32>
      %c3_108 = arith.constant 3 : index
      %c0_109 = arith.constant 0 : index
      %c0_110 = arith.constant 0 : index
      %173 = vector.load %arg17[%c3_108, %c0_109, %c0_110] : memref<4x32x1xf32, #tpu.memory_space<vmem>>, vector<1x32x1xf32>
      %174 = vector.shape_cast %173 : vector<1x32x1xf32> to vector<32x1xf32>
      %cst_111 = arith.constant dense<0xFF800000> : vector<32xf32>
      %175 = vector.multi_reduction <maximumf>, %172, %cst_111 [1] : vector<32x32xf32> to vector<32xf32>
      %176 = vector.shape_cast %175 : vector<32xf32> to vector<32x1xf32>
      %177 = arith.maximumf %174, %176 : vector<32x1xf32>
      %178 = arith.subf %174, %177 : vector<32x1xf32>
      %179 = math.exp %178 : vector<32x1xf32>
      %180 = vector.broadcast %177 : vector<32x1xf32> to vector<32x32xf32>
      %181 = arith.subf %172, %180 : vector<32x32xf32>
      %182 = math.exp %181 : vector<32x32xf32>
      %c3_112 = arith.constant 3 : index
      %c0_113 = arith.constant 0 : index
      %c0_114 = arith.constant 0 : index
      %183 = vector.load %arg18[%c3_112, %c0_113, %c0_114] : memref<4x32x1xf32, #tpu.memory_space<vmem>>, vector<1x32x1xf32>
      %184 = vector.shape_cast %183 : vector<1x32x1xf32> to vector<32x1xf32>
      %185 = arith.mulf %179, %184 : vector<32x1xf32>
      %cst_115 = arith.constant dense<0.000000e+00> : vector<32xf32>
      %186 = vector.multi_reduction <add>, %182, %cst_115 [1] : vector<32x32xf32> to vector<32xf32>
      %187 = vector.shape_cast %186 : vector<32xf32> to vector<32x1xf32>
      %188 = arith.addf %185, %187 : vector<32x1xf32>
      %c3_116 = arith.constant 3 : index
      %c0_117 = arith.constant 0 : index
      %c0_118 = arith.constant 0 : index
      %189 = vector.load %arg18[%c3_116, %c0_117, %c0_118] : memref<4x32x1xf32, #tpu.memory_space<vmem>>, vector<1x32x1xf32>
      %190 = vector.shape_cast %189 : vector<1x32x1xf32> to vector<32x1xf32>
      %191 = vector.shape_cast %188 : vector<32x1xf32> to vector<1x32x1xf32>
      tpu.vector_store %arg18[%c3_116, %c0_117, %c0_118], %191 {strides = array<i32>} : memref<4x32x1xf32, #tpu.memory_space<vmem>>, vector<1x32x1xf32>,
      %c3_119 = arith.constant 3 : index
      %c0_120 = arith.constant 0 : index
      %c0_121 = arith.constant 0 : index
      %192 = vector.load %arg19[%c3_119, %c0_120, %c0_121] : memref<4x32x8xf32, #tpu.memory_space<vmem>>, vector<1x32x8xf32>
      %193 = vector.shape_cast %192 : vector<1x32x8xf32> to vector<32x8xf32>
      %194 = vector.broadcast %179 : vector<32x1xf32> to vector<32x8xf32>
      %195 = arith.mulf %194, %193 : vector<32x8xf32>
      %196 = arith.truncf %182 : vector<32x32xf32> to vector<32x32xbf16>
      %c3_122 = arith.constant 3 : index
      %c0_123 = arith.constant 0 : index
      %c0_124 = arith.constant 0 : index
      %197 = vector.load %arg4[%c3_122, %c0_123, %c0_124] : memref<4x32x8xbf16, #tpu.memory_space<vmem>>, vector<1x32x8xbf16>
      %198 = vector.shape_cast %197 : vector<1x32x8xbf16> to vector<32x8xbf16>
      %cst_125 = arith.constant dense<0.000000e+00> : vector<32x8xf32>
      %199 = tpu.matmul %196, %198, %cst_125 {dimension_numbers = #tpu.dot_dimension_numbers<[1], [0], [0], [1], [0, 0, 1, 1], [], []>} : vector<32x32xbf16>, vector<32x8xbf16>, vector<32x8xf32> -> vector<32x8xf32>
      %200 = arith.addf %195, %199 : vector<32x8xf32>
      %c3_126 = arith.constant 3 : index
      %c0_127 = arith.constant 0 : index
      %c0_128 = arith.constant 0 : index
      %201 = vector.load %arg19[%c3_126, %c0_127, %c0_128] : memref<4x32x8xf32, #tpu.memory_space<vmem>>, vector<1x32x8xf32>
      %202 = vector.shape_cast %201 : vector<1x32x8xf32> to vector<32x8xf32>
      %203 = vector.shape_cast %200 : vector<32x8xf32> to vector<1x32x8xf32>
      tpu.vector_store %arg19[%c3_126, %c0_127, %c0_128], %203 {strides = array<i32>} : memref<4x32x8xf32, #tpu.memory_space<vmem>>, vector<1x32x8xf32>,
      %c3_129 = arith.constant 3 : index
      %c0_130 = arith.constant 0 : index
      %c0_131 = arith.constant 0 : index
      %204 = vector.load %arg17[%c3_129, %c0_130, %c0_131] : memref<4x32x1xf32, #tpu.memory_space<vmem>>, vector<1x32x1xf32>
      %205 = vector.shape_cast %204 : vector<1x32x1xf32> to vector<32x1xf32>
      %206 = vector.shape_cast %177 : vector<32x1xf32> to vector<1x32x1xf32>
      tpu.vector_store %arg17[%c3_129, %c0_130, %c0_131], %206 {strides = array<i32>} : memref<4x32x1xf32, #tpu.memory_space<vmem>>, vector<1x32x1xf32>,
    } else {
    }
    %c0_i32_3 = arith.constant 0 : i32
    %10 = arith.cmpi eq, %arg1, %c0_i32_3 : i32
    %11 = arith.extui %10 : i1 to i32
    %c0_i32_4 = arith.constant 0 : i32
    %12 = arith.cmpi ne, %11, %c0_i32_4 : i32
    scf.if %12 {
      %c0 = arith.constant 0 : index
      %c0_5 = arith.constant 0 : index
      %c0_6 = arith.constant 0 : index
      %13 = vector.load %arg18[%c0, %c0_5, %c0_6] : memref<4x32x1xf32, #tpu.memory_space<vmem>>, vector<1x32x1xf32>
      %14 = vector.shape_cast %13 : vector<1x32x1xf32> to vector<32x1xf32>
      %cst = arith.constant 1.000000e-30 : f32
      %15 = vector.broadcast %cst : f32 to vector<32x1xf32>
      %16 = arith.maximumf %14, %15 : vector<32x1xf32>
      %cst_7 = arith.constant 1.000000e+00 : f32
      %17 = vector.broadcast %cst_7 : f32 to vector<32x1xf32>
      %18 = arith.divf %17, %16 : vector<32x1xf32>
      %c0_8 = arith.constant 0 : index
      %c0_9 = arith.constant 0 : index
      %c0_10 = arith.constant 0 : index
      %19 = vector.load %arg19[%c0_8, %c0_9, %c0_10] : memref<4x32x8xf32, #tpu.memory_space<vmem>>, vector<1x32x8xf32>
      %20 = vector.shape_cast %19 : vector<1x32x8xf32> to vector<32x8xf32>
      %21 = vector.broadcast %18 : vector<32x1xf32> to vector<32x8xf32>
      %22 = arith.mulf %20, %21 : vector<32x8xf32>
      %c1 = arith.constant 1 : index
      %c0_11 = arith.constant 0 : index
      %c0_12 = arith.constant 0 : index
      %23 = vector.load %arg18[%c1, %c0_11, %c0_12] : memref<4x32x1xf32, #tpu.memory_space<vmem>>, vector<1x32x1xf32>
      %24 = vector.shape_cast %23 : vector<1x32x1xf32> to vector<32x1xf32>
      %cst_13 = arith.constant 1.000000e-30 : f32
      %25 = vector.broadcast %cst_13 : f32 to vector<32x1xf32>
      %26 = arith.maximumf %24, %25 : vector<32x1xf32>
      %cst_14 = arith.constant 1.000000e+00 : f32
      %27 = vector.broadcast %cst_14 : f32 to vector<32x1xf32>
      %28 = arith.divf %27, %26 : vector<32x1xf32>
      %c1_15 = arith.constant 1 : index
      %c0_16 = arith.constant 0 : index
      %c0_17 = arith.constant 0 : index
      %29 = vector.load %arg19[%c1_15, %c0_16, %c0_17] : memref<4x32x8xf32, #tpu.memory_space<vmem>>, vector<1x32x8xf32>
      %30 = vector.shape_cast %29 : vector<1x32x8xf32> to vector<32x8xf32>
      %31 = vector.broadcast %28 : vector<32x1xf32> to vector<32x8xf32>
      %32 = arith.mulf %30, %31 : vector<32x8xf32>
      %c2 = arith.constant 2 : index
      %c0_18 = arith.constant 0 : index
      %c0_19 = arith.constant 0 : index
      %33 = vector.load %arg18[%c2, %c0_18, %c0_19] : memref<4x32x1xf32, #tpu.memory_space<vmem>>, vector<1x32x1xf32>
      %34 = vector.shape_cast %33 : vector<1x32x1xf32> to vector<32x1xf32>
      %cst_20 = arith.constant 1.000000e-30 : f32
      %35 = vector.broadcast %cst_20 : f32 to vector<32x1xf32>
      %36 = arith.maximumf %34, %35 : vector<32x1xf32>
      %cst_21 = arith.constant 1.000000e+00 : f32
      %37 = vector.broadcast %cst_21 : f32 to vector<32x1xf32>
      %38 = arith.divf %37, %36 : vector<32x1xf32>
      %c2_22 = arith.constant 2 : index
      %c0_23 = arith.constant 0 : index
      %c0_24 = arith.constant 0 : index
      %39 = vector.load %arg19[%c2_22, %c0_23, %c0_24] : memref<4x32x8xf32, #tpu.memory_space<vmem>>, vector<1x32x8xf32>
      %40 = vector.shape_cast %39 : vector<1x32x8xf32> to vector<32x8xf32>
      %41 = vector.broadcast %38 : vector<32x1xf32> to vector<32x8xf32>
      %42 = arith.mulf %40, %41 : vector<32x8xf32>
      %c3 = arith.constant 3 : index
      %c0_25 = arith.constant 0 : index
      %c0_26 = arith.constant 0 : index
      %43 = vector.load %arg18[%c3, %c0_25, %c0_26] : memref<4x32x1xf32, #tpu.memory_space<vmem>>, vector<1x32x1xf32>
      %44 = vector.shape_cast %43 : vector<1x32x1xf32> to vector<32x1xf32>
      %cst_27 = arith.constant 1.000000e-30 : f32
      %45 = vector.broadcast %cst_27 : f32 to vector<32x1xf32>
      %46 = arith.maximumf %44, %45 : vector<32x1xf32>
      %cst_28 = arith.constant 1.000000e+00 : f32
      %47 = vector.broadcast %cst_28 : f32 to vector<32x1xf32>
      %48 = arith.divf %47, %46 : vector<32x1xf32>
      %c3_29 = arith.constant 3 : index
      %c0_30 = arith.constant 0 : index
      %c0_31 = arith.constant 0 : index
      %49 = vector.load %arg19[%c3_29, %c0_30, %c0_31] : memref<4x32x8xf32, #tpu.memory_space<vmem>>, vector<1x32x8xf32>
      %50 = vector.shape_cast %49 : vector<1x32x8xf32> to vector<32x8xf32>
      %51 = vector.broadcast %48 : vector<32x1xf32> to vector<32x8xf32>
      %52 = arith.mulf %50, %51 : vector<32x8xf32>
      %53 = tpu.concatenate %22, %32, %42, %52 in 1 : vector<32x8xf32>, vector<32x8xf32>, vector<32x8xf32>, vector<32x8xf32> -> vector<32x32xf32>
      %c0_32 = arith.constant 0 : index
      %c0_33 = arith.constant 0 : index
      %54 = vector.load %arg7[%c0_32, %c0_33] : memref<1x32xf32, #tpu.memory_space<vmem>>, vector<1x32xf32>
      %55 = vector.broadcast %54 : vector<1x32xf32> to vector<32x32xf32>
      %56 = arith.addf %53, %55 : vector<32x32xf32>
      %cst_34 = arith.constant 0.000000e+00 : f32
      %57 = vector.broadcast %cst_34 : f32 to vector<32x32xf32>
      %58 = arith.cmpf ogt, %56, %57 : vector<32x32xf32>
      %cst_35 = arith.constant 0.00999999977 : f32
      %59 = vector.broadcast %cst_35 : f32 to vector<32x32xf32>
      %60 = arith.mulf %59, %56 : vector<32x32xf32>
      %61 = arith.select %58, %56, %60 : vector<32x32xi1>, vector<32x32xf32>
      %cst_36 = arith.constant dense<0.000000e+00> : vector<32xf32>
      %62 = vector.multi_reduction <add>, %61, %cst_36 [1] : vector<32x32xf32> to vector<32xf32>
      %63 = vector.shape_cast %62 : vector<32xf32> to vector<32x1xf32>
      %cst_37 = arith.constant 3.200000e+01 : f32
      %64 = vector.broadcast %cst_37 : f32 to vector<32x1xf32>
      %65 = arith.divf %63, %64 : vector<32x1xf32>
      %66 = vector.broadcast %65 : vector<32x1xf32> to vector<32x32xf32>
      %67 = arith.subf %61, %66 : vector<32x32xf32>
      %68 = arith.mulf %67, %67 : vector<32x32xf32>
      %cst_38 = arith.constant dense<0.000000e+00> : vector<32xf32>
      %69 = vector.multi_reduction <add>, %68, %cst_38 [1] : vector<32x32xf32> to vector<32xf32>
      %70 = vector.shape_cast %69 : vector<32xf32> to vector<32x1xf32>
      %cst_39 = arith.constant 3.200000e+01 : f32
      %71 = vector.broadcast %cst_39 : f32 to vector<32x1xf32>
      %72 = arith.divf %70, %71 : vector<32x1xf32>
      %73 = vector.broadcast %65 : vector<32x1xf32> to vector<32x32xf32>
      %74 = arith.subf %61, %73 : vector<32x32xf32>
      %cst_40 = arith.constant 9.99999974E-6 : f32
      %75 = vector.broadcast %cst_40 : f32 to vector<32x1xf32>
      %76 = arith.addf %72, %75 : vector<32x1xf32>
      %77 = math.rsqrt %76 : vector<32x1xf32>
      %78 = vector.broadcast %77 : vector<32x1xf32> to vector<32x32xf32>
      %79 = arith.mulf %74, %78 : vector<32x32xf32>
      %c0_41 = arith.constant 0 : index
      %c0_42 = arith.constant 0 : index
      %80 = vector.load %arg8[%c0_41, %c0_42] : memref<1x32xf32, #tpu.memory_space<vmem>>, vector<1x32xf32>
      %81 = vector.broadcast %80 : vector<1x32xf32> to vector<32x32xf32>
      %82 = arith.mulf %79, %81 : vector<32x32xf32>
      %c0_43 = arith.constant 0 : index
      %c0_44 = arith.constant 0 : index
      %83 = vector.load %arg9[%c0_43, %c0_44] : memref<1x32xf32, #tpu.memory_space<vmem>>, vector<1x32xf32>
      %84 = vector.broadcast %83 : vector<1x32xf32> to vector<32x32xf32>
      %85 = arith.addf %82, %84 : vector<32x32xf32>
      %cst_45 = arith.constant 0.000000e+00 : f32
      %86 = vector.broadcast %cst_45 : f32 to vector<32x32xf32>
      %87 = arith.subf %86, %85 : vector<32x32xf32>
      %88 = math.exp %87 : vector<32x32xf32>
      %cst_46 = arith.constant 1.000000e+00 : f32
      %89 = vector.broadcast %cst_46 : f32 to vector<32x32xf32>
      %90 = arith.addf %89, %88 : vector<32x32xf32>
      %cst_47 = arith.constant 1.000000e+00 : f32
      %91 = vector.broadcast %cst_47 : f32 to vector<32x32xf32>
      %92 = arith.divf %91, %90 : vector<32x32xf32>
      %c0_48 = arith.constant 0 : index
      %c0_49 = arith.constant 0 : index
      %93 = vector.load %arg14[%c0_48, %c0_49] : memref<32x32xf32, #tpu.memory_space<vmem>>, vector<32x32xf32>
      tpu.vector_store %arg14[%c0_48, %c0_49], %92 {strides = array<i32>} : memref<32x32xf32, #tpu.memory_space<vmem>>, vector<32x32xf32>,
      %c0_50 = arith.constant 0 : index
      %c0_51 = arith.constant 0 : index
      %94 = vector.load %arg10[%c0_50, %c0_51] : memref<32x64xf32, #tpu.memory_space<vmem>>, vector<32x64xf32>
      %cst_52 = arith.constant dense<0.000000e+00> : vector<32x64xf32>
      %95 = tpu.matmul %92, %94, %cst_52 {dimension_numbers = #tpu.dot_dimension_numbers<[1], [0], [0], [1], [0, 0, 1, 1], [], []>} : vector<32x32xf32>, vector<32x64xf32>, vector<32x64xf32> -> vector<32x64xf32>
      %c0_53 = arith.constant 0 : index
      %c0_54 = arith.constant 0 : index
      %96 = vector.load %arg11[%c0_53, %c0_54] : memref<1x64xf32, #tpu.memory_space<vmem>>, vector<1x64xf32>
      %97 = vector.broadcast %96 : vector<1x64xf32> to vector<32x64xf32>
      %98 = arith.addf %95, %97 : vector<32x64xf32>
      %cst_55 = arith.constant 0.000000e+00 : f32
      %99 = vector.broadcast %cst_55 : f32 to vector<32x64xf32>
      %100 = arith.maximumf %98, %99 : vector<32x64xf32>
      %c0_56 = arith.constant 0 : index
      %c0_57 = arith.constant 0 : index
      %101 = vector.load %arg12[%c0_56, %c0_57] : memref<64x32xf32, #tpu.memory_space<vmem>>, vector<64x32xf32>
      %cst_58 = arith.constant dense<0.000000e+00> : vector<32x32xf32>
      %102 = tpu.matmul %100, %101, %cst_58 {dimension_numbers = #tpu.dot_dimension_numbers<[1], [0], [0], [1], [0, 0, 1, 1], [], []>} : vector<32x64xf32>, vector<64x32xf32>, vector<32x32xf32> -> vector<32x32xf32>
      %c0_59 = arith.constant 0 : index
      %c0_60 = arith.constant 0 : index
      %103 = vector.load %arg13[%c0_59, %c0_60] : memref<1x32xf32, #tpu.memory_space<vmem>>, vector<1x32xf32>
      %104 = vector.broadcast %103 : vector<1x32xf32> to vector<32x32xf32>
      %105 = arith.addf %102, %104 : vector<32x32xf32>
      %c0_61 = arith.constant 0 : index
      %c0_62 = arith.constant 0 : index
      %106 = vector.load %arg15[%c0_61, %c0_62] : memref<32x32xf32, #tpu.memory_space<vmem>>, vector<32x32xf32>
      tpu.vector_store %arg15[%c0_61, %c0_62], %105 {strides = array<i32>} : memref<32x32xf32, #tpu.memory_space<vmem>>, vector<32x32xf32>,
      %c0_63 = arith.constant 0 : index
      %c0_64 = arith.constant 0 : index
      %c0_65 = arith.constant 0 : index
      %107 = vector.load %arg17[%c0_63, %c0_64, %c0_65] : memref<4x32x1xf32, #tpu.memory_space<vmem>>, vector<1x32x1xf32>
      %108 = vector.shape_cast %107 : vector<1x32x1xf32> to vector<32x1xf32>
      %c1_66 = arith.constant 1 : index
      %c0_67 = arith.constant 0 : index
      %c0_68 = arith.constant 0 : index
      %109 = vector.load %arg17[%c1_66, %c0_67, %c0_68] : memref<4x32x1xf32, #tpu.memory_space<vmem>>, vector<1x32x1xf32>
      %110 = vector.shape_cast %109 : vector<1x32x1xf32> to vector<32x1xf32>
      %c2_69 = arith.constant 2 : index
      %c0_70 = arith.constant 0 : index
      %c0_71 = arith.constant 0 : index
      %111 = vector.load %arg17[%c2_69, %c0_70, %c0_71] : memref<4x32x1xf32, #tpu.memory_space<vmem>>, vector<1x32x1xf32>
      %112 = vector.shape_cast %111 : vector<1x32x1xf32> to vector<32x1xf32>
      %c3_72 = arith.constant 3 : index
      %c0_73 = arith.constant 0 : index
      %c0_74 = arith.constant 0 : index
      %113 = vector.load %arg17[%c3_72, %c0_73, %c0_74] : memref<4x32x1xf32, #tpu.memory_space<vmem>>, vector<1x32x1xf32>
      %114 = vector.shape_cast %113 : vector<1x32x1xf32> to vector<32x1xf32>
      %c0_75 = arith.constant 0 : index
      %c0_76 = arith.constant 0 : index
      %c0_77 = arith.constant 0 : index
      %115 = vector.load %arg18[%c0_75, %c0_76, %c0_77] : memref<4x32x1xf32, #tpu.memory_space<vmem>>, vector<1x32x1xf32>
      %116 = vector.shape_cast %115 : vector<1x32x1xf32> to vector<32x1xf32>
      %c1_78 = arith.constant 1 : index
      %c0_79 = arith.constant 0 : index
      %c0_80 = arith.constant 0 : index
      %117 = vector.load %arg18[%c1_78, %c0_79, %c0_80] : memref<4x32x1xf32, #tpu.memory_space<vmem>>, vector<1x32x1xf32>
      %118 = vector.shape_cast %117 : vector<1x32x1xf32> to vector<32x1xf32>
      %c2_81 = arith.constant 2 : index
      %c0_82 = arith.constant 0 : index
      %c0_83 = arith.constant 0 : index
      %119 = vector.load %arg18[%c2_81, %c0_82, %c0_83] : memref<4x32x1xf32, #tpu.memory_space<vmem>>, vector<1x32x1xf32>
      %120 = vector.shape_cast %119 : vector<1x32x1xf32> to vector<32x1xf32>
      %c3_84 = arith.constant 3 : index
      %c0_85 = arith.constant 0 : index
      %c0_86 = arith.constant 0 : index
      %121 = vector.load %arg18[%c3_84, %c0_85, %c0_86] : memref<4x32x1xf32, #tpu.memory_space<vmem>>, vector<1x32x1xf32>
      %122 = vector.shape_cast %121 : vector<1x32x1xf32> to vector<32x1xf32>
      %123 = tpu.concatenate %108, %110, %112, %114, %116, %118, %120, %122 in 1 : vector<32x1xf32>, vector<32x1xf32>, vector<32x1xf32>, vector<32x1xf32>, vector<32x1xf32>, vector<32x1xf32>, vector<32x1xf32>, vector<32x1xf32> -> vector<32x8xf32>
      %c0_87 = arith.constant 0 : index
      %c0_88 = arith.constant 0 : index
      %124 = vector.load %arg16[%c0_87, %c0_88] : memref<32x8xf32, #tpu.memory_space<vmem>>, vector<32x8xf32>
      tpu.vector_store %arg16[%c0_87, %c0_88], %123 {strides = array<i32>} : memref<32x8xf32, #tpu.memory_space<vmem>>, vector<32x8xf32>,
    } else {
    }
    return
  }
  func.func @transform_0(%arg0: i32, %arg1: i32, %arg2: memref<1xi32, #tpu.memory_space<smem>>) -> (i32, i32) {
    %c0_i32 = arith.constant 0 : i32
    return %arg0, %arg1 : i32, i32
  }
  func.func @transform_1(%arg0: i32, %arg1: i32, %arg2: memref<1xi32, #tpu.memory_space<smem>>) -> (i32, i32, i32) {
    %c0_i32 = arith.constant 0 : i32
    %c0_i32_0 = arith.constant 0 : i32
    %c0_i32_1 = arith.constant 0 : i32
    return %c0_i32, %arg1, %c0_i32_0 : i32, i32, i32
  }
  func.func @transform_2(%arg0: i32, %arg1: i32, %arg2: memref<1xi32, #tpu.memory_space<smem>>) -> (i32, i32, i32) {
    %c0_i32 = arith.constant 0 : i32
    %c0_i32_0 = arith.constant 0 : i32
    %c0_i32_1 = arith.constant 0 : i32
    return %c0_i32, %c0_i32_0, %arg1 : i32, i32, i32
  }
  func.func @transform_3(%arg0: i32, %arg1: i32, %arg2: memref<1xi32, #tpu.memory_space<smem>>) -> (i32, i32, i32) {
    %c0_i32 = arith.constant 0 : i32
    %c0_i32_0 = arith.constant 0 : i32
    %c0_i32_1 = arith.constant 0 : i32
    return %c0_i32, %arg0, %c0_i32_0 : i32, i32, i32
  }
  func.func @transform_4(%arg0: i32, %arg1: i32, %arg2: memref<1xi32, #tpu.memory_space<smem>>) -> (i32, i32) {
    %c0_i32 = arith.constant 0 : i32
    %c0_i32_0 = arith.constant 0 : i32
    %c0_i32_1 = arith.constant 0 : i32
    return %c0_i32, %c0_i32_0 : i32, i32
  }
  func.func @transform_5(%arg0: i32, %arg1: i32, %arg2: memref<1xi32, #tpu.memory_space<smem>>) -> (i32, i32) {
    %c0_i32 = arith.constant 0 : i32
    %c0_i32_0 = arith.constant 0 : i32
    %c0_i32_1 = arith.constant 0 : i32
    return %c0_i32, %c0_i32_0 : i32, i32
  }
  func.func @transform_6(%arg0: i32, %arg1: i32, %arg2: memref<1xi32, #tpu.memory_space<smem>>) -> (i32, i32) {
    %c0_i32 = arith.constant 0 : i32
    %c0_i32_0 = arith.constant 0 : i32
    %c0_i32_1 = arith.constant 0 : i32
    return %c0_i32, %c0_i32_0 : i32, i32
  }
  func.func @transform_7(%arg0: i32, %arg1: i32, %arg2: memref<1xi32, #tpu.memory_space<smem>>) -> (i32, i32) {
    %c0_i32 = arith.constant 0 : i32
    %c0_i32_0 = arith.constant 0 : i32
    %c0_i32_1 = arith.constant 0 : i32
    return %c0_i32, %c0_i32_0 : i32, i32
  }
  func.func @transform_8(%arg0: i32, %arg1: i32, %arg2: memref<1xi32, #tpu.memory_space<smem>>) -> (i32, i32) {
    %c0_i32 = arith.constant 0 : i32
    %c0_i32_0 = arith.constant 0 : i32
    %c0_i32_1 = arith.constant 0 : i32
    return %c0_i32, %c0_i32_0 : i32, i32
  }
  func.func @transform_9(%arg0: i32, %arg1: i32, %arg2: memref<1xi32, #tpu.memory_space<smem>>) -> (i32, i32) {
    %c0_i32 = arith.constant 0 : i32
    %c0_i32_0 = arith.constant 0 : i32
    %c0_i32_1 = arith.constant 0 : i32
    return %c0_i32, %c0_i32_0 : i32, i32
  }
  func.func @transform_10(%arg0: i32, %arg1: i32, %arg2: memref<1xi32, #tpu.memory_space<smem>>) -> (i32, i32) {
    %c0_i32 = arith.constant 0 : i32
    %c0_i32_0 = arith.constant 0 : i32
    %c0_i32_1 = arith.constant 0 : i32
    return %c0_i32, %c0_i32_0 : i32, i32
  }
  func.func @transform_11(%arg0: i32, %arg1: i32, %arg2: memref<1xi32, #tpu.memory_space<smem>>) -> (i32, i32) {
    %c0_i32 = arith.constant 0 : i32
    %c0_i32_0 = arith.constant 0 : i32
    return %arg0, %c0_i32 : i32, i32
  }
  func.func @transform_12(%arg0: i32, %arg1: i32, %arg2: memref<1xi32, #tpu.memory_space<smem>>) -> (i32, i32) {
    %c0_i32 = arith.constant 0 : i32
    %c0_i32_0 = arith.constant 0 : i32
    return %arg0, %c0_i32 : i32, i32
  }
  func.func @transform_13(%arg0: i32, %arg1: i32, %arg2: memref<1xi32, #tpu.memory_space<smem>>) -> (i32, i32) {
    %c0_i32 = arith.constant 0 : i32
    %c0_i32_0 = arith.constant 0 : i32
    return %arg0, %c0_i32 : i32, i32
  }
}

</mosaic_0001>

<bundles_post_ra>
// kernel: graph_merfish_forward.4
= control target key start
LH: loop header
LB: loop body
LE: loop exit
PB: predicated region body
PF: predicated region fallthrough
CT: control target
= control target key end

     0   :  { %vm21_vm0 = vcmask 261120   ;;  %vm67_vm1 = vcmask 257024   ;;  %s118_s27 = smov 96   ;;  %vm88_vm2 = vcmask 64512   ;;  %s187_s1 = inlined_call_operand.vmem [shape: f32[32,40], index: 1, kind: input, shape index: {}]   ;;  %s188_s0 = inlined_call_operand.vmem [shape: f32[32,32], index: 0, kind: input, shape index: {}]   ;;  %s189_s2 = inlined_call_operand.vmem [shape: bf16[32,32], index: 2, kind: output, shape index: {0}]   ;;  %s190_s3 = inlined_call_operand.vmem [shape: f32[32,8], index: 3, kind: output, shape index: {1}]  }
   0x1   :  { %v20_v0 = vld [vmem:[%s187_s1 + $0x18] sm:$0xff]  ;;  %v19_v1 = vld [vmem:[%s187_s1 + $0x10] sm:$0xff]  ;;  %v18_v2 = vld [vmem:[%s187_s1 + $0x8] sm:$0xff] }
   0x2   :  { %106 = vmatpush.msra.mxu2 %v20_v0  ;;  %46 = vmatpush.msra.mxu0 %v20_v0  ;;  %v17_v3 = vld [vmem:[%s187_s1] sm:$0xff]  ;;  %v15_v4 = vld [vmem:[%s188_s0 + $0x10] sm:$0xff]  ;;  %v16_v6 = vld [vmem:[%s188_s0 + $0x18] sm:$0xff] }
   0x3   :  { %107 = vmatpush.msra.mxu3 %v20_v0  ;;  %105 = vmatpush.msra.mxu1 %v20_v0  ;;  %v13_v5 = vld [vmem:[%s188_s0] sm:$0xff]  ;;  %v14_v7 = vld [vmem:[%s188_s0 + $0x8] sm:$0xff] }
   0x4   :  { %109 = vmatpush.msra.mxu2 %v19_v1  ;;  %47 = vmatpush.msra.mxu0 %v19_v1 }
   0x5   :  { %110 = vmatpush.msra.mxu3 %v19_v1  ;;  %108 = vmatpush.msra.mxu1 %v19_v1 }
   0x6   :  { %112 = vmatpush.msra.mxu2 %v18_v2  ;;  %48 = vmatpush.msra.mxu0 %v18_v2 }
   0x7   :  { %113 = vmatpush.msra.mxu3 %v18_v2  ;;  %111 = vmatpush.msra.mxu1 %v18_v2 }
   0x8   :  { %115 = vmatpush.msra.mxu2 %v17_v3  ;;  %49 = vmatpush.msra.mxu0 %v17_v3 }
   0x9   :  { %103 = vmatmul.msk.f32.vlgmr.msra.gmra.mxu2 %vm21_vm0, %v15_v4  ;;  %101 = vmatmul.msk.f32.vlgmr.msra.gmra.mxu0 %vm21_vm0, %v13_v5 }
   0xa   :  { %116 = vmatpush.msra.mxu3 %v17_v3  ;;  %114 = vmatpush.msra.mxu1 %v17_v3 }
   0xb   :  { %104 = vmatmul.msk.f32.vlgmr.msra.gmra.mxu3 %vm21_vm0, %v16_v6  ;;  %102 = vmatmul.msk.f32.vlgmr.msra.gmra.mxu1 %vm21_vm0, %v14_v7 }
  0x86   :  { %v51_v8 = vpop.f32.mrf.mxu0 }
  0x87   :  { %v63_v9 = vpack.c.bf16 %v51_v8, %v51_v8  ;;  %76 = vrot.lane.b32.xlu0 %v51_v8, %s118_s27 }
  0x88   :  { %v54_v10 = vpop.f32.mrf.mxu1 }
  0x89   :  { %68 = vst.msk [vmem:[%s189_s2] sm:$0xf] %vm67_vm1, %v63_v9  ;;  %v64_v11 = vpack.c.bf16 %v54_v10, %v54_v10 }
  0x8b   :  { %69 = vst.msk [vmem:[%s189_s2 + $0x4] sm:$0xf] %vm67_vm1, %v64_v11 }
  0x8c   :  { %v57_v12 = vpop.f32.mrf.mxu2 }
  0x8d   :  { %v65_v13 = vpack.c.bf16 %v57_v12, %v57_v12  ;;  %80 = vrot.lane.b32.xlu1 %v57_v12, %s118_s27 }
  0x8e   :  { %v60_v14 = vpop.f32.mrf.mxu3 }
  0x8f   :  { %70 = vst.msk [vmem:[%s189_s2 + $0x8] sm:$0xf] %vm67_vm1, %v65_v13  ;;  %v66_v15 = vpack.c.bf16 %v60_v14, %v60_v14  ;;  %78 = vrot.lane.b32.xlu0 %v54_v10, %s118_s27 }
  0x91   :  { %71 = vst.msk [vmem:[%s189_s2 + $0xc] sm:$0xf] %vm67_vm1, %v66_v15 }
  0x95   :  { %82 = vrot.lane.b32.xlu1 %v60_v14, %s118_s27 }
  0xf9   :  { %v77_v16 = vpop.permute.xlu0 %76 }
  0xfa   :  { %89 = vst.msk [vmem:[%s190_s3] sm:$0xff] %vm88_vm2, %v77_v16 }
  0xff   :  { %v81_v17 = vpop.permute.xlu1 %80 }
 0x100   :  { %91 = vst.msk [vmem:[%s190_s3 + $0x10] sm:$0xff] %vm88_vm2, %v81_v17 }
 0x101   :  { %v79_v18 = vpop.permute.xlu0 %78 }
 0x102   :  { %90 = vst.msk [vmem:[%s190_s3 + $0x8] sm:$0xff] %vm88_vm2, %v79_v18 }
 0x107   :  { %v83_v19 = vpop.permute.xlu1 %82 }
 0x108   :  { %92 = vst.msk [vmem:[%s190_s3 + $0x18] sm:$0xff] %vm88_vm2, %v83_v19 }

// kernel: graph_merfish_forward.5
= control target key start
LH: loop header
LB: loop body
LE: loop exit
PB: predicated region body
PF: predicated region fallthrough
CT: control target
= control target key end

     0   :  { %vm35_vm0 = vcmask 7168   ;;  %v2033_v0 = vmov -inf   ;;  %v2034_v1 = vmov 0.0   ;;  %vm3197_vm1 = vcmask 64512   ;;  %s3187_s0 = inlined_call_operand.<no memory space> [shape: s32[1], index: 0, kind: input, shape index: {}]   ;;  %s3188_s1 = inlined_call_operand.vmem [shape: s8[32,32], index: 1, kind: input, shape index: {}]   ;;  %s3189_s2 = inlined_call_operand.vmem [shape: bf16[4,32,8], index: 2, kind: input, shape index: {}]   ;;  %s3190_s3 = inlined_call_operand.vmem [shape: f32[4,1,32], index: 3, kind: input, shape index: {}]   ;;  %s3191_s4 = inlined_call_operand.vmem [shape: f32[4,32,1], index: 4, kind: input, shape index: {}]   ;;  %s3192_s5 = inlined_call_operand.vmem [shape: f32[1,32], index: 5, kind: input, shape index: {}]   ;;  %s3193_s6 = inlined_call_operand.vmem [shape: f32[1,32], index: 6, kind: input, shape index: {}]   ;;  %s3194_s7 = inlined_call_operand.vmem [shape: f32[1,32], index: 7, kind: input, shape index: {}]   ;;  %s3195_s8 = inlined_call_operand.vmem [shape: f32[32,32], index: 8, kind: output, shape index: {0}]   ;;  %s3196_s9 = inlined_call_operand.vmem [shape: f32[32,8], index: 9, kind: output, shape index: {1}]  }
   0x1   :  { %36 = vst.msk [vmem:[#allocation2] sm:$0xff] %vm35_vm0, %v2033_v0  ;;  %p1810_p0 = scmp.le.s32.totalorder %s3187_s0, 0 }
   0x2   :  { %37 = vst.msk [vmem:[#allocation2 + $0x8] sm:$0xff] %vm35_vm0, %v2033_v0 }
   0x3   :  { %38 = vst.msk [vmem:[#allocation2 + $0x10] sm:$0xff] %vm35_vm0, %v2033_v0 }
   0x4   :  { %39 = vst.msk [vmem:[#allocation2 + $0x18] sm:$0xff] %vm35_vm0, %v2033_v0 }
   0x5   :  { %40 = vst.msk [vmem:[#allocation2 + $0x20] sm:$0xff] %vm35_vm0, %v2033_v0 }
   0x6   :  { %41 = vst.msk [vmem:[#allocation2 + $0x28] sm:$0xff] %vm35_vm0, %v2033_v0 }
   0x7   :  { %42 = vst.msk [vmem:[#allocation2 + $0x30] sm:$0xff] %vm35_vm0, %v2033_v0 }
   0x8   :  { %43 = vst.msk [vmem:[#allocation2 + $0x38] sm:$0xff] %vm35_vm0, %v2033_v0 }
   0x9   :  { %44 = vst.msk [vmem:[#allocation2 + $0x40] sm:$0xff] %vm35_vm0, %v2033_v0 }
   0xa   :  { %45 = vst.msk [vmem:[#allocation2 + $0x48] sm:$0xff] %vm35_vm0, %v2033_v0 }
   0xb   :  { %46 = vst.msk [vmem:[#allocation2 + $0x50] sm:$0xff] %vm35_vm0, %v2033_v0 }
   0xc   :  { %47 = vst.msk [vmem:[#allocation2 + $0x58] sm:$0xff] %vm35_vm0, %v2033_v0 }
   0xd   :  { %48 = vst.msk [vmem:[#allocation2 + $0x60] sm:$0xff] %vm35_vm0, %v2033_v0 }
   0xe   :  { %49 = vst.msk [vmem:[#allocation2 + $0x68] sm:$0xff] %vm35_vm0, %v2033_v0 }
   0xf   :  { %50 = vst.msk [vmem:[#allocation2 + $0x70] sm:$0xff] %vm35_vm0, %v2033_v0 }
  0x10   :  { %51 = vst.msk [vmem:[#allocation2 + $0x78] sm:$0xff] %vm35_vm0, %v2033_v0 }
  0x11   :  { %52 = vst.msk [vmem:[#allocation3] sm:$0xff] %vm35_vm0, %v2034_v1 }
  0x12   :  { %53 = vst.msk [vmem:[#allocation3 + $0x8] sm:$0xff] %vm35_vm0, %v2034_v1 }
  0x13   :  { %54 = vst.msk [vmem:[#allocation3 + $0x10] sm:$0xff] %vm35_vm0, %v2034_v1 }
  0x14   :  { %55 = vst.msk [vmem:[#allocation3 + $0x18] sm:$0xff] %vm35_vm0, %v2034_v1 }
  0x15   :  { %56 = vst.msk [vmem:[#allocation3 + $0x20] sm:$0xff] %vm35_vm0, %v2034_v1 }
  0x16   :  { %57 = vst.msk [vmem:[#allocation3 + $0x28] sm:$0xff] %vm35_vm0, %v2034_v1 }
  0x17   :  { %58 = vst.msk [vmem:[#allocation3 + $0x30] sm:$0xff] %vm35_vm0, %v2034_v1 }
  0x18   :  { %59 = vst.msk [vmem:[#allocation3 + $0x38] sm:$0xff] %vm35_vm0, %v2034_v1 }
  0x19   :  { %60 = vst.msk [vmem:[#allocation3 + $0x40] sm:$0xff] %vm35_vm0, %v2034_v1 }
  0x1a   :  { %61 = vst.msk [vmem:[#allocation3 + $0x48] sm:$0xff] %vm35_vm0, %v2034_v1 }
  0x1b   :  { %62 = vst.msk [vmem:[#allocation3 + $0x50] sm:$0xff] %vm35_vm0, %v2034_v1 }
  0x1c   :  { %63 = vst.msk [vmem:[#allocation3 + $0x58] sm:$0xff] %vm35_vm0, %v2034_v1 }
  0x1d   :  { %64 = vst.msk [vmem:[#allocation3 + $0x60] sm:$0xff] %vm35_vm0, %v2034_v1 }
  0x1e   :  { %65 = vst.msk [vmem:[#allocation3 + $0x68] sm:$0xff] %vm35_vm0, %v2034_v1 }
  0x1f   :  { %66 = vst.msk [vmem:[#allocation3 + $0x70] sm:$0xff] %vm35_vm0, %v2034_v1 }
  0x20   :  { %67 = vst.msk [vmem:[#allocation3 + $0x78] sm:$0xff] %vm35_vm0, %v2034_v1 }
  0x21   :  { %69 = vst.msk [vmem:[#allocation4] sm:$0xff] %vm3197_vm1, %v2034_v1 }
  0x22   :  { %70 = vst.msk [vmem:[#allocation4 + $0x8] sm:$0xff] %vm3197_vm1, %v2034_v1 }
  0x23   :  { %71 = vst.msk [vmem:[#allocation4 + $0x10] sm:$0xff] %vm3197_vm1, %v2034_v1 }
  0x24   :  { %72 = vst.msk [vmem:[#allocation4 + $0x18] sm:$0xff] %vm3197_vm1, %v2034_v1 }
  0x25   :  { %73 = vst.msk [vmem:[#allocation4 + $0x20] sm:$0xff] %vm3197_vm1, %v2034_v1 }
  0x26   :  { %74 = vst.msk [vmem:[#allocation4 + $0x28] sm:$0xff] %vm3197_vm1, %v2034_v1 }
  0x27   :  { %75 = vst.msk [vmem:[#allocation4 + $0x30] sm:$0xff] %vm3197_vm1, %v2034_v1 }
  0x28   :  { %76 = vst.msk [vmem:[#allocation4 + $0x38] sm:$0xff] %vm3197_vm1, %v2034_v1 }
  0x29   :  { %77 = vst.msk [vmem:[#allocation4 + $0x40] sm:$0xff] %vm3197_vm1, %v2034_v1 }
  0x2a   :  { %78 = vst.msk [vmem:[#allocation4 + $0x48] sm:$0xff] %vm3197_vm1, %v2034_v1 }
  0x2b   :  { %79 = vst.msk [vmem:[#allocation4 + $0x50] sm:$0xff] %vm3197_vm1, %v2034_v1 }
  0x2c   :  { %80 = vst.msk [vmem:[#allocation4 + $0x58] sm:$0xff] %vm3197_vm1, %v2034_v1  ;;  %90 = sbr.rel (%p1810_p0) target bundleno = 1011 (0x3f3), region = 37 }
  0x2d   :  { %81 = vst.msk [vmem:[#allocation4 + $0x60] sm:$0xff] %vm3197_vm1, %v2034_v1 }
  0x2e   :  { %82 = vst.msk [vmem:[#allocation4 + $0x68] sm:$0xff] %vm3197_vm1, %v2034_v1 }
  0x2f   :  { %83 = vst.msk [vmem:[#allocation4 + $0x70] sm:$0xff] %vm3197_vm1, %v2034_v1 }
  0x30   :  { %84 = vst.msk [vmem:[#allocation4 + $0x78] sm:$0xff] %vm3197_vm1, %v2034_v1 }
  0x31   :  { %v113_v2 = vld [vmem:[%s3191_s4 + $0x10] sm:$0xff]  ;;  %v111_v3 = vld [vmem:[%s3191_s4] sm:$0xff]  ;;  %v2035_v4 = vmov 0   ;;  %v114_v6 = vld [vmem:[%s3191_s4 + $0x18] sm:$0xff]  ;;  %vm163_vm4 = vcmask 261120  }
  0x32   :  { %1915 = vset.pattern.permute.xlu1 %v2035_v4  ;;  %1914 = vset.pattern.permute.xlu0 %v2035_v4  ;;  %v1827_v5 = vld [vmem:[%s3191_s4 + $0x30] sm:$0xff]  ;;  %v112_v7 = vld [vmem:[%s3191_s4 + $0x8] sm:$0xff]  ;;  %v1825_v8 = vld [vmem:[%s3191_s4 + $0x20] sm:$0xff] }
  0x33   :  { %128 = vperm.xlu1 %1915, %v113_v2   ;;  %118 = vperm.xlu0 %1914, %v111_v3   ;;  %v1826_v9 = vld [vmem:[%s3191_s4 + $0x28] sm:$0xff]  ;;  %v1828_v10 = vld [vmem:[%s3191_s4 + $0x38] sm:$0xff]  ;;  %v1891_v11 = vld [vmem:[%s3188_s1] sm:$0xff]  }
  0x34   :  { %1916 = vset.pattern.permute.xlu2 %v2035_v4  ;;  %v1892_v12 = vunpack.c.0.s8 %v1891_v11  ;;  %v1896_v13 = vunpack.c.2.s8 %v1891_v11  ;;  %v1917_v16 = vld [vmem:[%s3190_s3] ss:$0 sm:$0xff]  ;;  %v1897_v18 = vunpack.c.3.s8 %v1891_v11  ;;  %v1893_v20 = vunpack.c.1.s8 %v1891_v11  ;;  %v1918_v47 = vld [vmem:[%s3190_s3 + $0x1] ss:$0 sm:$0xff]  ;;  %v1845_v2 = vld [vmem:[%s3191_s4 + $0x48] sm:$0xff] }
  0x35   :  { %356 = vperm.xlu2 %1916, %v1827_v5   ;;  %v1863_v3 = vld [vmem:[%s3191_s4 + $0x60] sm:$0xff] }
  0x36   :  { %v99_v14 = vcvt.s32.f32 %v1892_v12  ;;  %v101_v15 = vcvt.s32.f32 %v1896_v13  ;;  %v102_v26 = vcvt.s32.f32 %v1897_v18  ;;  %v100_v28 = vcvt.s32.f32 %v1893_v20  ;;  %v1844_v4 = vld [vmem:[%s3191_s4 + $0x40] sm:$0xff]  ;;  %v2239_v18 = vld [vmem:[#allocation2 + $0x10] sm:$0xff] }
  0x38   :  { %v1811_v17 = vadd.f32 -1.0, %v99_v14  ;;  %v1813_v19 = vadd.f32 -1.0, %v101_v15  ;;  %v1814_v34 = vadd.f32 -1.0, %v102_v26  ;;  %v1812_v36 = vadd.f32 -1.0, %v100_v28 }
  0x3a   :  { %v2179_v25 = vmul.f32 1e+30, %v1811_v17  ;;  %v2181_v27 = vmul.f32 1e+30, %v1813_v19  ;;  %v2193_v43 = vmul.f32 1e+30, %v1814_v34 }
  0x3b   :  { %133 = vperm.xlu1 %1915, %v114_v6   ;;  %123 = vperm.xlu0 %1914, %v112_v7   ;;  %v2195_v44 = vmul.f32 1e+30, %v1812_v36  ;;  %v159_v17 = vld [vmem:[#allocation2] sm:$0xff] }
  0x3c   :  { %v2271_v34 = vld [vmem:[#allocation2 + $0x20] sm:$0xff] }
  0x43   :  { %346 = vperm.xlu1 %1915, %v1825_v8   ;;  %351 = vperm.xlu0 %1914, %v1826_v9  }
  0x4b   :  { %361 = vperm.xlu1 %1915, %v1828_v10  }
  0x8f   :  { %v357_v5 = vpop.permute.xlu2 %356 }
  0x90   :  { %v369_v6 = vadd.f32 %v1918_v47, %v357_v5 }
  0x92   :  { %v377_v8 = vmul.f32 0.2, %v369_v6  ;;  %vm373_vm9 = vcmp.gt.f32.partialorder %v369_v6, 0.0 }
  0x94   :  { %v381_v10 = vsel %vm373_vm9, %v369_v6, %v377_v8  ;;  %v1866_v8 = vld [vmem:[%s3191_s4 + $0x78] sm:$0xff] }
  0x95   :  { %v2230_v12 = vadd.f32 %v381_v10, %v2181_v27  ;;  %v2326_v10 = vld [vmem:[#allocation2 + $0x30] sm:$0xff] }
  0x97   :  { %v398_v14 = vsel %vm163_vm4, %v2230_v12, -inf }
  0xa5   :  { %v129_v21 = vpop.permute.xlu1 %128  ;;  %v119_v22 = vpop.permute.xlu0 %118 }
  0xa6   :  { %v141_v23 = vadd.f32 %v1917_v16, %v129_v21  ;;  %v139_v24 = vadd.f32 %v1917_v16, %v119_v22 }
  0xa8   :  { %vm145_vm2 = vcmp.gt.f32.partialorder %v141_v23, 0.0  ;;  %v149_v29 = vmul.f32 0.2, %v141_v23  ;;  %vm143_vm3 = vcmp.gt.f32.partialorder %v139_v24, 0.0  ;;  %v147_v30 = vmul.f32 0.2, %v139_v24 }
  0xaa   :  { %v151_v31 = vsel %vm143_vm3, %v139_v24, %v147_v30  ;;  %v153_v32 = vsel %vm145_vm2, %v141_v23, %v149_v29  ;;  %v2250_v23 = vld [vmem:[#allocation2 + $0x18] sm:$0xff]  ;;  %v2252_v24 = vld [vmem:[#allocation2 + $0x8] sm:$0xff] }
  0xab   :  { %v2184_v33 = vadd.f32 %v151_v31, %v2179_v25  ;;  %v2187_v35 = vadd.f32 %v153_v32, %v2181_v27  ;;  %v2267_v31 = vld [vmem:[%s3190_s3 + $0x2] ss:$0 sm:$0xff]  ;;  %v2269_v32 = vld [vmem:[#allocation2 + $0x28] sm:$0xff] }
  0xad   :  { %v134_v37 = vpop.permute.xlu1 %133  ;;  %v124_v38 = vpop.permute.xlu0 %123  ;;  %v164_v39 = vsel %vm163_vm4, %v2184_v33, -inf  ;;  %v170_v40 = vsel %vm163_vm4, %v2187_v35, -inf }
  0xae   :  { %v142_v41 = vadd.f32 %v1917_v16, %v134_v37  ;;  %v140_v42 = vadd.f32 %v1917_v16, %v124_v38  ;;  %165 = vmax.xlane.f32.xlu2 %v164_v39  ;;  %171 = vmax.xlane.f32.xlu0 %v170_v40 }
  0xb0   :  { %vm146_vm5 = vcmp.gt.f32.partialorder %v142_v41, 0.0  ;;  %v150_v45 = vmul.f32 0.2, %v142_v41  ;;  %vm144_vm6 = vcmp.gt.f32.partialorder %v140_v42, 0.0  ;;  %v148_v46 = vmul.f32 0.2, %v140_v42 }
  0xb2   :  { %v154_v48 = vsel %vm146_vm5, %v142_v41, %v150_v45  ;;  %v152_v49 = vsel %vm144_vm6, %v140_v42, %v148_v46 }
  0xb3   :  { %v2201_v50 = vadd.f32 %v154_v48, %v2193_v43  ;;  %v2204_v51 = vadd.f32 %v152_v49, %v2195_v44 }
  0xb5   :  { %v347_v52 = vpop.permute.xlu1 %346  ;;  %v352_v53 = vpop.permute.xlu0 %351  ;;  %v173_v54 = vsel %vm163_vm4, %v2201_v50, -inf  ;;  %v167_v55 = vsel %vm163_vm4, %v2204_v51, -inf }
  0xb6   :  { %v367_v56 = vadd.f32 %v1918_v47, %v347_v52  ;;  %v368_v57 = vadd.f32 %v1918_v47, %v352_v53  ;;  %174 = vmax.xlane.f32.xlu1 %v173_v54  ;;  %168 = vmax.xlane.f32.xlu2 %v167_v55  ;;  %v2296_v52 = vld [vmem:[%s3190_s3 + $0x3] ss:$0 sm:$0xff] }
  0xb8   :  { %vm371_vm7 = vcmp.gt.f32.partialorder %v367_v56, 0.0  ;;  %v375_v58 = vmul.f32 0.2, %v367_v56  ;;  %vm372_vm8 = vcmp.gt.f32.partialorder %v368_v57, 0.0  ;;  %v376_v59 = vmul.f32 0.2, %v368_v57 }
  0xba   :  { %v380_v60 = vsel %vm372_vm8, %v368_v57, %v376_v59  ;;  %v379_v61 = vsel %vm371_vm7, %v367_v56, %v375_v58 }
  0xbb   :  { %v2211_v62 = vadd.f32 %v380_v60, %v2195_v44  ;;  %v2214_v63 = vadd.f32 %v379_v61, %v2179_v25 }
  0xbd   :  { %v395_v0 = vsel %vm163_vm4, %v2211_v62, -inf  ;;  %v392_v1 = vsel %vm163_vm4, %v2214_v63, -inf  ;;  %v362_v7 = vpop.permute.xlu1 %361 }
  0xbe   :  { %396 = vmax.xlane.f32.xlu1 %v395_v0  ;;  %393 = vmax.xlane.f32.xlu0 %v392_v1  ;;  %v370_v9 = vadd.f32 %v1918_v47, %v362_v7 }
  0xc0   :  { %v378_v11 = vmul.f32 0.2, %v370_v9  ;;  %vm374_vm10 = vcmp.gt.f32.partialorder %v370_v9, 0.0 }
  0xc2   :  { %v382_v13 = vsel %vm374_vm10, %v370_v9, %v378_v11 }
  0xc3   :  { %v2235_v15 = vadd.f32 %v382_v13, %v2193_v43 }
  0xc5   :  { %v401_v16 = vsel %vm163_vm4, %v2235_v15, -inf }
  0xce   :  { %580 = vperm.xlu2 %1916, %v1845_v2   ;;  %v1864_v2 = vld [vmem:[%s3191_s4 + $0x68] sm:$0xff] }
  0xd2   :  { %804 = vperm.xlu0 %1914, %v1863_v3  }
  0xd7   :  { %575 = vperm.xlu1 %1915, %v1844_v4   ;;  %v1865_v4 = vld [vmem:[%s3191_s4 + $0x70] sm:$0xff] }
  0xf7   :  { %399 = vmax.xlane.f32.xlu2 %v398_v14 }
  0xfc   :  { %402 = vmax.xlane.f32.xlu0 %v401_v16  ;;  %v2336_v16 = vld [vmem:[#allocation2 + $0x38] sm:$0xff] }
 0x121   :  { %v166_v19 = vpop.xlane.xlu2 %165  ;;  %v172_v20 = vpop.xlane.xlu0 %171 }
 0x122   :  { %v2241_v21 = vmax.f32 %v159_v17, %v166_v19  ;;  %v2244_v22 = vmax.f32 %v2239_v18, %v172_v20 }
 0x124   :  { %333 = vst.msk [vmem:[#allocation2] sm:$0xff] %vm35_vm0, %v2241_v21  ;;  %v180_v5 = vsub.f32 %v159_v17, %v2241_v21  ;;  %v182_v7 = vsub.f32 %v2239_v18, %v2244_v22 }
 0x125   :  { %335 = vst.msk [vmem:[#allocation2 + $0x10] sm:$0xff] %vm35_vm0, %v2244_v22 }
 0x126   :  { %v184_v6 = vmul.f32 1.442695, %v180_v5  ;;  %v188_v9 = vmul.f32 1.442695, %v182_v7 }
 0x128   :  { %1921 = vpow2.f32 %v184_v6 }
 0x129   :  { %v175_v26 = vpop.xlane.xlu1 %174  ;;  %v169_v28 = vpop.xlane.xlu2 %168  ;;  %1923 = vpow2.f32 %v188_v9 }
 0x12a   :  { %v2255_v29 = vmax.f32 %v2250_v23, %v175_v26  ;;  %v2258_v30 = vmax.f32 %v2252_v24, %v169_v28 }
 0x12c   :  { %336 = vst.msk [vmem:[#allocation2 + $0x18] sm:$0xff] %vm35_vm0, %v2255_v29  ;;  %v181_v20 = vsub.f32 %v2252_v24, %v2258_v30 }
 0x12d   :  { %334 = vst.msk [vmem:[#allocation2 + $0x8] sm:$0xff] %vm35_vm0, %v2258_v30 }
 0x12e   :  { %v2328_v11 = vpop.eup %1921  ;;  %v186_v28 = vmul.f32 1.442695, %v181_v20 }
 0x12f   :  { %v2342_v19 = vpop.eup %1923 }
 0x130   :  { %1925 = vpow2.f32 %v186_v28 }
 0x131   :  { %v397_v36 = vpop.xlane.xlu1 %396  ;;  %v581_v37 = vpop.permute.xlu2 %580 }
 0x132   :  { %v2274_v38 = vmax.f32 %v2269_v32, %v397_v36  ;;  %v597_v39 = vadd.f32 %v2267_v31, %v581_v37  ;;  %v394_v40 = vpop.xlane.xlu0 %393 }
 0x133   :  { %v2278_v41 = vmax.f32 %v2271_v34, %v394_v40 }
 0x134   :  { %563 = vst.msk [vmem:[#allocation2 + $0x28] sm:$0xff] %vm35_vm0, %v2274_v38  ;;  %vm601_vm11 = vcmp.gt.f32.partialorder %v597_v39, 0.0  ;;  %v605_v45 = vmul.f32 0.2, %v597_v39 }
 0x135   :  { %v408_v46 = vsub.f32 %v2271_v34, %v2278_v41  ;;  %562 = vst.msk [vmem:[#allocation2 + $0x20] sm:$0xff] %vm35_vm0, %v2278_v41  ;;  %v183_v34 = vsub.f32 %v2250_v23, %v2255_v29 }
 0x136   :  { %v609_v47 = vsel %vm601_vm11, %v597_v39, %v605_v45  ;;  %v2354_v37 = vpop.eup %1925 }
 0x137   :  { %v2289_v48 = vadd.f32 %v609_v47, %v2195_v44  ;;  %v190_v36 = vmul.f32 1.442695, %v183_v34  ;;  %v412_v24 = vmul.f32 1.442695, %v408_v46  ;;  %v2370_v47 = vld [vmem:[#allocation2 + $0x60] sm:$0xff] }
 0x139   :  { %v624_v49 = vsel %vm163_vm4, %v2289_v48, -inf  ;;  %1927 = vpow2.f32 %v190_v36 }
 0x13a   :  { %625 = vmax.xlane.f32.xlu1 %v624_v49  ;;  %1929 = vpow2.f32 %v412_v24 }
 0x13f   :  { %v2357_v39 = vpop.eup %1927 }
 0x140   :  { %v2360_v40 = vpop.eup %1929 }
 0x144   :  { %v805_v53 = vpop.permute.xlu0 %804 }
 0x145   :  { %v825_v54 = vadd.f32 %v2296_v52, %v805_v53 }
 0x147   :  { %vm829_vm12 = vcmp.gt.f32.partialorder %v825_v54, 0.0  ;;  %v833_v55 = vmul.f32 0.2, %v825_v54 }
 0x149   :  { %v576_v56 = vpop.permute.xlu1 %575  ;;  %v837_v57 = vsel %vm829_vm12, %v825_v54, %v833_v55  ;;  %v2379_v54 = vld [vmem:[#allocation2 + $0x40] sm:$0xff] }
 0x14a   :  { %v596_v58 = vadd.f32 %v2267_v31, %v576_v56  ;;  %v2301_v59 = vadd.f32 %v837_v57, %v2179_v25 }
 0x14c   :  { %vm600_vm13 = vcmp.gt.f32.partialorder %v596_v58, 0.0  ;;  %v604_v60 = vmul.f32 0.2, %v596_v58  ;;  %v850_v61 = vsel %vm163_vm4, %v2301_v59, -inf }
 0x14d   :  { %851 = vmax.xlane.f32.xlu0 %v850_v61  ;;  %v1885_v61 = vld [vmem:[%s3189_s2 + $0x18] sm:$0xff] }
 0x14e   :  { %v608_v0 = vsel %vm600_vm13, %v596_v58, %v604_v60  ;;  %541 = vmatpush.bf16.msra.mxu1 %v1885_v61 }
 0x14f   :  { %v2306_v1 = vadd.f32 %v608_v0, %v2179_v25  ;;  %v1846_v25 = vld [vmem:[%s3191_s4 + $0x50] sm:$0xff] }
 0x151   :  { %v621_v3 = vsel %vm163_vm4, %v2306_v1, -inf }
 0x152   :  { %622 = vmax.xlane.f32.xlu2 %v621_v3 }
 0x153   :  { %809 = vperm.xlu1 %1915, %v1864_v2  }
 0x15b   :  { %814 = vperm.xlu1 %1915, %v1865_v4   ;;  %v1884_v4 = vld [vmem:[%s3189_s2 + $0x10] sm:$0xff] }
 0x15c   :  { %542 = vmatpush.bf16.msra.mxu1 %v1884_v4 }
 0x161   :  { %585 = vperm.xlu0 %1914, %v1846_v25  }
 0x163   :  { %422 = vperm.xlu1 %1915, %v2278_v41   ;;  %v2363_v41 = vld [vmem:[#allocation2 + $0x48] sm:$0xff] }
 0x169   :  { %819 = vperm.xlu0 %1914, %v1866_v8  }
 0x16a   :  { %v400_v13 = vpop.xlane.xlu2 %399 }
 0x16b   :  { %v2331_v14 = vmax.f32 %v2326_v10, %v400_v13  ;;  %259 = vperm.xlu1 %1915, %v2328_v11  }
 0x16d   :  { %564 = vst.msk [vmem:[#allocation2 + $0x30] sm:$0xff] %vm35_vm0, %v2331_v14 }
 0x16f   :  { %v403_v17 = vpop.xlane.xlu0 %402 }
 0x170   :  { %v2339_v18 = vmax.f32 %v2336_v16, %v403_v17 }
 0x171   :  { %427 = vperm.xlu0 %1914, %v2274_v38  }
 0x172   :  { %v411_v26 = vsub.f32 %v2336_v16, %v2339_v18  ;;  %565 = vst.msk [vmem:[#allocation2 + $0x38] sm:$0xff] %vm35_vm0, %v2339_v18 }
 0x173   :  { %269 = vperm.xlu1 %1915, %v2342_v19  }
 0x179   :  { %437 = vperm.xlu0 %1914, %v2339_v18  }
 0x181   :  { %264 = vperm.xlu0 %1914, %v2354_v37  }
 0x189   :  { %274 = vperm.xlu0 %1914, %v2357_v39  }
 0x191   :  { %488 = vperm.xlu0 %1914, %v2360_v40  }
 0x1ad   :  { %v626_v23 = vpop.xlane.xlu1 %625 }
 0x1ae   :  { %v2366_v45 = vmax.f32 %v2363_v41, %v626_v23 }
 0x1b0   :  { %792 = vst.msk [vmem:[#allocation2 + $0x48] sm:$0xff] %vm35_vm0, %v2366_v45 }
 0x1c0   :  { %v852_v46 = vpop.xlane.xlu0 %851 }
 0x1c1   :  { %v2373_v49 = vmax.f32 %v2370_v47, %v852_v46 }
 0x1c3   :  { %v866_v53 = vsub.f32 %v2370_v47, %v2373_v49  ;;  %1020 = vst.msk [vmem:[#allocation2 + $0x60] sm:$0xff] %vm35_vm0, %v2373_v49 }
 0x1c5   :  { %v810_v55 = vpop.permute.xlu1 %809  ;;  %v623_v56 = vpop.xlane.xlu2 %622 }
 0x1c6   :  { %v826_v57 = vadd.f32 %v2296_v52, %v810_v55  ;;  %v2383_v58 = vmax.f32 %v2379_v54, %v623_v56  ;;  %v1847_v56 = vld [vmem:[%s3191_s4 + $0x58] sm:$0xff] }
 0x1c8   :  { %vm830_vm14 = vcmp.gt.f32.partialorder %v826_v57, 0.0  ;;  %v834_v60 = vmul.f32 0.2, %v826_v57  ;;  %791 = vst.msk [vmem:[#allocation2 + $0x40] sm:$0xff] %vm35_vm0, %v2383_v58 }
 0x1ca   :  { %v838_v0 = vsel %vm830_vm14, %v826_v57, %v834_v60 }
 0x1cb   :  { %v2391_v2 = vadd.f32 %v838_v0, %v2195_v44 }
 0x1cd   :  { %v853_v3 = vsel %vm163_vm4, %v2391_v2, -inf  ;;  %v815_v5 = vpop.permute.xlu1 %814 }
 0x1ce   :  { %854 = vmax.xlane.f32.xlu2 %v853_v3 }
 0x1d3   :  { %v586_v25 = vpop.permute.xlu0 %585 }
 0x1d4   :  { %v598_v6 = vadd.f32 %v2267_v31, %v586_v25 }
 0x1d5   :  { %v423_v17 = vpop.permute.xlu1 %422 }
 0x1d6   :  { %vm602_vm15 = vcmp.gt.f32.partialorder %v598_v6, 0.0  ;;  %v606_v7 = vmul.f32 0.2, %v598_v6  ;;  %v440_v34 = vsub.f32 %v2214_v63, %v423_v17 }
 0x1d8   :  { %v610_v8 = vsel %vm602_vm15, %v598_v6, %v606_v7  ;;  %v444_v23 = vmul.f32 1.442695, %v440_v34  ;;  %v2436_v6 = vld [vmem:[#allocation2 + $0x68] sm:$0xff] }
 0x1d9   :  { %v2400_v9 = vadd.f32 %v610_v8, %v2181_v27 }
 0x1da   :  { %1931 = vpow2.f32 %v444_v23 }
 0x1db   :  { %v820_v44 = vpop.permute.xlu0 %819  ;;  %v627_v13 = vsel %vm163_vm4, %v2400_v9, -inf }
 0x1dc   :  { %v828_v20 = vadd.f32 %v2296_v52, %v820_v44  ;;  %628 = vmax.xlane.f32.xlu1 %v627_v13 }
 0x1de   :  { %vm832_vm2 = vcmp.gt.f32.partialorder %v828_v20, 0.0  ;;  %v836_v28 = vmul.f32 0.2, %v828_v20 }
 0x1e0   :  { %v840_v36 = vsel %vm832_vm2, %v828_v20, %v836_v28  ;;  %v2415_v63 = vpop.eup %1931  ;;  %v2454_v20 = vld [vmem:[#allocation2 + $0x50] sm:$0xff] }
 0x1e1   :  { %v2407_v24 = vadd.f32 %v840_v36, %v2193_v43 }
 0x1e3   :  { %v428_v46 = vpop.permute.xlu0 %427  ;;  %v859_v55 = vsel %vm163_vm4, %v2407_v24, -inf }
 0x1e4   :  { %v441_v57 = vsub.f32 %v2211_v62, %v428_v46  ;;  %860 = vmax.xlane.f32.xlu1 %v859_v55  ;;  %v827_v62 = vadd.f32 %v2296_v52, %v815_v5 }
 0x1e6   :  { %v446_v60 = vmul.f32 1.442695, %v441_v57  ;;  %590 = vperm.xlu2 %1916, %v1847_v56   ;;  %v835_v3 = vmul.f32 0.2, %v827_v62  ;;  %vm831_vm3 = vcmp.gt.f32.partialorder %v827_v62, 0.0  ;;  %v2469_v56 = vld [vmem:[#allocation2 + $0x78] sm:$0xff] }
 0x1e8   :  { %1933 = vpow2.f32 %v446_v60 }
 0x1eb   :  { %v438_v13 = vpop.permute.xlu0 %437 }
 0x1ee   :  { %v2417_v61 = vpop.eup %1933  ;;  %194 = vperm.xlu2 %1916, %v2241_v21   ;;  %v839_v21 = vsel %vm831_vm3, %v827_v62, %v835_v3 }
 0x1ef   :  { %v510_v0 = vpack.c.bf16 %v2417_v61, %v2415_v63  ;;  %v2430_v4 = vadd.f32 %v839_v21, %v2181_v27  ;;  %v1882_v27 = vld [vmem:[%s3189_s2] sm:$0xff] }
 0x1f1   :  { %1842 = vmatmul.msk.bf16.vlgmr.msra.gmra.mxu1 %vm163_vm4, %v510_v0  ;;  %v856_v25 = vsel %vm163_vm4, %v2430_v4, -inf }
 0x1f3   :  { %v2471_v57 = vpop.permute.xlu0 %264 }
 0x1f6   :  { %199 = vperm.xlu2 %1916, %v2258_v30   ;;  %v2434_v30 = vpop.permute.xlu1 %259 }
 0x1fd   :  { %880 = vperm.xlu1 %1915, %v2373_v49  }
 0x1fe   :  { %204 = vperm.xlu2 %1916, %v2244_v22   ;;  %v1883_v22 = vld [vmem:[%s3189_s2 + $0x8] sm:$0xff]  ;;  %v2451_v7 = vpop.permute.xlu1 %269 }
 0x1ff   :  { %311 = vmatpush.bf16.msra.mxu0 %v1883_v22 }
 0x203   :  { %312 = vmatpush.bf16.msra.mxu0 %v1882_v27 }
 0x206   :  { %209 = vperm.xlu2 %1916, %v2255_v29  }
 0x20e   :  { %432 = vperm.xlu2 %1916, %v2331_v14  }
 0x237   :  { %857 = vmax.xlane.f32.xlu2 %v856_v25 }
 0x241   :  { %v855_v29 = vpop.xlane.xlu2 %854 }
 0x242   :  { %v2442_v52 = vmax.f32 %v2436_v6, %v855_v29 }
 0x244   :  { %v867_v5 = vsub.f32 %v2436_v6, %v2442_v52  ;;  %1021 = vst.msk [vmem:[#allocation2 + $0x68] sm:$0xff] %vm35_vm0, %v2442_v52 }
 0x249   :  { %v591_v8 = vpop.permute.xlu2 %590 }
 0x24a   :  { %v599_v44 = vadd.f32 %v2267_v31, %v591_v8 }
 0x24c   :  { %vm603_vm5 = vcmp.gt.f32.partialorder %v599_v44, 0.0  ;;  %v607_v17 = vmul.f32 0.2, %v599_v44 }
 0x24e   :  { %v611_v28 = vsel %vm603_vm5, %v599_v44, %v607_v17 }
 0x24f   :  { %v629_v34 = vpop.xlane.xlu1 %628  ;;  %656 = vperm.xlu2 %1916, %v2366_v45   ;;  %v2458_v36 = vadd.f32 %v611_v28, %v2193_v43 }
 0x250   :  { %v2461_v23 = vmax.f32 %v2454_v20, %v629_v34  ;;  %v482_v34 = vld [vmem:[#allocation4 + $0x20] sm:$0xff] }
 0x251   :  { %v195_v46 = vpop.permute.xlu2 %194  ;;  %v630_v55 = vsel %vm163_vm4, %v2458_v36, -inf }
 0x252   :  { %v639_v31 = vsub.f32 %v2454_v20, %v2461_v23  ;;  %793 = vst.msk [vmem:[#allocation2 + $0x50] sm:$0xff] %vm35_vm0, %v2461_v23  ;;  %631 = vmax.xlane.f32.xlu0 %v630_v55  ;;  %v212_v43 = vsub.f32 %v2184_v33, %v195_v46  ;;  %v2484_v33 = vpop.permute.xlu0 %274  ;;  %v637_v20 = vsub.f32 %v2379_v54, %v2383_v58 }
 0x254   :  { %v216_v3 = vmul.f32 1.442695, %v212_v43 }
 0x256   :  { %1935 = vpow2.f32 %v216_v3 }
 0x257   :  { %v861_v60 = vpop.xlane.xlu1 %860  ;;  %661 = vperm.xlu2 %1916, %v2461_v23  }
 0x258   :  { %v2476_v0 = vmax.f32 %v2469_v56, %v861_v60  ;;  %v443_v60 = vsub.f32 %v2235_v15, %v438_v13 }
 0x259   :  { %v200_v62 = vpop.permute.xlu2 %199 }
 0x25a   :  { %v869_v21 = vsub.f32 %v2469_v56, %v2476_v0  ;;  %1023 = vst.msk [vmem:[#allocation2 + $0x78] sm:$0xff] %vm35_vm0, %v2476_v0  ;;  %v213_v25 = vsub.f32 %v2204_v51, %v200_v62  ;;  %v489_v46 = vpop.permute.xlu0 %488 }
 0x25b   :  { %v506_v62 = vmul.f32 %v489_v46, %v482_v34  ;;  %v2510_v46 = vld [vmem:[#allocation2 + $0x70] sm:$0xff] }
 0x25c   :  { %v218_v22 = vmul.f32 1.442695, %v213_v25  ;;  %v2486_v27 = vpop.eup %1935  ;;  %v450_v25 = vmul.f32 1.442695, %v443_v60 }
 0x25e   :  { %1937 = vpow2.f32 %v218_v22 }
 0x25f   :  { %895 = vperm.xlu2 %1916, %v2476_v0  }
 0x261   :  { %v205_v29 = vpop.permute.xlu2 %204 }
 0x262   :  { %v214_v44 = vsub.f32 %v2187_v35, %v205_v29 }
 0x264   :  { %v2488_v8 = vpop.eup %1937  ;;  %v220_v51 = vmul.f32 1.442695, %v214_v44 }
 0x265   :  { %v281_v17 = vpack.c.bf16 %v2488_v8, %v2486_v27 }
 0x266   :  { %651 = vperm.xlu0 %1914, %v2383_v58   ;;  %1939 = vpow2.f32 %v220_v51 }
 0x267   :  { %1823 = vmatmul.msk.bf16.vlgmr.msra.gmra.mxu0 %vm163_vm4, %v281_v17 }
 0x269   :  { %v210_v28 = vpop.permute.xlu2 %209 }
 0x26a   :  { %v215_v55 = vsub.f32 %v2201_v50, %v210_v28 }
 0x26c   :  { %v222_v43 = vmul.f32 1.442695, %v215_v55  ;;  %v1940_v44 = vpop.eup %1939 }
 0x26d   :  { %v238_v34 = vsel %vm163_vm4, %v1940_v44, 0.0 }
 0x26e   :  { %1941 = vpow2.f32 %v222_v43  ;;  %v544_v35 = vpop.f32.mrf.mxu1  ;;  %885 = vperm.xlu0 %1914, %v2442_v52   ;;  %v3198_v52 = vsub.f32 %v2269_v32, %v2274_v38 }
 0x26f   :  { %v554_v3 = vadd.f32 %v544_v35, %v506_v62  ;;  %1943 = vpow2.f32 %v450_v25 }
 0x271   :  { %558 = vst.msk [vmem:[#allocation4 + $0x20] sm:$0xff] %vm3197_vm1, %v554_v3  ;;  %v433_v22 = vpop.permute.xlu2 %432 }
 0x272   :  { %v442_v29 = vsub.f32 %v2230_v12, %v433_v22  ;;  %v1887_v22 = vld [vmem:[%s3189_s2 + $0x28] sm:$0xff] }
 0x273   :  { %770 = vmatpush.bf16.msra.mxu2 %v1887_v22  ;;  %v881_v22 = vpop.permute.xlu1 %880 }
 0x274   :  { %v2500_v17 = vpop.eup %1941  ;;  %v448_v50 = vmul.f32 1.442695, %v442_v29  ;;  %v1886_v29 = vld [vmem:[%s3189_s2 + $0x20] sm:$0xff] }
 0x275   :  { %v282_v15 = vpack.c.bf16 %v2500_v17, %v1940_v44  ;;  %v2504_v13 = vpop.eup %1943  ;;  %v2527_v44 = vld [vmem:[#allocation2 + $0x58] sm:$0xff] }
 0x276   :  { %1945 = vpow2.f32 %v448_v50 }
 0x277   :  { %1824 = vmatmul.msk.bf16.gmra.mxu0 %vm163_vm4, %v282_v15  ;;  %771 = vmatpush.bf16.msra.mxu2 %v1886_v29 }
 0x27c   :  { %v1946_v51 = vpop.eup %1945 }
 0x27d   :  { %v511_v28 = vpack.c.bf16 %v2504_v13, %v1946_v51  ;;  %v467_v12 = vsel %vm163_vm4, %v1946_v51, 0.0 }
 0x27f   :  { %1843 = vmatmul.msk.bf16.gmra.mxu1 %vm163_vm4, %v511_v28  ;;  %v1889_v28 = vld [vmem:[%s3189_s2 + $0x38] sm:$0xff] }
 0x280   :  { %999 = vmatpush.bf16.msra.mxu3 %v1889_v28  ;;  %v461_v28 = vsel %vm163_vm4, %v2415_v63, 0.0  ;;  %v470_v63 = vsel %vm163_vm4, %v2504_v13, 0.0  ;;  %v410_v13 = vsub.f32 %v2326_v10, %v2331_v14  ;;  %v241_v10 = vsel %vm163_vm4, %v2500_v17, 0.0 }
 0x288   :  { %239 = vadd.xlane.f32.xlu2 %v238_v34 }
 0x290   :  { %468 = vadd.xlane.f32.xlu2 %v467_v12  ;;  %v1888_v12 = vld [vmem:[%s3189_s2 + $0x30] sm:$0xff] }
 0x291   :  { %1000 = vmatpush.bf16.msra.mxu3 %v1888_v12 }
 0x2aa   :  { %v858_v55 = vpop.xlane.xlu2 %857 }
 0x2ab   :  { %v2513_v43 = vmax.f32 %v2510_v46, %v858_v55 }
 0x2ad   :  { %1022 = vst.msk [vmem:[#allocation2 + $0x70] sm:$0xff] %vm35_vm0, %v2513_v43  ;;  %890 = vperm.xlu1 %1915, %v2513_v43  }
 0x2b2   :  { %v657_v62 = vpop.permute.xlu2 %656 }
 0x2b3   :  { %v670_v55 = vsub.f32 %v2289_v48, %v657_v62  ;;  %v253_v62 = vld [vmem:[#allocation4] sm:$0xff] }
 0x2b4   :  { %v277_v42 = vmul.f32 %v2434_v30, %v253_v62 }
 0x2ba   :  { %v662_v35 = vpop.permute.xlu2 %661 }
 0x2bb   :  { %v671_v3 = vsub.f32 %v2400_v9, %v662_v35  ;;  %v235_v35 = vsel %vm163_vm4, %v2488_v8, 0.0 }
 0x2bd   :  { %v677_v25 = vmul.f32 1.442695, %v671_v3  ;;  %v675_v3 = vmul.f32 1.442695, %v670_v55 }
 0x2bf   :  { %1947 = vpow2.f32 %v677_v25 }
 0x2c0   :  { %1949 = vpow2.f32 %v675_v3 }
 0x2c5   :  { %v2529_v50 = vpop.eup %1947  ;;  %v632_v15 = vpop.xlane.xlu0 %631 }
 0x2c6   :  { %v2532_v51 = vmax.f32 %v2527_v44, %v632_v15  ;;  %v696_v9 = vsel %vm163_vm4, %v2529_v50, 0.0 }
 0x2c7   :  { %697 = vadd.xlane.f32.xlu2 %v696_v9  ;;  %v898_v9 = vsub.f32 %v2301_v59, %v881_v22 }
 0x2c8   :  { %v640_v34 = vsub.f32 %v2527_v44, %v2532_v51  ;;  %794 = vst.msk [vmem:[#allocation2 + $0x58] sm:$0xff] %vm35_vm0, %v2532_v51  ;;  %666 = vperm.xlu0 %1914, %v2532_v51  }
 0x2c9   :  { %v902_v12 = vmul.f32 1.442695, %v898_v9  ;;  %v255_v9 = vld [vmem:[#allocation4 + $0x10] sm:$0xff] }
 0x2ca   :  { %v647_v54 = vmul.f32 1.442695, %v640_v34 }
 0x2d7   :  { %236 = vadd.xlane.f32.xlu1 %v235_v35  ;;  %v1950_v35 = vpop.eup %1949 }
 0x2d8   :  { %v652_v25 = vpop.permute.xlu0 %651 }
 0x2d9   :  { %v669_v29 = vsub.f32 %v2306_v1, %v652_v25  ;;  %v254_v25 = vld [vmem:[#allocation4 + $0x8] sm:$0xff] }
 0x2db   :  { %v673_v15 = vmul.f32 1.442695, %v669_v29  ;;  %v278_v29 = vmul.f32 %v2471_v57, %v254_v25  ;;  %v896_v57 = vpop.permute.xlu2 %895 }
 0x2dd   :  { %1951 = vpow2.f32 %v673_v15 }
 0x2de   :  { %1953 = vpow2.f32 %v902_v12  ;;  %v279_v12 = vmul.f32 %v2451_v7, %v255_v9  ;;  %v901_v9 = vsub.f32 %v2407_v24, %v896_v57  ;;  %v684_v57 = vld [vmem:[#allocation3 + $0x50] sm:$0xff] }
 0x2df   :  { %462 = vadd.xlane.f32.xlu1 %v461_v28  ;;  %v232_v28 = vsel %vm163_vm4, %v2486_v27, 0.0 }
 0x2e0   :  { %v886_v48 = vpop.permute.xlu0 %885 }
 0x2e1   :  { %v899_v8 = vsub.f32 %v2391_v2, %v886_v48  ;;  %v416_v48 = vmul.f32 1.442695, %v410_v13  ;;  %v870_v13 = vmul.f32 1.442695, %v866_v53 }
 0x2e3   :  { %v1952_v55 = vpop.eup %1951  ;;  %v904_v60 = vmul.f32 1.442695, %v899_v8 }
 0x2e4   :  { %v739_v1 = vpack.c.bf16 %v1950_v35, %v1952_v55  ;;  %v314_v59 = vpop.f32.mrf.mxu0  ;;  %v2560_v2 = vpop.eup %1953 }
 0x2e5   :  { %1955 = vpow2.f32 %v904_v60  ;;  %v324_v3 = vadd.f32 %v314_v59, %v277_v42  ;;  %v693_v42 = vsel %vm163_vm4, %v1950_v35, 0.0  ;;  %v226_v35 = vld [vmem:[#allocation3 + $0x10] sm:$0xff]  ;;  %v256_v59 = vld [vmem:[#allocation4 + $0x18] sm:$0xff] }
 0x2e6   :  { %1861 = vmatmul.msk.bf16.vlgmr.msra.gmra.mxu2 %vm163_vm4, %v739_v1  ;;  %1957 = vpow2.f32 %v416_v48  ;;  %v230_v14 = vmul.f32 %v2342_v19, %v226_v35  ;;  %v280_v7 = vmul.f32 %v2484_v33, %v256_v59  ;;  %v638_v19 = vsub.f32 %v2363_v41, %v2366_v45 }
 0x2e7   :  { %471 = vadd.xlane.f32.xlu1 %v470_v63  ;;  %329 = vst.msk [vmem:[#allocation4] sm:$0xff] %vm3197_vm1, %v324_v3  ;;  %v690_v33 = vsel %vm163_vm4, %v1952_v55, 0.0  ;;  %v876_v41 = vmul.f32 1.442695, %v869_v21  ;;  %v908_v55 = vmul.f32 1.442695, %v901_v9 }
 0x2e8   :  { %v645_v21 = vmul.f32 1.442695, %v639_v31  ;;  %v418_v48 = vmul.f32 1.442695, %v411_v26  ;;  %v641_v31 = vmul.f32 1.442695, %v637_v20 }
 0x2e9   :  { %v912_v9 = vld [vmem:[#allocation3 + $0x68] sm:$0xff] }
 0x2eb   :  { %v1956_v22 = vpop.eup %1955 }
 0x2ec   :  { %v968_v30 = vpack.c.bf16 %v1956_v22, %v2560_v2  ;;  %v316_v15 = vpop.f32.mrf.mxu0  ;;  %v922_v1 = vsel %vm163_vm4, %v1956_v22, 0.0  ;;  %v1958_v22 = vpop.eup %1957 }
 0x2ed   :  { %v325_v60 = vadd.f32 %v316_v15, %v278_v29  ;;  %v455_v29 = vld [vmem:[#allocation3 + $0x30] sm:$0xff] }
 0x2ee   :  { %1880 = vmatmul.msk.bf16.vlgmr.msra.gmra.mxu3 %vm163_vm4, %v968_v30  ;;  %v464_v30 = vsel %vm163_vm4, %v2417_v61, 0.0  ;;  %v459_v17 = vmul.f32 %v1958_v22, %v455_v29 }
 0x2ef   :  { %694 = vadd.xlane.f32.xlu1 %v693_v42  ;;  %330 = vst.msk [vmem:[#allocation4 + $0x8] sm:$0xff] %vm3197_vm1, %v325_v60  ;;  %v643_v42 = vmul.f32 1.442695, %v638_v19 }
 0x2f1   :  { %1959 = vpow2.f32 %v643_v42 }
 0x2f2   :  { %233 = vadd.xlane.f32.xlu0 %v232_v28  ;;  %1961 = vpow2.f32 %v870_v13 }
 0x2f3   :  { %1963 = vpow2.f32 %v876_v41 }
 0x2f4   :  { %v319_v62 = vpop.f32.mrf.mxu0  ;;  %1965 = vpow2.f32 %v908_v55  ;;  %v227_v55 = vld [vmem:[#allocation3 + $0x18] sm:$0xff] }
 0x2f5   :  { %v326_v8 = vadd.f32 %v319_v62, %v279_v12 }
 0x2f7   :  { %923 = vadd.xlane.f32.xlu1 %v922_v1  ;;  %331 = vst.msk [vmem:[#allocation4 + $0x10] sm:$0xff] %vm3197_vm1, %v326_v8  ;;  %v2589_v61 = vpop.eup %1959 }
 0x2f8   :  { %v2596_v45 = vpop.eup %1961 }
 0x2f9   :  { %v2600_v49 = vpop.eup %1963 }
 0x2fa   :  { %242 = vadd.xlane.f32.xlu0 %v241_v10  ;;  %v1966_v53 = vpop.eup %1965 }
 0x2fb   :  { %v240_v27 = vpop.xlane.xlu2 %239 }
 0x2fc   :  { %v246_v3 = vadd.f32 %v240_v27, %v230_v14  ;;  %v321_v63 = vpop.f32.mrf.mxu0  ;;  %v225_v14 = vld [vmem:[#allocation3 + $0x8] sm:$0xff] }
 0x2fd   :  { %v327_v25 = vadd.f32 %v321_v63, %v280_v7  ;;  %v229_v58 = vmul.f32 %v2354_v37, %v225_v14  ;;  %v872_v63 = vmul.f32 1.442695, %v867_v5  ;;  %v414_v5 = vmul.f32 1.442695, %v3198_v52  ;;  %v943_v52 = vld [vmem:[#allocation4 + $0x78] sm:$0xff] }
 0x2fe   :  { %251 = vst.msk [vmem:[#allocation3 + $0x10] sm:$0xff] %vm35_vm0, %v246_v3  ;;  %v453_v3 = vld [vmem:[#allocation3 + $0x20] sm:$0xff] }
 0x2ff   :  { %332 = vst.msk [vmem:[#allocation4 + $0x18] sm:$0xff] %vm3197_vm1, %v327_v25  ;;  %v457_v44 = vmul.f32 %v2360_v40, %v453_v3  ;;  %v928_v25 = vsel %vm163_vm4, %v1966_v53, 0.0  ;;  %v683_v40 = vld [vmem:[#allocation3 + $0x48] sm:$0xff] }
 0x302   :  { %465 = vadd.xlane.f32.xlu0 %v464_v30 }
 0x303   :  { %v469_v15 = vpop.xlane.xlu2 %468 }
 0x304   :  { %v475_v60 = vadd.f32 %v469_v15, %v459_v17  ;;  %v687_v17 = vmul.f32 %v2589_v61, %v683_v40  ;;  %v224_v15 = vld [vmem:[#allocation3] sm:$0xff] }
 0x306   :  { %479 = vst.msk [vmem:[#allocation3 + $0x30] sm:$0xff] %vm35_vm0, %v475_v60 }
 0x30a   :  { %691 = vadd.xlane.f32.xlu0 %v690_v33  ;;  %v228_v33 = vmul.f32 %v2328_v11, %v224_v15  ;;  %v3199_v11 = vsub.f32 %v2510_v46, %v2513_v43  ;;  %v484_v43 = vld [vmem:[#allocation4 + $0x30] sm:$0xff] }
 0x310   :  { %498 = vperm.xlu1 %1915, %v1958_v22  }
 0x318   :  { %722 = vperm.xlu1 %1915, %v2589_v61   ;;  %v231_v61 = vmul.f32 %v2357_v39, %v227_v55  ;;  %v682_v39 = vld [vmem:[#allocation3 + $0x40] sm:$0xff] }
 0x319   :  { %v911_v55 = vld [vmem:[#allocation3 + $0x60] sm:$0xff] }
 0x31f   :  { %v891_v28 = vpop.permute.xlu1 %890 }
 0x320   :  { %v900_v12 = vsub.f32 %v2430_v4, %v891_v28  ;;  %946 = vperm.xlu1 %1915, %v2596_v45  }
 0x322   :  { %v906_v47 = vmul.f32 1.442695, %v900_v12 }
 0x324   :  { %1967 = vpow2.f32 %v906_v47 }
 0x325   :  { %1969 = vpow2.f32 %v645_v21 }
 0x326   :  { %1971 = vpow2.f32 %v418_v48  ;;  %v2653_v48 = vpop.f32.mrf.mxu1 }
 0x328   :  { %961 = vperm.xlu1 %1915, %v2600_v49  }
 0x32a   :  { %v1968_v24 = vpop.eup %1967 }
 0x32b   :  { %v925_v56 = vsel %vm163_vm4, %v1968_v24, 0.0  ;;  %v969_v0 = vpack.c.bf16 %v1966_v53, %v1968_v24  ;;  %v2608_v4 = vpop.eup %1969  ;;  %v874_v53 = vmul.f32 1.442695, %v3199_v11  ;;  %v454_v24 = vld [vmem:[#allocation3 + $0x28] sm:$0xff] }
 0x32c   :  { %926 = vadd.xlane.f32.xlu2 %v925_v56  ;;  %v688_v62 = vmul.f32 %v2608_v4, %v684_v57  ;;  %v1972_v10 = vpop.eup %1971 }
 0x32d   :  { %1881 = vmatmul.msk.bf16.gmra.mxu3 %vm163_vm4, %v969_v0 }
 0x33a   :  { %v667_v8 = vpop.permute.xlu0 %666  ;;  %v698_v1 = vpop.xlane.xlu2 %697 }
 0x33b   :  { %v672_v35 = vsub.f32 %v2458_v36, %v667_v8  ;;  %v704_v59 = vadd.f32 %v698_v1, %v688_v62 }
 0x33d   :  { %v679_v23 = vmul.f32 1.442695, %v672_v35  ;;  %708 = vst.msk [vmem:[#allocation3 + $0x50] sm:$0xff] %vm35_vm0, %v704_v59  ;;  %v549_v59 = vpop.f32.mrf.mxu1 }
 0x33f   :  { %1973 = vpow2.f32 %v679_v23  ;;  %v712_v23 = vld [vmem:[#allocation4 + $0x48] sm:$0xff] }
 0x340   :  { %1975 = vpow2.f32 %v641_v31 }
 0x341   :  { %1977 = vpow2.f32 %v647_v54 }
 0x342   :  { %1979 = vpow2.f32 %v872_v63  ;;  %v485_v63 = vld [vmem:[#allocation4 + $0x38] sm:$0xff] }
 0x343   :  { %1981 = vpow2.f32 %v414_v5 }
 0x344   :  { %503 = vperm.xlu2 %1916, %v1972_v10   ;;  %1983 = vpow2.f32 %v874_v53 }
 0x345   :  { %v1974_v16 = vpop.eup %1973 }
 0x346   :  { %v699_v18 = vsel %vm163_vm4, %v1974_v16, 0.0  ;;  %v740_v26 = vpack.c.bf16 %v1974_v16, %v2529_v50  ;;  %v1976_v27 = vpop.eup %1975  ;;  %v919_v50 = vsel %vm163_vm4, %v2560_v2, 0.0  ;;  %v456_v2 = vld [vmem:[#allocation3 + $0x38] sm:$0xff] }
 0x347   :  { %700 = vadd.xlane.f32.xlu0 %v699_v18  ;;  %v2632_v37 = vpop.eup %1977  ;;  %v460_v22 = vmul.f32 %v1972_v10, %v456_v2  ;;  %v686_v62 = vmul.f32 %v1976_v27, %v682_v39 }
 0x348   :  { %1862 = vmatmul.msk.bf16.gmra.mxu2 %vm163_vm4, %v740_v26  ;;  %v1980_v30 = vpop.eup %1979  ;;  %v940_v26 = vld [vmem:[#allocation4 + $0x60] sm:$0xff] }
 0x349   :  { %v916_v41 = vmul.f32 %v1980_v30, %v912_v9  ;;  %v1982_v28 = vpop.eup %1981 }
 0x34a   :  { %v237_v36 = vpop.xlane.xlu1 %236  ;;  %v458_v56 = vmul.f32 %v1982_v28, %v454_v24  ;;  %v1984_v57 = vpop.eup %1983 }
 0x34b   :  { %v245_v7 = vadd.f32 %v237_v36, %v229_v58 }
 0x34c   :  { %717 = vperm.xlu2 %1916, %v1976_v27   ;;  %v913_v27 = vld [vmem:[#allocation3 + $0x70] sm:$0xff] }
 0x34d   :  { %250 = vst.msk [vmem:[#allocation3 + $0x8] sm:$0xff] %vm35_vm0, %v245_v7  ;;  %v917_v7 = vmul.f32 %v1984_v57, %v913_v27 }
 0x34f   :  { %920 = vadd.xlane.f32.xlu0 %v919_v50 }
 0x352   :  { %v463_v51 = vpop.xlane.xlu1 %462 }
 0x353   :  { %v473_v34 = vadd.f32 %v463_v51, %v457_v44 }
 0x354   :  { %732 = vperm.xlu2 %1916, %v2632_v37  }
 0x355   :  { %477 = vst.msk [vmem:[#allocation3 + $0x20] sm:$0xff] %vm35_vm0, %v473_v34 }
 0x357   :  { %929 = vadd.xlane.f32.xlu0 %v928_v25  ;;  %v551_v25 = vpop.f32.mrf.mxu1 }
 0x35a   :  { %v472_v29 = vpop.xlane.xlu1 %471 }
 0x35b   :  { %v476_v6 = vadd.f32 %v472_v29, %v460_v22  ;;  %v711_v22 = vld [vmem:[#allocation4 + $0x40] sm:$0xff] }
 0x35c   :  { %951 = vperm.xlu2 %1916, %v1980_v30  }
 0x35d   :  { %480 = vst.msk [vmem:[#allocation3 + $0x38] sm:$0xff] %vm35_vm0, %v476_v6 }
 0x362   :  { %v695_v60 = vpop.xlane.xlu1 %694 }
 0x363   :  { %v703_v19 = vadd.f32 %v695_v60, %v687_v17  ;;  %v685_v17 = vld [vmem:[#allocation3 + $0x58] sm:$0xff] }
 0x365   :  { %707 = vst.msk [vmem:[#allocation3 + $0x48] sm:$0xff] %vm35_vm0, %v703_v19  ;;  %v234_v42 = vpop.xlane.xlu0 %233 }
 0x366   :  { %v244_v13 = vadd.f32 %v234_v42, %v228_v33  ;;  %v689_v42 = vmul.f32 %v2632_v37, %v685_v17  ;;  %v914_v37 = vld [vmem:[#allocation3 + $0x78] sm:$0xff] }
 0x367   :  { %v918_v11 = vmul.f32 %v2600_v49, %v914_v37 }
 0x368   :  { %249 = vst.msk [vmem:[#allocation3] sm:$0xff] %vm35_vm0, %v244_v13 }
 0x369   :  { %v773_v1 = vpop.f32.mrf.mxu2 }
 0x36a   :  { %v924_v32 = vpop.xlane.xlu1 %923 }
 0x36b   :  { %v932_v38 = vadd.f32 %v924_v32, %v916_v41  ;;  %493 = vperm.xlu0 %1914, %v1982_v28   ;;  %v941_v41 = vld [vmem:[#allocation4 + $0x68] sm:$0xff] }
 0x36d   :  { %936 = vst.msk [vmem:[#allocation3 + $0x68] sm:$0xff] %vm35_vm0, %v932_v38  ;;  %v243_v12 = vpop.xlane.xlu0 %242  ;;  %v915_v38 = vmul.f32 %v2596_v45, %v911_v55  ;;  %v483_v45 = vld [vmem:[#allocation4 + $0x28] sm:$0xff] }
 0x36e   :  { %v247_v47 = vadd.f32 %v243_v12, %v231_v61 }
 0x370   :  { %252 = vst.msk [vmem:[#allocation3 + $0x18] sm:$0xff] %vm35_vm0, %v247_v47 }
 0x371   :  { %v775_v16 = vpop.f32.mrf.mxu2  ;;  %v1002_v58 = vpop.f32.mrf.mxu3 }
 0x373   :  { %727 = vperm.xlu0 %1914, %v2608_v4  }
 0x375   :  { %v466_v0 = vpop.xlane.xlu0 %465 }
 0x376   :  { %v474_v21 = vadd.f32 %v466_v0, %v458_v56  ;;  %v714_v0 = vld [vmem:[#allocation4 + $0x58] sm:$0xff] }
 0x378   :  { %478 = vst.msk [vmem:[#allocation3 + $0x28] sm:$0xff] %vm35_vm0, %v474_v21 }
 0x379   :  { %v1004_v51 = vpop.f32.mrf.mxu3 }
 0x37b   :  { %956 = vperm.xlu0 %1914, %v1984_v57  }
 0x37d   :  { %v692_v8 = vpop.xlane.xlu0 %691 }
 0x37e   :  { %v702_v46 = vadd.f32 %v692_v8, %v686_v62 }
 0x380   :  { %706 = vst.msk [vmem:[#allocation3 + $0x40] sm:$0xff] %vm35_vm0, %v702_v46 }
 0x382   :  { %v499_v35 = vpop.permute.xlu1 %498 }
 0x383   :  { %v508_v4 = vmul.f32 %v499_v35, %v484_v43  ;;  %v713_v43 = vld [vmem:[#allocation4 + $0x50] sm:$0xff] }
 0x385   :  { %v556_v20 = vadd.f32 %v549_v59, %v508_v4  ;;  %v942_v4 = vld [vmem:[#allocation4 + $0x70] sm:$0xff] }
 0x387   :  { %560 = vst.msk [vmem:[#allocation4 + $0x30] sm:$0xff] %vm3197_vm1, %v556_v20 }
 0x38a   :  { %v723_v31 = vpop.permute.xlu1 %722 }
 0x38b   :  { %v736_v10 = vmul.f32 %v723_v31, %v712_v23 }
 0x38d   :  { %v784_v18 = vadd.f32 %v775_v16, %v736_v10 }
 0x38f   :  { %788 = vst.msk [vmem:[#allocation4 + $0x48] sm:$0xff] %vm3197_vm1, %v784_v18 }
 0x392   :  { %v947_v14 = vpop.permute.xlu1 %946 }
 0x393   :  { %v964_v54 = vmul.f32 %v947_v14, %v940_v26 }
 0x395   :  { %v1012_v36 = vadd.f32 %v1002_v58, %v964_v54 }
 0x397   :  { %1016 = vst.msk [vmem:[#allocation4 + $0x60] sm:$0xff] %vm3197_vm1, %v1012_v36 }
 0x39a   :  { %v962_v5 = vpop.permute.xlu1 %961 }
 0x39b   :  { %v967_v15 = vmul.f32 %v962_v5, %v943_v52 }
 0x39f   :  { %v927_v50 = vpop.xlane.xlu2 %926 }
 0x3a0   :  { %v933_v3 = vadd.f32 %v927_v50, %v917_v7 }
 0x3a2   :  { %937 = vst.msk [vmem:[#allocation3 + $0x70] sm:$0xff] %vm35_vm0, %v933_v3 }
 0x3a7   :  { %v504_v44 = vpop.permute.xlu2 %503 }
 0x3a8   :  { %v509_v34 = vmul.f32 %v504_v44, %v485_v63 }
 0x3aa   :  { %v557_v2 = vadd.f32 %v551_v25, %v509_v34 }
 0x3ac   :  { %561 = vst.msk [vmem:[#allocation4 + $0x38] sm:$0xff] %vm3197_vm1, %v557_v2 }
 0x3af   :  { %v718_v29 = vpop.permute.xlu2 %717 }
 0x3b0   :  { %v735_v30 = vmul.f32 %v718_v29, %v711_v22  ;;  %v1007_v6 = vpop.f32.mrf.mxu3 }
 0x3b2   :  { %v783_v40 = vadd.f32 %v773_v1, %v735_v30 }
 0x3b4   :  { %787 = vst.msk [vmem:[#allocation4 + $0x40] sm:$0xff] %vm3197_vm1, %v783_v40 }
 0x3b7   :  { %v733_v60 = vpop.permute.xlu2 %732 }
 0x3b8   :  { %v1009_v19 = vpop.f32.mrf.mxu3  ;;  %v738_v21 = vmul.f32 %v733_v60, %v714_v0 }
 0x3b9   :  { %v1015_v33 = vadd.f32 %v1009_v19, %v967_v15 }
 0x3ba   :  { %v701_v13 = vpop.xlane.xlu0 %700 }
 0x3bb   :  { %1019 = vst.msk [vmem:[#allocation4 + $0x78] sm:$0xff] %vm3197_vm1, %v1015_v33  ;;  %v705_v9 = vadd.f32 %v701_v13, %v689_v42 }
 0x3bd   :  { %709 = vst.msk [vmem:[#allocation3 + $0x58] sm:$0xff] %vm35_vm0, %v705_v9 }
 0x3bf   :  { %v952_v28 = vpop.permute.xlu2 %951 }
 0x3c0   :  { %v965_v32 = vmul.f32 %v952_v28, %v941_v41 }
 0x3c2   :  { %v1013_v61 = vadd.f32 %v1004_v51, %v965_v32  ;;  %v921_v12 = vpop.xlane.xlu0 %920 }
 0x3c3   :  { %v931_v47 = vadd.f32 %v921_v12, %v915_v38 }
 0x3c4   :  { %1017 = vst.msk [vmem:[#allocation4 + $0x68] sm:$0xff] %vm3197_vm1, %v1013_v61 }
 0x3c5   :  { %935 = vst.msk [vmem:[#allocation3 + $0x60] sm:$0xff] %vm35_vm0, %v931_v47 }
 0x3ca   :  { %v930_v53 = vpop.xlane.xlu0 %929 }
 0x3cb   :  { %v934_v24 = vadd.f32 %v930_v53, %v918_v11  ;;  %v778_v56 = vpop.f32.mrf.mxu2 }
 0x3cd   :  { %938 = vst.msk [vmem:[#allocation3 + $0x78] sm:$0xff] %vm35_vm0, %v934_v24 }
 0x3d3   :  { %v780_v39 = vpop.f32.mrf.mxu2 }
 0x3d4   :  { %v786_v57 = vadd.f32 %v780_v39, %v738_v21 }
 0x3d6   :  { %790 = vst.msk [vmem:[#allocation4 + $0x58] sm:$0xff] %vm3197_vm1, %v786_v57 }
 0x3dd   :  { %v494_v62 = vpop.permute.xlu0 %493 }
 0x3de   :  { %v507_v8 = vmul.f32 %v494_v62, %v483_v45 }
 0x3e0   :  { %v555_v46 = vadd.f32 %v2653_v48, %v507_v8 }
 0x3e2   :  { %559 = vst.msk [vmem:[#allocation4 + $0x28] sm:$0xff] %vm3197_vm1, %v555_v46 }
 0x3e5   :  { %v728_v49 = vpop.permute.xlu0 %727 }
 0x3e6   :  { %v737_v1 = vmul.f32 %v728_v49, %v713_v43 }
 0x3e8   :  { %v785_v35 = vadd.f32 %v778_v56, %v737_v1 }
 0x3ea   :  { %789 = vst.msk [vmem:[#allocation4 + $0x50] sm:$0xff] %vm3197_vm1, %v785_v35 }
 0x3ed   :  { %v957_v59 = vpop.permute.xlu0 %956 }
 0x3ee   :  { %v966_v20 = vmul.f32 %v957_v59, %v942_v4 }
 0x3f0   :  { %v1014_v23 = vadd.f32 %v1007_v6, %v966_v20 }
 0x3f2   :  { %1018 = vst.msk [vmem:[#allocation4 + $0x70] sm:$0xff] %vm3197_vm1, %v1014_v23 }
 0x3f3 PF:  { %v2675_v31 = vld [vmem:[#allocation3 + $0x20] sm:$0xff]  ;;  %v2677_v10 = vld [vmem:[#allocation3 + $0x10] sm:$0xff]  ;;  %v2036_v16 = vmov 0   ;;  %v2686_v36 = vld [vmem:[#allocation3 + $0x28] sm:$0xff]  ;;  %s2037_s2 = smov 1   ;;  %s2038_s19 = smov 2  }
 0x3f4   :  { %v2679_v48 = vld [vmem:[#allocation3] sm:$0xff]  ;;  %1987 = vset.pattern.permute.xlu2 %v2036_v16  ;;  %1986 = vset.pattern.permute.xlu1 %v2036_v16  ;;  %v1128_v18 = vmax.f32 %v2675_v31, 1e-30  ;;  %v1033_v26 = vmax.f32 %v2677_v10, 1e-30  ;;  %v2688_v27 = vld [vmem:[#allocation3 + $0x18] sm:$0xff] }
 0x3f5   :  { %v2684_v14 = vmax.f32 %v2679_v48, 1e-30  ;;  %1985 = vset.pattern.permute.xlu0 %v2036_v16  ;;  %v2691_v3 = vld [vmem:[#allocation3 + $0x8] sm:$0xff]  ;;  %v2695_v51 = vld [vmem:[#allocation3 + $0x40] sm:$0xff]  ;;  %v2698_v34 = vmax.f32 %v2686_v36, 1e-30 }
 0x3f6   :  { %1991 = vrcp.f32 %v1128_v18  ;;  %v1141_v54 = vand.u32 2147483647, %v1128_v18  ;;  %v1143_v58 = vand.u32 2147483648, %v1128_v18  ;;  %v1074_v7 = vand.u32 2147483647, %v1033_v26  ;;  %v2703_v2 = vld [vmem:[#allocation3 + $0x38] sm:$0xff] }
 0x3f7   :  { %1993 = vrcp.f32 %v1033_v26  ;;  %v1076_v50 = vand.u32 2147483648, %v1033_v26  ;;  %v1044_v63 = vand.u32 2147483647, %v2684_v14  ;;  %v1046_v44 = vand.u32 2147483648, %v2684_v14  ;;  %s2039_s20 = smov 3   ;;  %s2040_s21 = smov 4  }
 0x3f8   :  { %1995 = vrcp.f32 %v2684_v14  ;;  %vm1137_vm4 = vweird.f32 %v1128_v18  ;;  %vm1070_vm6 = vweird.f32 %v1033_v26  ;;  %v2701_v25 = vmax.f32 %v2688_v27, 1e-30  ;;  %s2041_s22 = smov 5   ;;  %s2042_s23 = smov 8  }
 0x3f9   :  { %vm2705_vm7 = vcmp.eq.f32.partialorder %v1141_v54, 8.507059e+37  ;;  %v1144_v29 = vor.u32 1.1754944e-38, %v1143_v58  ;;  %vm1040_vm8 = vweird.f32 %v2684_v14  ;;  %v2711_v30 = vmax.f32 %v2691_v3, 1e-30  ;;  %s2043_s24 = smov 16   ;;  %s2044_s25 = smov 24  }
 0x3fa   :  { %vm2713_vm9 = vcmp.eq.f32.partialorder %v1074_v7, 8.507059e+37  ;;  %v1077_v52 = vor.u32 1.1754944e-38, %v1076_v50  ;;  %v1047_v5 = vor.u32 1.1754944e-38, %v1046_v44  ;;  %1997 = vrcp.f32 %v2698_v34  ;;  %s2045_s26 = smov 6  }
 0x3fb   :  { %v2719_v17 = vmax.f32 %v2695_v51, 1e-30  ;;  %vm2721_vm10 = vcmp.eq.f32.partialorder %v1044_v63, 8.507059e+37  ;;  %v1156_v33 = vand.u32 2147483647, %v2698_v34  ;;  %1999 = vrcp.f32 %v2701_v25 }
 0x3fc   :  { %v1992_v6 = vpop.eup %1991  ;;  %v2728_v42 = vmax.f32 %v2703_v2, 1e-30  ;;  %vm1152_vm12 = vweird.f32 %v2698_v34  ;;  %v1158_v41 = vand.u32 2147483648, %v2698_v34  ;;  %vm1085_vm13 = vweird.f32 %v2701_v25 }
 0x3fd   :  { %v1994_v15 = vpop.eup %1993  ;;  %v1133_v60 = vmul.f32 %v1992_v6, %v1128_v18  ;;  %vm1138_vm11 = vweird.f32 %v1992_v6  ;;  %v1089_v32 = vand.u32 2147483647, %v2701_v25  ;;  %v1091_v61 = vand.u32 2147483648, %v2701_v25 }
 0x3fe   :  { %v1996_v13 = vpop.eup %1995  ;;  %v1066_v9 = vmul.f32 %v1994_v15, %v1033_v26  ;;  %vm1071_vm14 = vweird.f32 %v1994_v15  ;;  %2001 = vrcp.f32 %v2711_v30  ;;  %vm2737_vm2 = vcmp.eq.f32.partialorder %v1156_v33, 8.507059e+37  ;;  %vm2743_vm3 = vmor %vm1137_vm4, %vm1138_vm11  ;;  %v2807_v33 = vld [vmem:[#allocation3 + $0x30] sm:$0xff] }
 0x3ff   :  { %v1134_v55 = vsub.f32 1.0, %v1133_v60  ;;  %v1036_v28 = vmul.f32 %v1996_v13, %v2684_v14  ;;  %vm1041_vm15 = vweird.f32 %v1996_v13  ;;  %v1159_v56 = vor.u32 1.1754944e-38, %v1158_v41  ;;  %vm2751_vm1 = vmor %vm1070_vm6, %vm1071_vm14 }
 0x400   :  { %v1067_v38 = vsub.f32 1.0, %v1066_v9  ;;  %v1998_v11 = vpop.eup %1997  ;;  %vm1055_vm5 = vweird.f32 %v2711_v30  ;;  %2003 = vrcp.f32 %v2719_v17  ;;  %vm2756_vm4 = vcmp.eq.f32.partialorder %v1089_v32, 8.507059e+37  ;;  %vm2763_vm11 = vmor %vm1040_vm8, %vm1041_vm15 }
 0x401   :  { %v1135_v12 = vmul.f32 %v1992_v6, %v1134_v55  ;;  %v1037_v47 = vsub.f32 1.0, %v1036_v28  ;;  %v2000_v0 = vpop.eup %1999  ;;  %v1148_v45 = vmul.f32 %v1998_v11, %v2698_v34  ;;  %v1092_v49 = vor.u32 1.1754944e-38, %v1091_v61 }
 0x402   :  { %v1068_v24 = vmul.f32 %v1994_v15, %v1067_v38  ;;  %v1081_v43 = vmul.f32 %v2000_v0, %v2701_v25  ;;  %v1059_v1 = vand.u32 2147483647, %v2711_v30  ;;  %vm1153_vm6 = vweird.f32 %v1998_v11 }
 0x403   :  { %v1136_v21 = vadd.f32 %v1992_v6, %v1135_v12  ;;  %v1038_v57 = vmul.f32 %v1996_v13, %v1037_v47  ;;  %v1149_v59 = vsub.f32 1.0, %v1148_v45  ;;  %vm1086_vm8 = vweird.f32 %v2000_v0  ;;  %v2824_v12 = vld [vmem:[#allocation3 + $0x50] sm:$0xff] }
 0x404   :  { %v1069_v8 = vadd.f32 %v1994_v15, %v1068_v24  ;;  %v2002_v20 = vpop.eup %2001  ;;  %v1082_v18 = vsub.f32 1.0, %v1081_v43  ;;  %v1061_v22 = vand.u32 2147483648, %v2711_v30  ;;  %2005 = vrcp.f32 %v2728_v42 }
 0x405   :  { %v1140_v35 = vsel %vm2743_vm3, %v1992_v6, %v1136_v21  ;;  %v1039_v4 = vadd.f32 %v1996_v13, %v1038_v57  ;;  %v1150_v54 = vmul.f32 %v1998_v11, %v1149_v59  ;;  %v1051_v58 = vmul.f32 %v2002_v20, %v2711_v30  ;;  %v2869_v59 = vld [vmem:[#allocation3 + $0x70] sm:$0xff] }
 0x406   :  { %v1145_v23 = vsel %vm2705_vm7, %v1144_v29, %v1140_v35  ;;  %v1073_v16 = vsel %vm2751_vm1, %v1994_v15, %v1069_v8  ;;  %v2780_v7 = vpop.eup %2003  ;;  %vm2786_vm1 = vmor %vm1152_vm12, %vm1153_vm6  ;;  %v1083_v44 = vmul.f32 %v2000_v0, %v1082_v18  ;;  %vm1235_vm7 = vweird.f32 %v2719_v17 }
 0x407   :  { %1199 = vperm.xlu2 %1987, %v1145_v23   ;;  %v1078_v26 = vsel %vm2713_vm9, %v1077_v52, %v1073_v16  ;;  %v1043_v14 = vsel %vm2763_vm11, %v1996_v13, %v1039_v4  ;;  %v1151_v29 = vadd.f32 %v1998_v11, %v1150_v54  ;;  %vm2795_vm9 = vmor %vm1085_vm13, %vm1086_vm8  ;;  %v1052_v40 = vsub.f32 1.0, %v1051_v58  ;;  %v2809_v13 = vld [vmem:[#allocation3 + $0x58] sm:$0xff]  ;;  %v2883_v54 = vld [vmem:[#allocation3 + $0x68] sm:$0xff] }
 0x408   :  { %1111 = vperm.xlu1 %1986, %v1078_v26   ;;  %v1048_v50 = vsel %vm2721_vm10, %v1047_v5, %v1043_v14  ;;  %vm1056_vm10 = vweird.f32 %v2002_v20  ;;  %v1231_v34 = vmul.f32 %v2780_v7, %v2719_v17  ;;  %v1084_v52 = vadd.f32 %v2000_v0, %v1083_v44 }
 0x409   :  { %1101 = vperm.xlu0 %1985, %v1048_v50   ;;  %vm1236_vm12 = vweird.f32 %v2780_v7  ;;  %v1239_v5 = vand.u32 2147483647, %v2719_v17  ;;  %v1155_v15 = vsel %vm2786_vm1, %v1998_v11, %v1151_v29  ;;  %v1053_v25 = vmul.f32 %v2002_v20, %v1052_v40  ;;  %vm2817_vm13 = vmor %vm1055_vm5, %vm1056_vm10 }
 0x40a   :  { %v1232_v60 = vsub.f32 1.0, %v1231_v34  ;;  %v1241_v19 = vand.u32 2147483648, %v2719_v17  ;;  %v1160_v9 = vsel %vm2737_vm2, %v1159_v56, %v1155_v15  ;;  %v1088_v41 = vsel %vm2795_vm9, %v2000_v0, %v1084_v52  ;;  %vm2830_vm15 = vmor %vm1235_vm7, %vm1236_vm12  ;;  %v2006_v0 = vpop.eup %2005 }
 0x40b   :  { %v1062_v28 = vor.u32 1.1754944e-38, %v1061_v22  ;;  %v1093_v32 = vsel %vm2756_vm4, %v1092_v49, %v1088_v41  ;;  %v1054_v38 = vadd.f32 %v2002_v20, %v1053_v25  ;;  %vm1060_vm14 = vcmp.eq.f32.partialorder %v1059_v1, 8.507059e+37  ;;  %v2865_v49 = vld [vmem:[#allocation3 + $0x48] sm:$0xff] }
 0x40c   :  { %v1233_v61 = vmul.f32 %v2780_v7, %v1232_v60  ;;  %v1186_v47 = vand.u32 2147483647, %v2728_v42  ;;  %v2836_v37 = vmax.f32 %v2807_v33, 1e-30  ;;  %v2839_v11 = vmax.f32 %v2809_v13, 1e-30 }
 0x40d   :  { %v1058_v53 = vsel %vm2817_vm13, %v2002_v20, %v1054_v38  ;;  %vm2844_vm2 = vcmp.eq.f32.partialorder %v1239_v5, 8.507059e+37  ;;  %v1242_v56 = vor.u32 1.1754944e-38, %v1241_v19  ;;  %v1188_v39 = vand.u32 2147483648, %v2728_v42 }
 0x40e   :  { %v1234_v24 = vadd.f32 %v2780_v7, %v1233_v61  ;;  %v1063_v21 = vsel %vm1060_vm14, %v1062_v28, %v1058_v53  ;;  %2007 = vrcp.f32 %v2836_v37  ;;  %v2851_v57 = vmax.f32 %v2824_v12, 1e-30 }
 0x40f   :  { %1204 = vperm.xlu2 %1987, %v1160_v9   ;;  %v1178_v62 = vmul.f32 %v2006_v0, %v2728_v42  ;;  %v1171_v8 = vand.u32 2147483647, %v2836_v37  ;;  %v1173_v46 = vand.u32 2147483648, %v2836_v37  ;;  %vm1182_vm3 = vweird.f32 %v2728_v42 }
 0x410   :  { %1116 = vperm.xlu1 %1986, %v1093_v32   ;;  %v1238_v45 = vsel %vm2830_vm15, %v2780_v7, %v1234_v24  ;;  %vm2860_vm5 = vcmp.eq.f32.partialorder %v1186_v47, 8.507059e+37  ;;  %2009 = vrcp.f32 %v2839_v11  ;;  %vm1183_vm4 = vweird.f32 %v2006_v0 }
 0x411   :  { %1106 = vperm.xlu0 %1985, %v1063_v21   ;;  %v1179_v1 = vsub.f32 1.0, %v1178_v62  ;;  %v1284_v35 = vand.u32 2147483647, %v2839_v11  ;;  %v1286_v4 = vand.u32 2147483648, %v2839_v11  ;;  %v1243_v20 = vsel %vm2844_vm2, %v1242_v56, %v1238_v45  ;;  %vm2888_vm1 = vmor %vm1182_vm3, %vm1183_vm4 }
 0x412   :  { %v1189_v23 = vor.u32 1.1754944e-38, %v1188_v39  ;;  %vm1167_vm11 = vweird.f32 %v2836_v37  ;;  %2011 = vrcp.f32 %v2851_v57  ;;  %vm2875_vm6 = vcmp.eq.f32.partialorder %v1171_v8, 8.507059e+37 }
 0x413   :  { %v1180_v16 = vmul.f32 %v2006_v0, %v1179_v1  ;;  %v1174_v26 = vor.u32 1.1754944e-38, %v1173_v46  ;;  %vm1280_vm8 = vweird.f32 %v2839_v11  ;;  %v2881_v14 = vmax.f32 %v2865_v49, 1e-30  ;;  %v2948_v1 = vld [vmem:[#allocation3 + $0x78] sm:$0xff] }
 0x414   :  { %v2008_v58 = vpop.eup %2007  ;;  %vm1265_vm7 = vweird.f32 %v2851_v57  ;;  %v1269_v50 = vand.u32 2147483647, %v2851_v57  ;;  %v1271_v63 = vand.u32 2147483648, %v2851_v57  ;;  %v2896_v44 = vmax.f32 %v2869_v59, 1e-30 }
 0x415   :  { %v1181_v22 = vadd.f32 %v2006_v0, %v1180_v16  ;;  %v1163_v29 = vmul.f32 %v2008_v58, %v2836_v37  ;;  %vm2899_vm9 = vcmp.eq.f32.partialorder %v1284_v35, 8.507059e+37  ;;  %v1287_v42 = vor.u32 1.1754944e-38, %v1286_v4 }
 0x416   :  { %2013 = vrcp.f32 %v2881_v14  ;;  %v2010_v40 = vpop.eup %2009  ;;  %v1254_v34 = vand.u32 2147483647, %v2881_v14  ;;  %v1256_v52 = vand.u32 2147483648, %v2881_v14  ;;  %v2908_v5 = vmax.f32 %v2883_v54, 1e-30 }
 0x417   :  { %1297 = vperm.xlu2 %1987, %v1243_v20   ;;  %2015 = vrcp.f32 %v2896_v44  ;;  %v1185_v15 = vsel %vm2888_vm1, %v2006_v0, %v1181_v22  ;;  %v1164_v25 = vsub.f32 1.0, %v1163_v29  ;;  %vm1168_vm10 = vweird.f32 %v2008_v58  ;;  %v1634_v29 = vld [vmem:[#allocation2 + $0x78] sm:$0xff] }
 0x418   :  { %v1276_v60 = vmul.f32 %v2010_v40, %v2839_v11  ;;  %v2012_v19 = vpop.eup %2011  ;;  %v1190_v9 = vsel %vm2860_vm5, %v1189_v23, %v1185_v15  ;;  %vm2915_vm12 = vcmp.eq.f32.partialorder %v1269_v50, 8.507059e+37  ;;  %v1272_v55 = vor.u32 1.1754944e-38, %v1271_v63  ;;  %vm2923_vm15 = vmor %vm1167_vm11, %vm1168_vm10  ;;  %v2946_v11 = vld [vmem:[#allocation3 + $0x60] sm:$0xff] }
 0x419   :  { %vm1250_vm13 = vweird.f32 %v2881_v14  ;;  %1214 = vperm.xlu1 %1986, %v1190_v9   ;;  %v1165_v28 = vmul.f32 %v2008_v58, %v1164_v25  ;;  %vm1281_vm14 = vweird.f32 %v2010_v40  ;;  %v1261_v38 = vmul.f32 %v2012_v19, %v2851_v57 }
 0x41a   :  { %v1277_v32 = vsub.f32 1.0, %v1276_v60  ;;  %vm2927_vm2 = vcmp.eq.f32.partialorder %v1254_v34, 8.507059e+37  ;;  %v1257_v47 = vor.u32 1.1754944e-38, %v1256_v52  ;;  %vm1363_vm3 = vweird.f32 %v2896_v44  ;;  %vm2935_vm4 = vmor %vm1280_vm8, %vm1281_vm14 }
 0x41b   :  { %2017 = vrcp.f32 %v2908_v5  ;;  %v1166_v24 = vadd.f32 %v2008_v58, %v1165_v28  ;;  %v1262_v56 = vsub.f32 1.0, %v1261_v38  ;;  %vm1266_vm5 = vweird.f32 %v2012_v19 }
 0x41c   :  { %v2014_v53 = vpop.eup %2013  ;;  %v1278_v17 = vmul.f32 %v2010_v40, %v1277_v32  ;;  %v1367_v39 = vand.u32 2147483647, %v2896_v44  ;;  %v1369_v45 = vand.u32 2147483648, %v2896_v44  ;;  %vm1348_vm11 = vweird.f32 %v2908_v5  ;;  %vm2954_vm8 = vmor %vm1265_vm7, %vm1266_vm5 }
 0x41d   :  { %v2016_v0 = vpop.eup %2015  ;;  %v1246_v21 = vmul.f32 %v2014_v53, %v2881_v14  ;;  %v1170_v62 = vsel %vm2923_vm15, %v2008_v58, %v1166_v24  ;;  %v1263_v46 = vmul.f32 %v2012_v19, %v1262_v56  ;;  %vm1251_vm1 = vweird.f32 %v2014_v53 }
 0x41e   :  { %v1279_v8 = vadd.f32 %v2010_v40, %v1278_v17  ;;  %v1359_v43 = vmul.f32 %v2016_v0, %v2896_v44  ;;  %v1175_v35 = vsel %vm2875_vm6, %v1174_v26, %v1170_v62  ;;  %v1352_v23 = vand.u32 2147483647, %v2908_v5  ;;  %vm2971_vm6 = vmor %vm1250_vm13, %vm1251_vm1 }
 0x41f   :  { %v1247_v20 = vsub.f32 1.0, %v1246_v21  ;;  %1209 = vperm.xlu0 %1985, %v1175_v35   ;;  %v1264_v58 = vadd.f32 %v2012_v19, %v1263_v46  ;;  %vm1364_vm10 = vweird.f32 %v2016_v0  ;;  %v1324_v26 = vmax.f32 %v2946_v11, 1e-30  ;;  %v1623_v46 = vld [vmem:[#allocation2 + $0x30] sm:$0xff] }
 0x420   :  { %v1283_v16 = vsel %vm2935_vm4, %v2010_v40, %v1279_v8  ;;  %v1360_v7 = vsub.f32 1.0, %v1359_v43  ;;  %v2965_v63 = vmax.f32 %v2948_v1, 1e-30  ;;  %v1370_v34 = vor.u32 1.1754944e-38, %v1369_v45  ;;  %vm1365_vm7 = vmor %vm1363_vm3, %vm1364_vm10 }
 0x421   :  { %v2018_v50 = vpop.eup %2017  ;;  %v1288_v18 = vsel %vm2899_vm9, %v1287_v42, %v1283_v16  ;;  %v1248_v57 = vmul.f32 %v2014_v53, %v1247_v20  ;;  %v1268_v22 = vsel %vm2954_vm8, %v2012_v19, %v1264_v58  ;;  %v1354_v15 = vand.u32 2147483648, %v2908_v5  ;;  %v1626_v58 = vld [vmem:[#allocation2 + $0x40] sm:$0xff] }
 0x422   :  { %1312 = vperm.xlu2 %1987, %v1288_v18   ;;  %v1361_v40 = vmul.f32 %v2016_v0, %v1360_v7  ;;  %v1344_v6 = vmul.f32 %v2018_v50, %v2908_v5  ;;  %v1273_v42 = vsel %vm2915_vm12, %v1272_v55, %v1268_v22  ;;  %2019 = vrcp.f32 %v1324_v26  ;;  %v1629_v18 = vld [vmem:[#allocation2 + $0x58] sm:$0xff] }
 0x423   :  { %v1249_v52 = vadd.f32 %v2014_v53, %v1248_v57  ;;  %1307 = vperm.xlu1 %1986, %v1273_v42   ;;  %vm1368_vm9 = vcmp.eq.f32.partialorder %v1367_v39, 8.507059e+37  ;;  %vm1349_vm13 = vweird.f32 %v2018_v50  ;;  %2021 = vrcp.f32 %v2965_v63  ;;  %v1621_v39 = vld [vmem:[#allocation2 + $0x20] sm:$0xff]  ;;  %v1622_v57 = vld [vmem:[#allocation2 + $0x28] sm:$0xff]  ;;  %v1624_v22 = vld [vmem:[#allocation2 + $0x38] sm:$0xff] }
 0x424   :  { %v1362_v14 = vadd.f32 %v2016_v0, %v1361_v40  ;;  %v1345_v25 = vsub.f32 1.0, %v1344_v6  ;;  %vm1350_vm12 = vmor %vm1348_vm11, %vm1349_vm13  ;;  %v1355_v55 = vor.u32 1.1754944e-38, %v1354_v15  ;;  %vm1353_vm14 = vcmp.eq.f32.partialorder %v1352_v23, 8.507059e+37  ;;  %v1628_v40 = vld [vmem:[#allocation2 + $0x50] sm:$0xff]  ;;  %v1193_v6 = vld [vmem:[#allocation4 + $0x20] sm:$0xff] }
 0x425   :  { %v1253_v60 = vsel %vm2971_vm6, %v2014_v53, %v1249_v52  ;;  %vm1333_vm15 = vweird.f32 %v1324_v26  ;;  %v1339_v17 = vand.u32 2147483648, %v1324_v26  ;;  %vm1378_vm5 = vweird.f32 %v2965_v63 }
 0x426   :  { %v1258_v19 = vsel %vm2927_vm2, %v1257_v47, %v1253_v60  ;;  %v1366_v9 = vsel %vm1365_vm7, %v2016_v0, %v1362_v14  ;;  %v1346_v41 = vmul.f32 %v2018_v50, %v1345_v25  ;;  %v1337_v47 = vand.u32 2147483647, %v1324_v26  ;;  %v1294_v60 = vld [vmem:[#allocation4 + $0x58] sm:$0xff] }
 0x427   :  { %v1371_v44 = vsel %vm1368_vm9, %v1370_v34, %v1366_v9  ;;  %1302 = vperm.xlu0 %1985, %v1258_v19   ;;  %v1340_v21 = vor.u32 1.1754944e-38, %v1339_v17  ;;  %v1384_v8 = vand.u32 2147483648, %v2965_v63  ;;  %v1382_v4 = vand.u32 2147483647, %v2965_v63  ;;  %v1632_v34 = vld [vmem:[#allocation2 + $0x68] sm:$0xff]  ;;  %v1195_v17 = vld [vmem:[#allocation4 + $0x30] sm:$0xff] }
 0x428   :  { %v1347_v28 = vadd.f32 %v2018_v50, %v1346_v41  ;;  %v2020_v32 = vpop.eup %2019  ;;  %vm1338_vm4 = vcmp.eq.f32.partialorder %v1337_v47, 8.507059e+37  ;;  %v1391_v41 = vld [vmem:[#allocation4 + $0x70] sm:$0xff]  ;;  %vm1768_vm10 = vcmask 15360   ;;  %vm1773_vm6 = vcmask 23552  }
 0x429   :  { %v1329_v61 = vmul.f32 %v2020_v32, %v1324_v26  ;;  %v2022_v53 = vpop.eup %2021  ;;  %vm1334_vm2 = vweird.f32 %v2020_v32  ;;  %v1385_v23 = vor.u32 1.1754944e-38, %v1384_v8  ;;  %vm1383_vm1 = vcmp.eq.f32.partialorder %v1382_v4, 8.507059e+37  ;;  %v1631_v26 = vld [vmem:[#allocation2 + $0x60] sm:$0xff]  ;;  %v1390_v8 = vld [vmem:[#allocation4 + $0x68] sm:$0xff] }
 0x42a   :  { %1405 = vperm.xlu2 %1987, %v1371_v44   ;;  %v1351_v38 = vsel %vm1350_vm12, %v2018_v50, %v1347_v28  ;;  %v1374_v56 = vmul.f32 %v2022_v53, %v2965_v63  ;;  %vm2989_vm3 = vmor %vm1333_vm15, %vm1334_vm2  ;;  %vm1379_vm11 = vweird.f32 %v2022_v53  ;;  %v1627_v50 = vld [vmem:[#allocation2 + $0x48] sm:$0xff]  ;;  %v1633_v63 = vld [vmem:[#allocation2 + $0x70] sm:$0xff]  ;;  %vm1778_vm7 = vcmask 31744  }
 0x42b   :  { %v1356_v24 = vsel %vm1353_vm14, %v1355_v55, %v1351_v38  ;;  %v1330_v30 = vsub.f32 1.0, %v1329_v61  ;;  %vm1380_vm8 = vmor %vm1378_vm5, %vm1379_vm11  ;;  %vm1783_vm9 = vcmask 39936   ;;  %vm1470_vm13 = vcmask 130048  }
 0x42c   :  { %1400 = vperm.xlu1 %1986, %v1356_v24   ;;  %v1375_v0 = vsub.f32 1.0, %v1374_v56  ;;  %v1616_v24 = vld [vmem:[#allocation2] sm:$0xff]  ;;  %vm3248_vm12 = vcmask 64512   ;;  %vm1500_vm15 = vcmask 261120  }
 0x42d   :  { %v1331_v5 = vmul.f32 %v2020_v32, %v1330_v30  ;;  %vm3249_vm2 = vmmov %vm3248_vm12 }
 0x42e   :  { %v1376_v62 = vmul.f32 %v2022_v53, %v1375_v0  ;;  %vm3250_vm5 = vmmov %vm3249_vm2 }
 0x42f   :  { %v1332_v45 = vadd.f32 %v2020_v32, %v1331_v5  ;;  %v1293_v5 = vld [vmem:[#allocation4 + $0x50] sm:$0xff]  ;;  %vm3251_vm11 = vmmov %vm3249_vm2 }
 0x430   :  { %v1377_v35 = vadd.f32 %v2022_v53, %v1376_v62 }
 0x431   :  { %v1336_v43 = vsel %vm2989_vm3, %v2020_v32, %v1332_v45  ;;  %v1196_v32 = vld [vmem:[#allocation4 + $0x38] sm:$0xff]  ;;  %v1292_v45 = vld [vmem:[#allocation4 + $0x48] sm:$0xff] }
 0x432   :  { %1655 = vrot.lane.b32.xlu2 %v1621_v39, %s2037_s2  ;;  %v1341_v20 = vsel %vm1338_vm4, %v1340_v21, %v1336_v43  ;;  %v1381_v16 = vsel %vm1380_vm8, %v2022_v53, %v1377_v35  ;;  %v1389_v35 = vld [vmem:[#allocation4 + $0x60] sm:$0xff] }
 0x433   :  { %1395 = vperm.xlu0 %1985, %v1341_v20   ;;  %v1386_v7 = vsel %vm1383_vm1, %v1385_v23, %v1381_v16  ;;  %v1392_v16 = vld [vmem:[#allocation4 + $0x78] sm:$0xff] }
 0x434   :  { %1659 = vrot.lane.b32.xlu1 %v1623_v46, %s2037_s2 }
 0x43a   :  { %1671 = vrot.lane.b32.xlu2 %v1626_v58, %s2038_s19 }
 0x43b   :  { %1410 = vperm.xlu0 %1985, %v1386_v7  }
 0x43c   :  { %1673 = vrot.lane.b32.xlu1 %v1627_v50, %s2038_s19 }
 0x442   :  { %1677 = vrot.lane.b32.xlu2 %v1629_v18, %s2038_s19  ;;  %v1617_v18 = vld [vmem:[#allocation2 + $0x8] sm:$0xff] }
 0x443   :  { %1657 = vrot.lane.b32.xlu0 %v1622_v57, %s2037_s2 }
 0x444   :  { %1687 = vrot.lane.b32.xlu1 %v1631_v26, %s2039_s20 }
 0x44a   :  { %1691 = vrot.lane.b32.xlu2 %v1633_v63, %s2039_s20 }
 0x44b   :  { %1661 = vrot.lane.b32.xlu0 %v1624_v22, %s2037_s2 }
 0x44c   :  { %1693 = vrot.lane.b32.xlu1 %v1634_v29, %s2039_s20 }
 0x452   :  { %1705 = vrot.lane.b32.xlu2 %v2691_v3, %s2040_s21  ;;  %v1194_v3 = vld [vmem:[#allocation4 + $0x28] sm:$0xff] }
 0x453   :  { %1675 = vrot.lane.b32.xlu0 %v1628_v40, %s2038_s19 }
 0x454   :  { %1707 = vrot.lane.b32.xlu1 %v2677_v10, %s2040_s21 }
 0x45a   :  { %1719 = vrot.lane.b32.xlu2 %v2675_v31, %s2041_s22  ;;  %v1291_v31 = vld [vmem:[#allocation4 + $0x40] sm:$0xff] }
 0x45b   :  { %1689 = vrot.lane.b32.xlu0 %v1632_v34, %s2039_s20 }
 0x45c   :  { %1721 = vrot.lane.b32.xlu1 %v2686_v36, %s2041_s22 }
 0x461   :  { %v1200_v42 = vpop.permute.xlu2 %1199 }
 0x462   :  { %v1217_v52 = vmul.f32 %v1200_v42, %v1193_v6 }
 0x463   :  { %1703 = vrot.lane.b32.xlu0 %v2679_v48, %s2040_s21 }
 0x464   :  { %1421 = vrot.lane.b32.xlu1 %v1217_v52, %s2042_s23 }
 0x469   :  { %v1205_v15 = vpop.permute.xlu2 %1204 }
 0x46a   :  { %v1218_v10 = vmul.f32 %v1205_v15, %v1194_v3  ;;  %v1618_v3 = vld [vmem:[#allocation2 + $0x10] sm:$0xff] }
 0x46b   :  { %1709 = vrot.lane.b32.xlu0 %v2688_v27, %s2040_s21 }
 0x46c   :  { %1423 = vrot.lane.b32.xlu2 %v1218_v10, %s2042_s23 }
 0x471   :  { %v1298_v14 = vpop.permute.xlu2 %1297 }
 0x472   :  { %v1315_v25 = vmul.f32 %v1298_v14, %v1291_v31 }
 0x474   :  { %1437 = vrot.lane.b32.xlu2 %v1315_v25, %s2043_s24 }
 0x47a   :  { %v3009_v36 = vpop.permute.xlu1 %1111 }
 0x47b   :  { %v3011_v9 = vpop.permute.xlu0 %1101 }
 0x47c   :  { %v1313_v48 = vpop.permute.xlu2 %1312 }
 0x47d   :  { %v1318_v19 = vmul.f32 %v1313_v48, %v1294_v60 }
 0x47f   :  { %1443 = vrot.lane.b32.xlu2 %v1318_v19, %s2043_s24 }
 0x482   :  { %v3014_v44 = vpop.permute.xlu1 %1116 }
 0x483   :  { %v3017_v28 = vpop.permute.xlu0 %1106 }
 0x484   :  { %v1406_v55 = vpop.permute.xlu2 %1405 }
 0x485   :  { %v1415_v27 = vmul.f32 %v1406_v55, %v1391_v41 }
 0x487   :  { %1457 = vrot.lane.b32.xlu2 %v1415_v27, %s2044_s25 }
 0x48b   :  { %v1215_v38 = vpop.permute.xlu1 %1214 }
 0x48c   :  { %v1656_v61 = vpop.permute.xlu2 %1655  ;;  %v1220_v53 = vmul.f32 %v1215_v38, %v1196_v32 }
 0x48d   :  { %v1764_v47 = vsel %vm35_vm0, %v1616_v24, %v1656_v61 }
 0x48e   :  { %1427 = vrot.lane.b32.xlu1 %v1220_v53, %s2042_s23 }
 0x48f   :  { %1725 = vrot.lane.b32.xlu2 %v2703_v2, %s2041_s22 }
 0x491   :  { %v1210_v30 = vpop.permute.xlu0 %1209 }
 0x492   :  { %v1219_v56 = vmul.f32 %v1210_v30, %v1195_v17 }
 0x494   :  { %v1672_v0 = vpop.permute.xlu2 %1671  ;;  %1425 = vrot.lane.b32.xlu0 %v1219_v56, %s2042_s23 }
 0x495   :  { %v1769_v37 = vsel %vm1768_vm10, %v1764_v47, %v1672_v0  ;;  %v1308_v21 = vpop.permute.xlu1 %1307 }
 0x496   :  { %v1317_v39 = vmul.f32 %v1308_v21, %v1293_v5  ;;  %v1097_v21 = vld [vmem:[#allocation4 + $0x10] sm:$0xff] }
 0x498   :  { %1441 = vrot.lane.b32.xlu1 %v1317_v39, %s2043_s24 }
 0x499   :  { %v1303_v2 = vpop.permute.xlu0 %1302 }
 0x49a   :  { %v1316_v62 = vmul.f32 %v1303_v2, %v1292_v45  ;;  %v1121_v45 = vmul.f32 %v3009_v36, %v1097_v21  ;;  %v1988_v2 = vld [vmem:[%s3192_s5] ss:$0 sm:$0xff]  ;;  %s2046_s5 = smov 7  }
 0x49c   :  { %1439 = vrot.lane.b32.xlu0 %v1316_v62, %s2043_s24  ;;  %v1678_v40 = vpop.permute.xlu2 %1677 }
 0x49e   :  { %v1401_v46 = vpop.permute.xlu1 %1400 }
 0x49f   :  { %v1414_v43 = vmul.f32 %v1401_v46, %v1390_v8 }
 0x4a1   :  { %1455 = vrot.lane.b32.xlu1 %v1414_v43, %s2044_s25 }
 0x4a4   :  { %v1692_v10 = vpop.permute.xlu2 %1691 }
 0x4a5   :  { %v1396_v4 = vpop.permute.xlu0 %1395 }
 0x4a6   :  { %v1660_v20 = vpop.permute.xlu1 %1659  ;;  %v1413_v23 = vmul.f32 %v1396_v4, %v1389_v35  ;;  %v1096_v35 = vld [vmem:[#allocation4 + $0x8] sm:$0xff] }
 0x4a7   :  { %v1766_v31 = vsel %vm35_vm0, %v1618_v3, %v1660_v20 }
 0x4a8   :  { %1453 = vrot.lane.b32.xlu0 %v1413_v23, %s2044_s25  ;;  %v1120_v23 = vmul.f32 %v3017_v28, %v1096_v35 }
 0x4a9   :  { %1735 = vrot.lane.b32.xlu1 %v2695_v51, %s2045_s26  ;;  %v1619_v51 = vld [vmem:[#allocation2 + $0x18] sm:$0xff] }
 0x4ac   :  { %v1706_v19 = vpop.permute.xlu2 %1705 }
 0x4ad   :  { %v1411_v58 = vpop.permute.xlu0 %1410 }
 0x4ae   :  { %v1674_v7 = vpop.permute.xlu1 %1673  ;;  %v1416_v50 = vmul.f32 %v1411_v58, %v1392_v16 }
 0x4b0   :  { %1459 = vrot.lane.b32.xlu0 %v1416_v50, %s2044_s25  ;;  %v1095_v50 = vld [vmem:[#allocation4] sm:$0xff] }
 0x4b4   :  { %v1720_v61 = vpop.permute.xlu2 %1719 }
 0x4b5   :  { %v1658_v57 = vpop.permute.xlu0 %1657 }
 0x4b6   :  { %v1688_v26 = vpop.permute.xlu1 %1687  ;;  %v1765_v63 = vsel %vm35_vm0, %v1617_v18, %v1658_v57 }
 0x4b7   :  { %v1774_v22 = vsel %vm1773_vm6, %v1769_v37, %v1688_v26  ;;  %v1770_v29 = vsel %vm1768_vm10, %v1765_v63, %v1674_v7 }
 0x4b8   :  { %1723 = vrot.lane.b32.xlu0 %v2807_v33, %s2041_s22 }
 0x4bd   :  { %v1662_v34 = vpop.permute.xlu0 %1661 }
 0x4be   :  { %v1694_v6 = vpop.permute.xlu1 %1693  ;;  %v1767_v42 = vsel %vm35_vm0, %v1619_v51, %v1662_v34  ;;  %vm1475_vm0 = vcmask 195584  }
 0x4bf   :  { %v1772_v52 = vsel %vm1768_vm10, %v1767_v42, %v1678_v40 }
 0x4c0   :  { %1737 = vrot.lane.b32.xlu0 %v2865_v49, %s2045_s26  ;;  %v1777_v15 = vsel %vm1773_vm6, %v1772_v52, %v1694_v6  ;;  %v1098_v6 = vld [vmem:[#allocation4 + $0x18] sm:$0xff] }
 0x4c5   :  { %v1676_v14 = vpop.permute.xlu0 %1675 }
 0x4c6   :  { %v1708_v25 = vpop.permute.xlu1 %1707  ;;  %v1771_v33 = vsel %vm1768_vm10, %v1766_v31, %v1676_v14  ;;  %v1424_v47 = vpop.permute.xlu2 %1423  ;;  %vm1788_vm10 = vcmask 48128  }
 0x4c7   :  { %v1776_v60 = vsel %vm1773_vm6, %v1771_v33, %v1692_v10  ;;  %v1467_v58 = vsel %vm3249_vm2, %v1120_v23, %v1424_v47  ;;  %v1122_v10 = vmul.f32 %v3014_v44, %v1098_v6 }
 0x4c8   :  { %v3046_v48 = vsel %vm1778_vm7, %v1776_v60, %v1708_v25 }
 0x4cd   :  { %v1690_v41 = vpop.permute.xlu0 %1689 }
 0x4ce   :  { %v1775_v49 = vsel %vm1773_vm6, %v1770_v29, %v1690_v41  ;;  %v1722_v55 = vpop.permute.xlu1 %1721  ;;  %v1438_v56 = vpop.permute.xlu2 %1437  ;;  %v1119_v29 = vmul.f32 %v3011_v9, %v1095_v50  ;;  %vm1793_vm6 = vcmask 56320  }
 0x4cf   :  { %v1780_v27 = vsel %vm1778_vm7, %v1775_v49, %v1706_v19 }
 0x4d0   :  { %v3051_v32 = vsel %vm1783_vm9, %v1780_v27, %v1722_v55 }
 0x4d5   :  { %v1704_v38 = vpop.permute.xlu0 %1703 }
 0x4d6   :  { %v1779_v53 = vsel %vm1778_vm7, %v1774_v22, %v1704_v38  ;;  %v1422_v5 = vpop.permute.xlu1 %1421 }
 0x4d7   :  { %v3055_v24 = vsel %vm1783_vm9, %v1779_v53, %v1720_v61  ;;  %v1466_v40 = vsel %vm3250_vm5, %v1119_v29, %v1422_v5  ;;  %v2047_v61 = vmov 32.0  }
 0x4d8   :  { %v1471_v42 = vsel %vm1470_vm13, %v1466_v40, %v1438_v56  ;;  %2023 = vrcp.f32 %v2047_v61 }
 0x4d9   :  { %v1444_v37 = vpop.permute.xlu2 %1443 }
 0x4dd   :  { %v1710_v17 = vpop.permute.xlu0 %1709 }
 0x4de   :  { %v3058_v30 = vsel %vm1778_vm7, %v1777_v15, %v1710_v17  ;;  %v2024_v53 = vpop.eup %2023  ;;  %vm3252_vm7 = vmmov %vm3249_vm2 }
 0x4df   :  { %v1514_v17 = vmul.f32 32.0, %v2024_v53  ;;  %vm1518_vm1 = vweird.f32 %v2024_v53 }
 0x4e1   :  { %v1458_v46 = vpop.permute.xlu2 %1457 }
 0x500   :  { %v1428_v0 = vpop.permute.xlu1 %1427 }
 0x501   :  { %v1469_v9 = vsel %vm3251_vm11, %v1122_v10, %v1428_v0 }
 0x502   :  { %v1474_v33 = vsel %vm1470_vm13, %v1469_v9, %v1444_v37  ;;  %v1726_v37 = vpop.permute.xlu2 %1725 }
 0x506   :  { %v1426_v39 = vpop.permute.xlu0 %1425 }
 0x507   :  { %v1468_v62 = vsel %vm3248_vm12, %v1121_v45, %v1426_v39 }
 0x50a   :  { %v1442_v8 = vpop.permute.xlu1 %1441 }
 0x50b   :  { %v1473_v43 = vsel %vm1470_vm13, %v1468_v62, %v1442_v8 }
 0x50c   :  { %v1478_v4 = vsel %vm1475_vm0, %v1473_v43, %v1458_v46 }
 0x50d   :  { %v1486_v20 = vadd.f32 %v1988_v2, %v1478_v4 }
 0x50e   :  { %v1440_v16 = vpop.permute.xlu0 %1439 }
 0x50f   :  { %vm1490_vm14 = vcmp.gt.f32.partialorder %v1486_v20, 0.0  ;;  %v1494_v36 = vmul.f32 0.01, %v1486_v20  ;;  %v1472_v18 = vsel %vm1470_vm13, %v1467_v58, %v1440_v16 }
 0x511   :  { %v1498_v7 = vsel %vm1490_vm14, %v1486_v20, %v1494_v36 }
 0x512   :  { %v1507_v26 = vsel %vm1500_vm15, %v1498_v7, 0.0 }
 0x513   :  { %v1456_v57 = vpop.permute.xlu1 %1455  ;;  %1508 = vadd.xlane.f32.xlu0 %v1507_v26 }
 0x514   :  { %v1477_v63 = vsel %vm1475_vm0, %v1472_v18, %v1456_v57 }
 0x515   :  { %v1485_v22 = vadd.f32 %v1988_v2, %v1477_v63 }
 0x517   :  { %vm1489_vm3 = vcmp.gt.f32.partialorder %v1485_v22, 0.0  ;;  %v1493_v28 = vmul.f32 0.01, %v1485_v22 }
 0x519   :  { %v1497_v51 = vsel %vm1489_vm3, %v1485_v22, %v1493_v28 }
 0x51a   :  { %v1504_v34 = vsel %vm1500_vm15, %v1497_v51, 0.0  ;;  %v1454_v52 = vpop.permute.xlu0 %1453 }
 0x51b   :  { %1505 = vadd.xlane.f32.xlu2 %v1504_v34  ;;  %v1476_v3 = vsel %vm1475_vm0, %v1471_v42, %v1454_v52 }
 0x51c   :  { %v1484_v15 = vadd.f32 %v1988_v2, %v1476_v3 }
 0x51e   :  { %vm1488_vm4 = vcmp.gt.f32.partialorder %v1484_v15, 0.0  ;;  %v1492_v31 = vmul.f32 0.01, %v1484_v15 }
 0x520   :  { %v1496_v14 = vsel %vm1488_vm4, %v1484_v15, %v1492_v31 }
 0x521   :  { %v1501_v25 = vsel %vm1500_vm15, %v1496_v14, 0.0 }
 0x522   :  { %1502 = vadd.xlane.f32.xlu1 %v1501_v25  ;;  %v1460_v60 = vpop.permute.xlu0 %1459 }
 0x523   :  { %v1479_v19 = vsel %vm1475_vm0, %v1474_v33, %v1460_v60  ;;  %vm3253_vm0 = vmmov %vm3249_vm2 }
 0x524   :  { %v1487_v41 = vadd.f32 %v1988_v2, %v1479_v19  ;;  %vm3254_vm2 = vmmov %vm3253_vm0 }
 0x526   :  { %vm1491_vm8 = vcmp.gt.f32.partialorder %v1487_v41, 0.0  ;;  %v1495_v49 = vmul.f32 0.01, %v1487_v41 }
 0x527   :  { %1751 = vrot.lane.b32.xlu0 %v2946_v11, %s2046_s5  ;;  %v1515_v11 = vsub.f32 1.0, %v1514_v17 }
 0x528   :  { %v1499_v44 = vsel %vm1491_vm8, %v1487_v41, %v1495_v49 }
 0x529   :  { %v1510_v55 = vsel %vm1500_vm15, %v1499_v44, 0.0  ;;  %v1516_v47 = vmul.f32 %v2024_v53, %v1515_v11 }
 0x52a   :  { %1511 = vadd.xlane.f32.xlu2 %v1510_v55  ;;  %v1724_v27 = vpop.permute.xlu0 %1723 }
 0x52b   :  { %v3087_v38 = vsel %vm1783_vm9, %v3046_v48, %v1724_v27  ;;  %v1517_v5 = vadd.f32 %v2024_v53, %v1516_v47  ;;  %v1990_v27 = vld [vmem:[%s3194_s7] ss:$0 sm:$0xff] }
 0x52d   :  { %v3093_v0 = vsel %vm1518_vm1, %v2024_v53, %v1517_v5 }
 0x532   :  { %v1738_v56 = vpop.permute.xlu0 %1737 }
 0x53b   :  { %1741 = vrot.lane.b32.xlu1 %v2809_v13, %s2045_s26 }
 0x542   :  { %1739 = vrot.lane.b32.xlu2 %v2824_v12, %s2045_s26  ;;  %v1736_v12 = vpop.permute.xlu1 %1735 }
 0x543   :  { %v1789_v23 = vsel %vm1788_vm10, %v3055_v24, %v1736_v12 }
 0x586   :  { %v1509_v48 = vpop.xlane.xlu0 %1508 }
 0x587   :  { %v1522_v21 = vmul.f32 %v3093_v0, %v1509_v48 }
 0x589   :  { %v3096_v39 = vsub.f32 %v1498_v7, %v1522_v21 }
 0x58b   :  { %v1530_v13 = vmul.f32 %v3096_v39, %v3096_v39 }
 0x58d   :  { %v1538_v2 = vsel %vm1500_vm15, %v1530_v13, 0.0 }
 0x58e   :  { %v1506_v45 = vpop.xlane.xlu2 %1505  ;;  %1539 = vadd.xlane.f32.xlu0 %v1538_v2 }
 0x58f   :  { %v1521_v62 = vmul.f32 %v3093_v0, %v1506_v45 }
 0x591   :  { %v3102_v8 = vsub.f32 %v1497_v51, %v1521_v62 }
 0x593   :  { %v1529_v46 = vmul.f32 %v3102_v8, %v3102_v8 }
 0x595   :  { %v1535_v43 = vsel %vm1500_vm15, %v1529_v46, 0.0  ;;  %v1503_v35 = vpop.xlane.xlu1 %1502 }
 0x596   :  { %1536 = vadd.xlane.f32.xlu2 %v1535_v43  ;;  %v1520_v4 = vmul.f32 %v3093_v0, %v1503_v35 }
 0x598   :  { %v3108_v20 = vsub.f32 %v1496_v14, %v1520_v4  ;;  %v1787_v14 = vsel %vm1783_vm9, %v3058_v30, %v1726_v37 }
 0x599   :  { %v1752_v16 = vpop.permute.xlu0 %1751 }
 0x59a   :  { %v1528_v36 = vmul.f32 %v3108_v20, %v3108_v20  ;;  %v1794_v58 = vsel %vm1793_vm6, %v1789_v23, %v1752_v16 }
 0x59b   :  { %1798 = vst.msk [vmem:[%s3196_s9] sm:$0xff] %vm3252_vm7, %v1794_v58 }
 0x59c   :  { %v1532_v7 = vsel %vm1500_vm15, %v1528_v36, 0.0 }
 0x59d   :  { %1533 = vadd.xlane.f32.xlu1 %v1532_v7  ;;  %v1512_v50 = vpop.xlane.xlu2 %1511 }
 0x59e   :  { %v1523_v18 = vmul.f32 %v3093_v0, %v1512_v50 }
 0x5a0   :  { %v3121_v57 = vsub.f32 %v1499_v44, %v1523_v18  ;;  %v1989_v44 = vld [vmem:[%s3193_s6] ss:$0 sm:$0xff] }
 0x5a2   :  { %v1531_v24 = vmul.f32 %v3121_v57, %v3121_v57  ;;  %1757 = vrot.lane.b32.xlu0 %v2948_v1, %s2046_s5 }
 0x5a4   :  { %v1541_v26 = vsel %vm1500_vm15, %v1531_v24, 0.0 }
 0x5a5   :  { %1542 = vadd.xlane.f32.xlu1 %v1541_v26  ;;  %v3132_v63 = vpop.permute.xlu2 %1739 }
 0x5ad   :  { %v1742_v40 = vpop.permute.xlu1 %1741 }
 0x5ae   :  { %1753 = vrot.lane.b32.xlu2 %v2883_v54, %s2046_s5  ;;  %v1790_v54 = vsel %vm1788_vm10, %v3051_v32, %v1738_v56  ;;  %v1792_v32 = vsel %vm1788_vm10, %v1787_v14, %v1742_v40 }
 0x5be   :  { %1755 = vrot.lane.b32.xlu1 %v2869_v59, %s2046_s5 }
 0x601   :  { %v1540_v22 = vpop.xlane.xlu0 %1539 }
 0x602   :  { %v1546_v29 = vmul.f32 %v1540_v22, %v3093_v0 }
 0x604   :  { %v1550_v28 = vadd.f32 1e-05, %v1546_v29 }
 0x606   :  { %2025 = vrsqrt.f32 %v1550_v28  ;;  %vm1578_vm12 = vweird.f32 %v1550_v28 }
 0x609   :  { %v1537_v51 = vpop.xlane.xlu2 %1536 }
 0x60a   :  { %v1545_v1 = vmul.f32 %v1537_v51, %v3093_v0 }
 0x60c   :  { %v1549_v34 = vadd.f32 1e-05, %v1545_v1  ;;  %v2026_v6 = vpop.eup %2025 }
 0x60d   :  { %v1573_v42 = vmul.f32 %v2026_v6, %v1550_v28  ;;  %vm1579_vm13 = vweird.f32 %v2026_v6 }
 0x60e   :  { %2027 = vrsqrt.f32 %v1549_v34  ;;  %vm1580_vm14 = vmor %vm1578_vm12, %vm1579_vm13  ;;  %vm1568_vm3 = vweird.f32 %v1549_v34 }
 0x60f   :  { %v1574_v52 = vmul.f32 %v2026_v6, %v1573_v42  ;;  %vm3255_vm13 = vmmov %vm3254_vm2 }
 0x610   :  { %v1534_v59 = vpop.xlane.xlu1 %1533 }
 0x611   :  { %v1754_v3 = vpop.permute.xlu2 %1753  ;;  %v1575_v15 = vmul.f32 0.5, %v1574_v52  ;;  %v1544_v10 = vmul.f32 %v1534_v59, %v3093_v0 }
 0x612   :  { %v1795_v31 = vsel %vm1793_vm6, %v1790_v54, %v1754_v3 }
 0x613   :  { %1799 = vst.msk [vmem:[%s3196_s9 + $0x8] sm:$0xff] %vm3253_vm0, %v1795_v31  ;;  %v1576_v25 = vsub.f32 1.5, %v1575_v15  ;;  %v1548_v33 = vadd.f32 1e-05, %v1544_v10 }
 0x614   :  { %v2028_v9 = vpop.eup %2027  ;;  %v1758_v19 = vpop.permute.xlu0 %1757 }
 0x615   :  { %v1563_v60 = vmul.f32 %v2028_v9, %v1549_v34  ;;  %v1577_v41 = vmul.f32 %v2026_v6, %v1576_v25  ;;  %2029 = vrsqrt.f32 %v1548_v33  ;;  %v1797_v49 = vsel %vm1793_vm6, %v1792_v32, %v1758_v19 }
 0x616   :  { %1801 = vst.msk [vmem:[%s3196_s9 + $0x18] sm:$0xff] %vm3254_vm2, %v1797_v49  ;;  %vm1569_vm9 = vweird.f32 %v2028_v9  ;;  %vm1558_vm11 = vweird.f32 %v1548_v33 }
 0x617   :  { %v1564_v55 = vmul.f32 %v2028_v9, %v1563_v60  ;;  %v1581_v30 = vsel %vm1580_vm14, %v2026_v6, %v1577_v41  ;;  %vm1570_vm5 = vmor %vm1568_vm3, %vm1569_vm9 }
 0x618   :  { %v1594_v61 = vmul.f32 %v1581_v30, %v3096_v39  ;;  %v1543_v17 = vpop.xlane.xlu1 %1542 }
 0x619   :  { %v1565_v53 = vmul.f32 0.5, %v1564_v55  ;;  %v1547_v11 = vmul.f32 %v1543_v17, %v3093_v0 }
 0x61a   :  { %v1602_v47 = vmul.f32 %v1989_v44, %v1594_v61 }
 0x61b   :  { %v1566_v56 = vsub.f32 1.5, %v1565_v53  ;;  %v2030_v5 = vpop.eup %2029  ;;  %v1551_v37 = vadd.f32 1e-05, %v1547_v11 }
 0x61c   :  { %v1610_v48 = vadd.f32 %v1990_v27, %v1602_v47  ;;  %v1553_v21 = vmul.f32 %v2030_v5, %v1548_v33  ;;  %vm1559_vm4 = vweird.f32 %v2030_v5 }
 0x61d   :  { %v1567_v13 = vmul.f32 %v2028_v9, %v1566_v56  ;;  %2031 = vrsqrt.f32 %v1551_v37  ;;  %vm1560_vm8 = vmor %vm1558_vm11, %vm1559_vm4  ;;  %vm1588_vm7 = vweird.f32 %v1551_v37 }
 0x61e   :  { %1614 = vst.msk [vmem:[%s3195_s8 + $0x10] sm:$0xff] %vm1500_vm15, %v1610_v48  ;;  %v1554_v39 = vmul.f32 %v2030_v5, %v1553_v21 }
 0x61f   :  { %v1571_v12 = vsel %vm1570_vm5, %v2028_v9, %v1567_v13 }
 0x620   :  { %v1593_v0 = vmul.f32 %v1571_v12, %v3102_v8  ;;  %v1555_v45 = vmul.f32 0.5, %v1554_v39 }
 0x622   :  { %v1601_v2 = vmul.f32 %v1989_v44, %v1593_v0  ;;  %v1556_v62 = vsub.f32 1.5, %v1555_v45 }
 0x623   :  { %v2032_v46 = vpop.eup %2031 }
 0x624   :  { %v1609_v43 = vadd.f32 %v1990_v27, %v1601_v2  ;;  %v1557_v35 = vmul.f32 %v2030_v5, %v1556_v62  ;;  %v1583_v4 = vmul.f32 %v2032_v46, %v1551_v37  ;;  %vm1589_vm1 = vweird.f32 %v2032_v46 }
 0x625   :  { %vm1590_vm0 = vmor %vm1588_vm7, %vm1589_vm1 }
 0x626   :  { %1613 = vst.msk [vmem:[%s3195_s8 + $0x8] sm:$0xff] %vm1500_vm15, %v1609_v43  ;;  %v1561_v23 = vsel %vm1560_vm8, %v2030_v5, %v1557_v35  ;;  %v1584_v16 = vmul.f32 %v2032_v46, %v1583_v4 }
 0x627   :  { %v1592_v36 = vmul.f32 %v1561_v23, %v3108_v20  ;;  %v1791_v20 = vsel %vm1788_vm10, %v3087_v38, %v3132_v63 }
 0x628   :  { %v1585_v8 = vmul.f32 0.5, %v1584_v16 }
 0x629   :  { %v1600_v58 = vmul.f32 %v1989_v44, %v1592_v36 }
 0x62a   :  { %v1586_v7 = vsub.f32 1.5, %v1585_v8 }
 0x62b   :  { %v1608_v50 = vadd.f32 %v1990_v27, %v1600_v58 }
 0x62c   :  { %v1587_v18 = vmul.f32 %v2032_v46, %v1586_v7 }
 0x62d   :  { %1612 = vst.msk [vmem:[%s3195_s8] sm:$0xff] %vm1500_vm15, %v1608_v50 }
 0x62e   :  { %v1591_v24 = vsel %vm1590_vm0, %v2032_v46, %v1587_v18 }
 0x62f   :  { %v1595_v26 = vmul.f32 %v1591_v24, %v3121_v57 }
 0x630   :  { %v1756_v22 = vpop.permute.xlu1 %1755 }
 0x631   :  { %v1603_v29 = vmul.f32 %v1989_v44, %v1595_v26  ;;  %v1796_v28 = vsel %vm1793_vm6, %v1791_v20, %v1756_v22 }
 0x632   :  { %1800 = vst.msk [vmem:[%s3196_s9 + $0x10] sm:$0xff] %vm3255_vm13, %v1796_v28 }
 0x633   :  { %v1611_v40 = vadd.f32 %v1990_v27, %v1603_v29 }
 0x635   :  { %1615 = vst.msk [vmem:[%s3195_s8 + $0x18] sm:$0xff] %vm1500_vm15, %v1611_v40 }

// kernel: graph_merfish_forward.7
= control target key start
LH: loop header
LB: loop body
LE: loop exit
PB: predicated region body
PF: predicated region fallthrough
CT: control target
= control target key end

     0   :  { %vm3439_vm0 = vcmask 7168   ;;  %v2279_v0 = vmov -inf   ;;  %v2280_v1 = vmov 0.0   ;;  %vm81_vm1 = vcmask 64512   ;;  %s3424_s0 = inlined_call_operand.<no memory space> [shape: s32[1], index: 0, kind: input, shape index: {}]   ;;  %s3425_s1 = inlined_call_operand.vmem [shape: s8[32,32], index: 1, kind: input, shape index: {}]   ;;  %s3426_s2 = inlined_call_operand.vmem [shape: bf16[4,32,8], index: 2, kind: input, shape index: {}]   ;;  %s3427_s3 = inlined_call_operand.vmem [shape: f32[4,1,32], index: 3, kind: input, shape index: {}]   ;;  %s3428_s4 = inlined_call_operand.vmem [shape: f32[4,32,1], index: 4, kind: input, shape index: {}]   ;;  %s3429_s5 = inlined_call_operand.vmem [shape: f32[1,32], index: 5, kind: input, shape index: {}]   ;;  %s3430_s6 = inlined_call_operand.vmem [shape: f32[1,32], index: 6, kind: input, shape index: {}]   ;;  %s3431_s7 = inlined_call_operand.vmem [shape: f32[1,32], index: 7, kind: input, shape index: {}]   ;;  %s3432_s8 = inlined_call_operand.vmem [shape: f32[32,64], index: 8, kind: input, shape index: {}]   ;;  %s3433_s9 = inlined_call_operand.vmem [shape: f32[1,64], index: 9, kind: input, shape index: {}]   ;;  %s3434_s10 = inlined_call_operand.vmem [shape: f32[64,32], index: 10, kind: input, shape index: {}]   ;;  %s3435_s11 = inlined_call_operand.vmem [shape: f32[1,32], index: 11, kind: input, shape index: {}]   ;;  %s3436_s12 = inlined_call_operand.vmem [shape: f32[32,32], index: 12, kind: output, shape index: {0}]   ;;  %s3437_s13 = inlined_call_operand.vmem [shape: f32[32,32], index: 13, kind: output, shape index: {1}]   ;;  %s3438_s14 = inlined_call_operand.vmem [shape: f32[32,8], index: 14, kind: output, shape index: {2}]  }
   0x1   :  { %49 = vst.msk [vmem:[#allocation2] sm:$0xff] %vm3439_vm0, %v2279_v0  ;;  %p2014_p0 = scmp.le.s32.totalorder %s3424_s0, 0 }
   0x2   :  { %50 = vst.msk [vmem:[#allocation2 + $0x8] sm:$0xff] %vm3439_vm0, %v2279_v0 }
   0x3   :  { %51 = vst.msk [vmem:[#allocation2 + $0x10] sm:$0xff] %vm3439_vm0, %v2279_v0 }
   0x4   :  { %52 = vst.msk [vmem:[#allocation2 + $0x18] sm:$0xff] %vm3439_vm0, %v2279_v0 }
   0x5   :  { %53 = vst.msk [vmem:[#allocation2 + $0x20] sm:$0xff] %vm3439_vm0, %v2279_v0 }
   0x6   :  { %54 = vst.msk [vmem:[#allocation2 + $0x28] sm:$0xff] %vm3439_vm0, %v2279_v0 }
   0x7   :  { %55 = vst.msk [vmem:[#allocation2 + $0x30] sm:$0xff] %vm3439_vm0, %v2279_v0 }
   0x8   :  { %56 = vst.msk [vmem:[#allocation2 + $0x38] sm:$0xff] %vm3439_vm0, %v2279_v0 }
   0x9   :  { %57 = vst.msk [vmem:[#allocation2 + $0x40] sm:$0xff] %vm3439_vm0, %v2279_v0 }
   0xa   :  { %58 = vst.msk [vmem:[#allocation2 + $0x48] sm:$0xff] %vm3439_vm0, %v2279_v0 }
   0xb   :  { %59 = vst.msk [vmem:[#allocation2 + $0x50] sm:$0xff] %vm3439_vm0, %v2279_v0 }
   0xc   :  { %60 = vst.msk [vmem:[#allocation2 + $0x58] sm:$0xff] %vm3439_vm0, %v2279_v0 }
   0xd   :  { %61 = vst.msk [vmem:[#allocation2 + $0x60] sm:$0xff] %vm3439_vm0, %v2279_v0 }
   0xe   :  { %62 = vst.msk [vmem:[#allocation2 + $0x68] sm:$0xff] %vm3439_vm0, %v2279_v0 }
   0xf   :  { %63 = vst.msk [vmem:[#allocation2 + $0x70] sm:$0xff] %vm3439_vm0, %v2279_v0 }
  0x10   :  { %64 = vst.msk [vmem:[#allocation2 + $0x78] sm:$0xff] %vm3439_vm0, %v2279_v0 }
  0x11   :  { %65 = vst.msk [vmem:[#allocation3] sm:$0xff] %vm3439_vm0, %v2280_v1 }
  0x12   :  { %66 = vst.msk [vmem:[#allocation3 + $0x8] sm:$0xff] %vm3439_vm0, %v2280_v1 }
  0x13   :  { %67 = vst.msk [vmem:[#allocation3 + $0x10] sm:$0xff] %vm3439_vm0, %v2280_v1 }
  0x14   :  { %68 = vst.msk [vmem:[#allocation3 + $0x18] sm:$0xff] %vm3439_vm0, %v2280_v1 }
  0x15   :  { %69 = vst.msk [vmem:[#allocation3 + $0x20] sm:$0xff] %vm3439_vm0, %v2280_v1 }
  0x16   :  { %70 = vst.msk [vmem:[#allocation3 + $0x28] sm:$0xff] %vm3439_vm0, %v2280_v1 }
  0x17   :  { %71 = vst.msk [vmem:[#allocation3 + $0x30] sm:$0xff] %vm3439_vm0, %v2280_v1 }
  0x18   :  { %72 = vst.msk [vmem:[#allocation3 + $0x38] sm:$0xff] %vm3439_vm0, %v2280_v1 }
  0x19   :  { %73 = vst.msk [vmem:[#allocation3 + $0x40] sm:$0xff] %vm3439_vm0, %v2280_v1 }
  0x1a   :  { %74 = vst.msk [vmem:[#allocation3 + $0x48] sm:$0xff] %vm3439_vm0, %v2280_v1 }
  0x1b   :  { %75 = vst.msk [vmem:[#allocation3 + $0x50] sm:$0xff] %vm3439_vm0, %v2280_v1 }
  0x1c   :  { %76 = vst.msk [vmem:[#allocation3 + $0x58] sm:$0xff] %vm3439_vm0, %v2280_v1 }
  0x1d   :  { %77 = vst.msk [vmem:[#allocation3 + $0x60] sm:$0xff] %vm3439_vm0, %v2280_v1 }
  0x1e   :  { %78 = vst.msk [vmem:[#allocation3 + $0x68] sm:$0xff] %vm3439_vm0, %v2280_v1 }
  0x1f   :  { %79 = vst.msk [vmem:[#allocation3 + $0x70] sm:$0xff] %vm3439_vm0, %v2280_v1 }
  0x20   :  { %80 = vst.msk [vmem:[#allocation3 + $0x78] sm:$0xff] %vm3439_vm0, %v2280_v1 }
  0x21   :  { %82 = vst.msk [vmem:[#allocation4] sm:$0xff] %vm81_vm1, %v2280_v1 }
  0x22   :  { %83 = vst.msk [vmem:[#allocation4 + $0x8] sm:$0xff] %vm81_vm1, %v2280_v1 }
  0x23   :  { %84 = vst.msk [vmem:[#allocation4 + $0x10] sm:$0xff] %vm81_vm1, %v2280_v1 }
  0x24   :  { %85 = vst.msk [vmem:[#allocation4 + $0x18] sm:$0xff] %vm81_vm1, %v2280_v1 }
  0x25   :  { %86 = vst.msk [vmem:[#allocation4 + $0x20] sm:$0xff] %vm81_vm1, %v2280_v1 }
  0x26   :  { %87 = vst.msk [vmem:[#allocation4 + $0x28] sm:$0xff] %vm81_vm1, %v2280_v1 }
  0x27   :  { %88 = vst.msk [vmem:[#allocation4 + $0x30] sm:$0xff] %vm81_vm1, %v2280_v1 }
  0x28   :  { %89 = vst.msk [vmem:[#allocation4 + $0x38] sm:$0xff] %vm81_vm1, %v2280_v1 }
  0x29   :  { %90 = vst.msk [vmem:[#allocation4 + $0x40] sm:$0xff] %vm81_vm1, %v2280_v1 }
  0x2a   :  { %91 = vst.msk [vmem:[#allocation4 + $0x48] sm:$0xff] %vm81_vm1, %v2280_v1 }
  0x2b   :  { %92 = vst.msk [vmem:[#allocation4 + $0x50] sm:$0xff] %vm81_vm1, %v2280_v1 }
  0x2c   :  { %93 = vst.msk [vmem:[#allocation4 + $0x58] sm:$0xff] %vm81_vm1, %v2280_v1  ;;  %103 = sbr.rel (%p2014_p0) target bundleno = 1011 (0x3f3), region = 53 }
  0x2d   :  { %94 = vst.msk [vmem:[#allocation4 + $0x60] sm:$0xff] %vm81_vm1, %v2280_v1 }
  0x2e   :  { %95 = vst.msk [vmem:[#allocation4 + $0x68] sm:$0xff] %vm81_vm1, %v2280_v1 }
  0x2f   :  { %96 = vst.msk [vmem:[#allocation4 + $0x70] sm:$0xff] %vm81_vm1, %v2280_v1 }
  0x30   :  { %97 = vst.msk [vmem:[#allocation4 + $0x78] sm:$0xff] %vm81_vm1, %v2280_v1 }
  0x31   :  { %v126_v2 = vld [vmem:[%s3428_s4 + $0x10] sm:$0xff]  ;;  %v124_v3 = vld [vmem:[%s3428_s4] sm:$0xff]  ;;  %v2281_v4 = vmov 0   ;;  %v127_v6 = vld [vmem:[%s3428_s4 + $0x18] sm:$0xff]  ;;  %vm176_vm4 = vcmask 261120  }
  0x32   :  { %2139 = vset.pattern.permute.xlu1 %v2281_v4  ;;  %2138 = vset.pattern.permute.xlu0 %v2281_v4  ;;  %v2031_v5 = vld [vmem:[%s3428_s4 + $0x30] sm:$0xff]  ;;  %v125_v7 = vld [vmem:[%s3428_s4 + $0x8] sm:$0xff]  ;;  %v2029_v8 = vld [vmem:[%s3428_s4 + $0x20] sm:$0xff] }
  0x33   :  { %141 = vperm.xlu1 %2139, %v126_v2   ;;  %131 = vperm.xlu0 %2138, %v124_v3   ;;  %v2030_v9 = vld [vmem:[%s3428_s4 + $0x28] sm:$0xff]  ;;  %v2032_v10 = vld [vmem:[%s3428_s4 + $0x38] sm:$0xff]  ;;  %v2103_v11 = vld [vmem:[%s3425_s1] sm:$0xff]  }
  0x34   :  { %2140 = vset.pattern.permute.xlu2 %v2281_v4  ;;  %v2104_v12 = vunpack.c.0.s8 %v2103_v11  ;;  %v2108_v13 = vunpack.c.2.s8 %v2103_v11  ;;  %v2141_v16 = vld [vmem:[%s3427_s3] ss:$0 sm:$0xff]  ;;  %v2109_v18 = vunpack.c.3.s8 %v2103_v11  ;;  %v2105_v20 = vunpack.c.1.s8 %v2103_v11  ;;  %v2142_v47 = vld [vmem:[%s3427_s3 + $0x1] ss:$0 sm:$0xff]  ;;  %v2049_v2 = vld [vmem:[%s3428_s4 + $0x48] sm:$0xff] }
  0x35   :  { %369 = vperm.xlu2 %2140, %v2031_v5   ;;  %v2067_v3 = vld [vmem:[%s3428_s4 + $0x60] sm:$0xff] }
  0x36   :  { %v112_v14 = vcvt.s32.f32 %v2104_v12  ;;  %v114_v15 = vcvt.s32.f32 %v2108_v13  ;;  %v115_v26 = vcvt.s32.f32 %v2109_v18  ;;  %v113_v28 = vcvt.s32.f32 %v2105_v20  ;;  %v2048_v4 = vld [vmem:[%s3428_s4 + $0x40] sm:$0xff]  ;;  %v2510_v18 = vld [vmem:[#allocation2 + $0x10] sm:$0xff] }
  0x38   :  { %v2015_v17 = vadd.f32 -1.0, %v112_v14  ;;  %v2017_v19 = vadd.f32 -1.0, %v114_v15  ;;  %v2018_v34 = vadd.f32 -1.0, %v115_v26  ;;  %v2016_v36 = vadd.f32 -1.0, %v113_v28 }
  0x3a   :  { %v2450_v25 = vmul.f32 1e+30, %v2015_v17  ;;  %v2452_v27 = vmul.f32 1e+30, %v2017_v19  ;;  %v2464_v43 = vmul.f32 1e+30, %v2018_v34 }
  0x3b   :  { %146 = vperm.xlu1 %2139, %v127_v6   ;;  %136 = vperm.xlu0 %2138, %v125_v7   ;;  %v2466_v44 = vmul.f32 1e+30, %v2016_v36  ;;  %v172_v17 = vld [vmem:[#allocation2] sm:$0xff] }
  0x3c   :  { %v2542_v34 = vld [vmem:[#allocation2 + $0x20] sm:$0xff] }
  0x43   :  { %359 = vperm.xlu1 %2139, %v2029_v8   ;;  %364 = vperm.xlu0 %2138, %v2030_v9  }
  0x4b   :  { %374 = vperm.xlu1 %2139, %v2032_v10  }
  0x8f   :  { %v370_v5 = vpop.permute.xlu2 %369 }
  0x90   :  { %v382_v6 = vadd.f32 %v2142_v47, %v370_v5 }
  0x92   :  { %v390_v8 = vmul.f32 0.2, %v382_v6  ;;  %vm386_vm9 = vcmp.gt.f32.partialorder %v382_v6, 0.0 }
  0x94   :  { %v394_v10 = vsel %vm386_vm9, %v382_v6, %v390_v8  ;;  %v2070_v8 = vld [vmem:[%s3428_s4 + $0x78] sm:$0xff] }
  0x95   :  { %v2501_v12 = vadd.f32 %v394_v10, %v2452_v27  ;;  %v2597_v10 = vld [vmem:[#allocation2 + $0x30] sm:$0xff] }
  0x97   :  { %v411_v14 = vsel %vm176_vm4, %v2501_v12, -inf }
  0xa5   :  { %v142_v21 = vpop.permute.xlu1 %141  ;;  %v132_v22 = vpop.permute.xlu0 %131 }
  0xa6   :  { %v154_v23 = vadd.f32 %v2141_v16, %v142_v21  ;;  %v152_v24 = vadd.f32 %v2141_v16, %v132_v22 }
  0xa8   :  { %vm158_vm2 = vcmp.gt.f32.partialorder %v154_v23, 0.0  ;;  %v162_v29 = vmul.f32 0.2, %v154_v23  ;;  %vm156_vm3 = vcmp.gt.f32.partialorder %v152_v24, 0.0  ;;  %v160_v30 = vmul.f32 0.2, %v152_v24 }
  0xaa   :  { %v164_v31 = vsel %vm156_vm3, %v152_v24, %v160_v30  ;;  %v166_v32 = vsel %vm158_vm2, %v154_v23, %v162_v29  ;;  %v2521_v23 = vld [vmem:[#allocation2 + $0x18] sm:$0xff]  ;;  %v2523_v24 = vld [vmem:[#allocation2 + $0x8] sm:$0xff] }
  0xab   :  { %v2455_v33 = vadd.f32 %v164_v31, %v2450_v25  ;;  %v2458_v35 = vadd.f32 %v166_v32, %v2452_v27  ;;  %v2538_v31 = vld [vmem:[%s3427_s3 + $0x2] ss:$0 sm:$0xff]  ;;  %v2540_v32 = vld [vmem:[#allocation2 + $0x28] sm:$0xff] }
  0xad   :  { %v147_v37 = vpop.permute.xlu1 %146  ;;  %v137_v38 = vpop.permute.xlu0 %136  ;;  %v177_v39 = vsel %vm176_vm4, %v2455_v33, -inf  ;;  %v183_v40 = vsel %vm176_vm4, %v2458_v35, -inf }
  0xae   :  { %v155_v41 = vadd.f32 %v2141_v16, %v147_v37  ;;  %v153_v42 = vadd.f32 %v2141_v16, %v137_v38  ;;  %178 = vmax.xlane.f32.xlu2 %v177_v39  ;;  %184 = vmax.xlane.f32.xlu0 %v183_v40 }
  0xb0   :  { %vm159_vm5 = vcmp.gt.f32.partialorder %v155_v41, 0.0  ;;  %v163_v45 = vmul.f32 0.2, %v155_v41  ;;  %vm157_vm6 = vcmp.gt.f32.partialorder %v153_v42, 0.0  ;;  %v161_v46 = vmul.f32 0.2, %v153_v42 }
  0xb2   :  { %v167_v48 = vsel %vm159_vm5, %v155_v41, %v163_v45  ;;  %v165_v49 = vsel %vm157_vm6, %v153_v42, %v161_v46 }
  0xb3   :  { %v2472_v50 = vadd.f32 %v167_v48, %v2464_v43  ;;  %v2475_v51 = vadd.f32 %v165_v49, %v2466_v44 }
  0xb5   :  { %v360_v52 = vpop.permute.xlu1 %359  ;;  %v365_v53 = vpop.permute.xlu0 %364  ;;  %v186_v54 = vsel %vm176_vm4, %v2472_v50, -inf  ;;  %v180_v55 = vsel %vm176_vm4, %v2475_v51, -inf }
  0xb6   :  { %v380_v56 = vadd.f32 %v2142_v47, %v360_v52  ;;  %v381_v57 = vadd.f32 %v2142_v47, %v365_v53  ;;  %187 = vmax.xlane.f32.xlu1 %v186_v54  ;;  %181 = vmax.xlane.f32.xlu2 %v180_v55  ;;  %v2567_v52 = vld [vmem:[%s3427_s3 + $0x3] ss:$0 sm:$0xff] }
  0xb8   :  { %vm384_vm7 = vcmp.gt.f32.partialorder %v380_v56, 0.0  ;;  %v388_v58 = vmul.f32 0.2, %v380_v56  ;;  %vm385_vm8 = vcmp.gt.f32.partialorder %v381_v57, 0.0  ;;  %v389_v59 = vmul.f32 0.2, %v381_v57 }
  0xba   :  { %v393_v60 = vsel %vm385_vm8, %v381_v57, %v389_v59  ;;  %v392_v61 = vsel %vm384_vm7, %v380_v56, %v388_v58 }
  0xbb   :  { %v2482_v62 = vadd.f32 %v393_v60, %v2466_v44  ;;  %v2485_v63 = vadd.f32 %v392_v61, %v2450_v25 }
  0xbd   :  { %v408_v0 = vsel %vm176_vm4, %v2482_v62, -inf  ;;  %v405_v1 = vsel %vm176_vm4, %v2485_v63, -inf  ;;  %v375_v7 = vpop.permute.xlu1 %374 }
  0xbe   :  { %409 = vmax.xlane.f32.xlu1 %v408_v0  ;;  %406 = vmax.xlane.f32.xlu0 %v405_v1  ;;  %v383_v9 = vadd.f32 %v2142_v47, %v375_v7 }
  0xc0   :  { %v391_v11 = vmul.f32 0.2, %v383_v9  ;;  %vm387_vm10 = vcmp.gt.f32.partialorder %v383_v9, 0.0 }
  0xc2   :  { %v395_v13 = vsel %vm387_vm10, %v383_v9, %v391_v11 }
  0xc3   :  { %v2506_v15 = vadd.f32 %v395_v13, %v2464_v43 }
  0xc5   :  { %v414_v16 = vsel %vm176_vm4, %v2506_v15, -inf }
  0xce   :  { %593 = vperm.xlu2 %2140, %v2049_v2   ;;  %v2068_v2 = vld [vmem:[%s3428_s4 + $0x68] sm:$0xff] }
  0xd2   :  { %817 = vperm.xlu0 %2138, %v2067_v3  }
  0xd7   :  { %588 = vperm.xlu1 %2139, %v2048_v4   ;;  %v2069_v4 = vld [vmem:[%s3428_s4 + $0x70] sm:$0xff] }
  0xf7   :  { %412 = vmax.xlane.f32.xlu2 %v411_v14 }
  0xfc   :  { %415 = vmax.xlane.f32.xlu0 %v414_v16  ;;  %v2607_v16 = vld [vmem:[#allocation2 + $0x38] sm:$0xff] }
 0x121   :  { %v179_v19 = vpop.xlane.xlu2 %178  ;;  %v185_v20 = vpop.xlane.xlu0 %184 }
 0x122   :  { %v2512_v21 = vmax.f32 %v172_v17, %v179_v19  ;;  %v2515_v22 = vmax.f32 %v2510_v18, %v185_v20 }
 0x124   :  { %346 = vst.msk [vmem:[#allocation2] sm:$0xff] %vm3439_vm0, %v2512_v21  ;;  %v193_v5 = vsub.f32 %v172_v17, %v2512_v21  ;;  %v195_v7 = vsub.f32 %v2510_v18, %v2515_v22 }
 0x125   :  { %348 = vst.msk [vmem:[#allocation2 + $0x10] sm:$0xff] %vm3439_vm0, %v2515_v22 }
 0x126   :  { %v197_v6 = vmul.f32 1.442695, %v193_v5  ;;  %v201_v9 = vmul.f32 1.442695, %v195_v7 }
 0x128   :  { %2145 = vpow2.f32 %v197_v6 }
 0x129   :  { %v188_v26 = vpop.xlane.xlu1 %187  ;;  %v182_v28 = vpop.xlane.xlu2 %181  ;;  %2147 = vpow2.f32 %v201_v9 }
 0x12a   :  { %v2526_v29 = vmax.f32 %v2521_v23, %v188_v26  ;;  %v2529_v30 = vmax.f32 %v2523_v24, %v182_v28 }
 0x12c   :  { %349 = vst.msk [vmem:[#allocation2 + $0x18] sm:$0xff] %vm3439_vm0, %v2526_v29  ;;  %v194_v20 = vsub.f32 %v2523_v24, %v2529_v30 }
 0x12d   :  { %347 = vst.msk [vmem:[#allocation2 + $0x8] sm:$0xff] %vm3439_vm0, %v2529_v30 }
 0x12e   :  { %v2599_v11 = vpop.eup %2145  ;;  %v199_v28 = vmul.f32 1.442695, %v194_v20 }
 0x12f   :  { %v2613_v19 = vpop.eup %2147 }
 0x130   :  { %2149 = vpow2.f32 %v199_v28 }
 0x131   :  { %v410_v36 = vpop.xlane.xlu1 %409  ;;  %v594_v37 = vpop.permute.xlu2 %593 }
 0x132   :  { %v2545_v38 = vmax.f32 %v2540_v32, %v410_v36  ;;  %v610_v39 = vadd.f32 %v2538_v31, %v594_v37  ;;  %v407_v40 = vpop.xlane.xlu0 %406 }
 0x133   :  { %v2549_v41 = vmax.f32 %v2542_v34, %v407_v40 }
 0x134   :  { %576 = vst.msk [vmem:[#allocation2 + $0x28] sm:$0xff] %vm3439_vm0, %v2545_v38  ;;  %vm614_vm11 = vcmp.gt.f32.partialorder %v610_v39, 0.0  ;;  %v618_v45 = vmul.f32 0.2, %v610_v39 }
 0x135   :  { %v421_v46 = vsub.f32 %v2542_v34, %v2549_v41  ;;  %575 = vst.msk [vmem:[#allocation2 + $0x20] sm:$0xff] %vm3439_vm0, %v2549_v41  ;;  %v196_v34 = vsub.f32 %v2521_v23, %v2526_v29 }
 0x136   :  { %v622_v47 = vsel %vm614_vm11, %v610_v39, %v618_v45  ;;  %v2625_v37 = vpop.eup %2149 }
 0x137   :  { %v2560_v48 = vadd.f32 %v622_v47, %v2466_v44  ;;  %v203_v36 = vmul.f32 1.442695, %v196_v34  ;;  %v425_v24 = vmul.f32 1.442695, %v421_v46  ;;  %v2641_v47 = vld [vmem:[#allocation2 + $0x60] sm:$0xff] }
 0x139   :  { %v637_v49 = vsel %vm176_vm4, %v2560_v48, -inf  ;;  %2151 = vpow2.f32 %v203_v36 }
 0x13a   :  { %638 = vmax.xlane.f32.xlu1 %v637_v49  ;;  %2153 = vpow2.f32 %v425_v24 }
 0x13f   :  { %v2628_v39 = vpop.eup %2151 }
 0x140   :  { %v2631_v40 = vpop.eup %2153 }
 0x144   :  { %v818_v53 = vpop.permute.xlu0 %817 }
 0x145   :  { %v838_v54 = vadd.f32 %v2567_v52, %v818_v53 }
 0x147   :  { %vm842_vm12 = vcmp.gt.f32.partialorder %v838_v54, 0.0  ;;  %v846_v55 = vmul.f32 0.2, %v838_v54 }
 0x149   :  { %v589_v56 = vpop.permute.xlu1 %588  ;;  %v850_v57 = vsel %vm842_vm12, %v838_v54, %v846_v55  ;;  %v2650_v54 = vld [vmem:[#allocation2 + $0x40] sm:$0xff] }
 0x14a   :  { %v609_v58 = vadd.f32 %v2538_v31, %v589_v56  ;;  %v2572_v59 = vadd.f32 %v850_v57, %v2450_v25 }
 0x14c   :  { %vm613_vm13 = vcmp.gt.f32.partialorder %v609_v58, 0.0  ;;  %v617_v60 = vmul.f32 0.2, %v609_v58  ;;  %v863_v61 = vsel %vm176_vm4, %v2572_v59, -inf }
 0x14d   :  { %864 = vmax.xlane.f32.xlu0 %v863_v61  ;;  %v2097_v61 = vld [vmem:[%s3426_s2 + $0x18] sm:$0xff] }
 0x14e   :  { %v621_v0 = vsel %vm613_vm13, %v609_v58, %v617_v60  ;;  %554 = vmatpush.bf16.msra.mxu1 %v2097_v61 }
 0x14f   :  { %v2577_v1 = vadd.f32 %v621_v0, %v2450_v25  ;;  %v2050_v25 = vld [vmem:[%s3428_s4 + $0x50] sm:$0xff] }
 0x151   :  { %v634_v3 = vsel %vm176_vm4, %v2577_v1, -inf }
 0x152   :  { %635 = vmax.xlane.f32.xlu2 %v634_v3 }
 0x153   :  { %822 = vperm.xlu1 %2139, %v2068_v2  }
 0x15b   :  { %827 = vperm.xlu1 %2139, %v2069_v4   ;;  %v2096_v4 = vld [vmem:[%s3426_s2 + $0x10] sm:$0xff] }
 0x15c   :  { %555 = vmatpush.bf16.msra.mxu1 %v2096_v4 }
 0x161   :  { %598 = vperm.xlu0 %2138, %v2050_v25  }
 0x163   :  { %435 = vperm.xlu1 %2139, %v2549_v41   ;;  %v2634_v41 = vld [vmem:[#allocation2 + $0x48] sm:$0xff] }
 0x169   :  { %832 = vperm.xlu0 %2138, %v2070_v8  }
 0x16a   :  { %v413_v13 = vpop.xlane.xlu2 %412 }
 0x16b   :  { %v2602_v14 = vmax.f32 %v2597_v10, %v413_v13  ;;  %272 = vperm.xlu1 %2139, %v2599_v11  }
 0x16d   :  { %577 = vst.msk [vmem:[#allocation2 + $0x30] sm:$0xff] %vm3439_vm0, %v2602_v14 }
 0x16f   :  { %v416_v17 = vpop.xlane.xlu0 %415 }
 0x170   :  { %v2610_v18 = vmax.f32 %v2607_v16, %v416_v17 }
 0x171   :  { %440 = vperm.xlu0 %2138, %v2545_v38  }
 0x172   :  { %v424_v26 = vsub.f32 %v2607_v16, %v2610_v18  ;;  %578 = vst.msk [vmem:[#allocation2 + $0x38] sm:$0xff] %vm3439_vm0, %v2610_v18 }
 0x173   :  { %282 = vperm.xlu1 %2139, %v2613_v19  }
 0x179   :  { %450 = vperm.xlu0 %2138, %v2610_v18  }
 0x181   :  { %277 = vperm.xlu0 %2138, %v2625_v37  }
 0x189   :  { %287 = vperm.xlu0 %2138, %v2628_v39  }
 0x191   :  { %501 = vperm.xlu0 %2138, %v2631_v40  }
 0x1ad   :  { %v639_v23 = vpop.xlane.xlu1 %638 }
 0x1ae   :  { %v2637_v45 = vmax.f32 %v2634_v41, %v639_v23 }
 0x1b0   :  { %805 = vst.msk [vmem:[#allocation2 + $0x48] sm:$0xff] %vm3439_vm0, %v2637_v45 }
 0x1c0   :  { %v865_v46 = vpop.xlane.xlu0 %864 }
 0x1c1   :  { %v2644_v49 = vmax.f32 %v2641_v47, %v865_v46 }
 0x1c3   :  { %v879_v53 = vsub.f32 %v2641_v47, %v2644_v49  ;;  %1033 = vst.msk [vmem:[#allocation2 + $0x60] sm:$0xff] %vm3439_vm0, %v2644_v49 }
 0x1c5   :  { %v823_v55 = vpop.permute.xlu1 %822  ;;  %v636_v56 = vpop.xlane.xlu2 %635 }
 0x1c6   :  { %v839_v57 = vadd.f32 %v2567_v52, %v823_v55  ;;  %v2654_v58 = vmax.f32 %v2650_v54, %v636_v56  ;;  %v2051_v56 = vld [vmem:[%s3428_s4 + $0x58] sm:$0xff] }
 0x1c8   :  { %vm843_vm14 = vcmp.gt.f32.partialorder %v839_v57, 0.0  ;;  %v847_v60 = vmul.f32 0.2, %v839_v57  ;;  %804 = vst.msk [vmem:[#allocation2 + $0x40] sm:$0xff] %vm3439_vm0, %v2654_v58 }
 0x1ca   :  { %v851_v0 = vsel %vm843_vm14, %v839_v57, %v847_v60 }
 0x1cb   :  { %v2662_v2 = vadd.f32 %v851_v0, %v2466_v44 }
 0x1cd   :  { %v866_v3 = vsel %vm176_vm4, %v2662_v2, -inf  ;;  %v828_v5 = vpop.permute.xlu1 %827 }
 0x1ce   :  { %867 = vmax.xlane.f32.xlu2 %v866_v3 }
 0x1d3   :  { %v599_v25 = vpop.permute.xlu0 %598 }
 0x1d4   :  { %v611_v6 = vadd.f32 %v2538_v31, %v599_v25 }
 0x1d5   :  { %v436_v17 = vpop.permute.xlu1 %435 }
 0x1d6   :  { %vm615_vm15 = vcmp.gt.f32.partialorder %v611_v6, 0.0  ;;  %v619_v7 = vmul.f32 0.2, %v611_v6  ;;  %v453_v34 = vsub.f32 %v2485_v63, %v436_v17 }
 0x1d8   :  { %v623_v8 = vsel %vm615_vm15, %v611_v6, %v619_v7  ;;  %v457_v23 = vmul.f32 1.442695, %v453_v34  ;;  %v2707_v6 = vld [vmem:[#allocation2 + $0x68] sm:$0xff] }
 0x1d9   :  { %v2671_v9 = vadd.f32 %v623_v8, %v2452_v27 }
 0x1da   :  { %2155 = vpow2.f32 %v457_v23 }
 0x1db   :  { %v833_v44 = vpop.permute.xlu0 %832  ;;  %v640_v13 = vsel %vm176_vm4, %v2671_v9, -inf }
 0x1dc   :  { %v841_v20 = vadd.f32 %v2567_v52, %v833_v44  ;;  %641 = vmax.xlane.f32.xlu1 %v640_v13 }
 0x1de   :  { %vm845_vm2 = vcmp.gt.f32.partialorder %v841_v20, 0.0  ;;  %v849_v28 = vmul.f32 0.2, %v841_v20 }
 0x1e0   :  { %v853_v36 = vsel %vm845_vm2, %v841_v20, %v849_v28  ;;  %v2686_v63 = vpop.eup %2155  ;;  %v2725_v20 = vld [vmem:[#allocation2 + $0x50] sm:$0xff] }
 0x1e1   :  { %v2678_v24 = vadd.f32 %v853_v36, %v2464_v43 }
 0x1e3   :  { %v441_v46 = vpop.permute.xlu0 %440  ;;  %v872_v55 = vsel %vm176_vm4, %v2678_v24, -inf }
 0x1e4   :  { %v454_v57 = vsub.f32 %v2482_v62, %v441_v46  ;;  %873 = vmax.xlane.f32.xlu1 %v872_v55  ;;  %v840_v62 = vadd.f32 %v2567_v52, %v828_v5 }
 0x1e6   :  { %v459_v60 = vmul.f32 1.442695, %v454_v57  ;;  %603 = vperm.xlu2 %2140, %v2051_v56   ;;  %v848_v3 = vmul.f32 0.2, %v840_v62  ;;  %vm844_vm3 = vcmp.gt.f32.partialorder %v840_v62, 0.0  ;;  %v2740_v56 = vld [vmem:[#allocation2 + $0x78] sm:$0xff] }
 0x1e8   :  { %2157 = vpow2.f32 %v459_v60 }
 0x1eb   :  { %v451_v13 = vpop.permute.xlu0 %450 }
 0x1ee   :  { %v2688_v61 = vpop.eup %2157  ;;  %207 = vperm.xlu2 %2140, %v2512_v21   ;;  %v852_v21 = vsel %vm844_vm3, %v840_v62, %v848_v3 }
 0x1ef   :  { %v523_v0 = vpack.c.bf16 %v2688_v61, %v2686_v63  ;;  %v2701_v4 = vadd.f32 %v852_v21, %v2452_v27  ;;  %v2094_v27 = vld [vmem:[%s3426_s2] sm:$0xff] }
 0x1f1   :  { %2046 = vmatmul.msk.bf16.vlgmr.msra.gmra.mxu1 %vm176_vm4, %v523_v0  ;;  %v869_v25 = vsel %vm176_vm4, %v2701_v4, -inf }
 0x1f3   :  { %v2742_v57 = vpop.permute.xlu0 %277 }
 0x1f6   :  { %212 = vperm.xlu2 %2140, %v2529_v30   ;;  %v2705_v30 = vpop.permute.xlu1 %272 }
 0x1fd   :  { %893 = vperm.xlu1 %2139, %v2644_v49  }
 0x1fe   :  { %217 = vperm.xlu2 %2140, %v2515_v22   ;;  %v2095_v22 = vld [vmem:[%s3426_s2 + $0x8] sm:$0xff]  ;;  %v2722_v7 = vpop.permute.xlu1 %282 }
 0x1ff   :  { %324 = vmatpush.bf16.msra.mxu0 %v2095_v22 }
 0x203   :  { %325 = vmatpush.bf16.msra.mxu0 %v2094_v27 }
 0x206   :  { %222 = vperm.xlu2 %2140, %v2526_v29  }
 0x20e   :  { %445 = vperm.xlu2 %2140, %v2602_v14  }
 0x237   :  { %870 = vmax.xlane.f32.xlu2 %v869_v25 }
 0x241   :  { %v868_v29 = vpop.xlane.xlu2 %867 }
 0x242   :  { %v2713_v52 = vmax.f32 %v2707_v6, %v868_v29 }
 0x244   :  { %v880_v5 = vsub.f32 %v2707_v6, %v2713_v52  ;;  %1034 = vst.msk [vmem:[#allocation2 + $0x68] sm:$0xff] %vm3439_vm0, %v2713_v52 }
 0x249   :  { %v604_v8 = vpop.permute.xlu2 %603 }
 0x24a   :  { %v612_v44 = vadd.f32 %v2538_v31, %v604_v8 }
 0x24c   :  { %vm616_vm5 = vcmp.gt.f32.partialorder %v612_v44, 0.0  ;;  %v620_v17 = vmul.f32 0.2, %v612_v44 }
 0x24e   :  { %v624_v28 = vsel %vm616_vm5, %v612_v44, %v620_v17 }
 0x24f   :  { %v642_v34 = vpop.xlane.xlu1 %641  ;;  %669 = vperm.xlu2 %2140, %v2637_v45   ;;  %v2729_v36 = vadd.f32 %v624_v28, %v2464_v43 }
 0x250   :  { %v2732_v23 = vmax.f32 %v2725_v20, %v642_v34  ;;  %v495_v34 = vld [vmem:[#allocation4 + $0x20] sm:$0xff] }
 0x251   :  { %v208_v46 = vpop.permute.xlu2 %207  ;;  %v643_v55 = vsel %vm176_vm4, %v2729_v36, -inf }
 0x252   :  { %v652_v31 = vsub.f32 %v2725_v20, %v2732_v23  ;;  %806 = vst.msk [vmem:[#allocation2 + $0x50] sm:$0xff] %vm3439_vm0, %v2732_v23  ;;  %644 = vmax.xlane.f32.xlu0 %v643_v55  ;;  %v225_v43 = vsub.f32 %v2455_v33, %v208_v46  ;;  %v2755_v33 = vpop.permute.xlu0 %287  ;;  %v650_v20 = vsub.f32 %v2650_v54, %v2654_v58 }
 0x254   :  { %v229_v3 = vmul.f32 1.442695, %v225_v43 }
 0x256   :  { %2159 = vpow2.f32 %v229_v3 }
 0x257   :  { %v874_v60 = vpop.xlane.xlu1 %873  ;;  %674 = vperm.xlu2 %2140, %v2732_v23  }
 0x258   :  { %v2747_v0 = vmax.f32 %v2740_v56, %v874_v60  ;;  %v456_v60 = vsub.f32 %v2506_v15, %v451_v13 }
 0x259   :  { %v213_v62 = vpop.permute.xlu2 %212 }
 0x25a   :  { %v882_v21 = vsub.f32 %v2740_v56, %v2747_v0  ;;  %1036 = vst.msk [vmem:[#allocation2 + $0x78] sm:$0xff] %vm3439_vm0, %v2747_v0  ;;  %v226_v25 = vsub.f32 %v2475_v51, %v213_v62  ;;  %v502_v46 = vpop.permute.xlu0 %501 }
 0x25b   :  { %v519_v62 = vmul.f32 %v502_v46, %v495_v34  ;;  %v2781_v46 = vld [vmem:[#allocation2 + $0x70] sm:$0xff] }
 0x25c   :  { %v231_v22 = vmul.f32 1.442695, %v226_v25  ;;  %v2757_v27 = vpop.eup %2159  ;;  %v463_v25 = vmul.f32 1.442695, %v456_v60 }
 0x25e   :  { %2161 = vpow2.f32 %v231_v22 }
 0x25f   :  { %908 = vperm.xlu2 %2140, %v2747_v0  }
 0x261   :  { %v218_v29 = vpop.permute.xlu2 %217 }
 0x262   :  { %v227_v44 = vsub.f32 %v2458_v35, %v218_v29 }
 0x264   :  { %v2759_v8 = vpop.eup %2161  ;;  %v233_v51 = vmul.f32 1.442695, %v227_v44 }
 0x265   :  { %v294_v17 = vpack.c.bf16 %v2759_v8, %v2757_v27 }
 0x266   :  { %664 = vperm.xlu0 %2138, %v2654_v58   ;;  %2163 = vpow2.f32 %v233_v51 }
 0x267   :  { %2027 = vmatmul.msk.bf16.vlgmr.msra.gmra.mxu0 %vm176_vm4, %v294_v17 }
 0x269   :  { %v223_v28 = vpop.permute.xlu2 %222 }
 0x26a   :  { %v228_v55 = vsub.f32 %v2472_v50, %v223_v28 }
 0x26c   :  { %v235_v43 = vmul.f32 1.442695, %v228_v55  ;;  %v2164_v44 = vpop.eup %2163 }
 0x26d   :  { %v251_v34 = vsel %vm176_vm4, %v2164_v44, 0.0 }
 0x26e   :  { %2165 = vpow2.f32 %v235_v43  ;;  %v557_v35 = vpop.f32.mrf.mxu1  ;;  %898 = vperm.xlu0 %2138, %v2713_v52   ;;  %v3440_v52 = vsub.f32 %v2540_v32, %v2545_v38 }
 0x26f   :  { %v567_v3 = vadd.f32 %v557_v35, %v519_v62  ;;  %2167 = vpow2.f32 %v463_v25 }
 0x271   :  { %571 = vst.msk [vmem:[#allocation4 + $0x20] sm:$0xff] %vm81_vm1, %v567_v3  ;;  %v446_v22 = vpop.permute.xlu2 %445 }
 0x272   :  { %v455_v29 = vsub.f32 %v2501_v12, %v446_v22  ;;  %v2099_v22 = vld [vmem:[%s3426_s2 + $0x28] sm:$0xff] }
 0x273   :  { %783 = vmatpush.bf16.msra.mxu2 %v2099_v22  ;;  %v894_v22 = vpop.permute.xlu1 %893 }
 0x274   :  { %v2771_v17 = vpop.eup %2165  ;;  %v461_v50 = vmul.f32 1.442695, %v455_v29  ;;  %v2098_v29 = vld [vmem:[%s3426_s2 + $0x20] sm:$0xff] }
 0x275   :  { %v295_v15 = vpack.c.bf16 %v2771_v17, %v2164_v44  ;;  %v2775_v13 = vpop.eup %2167  ;;  %v2798_v44 = vld [vmem:[#allocation2 + $0x58] sm:$0xff] }
 0x276   :  { %2169 = vpow2.f32 %v461_v50 }
 0x277   :  { %2028 = vmatmul.msk.bf16.gmra.mxu0 %vm176_vm4, %v295_v15  ;;  %784 = vmatpush.bf16.msra.mxu2 %v2098_v29 }
 0x27c   :  { %v2170_v51 = vpop.eup %2169 }
 0x27d   :  { %v524_v28 = vpack.c.bf16 %v2775_v13, %v2170_v51  ;;  %v480_v12 = vsel %vm176_vm4, %v2170_v51, 0.0 }
 0x27f   :  { %2047 = vmatmul.msk.bf16.gmra.mxu1 %vm176_vm4, %v524_v28  ;;  %v2101_v28 = vld [vmem:[%s3426_s2 + $0x38] sm:$0xff] }
 0x280   :  { %1012 = vmatpush.bf16.msra.mxu3 %v2101_v28  ;;  %v474_v28 = vsel %vm176_vm4, %v2686_v63, 0.0  ;;  %v483_v63 = vsel %vm176_vm4, %v2775_v13, 0.0  ;;  %v423_v13 = vsub.f32 %v2597_v10, %v2602_v14  ;;  %v254_v10 = vsel %vm176_vm4, %v2771_v17, 0.0 }
 0x288   :  { %252 = vadd.xlane.f32.xlu2 %v251_v34 }
 0x290   :  { %481 = vadd.xlane.f32.xlu2 %v480_v12  ;;  %v2100_v12 = vld [vmem:[%s3426_s2 + $0x30] sm:$0xff] }
 0x291   :  { %1013 = vmatpush.bf16.msra.mxu3 %v2100_v12 }
 0x2aa   :  { %v871_v55 = vpop.xlane.xlu2 %870 }
 0x2ab   :  { %v2784_v43 = vmax.f32 %v2781_v46, %v871_v55 }
 0x2ad   :  { %1035 = vst.msk [vmem:[#allocation2 + $0x70] sm:$0xff] %vm3439_vm0, %v2784_v43  ;;  %903 = vperm.xlu1 %2139, %v2784_v43  }
 0x2b2   :  { %v670_v62 = vpop.permute.xlu2 %669 }
 0x2b3   :  { %v683_v55 = vsub.f32 %v2560_v48, %v670_v62  ;;  %v266_v62 = vld [vmem:[#allocation4] sm:$0xff] }
 0x2b4   :  { %v290_v42 = vmul.f32 %v2705_v30, %v266_v62 }
 0x2ba   :  { %v675_v35 = vpop.permute.xlu2 %674 }
 0x2bb   :  { %v684_v3 = vsub.f32 %v2671_v9, %v675_v35  ;;  %v248_v35 = vsel %vm176_vm4, %v2759_v8, 0.0 }
 0x2bd   :  { %v690_v25 = vmul.f32 1.442695, %v684_v3  ;;  %v688_v3 = vmul.f32 1.442695, %v683_v55 }
 0x2bf   :  { %2171 = vpow2.f32 %v690_v25 }
 0x2c0   :  { %2173 = vpow2.f32 %v688_v3 }
 0x2c5   :  { %v2800_v50 = vpop.eup %2171  ;;  %v645_v15 = vpop.xlane.xlu0 %644 }
 0x2c6   :  { %v2803_v51 = vmax.f32 %v2798_v44, %v645_v15  ;;  %v709_v9 = vsel %vm176_vm4, %v2800_v50, 0.0 }
 0x2c7   :  { %710 = vadd.xlane.f32.xlu2 %v709_v9  ;;  %v911_v9 = vsub.f32 %v2572_v59, %v894_v22 }
 0x2c8   :  { %v653_v34 = vsub.f32 %v2798_v44, %v2803_v51  ;;  %807 = vst.msk [vmem:[#allocation2 + $0x58] sm:$0xff] %vm3439_vm0, %v2803_v51  ;;  %679 = vperm.xlu0 %2138, %v2803_v51  }
 0x2c9   :  { %v915_v12 = vmul.f32 1.442695, %v911_v9  ;;  %v268_v9 = vld [vmem:[#allocation4 + $0x10] sm:$0xff] }
 0x2ca   :  { %v660_v54 = vmul.f32 1.442695, %v653_v34 }
 0x2d7   :  { %249 = vadd.xlane.f32.xlu1 %v248_v35  ;;  %v2174_v35 = vpop.eup %2173 }
 0x2d8   :  { %v665_v25 = vpop.permute.xlu0 %664 }
 0x2d9   :  { %v682_v29 = vsub.f32 %v2577_v1, %v665_v25  ;;  %v267_v25 = vld [vmem:[#allocation4 + $0x8] sm:$0xff] }
 0x2db   :  { %v686_v15 = vmul.f32 1.442695, %v682_v29  ;;  %v291_v29 = vmul.f32 %v2742_v57, %v267_v25  ;;  %v909_v57 = vpop.permute.xlu2 %908 }
 0x2dd   :  { %2175 = vpow2.f32 %v686_v15 }
 0x2de   :  { %2177 = vpow2.f32 %v915_v12  ;;  %v292_v12 = vmul.f32 %v2722_v7, %v268_v9  ;;  %v914_v9 = vsub.f32 %v2678_v24, %v909_v57  ;;  %v697_v57 = vld [vmem:[#allocation3 + $0x50] sm:$0xff] }
 0x2df   :  { %475 = vadd.xlane.f32.xlu1 %v474_v28  ;;  %v245_v28 = vsel %vm176_vm4, %v2757_v27, 0.0 }
 0x2e0   :  { %v899_v48 = vpop.permute.xlu0 %898 }
 0x2e1   :  { %v912_v8 = vsub.f32 %v2662_v2, %v899_v48  ;;  %v429_v48 = vmul.f32 1.442695, %v423_v13  ;;  %v883_v13 = vmul.f32 1.442695, %v879_v53 }
 0x2e3   :  { %v2176_v55 = vpop.eup %2175  ;;  %v917_v60 = vmul.f32 1.442695, %v912_v8 }
 0x2e4   :  { %v752_v1 = vpack.c.bf16 %v2174_v35, %v2176_v55  ;;  %v327_v59 = vpop.f32.mrf.mxu0  ;;  %v2831_v2 = vpop.eup %2177 }
 0x2e5   :  { %2179 = vpow2.f32 %v917_v60  ;;  %v337_v3 = vadd.f32 %v327_v59, %v290_v42  ;;  %v706_v42 = vsel %vm176_vm4, %v2174_v35, 0.0  ;;  %v239_v35 = vld [vmem:[#allocation3 + $0x10] sm:$0xff]  ;;  %v269_v59 = vld [vmem:[#allocation4 + $0x18] sm:$0xff] }
 0x2e6   :  { %2065 = vmatmul.msk.bf16.vlgmr.msra.gmra.mxu2 %vm176_vm4, %v752_v1  ;;  %2181 = vpow2.f32 %v429_v48  ;;  %v243_v14 = vmul.f32 %v2613_v19, %v239_v35  ;;  %v293_v7 = vmul.f32 %v2755_v33, %v269_v59  ;;  %v651_v19 = vsub.f32 %v2634_v41, %v2637_v45 }
 0x2e7   :  { %484 = vadd.xlane.f32.xlu1 %v483_v63  ;;  %342 = vst.msk [vmem:[#allocation4] sm:$0xff] %vm81_vm1, %v337_v3  ;;  %v703_v33 = vsel %vm176_vm4, %v2176_v55, 0.0  ;;  %v889_v41 = vmul.f32 1.442695, %v882_v21  ;;  %v921_v55 = vmul.f32 1.442695, %v914_v9 }
 0x2e8   :  { %v658_v21 = vmul.f32 1.442695, %v652_v31  ;;  %v431_v48 = vmul.f32 1.442695, %v424_v26  ;;  %v654_v31 = vmul.f32 1.442695, %v650_v20 }
 0x2e9   :  { %v925_v9 = vld [vmem:[#allocation3 + $0x68] sm:$0xff] }
 0x2eb   :  { %v2180_v22 = vpop.eup %2179 }
 0x2ec   :  { %v981_v30 = vpack.c.bf16 %v2180_v22, %v2831_v2  ;;  %v329_v15 = vpop.f32.mrf.mxu0  ;;  %v935_v1 = vsel %vm176_vm4, %v2180_v22, 0.0  ;;  %v2182_v22 = vpop.eup %2181 }
 0x2ed   :  { %v338_v60 = vadd.f32 %v329_v15, %v291_v29  ;;  %v468_v29 = vld [vmem:[#allocation3 + $0x30] sm:$0xff] }
 0x2ee   :  { %2084 = vmatmul.msk.bf16.vlgmr.msra.gmra.mxu3 %vm176_vm4, %v981_v30  ;;  %v477_v30 = vsel %vm176_vm4, %v2688_v61, 0.0  ;;  %v472_v17 = vmul.f32 %v2182_v22, %v468_v29 }
 0x2ef   :  { %707 = vadd.xlane.f32.xlu1 %v706_v42  ;;  %343 = vst.msk [vmem:[#allocation4 + $0x8] sm:$0xff] %vm81_vm1, %v338_v60  ;;  %v656_v42 = vmul.f32 1.442695, %v651_v19 }
 0x2f1   :  { %2183 = vpow2.f32 %v656_v42 }
 0x2f2   :  { %246 = vadd.xlane.f32.xlu0 %v245_v28  ;;  %2185 = vpow2.f32 %v883_v13 }
 0x2f3   :  { %2187 = vpow2.f32 %v889_v41 }
 0x2f4   :  { %v332_v62 = vpop.f32.mrf.mxu0  ;;  %2189 = vpow2.f32 %v921_v55  ;;  %v240_v55 = vld [vmem:[#allocation3 + $0x18] sm:$0xff] }
 0x2f5   :  { %v339_v8 = vadd.f32 %v332_v62, %v292_v12 }
 0x2f7   :  { %936 = vadd.xlane.f32.xlu1 %v935_v1  ;;  %344 = vst.msk [vmem:[#allocation4 + $0x10] sm:$0xff] %vm81_vm1, %v339_v8  ;;  %v2860_v61 = vpop.eup %2183 }
 0x2f8   :  { %v2867_v45 = vpop.eup %2185 }
 0x2f9   :  { %v2871_v49 = vpop.eup %2187 }
 0x2fa   :  { %255 = vadd.xlane.f32.xlu0 %v254_v10  ;;  %v2190_v53 = vpop.eup %2189 }
 0x2fb   :  { %v253_v27 = vpop.xlane.xlu2 %252 }
 0x2fc   :  { %v259_v3 = vadd.f32 %v253_v27, %v243_v14  ;;  %v334_v63 = vpop.f32.mrf.mxu0  ;;  %v238_v14 = vld [vmem:[#allocation3 + $0x8] sm:$0xff] }
 0x2fd   :  { %v340_v25 = vadd.f32 %v334_v63, %v293_v7  ;;  %v242_v58 = vmul.f32 %v2625_v37, %v238_v14  ;;  %v885_v63 = vmul.f32 1.442695, %v880_v5  ;;  %v427_v5 = vmul.f32 1.442695, %v3440_v52  ;;  %v956_v52 = vld [vmem:[#allocation4 + $0x78] sm:$0xff] }
 0x2fe   :  { %264 = vst.msk [vmem:[#allocation3 + $0x10] sm:$0xff] %vm3439_vm0, %v259_v3  ;;  %v466_v3 = vld [vmem:[#allocation3 + $0x20] sm:$0xff] }
 0x2ff   :  { %345 = vst.msk [vmem:[#allocation4 + $0x18] sm:$0xff] %vm81_vm1, %v340_v25  ;;  %v470_v44 = vmul.f32 %v2631_v40, %v466_v3  ;;  %v941_v25 = vsel %vm176_vm4, %v2190_v53, 0.0  ;;  %v696_v40 = vld [vmem:[#allocation3 + $0x48] sm:$0xff] }
 0x302   :  { %478 = vadd.xlane.f32.xlu0 %v477_v30 }
 0x303   :  { %v482_v15 = vpop.xlane.xlu2 %481 }
 0x304   :  { %v488_v60 = vadd.f32 %v482_v15, %v472_v17  ;;  %v700_v17 = vmul.f32 %v2860_v61, %v696_v40  ;;  %v237_v15 = vld [vmem:[#allocation3] sm:$0xff] }
 0x306   :  { %492 = vst.msk [vmem:[#allocation3 + $0x30] sm:$0xff] %vm3439_vm0, %v488_v60 }
 0x30a   :  { %704 = vadd.xlane.f32.xlu0 %v703_v33  ;;  %v241_v33 = vmul.f32 %v2599_v11, %v237_v15  ;;  %v3441_v11 = vsub.f32 %v2781_v46, %v2784_v43  ;;  %v497_v43 = vld [vmem:[#allocation4 + $0x30] sm:$0xff] }
 0x310   :  { %511 = vperm.xlu1 %2139, %v2182_v22  }
 0x318   :  { %735 = vperm.xlu1 %2139, %v2860_v61   ;;  %v244_v61 = vmul.f32 %v2628_v39, %v240_v55  ;;  %v695_v39 = vld [vmem:[#allocation3 + $0x40] sm:$0xff] }
 0x319   :  { %v924_v55 = vld [vmem:[#allocation3 + $0x60] sm:$0xff] }
 0x31f   :  { %v904_v28 = vpop.permute.xlu1 %903 }
 0x320   :  { %v913_v12 = vsub.f32 %v2701_v4, %v904_v28  ;;  %959 = vperm.xlu1 %2139, %v2867_v45  }
 0x322   :  { %v919_v47 = vmul.f32 1.442695, %v913_v12 }
 0x324   :  { %2191 = vpow2.f32 %v919_v47 }
 0x325   :  { %2193 = vpow2.f32 %v658_v21 }
 0x326   :  { %2195 = vpow2.f32 %v431_v48  ;;  %v2924_v48 = vpop.f32.mrf.mxu1 }
 0x328   :  { %974 = vperm.xlu1 %2139, %v2871_v49  }
 0x32a   :  { %v2192_v24 = vpop.eup %2191 }
 0x32b   :  { %v938_v56 = vsel %vm176_vm4, %v2192_v24, 0.0  ;;  %v982_v0 = vpack.c.bf16 %v2190_v53, %v2192_v24  ;;  %v2879_v4 = vpop.eup %2193  ;;  %v887_v53 = vmul.f32 1.442695, %v3441_v11  ;;  %v467_v24 = vld [vmem:[#allocation3 + $0x28] sm:$0xff] }
 0x32c   :  { %939 = vadd.xlane.f32.xlu2 %v938_v56  ;;  %v701_v62 = vmul.f32 %v2879_v4, %v697_v57  ;;  %v2196_v10 = vpop.eup %2195 }
 0x32d   :  { %2085 = vmatmul.msk.bf16.gmra.mxu3 %vm176_vm4, %v982_v0 }
 0x33a   :  { %v680_v8 = vpop.permute.xlu0 %679  ;;  %v711_v1 = vpop.xlane.xlu2 %710 }
 0x33b   :  { %v685_v35 = vsub.f32 %v2729_v36, %v680_v8  ;;  %v717_v59 = vadd.f32 %v711_v1, %v701_v62 }
 0x33d   :  { %v692_v23 = vmul.f32 1.442695, %v685_v35  ;;  %721 = vst.msk [vmem:[#allocation3 + $0x50] sm:$0xff] %vm3439_vm0, %v717_v59  ;;  %v562_v59 = vpop.f32.mrf.mxu1 }
 0x33f   :  { %2197 = vpow2.f32 %v692_v23  ;;  %v725_v23 = vld [vmem:[#allocation4 + $0x48] sm:$0xff] }
 0x340   :  { %2199 = vpow2.f32 %v654_v31 }
 0x341   :  { %2201 = vpow2.f32 %v660_v54 }
 0x342   :  { %2203 = vpow2.f32 %v885_v63  ;;  %v498_v63 = vld [vmem:[#allocation4 + $0x38] sm:$0xff] }
 0x343   :  { %2205 = vpow2.f32 %v427_v5 }
 0x344   :  { %516 = vperm.xlu2 %2140, %v2196_v10   ;;  %2207 = vpow2.f32 %v887_v53 }
 0x345   :  { %v2198_v16 = vpop.eup %2197 }
 0x346   :  { %v712_v18 = vsel %vm176_vm4, %v2198_v16, 0.0  ;;  %v753_v26 = vpack.c.bf16 %v2198_v16, %v2800_v50  ;;  %v2200_v27 = vpop.eup %2199  ;;  %v932_v50 = vsel %vm176_vm4, %v2831_v2, 0.0  ;;  %v469_v2 = vld [vmem:[#allocation3 + $0x38] sm:$0xff] }
 0x347   :  { %713 = vadd.xlane.f32.xlu0 %v712_v18  ;;  %v2903_v37 = vpop.eup %2201  ;;  %v473_v22 = vmul.f32 %v2196_v10, %v469_v2  ;;  %v699_v62 = vmul.f32 %v2200_v27, %v695_v39 }
 0x348   :  { %2066 = vmatmul.msk.bf16.gmra.mxu2 %vm176_vm4, %v753_v26  ;;  %v2204_v30 = vpop.eup %2203  ;;  %v953_v26 = vld [vmem:[#allocation4 + $0x60] sm:$0xff] }
 0x349   :  { %v929_v41 = vmul.f32 %v2204_v30, %v925_v9  ;;  %v2206_v28 = vpop.eup %2205 }
 0x34a   :  { %v250_v36 = vpop.xlane.xlu1 %249  ;;  %v471_v56 = vmul.f32 %v2206_v28, %v467_v24  ;;  %v2208_v57 = vpop.eup %2207 }
 0x34b   :  { %v258_v7 = vadd.f32 %v250_v36, %v242_v58 }
 0x34c   :  { %730 = vperm.xlu2 %2140, %v2200_v27   ;;  %v926_v27 = vld [vmem:[#allocation3 + $0x70] sm:$0xff] }
 0x34d   :  { %263 = vst.msk [vmem:[#allocation3 + $0x8] sm:$0xff] %vm3439_vm0, %v258_v7  ;;  %v930_v7 = vmul.f32 %v2208_v57, %v926_v27 }
 0x34f   :  { %933 = vadd.xlane.f32.xlu0 %v932_v50 }
 0x352   :  { %v476_v51 = vpop.xlane.xlu1 %475 }
 0x353   :  { %v486_v34 = vadd.f32 %v476_v51, %v470_v44 }
 0x354   :  { %745 = vperm.xlu2 %2140, %v2903_v37  }
 0x355   :  { %490 = vst.msk [vmem:[#allocation3 + $0x20] sm:$0xff] %vm3439_vm0, %v486_v34 }
 0x357   :  { %942 = vadd.xlane.f32.xlu0 %v941_v25  ;;  %v564_v25 = vpop.f32.mrf.mxu1 }
 0x35a   :  { %v485_v29 = vpop.xlane.xlu1 %484 }
 0x35b   :  { %v489_v6 = vadd.f32 %v485_v29, %v473_v22  ;;  %v724_v22 = vld [vmem:[#allocation4 + $0x40] sm:$0xff] }
 0x35c   :  { %964 = vperm.xlu2 %2140, %v2204_v30  }
 0x35d   :  { %493 = vst.msk [vmem:[#allocation3 + $0x38] sm:$0xff] %vm3439_vm0, %v489_v6 }
 0x362   :  { %v708_v60 = vpop.xlane.xlu1 %707 }
 0x363   :  { %v716_v19 = vadd.f32 %v708_v60, %v700_v17  ;;  %v698_v17 = vld [vmem:[#allocation3 + $0x58] sm:$0xff] }
 0x365   :  { %720 = vst.msk [vmem:[#allocation3 + $0x48] sm:$0xff] %vm3439_vm0, %v716_v19  ;;  %v247_v42 = vpop.xlane.xlu0 %246 }
 0x366   :  { %v257_v13 = vadd.f32 %v247_v42, %v241_v33  ;;  %v702_v42 = vmul.f32 %v2903_v37, %v698_v17  ;;  %v927_v37 = vld [vmem:[#allocation3 + $0x78] sm:$0xff] }
 0x367   :  { %v931_v11 = vmul.f32 %v2871_v49, %v927_v37 }
 0x368   :  { %262 = vst.msk [vmem:[#allocation3] sm:$0xff] %vm3439_vm0, %v257_v13 }
 0x369   :  { %v786_v1 = vpop.f32.mrf.mxu2 }
 0x36a   :  { %v937_v32 = vpop.xlane.xlu1 %936 }
 0x36b   :  { %v945_v38 = vadd.f32 %v937_v32, %v929_v41  ;;  %506 = vperm.xlu0 %2138, %v2206_v28   ;;  %v954_v41 = vld [vmem:[#allocation4 + $0x68] sm:$0xff] }
 0x36d   :  { %949 = vst.msk [vmem:[#allocation3 + $0x68] sm:$0xff] %vm3439_vm0, %v945_v38  ;;  %v256_v12 = vpop.xlane.xlu0 %255  ;;  %v928_v38 = vmul.f32 %v2867_v45, %v924_v55  ;;  %v496_v45 = vld [vmem:[#allocation4 + $0x28] sm:$0xff] }
 0x36e   :  { %v260_v47 = vadd.f32 %v256_v12, %v244_v61 }
 0x370   :  { %265 = vst.msk [vmem:[#allocation3 + $0x18] sm:$0xff] %vm3439_vm0, %v260_v47 }
 0x371   :  { %v788_v16 = vpop.f32.mrf.mxu2  ;;  %v1015_v58 = vpop.f32.mrf.mxu3 }
 0x373   :  { %740 = vperm.xlu0 %2138, %v2879_v4  }
 0x375   :  { %v479_v0 = vpop.xlane.xlu0 %478 }
 0x376   :  { %v487_v21 = vadd.f32 %v479_v0, %v471_v56  ;;  %v727_v0 = vld [vmem:[#allocation4 + $0x58] sm:$0xff] }
 0x378   :  { %491 = vst.msk [vmem:[#allocation3 + $0x28] sm:$0xff] %vm3439_vm0, %v487_v21 }
 0x379   :  { %v1017_v51 = vpop.f32.mrf.mxu3 }
 0x37b   :  { %969 = vperm.xlu0 %2138, %v2208_v57  }
 0x37d   :  { %v705_v8 = vpop.xlane.xlu0 %704 }
 0x37e   :  { %v715_v46 = vadd.f32 %v705_v8, %v699_v62 }
 0x380   :  { %719 = vst.msk [vmem:[#allocation3 + $0x40] sm:$0xff] %vm3439_vm0, %v715_v46 }
 0x382   :  { %v512_v35 = vpop.permute.xlu1 %511 }
 0x383   :  { %v521_v4 = vmul.f32 %v512_v35, %v497_v43  ;;  %v726_v43 = vld [vmem:[#allocation4 + $0x50] sm:$0xff] }
 0x385   :  { %v569_v20 = vadd.f32 %v562_v59, %v521_v4  ;;  %v955_v4 = vld [vmem:[#allocation4 + $0x70] sm:$0xff] }
 0x387   :  { %573 = vst.msk [vmem:[#allocation4 + $0x30] sm:$0xff] %vm81_vm1, %v569_v20 }
 0x38a   :  { %v736_v31 = vpop.permute.xlu1 %735 }
 0x38b   :  { %v749_v10 = vmul.f32 %v736_v31, %v725_v23 }
 0x38d   :  { %v797_v18 = vadd.f32 %v788_v16, %v749_v10 }
 0x38f   :  { %801 = vst.msk [vmem:[#allocation4 + $0x48] sm:$0xff] %vm81_vm1, %v797_v18 }
 0x392   :  { %v960_v14 = vpop.permute.xlu1 %959 }
 0x393   :  { %v977_v54 = vmul.f32 %v960_v14, %v953_v26 }
 0x395   :  { %v1025_v36 = vadd.f32 %v1015_v58, %v977_v54 }
 0x397   :  { %1029 = vst.msk [vmem:[#allocation4 + $0x60] sm:$0xff] %vm81_vm1, %v1025_v36 }
 0x39a   :  { %v975_v5 = vpop.permute.xlu1 %974 }
 0x39b   :  { %v980_v15 = vmul.f32 %v975_v5, %v956_v52 }
 0x39f   :  { %v940_v50 = vpop.xlane.xlu2 %939 }
 0x3a0   :  { %v946_v3 = vadd.f32 %v940_v50, %v930_v7 }
 0x3a2   :  { %950 = vst.msk [vmem:[#allocation3 + $0x70] sm:$0xff] %vm3439_vm0, %v946_v3 }
 0x3a7   :  { %v517_v44 = vpop.permute.xlu2 %516 }
 0x3a8   :  { %v522_v34 = vmul.f32 %v517_v44, %v498_v63 }
 0x3aa   :  { %v570_v2 = vadd.f32 %v564_v25, %v522_v34 }
 0x3ac   :  { %574 = vst.msk [vmem:[#allocation4 + $0x38] sm:$0xff] %vm81_vm1, %v570_v2 }
 0x3af   :  { %v731_v29 = vpop.permute.xlu2 %730 }
 0x3b0   :  { %v748_v30 = vmul.f32 %v731_v29, %v724_v22  ;;  %v1020_v6 = vpop.f32.mrf.mxu3 }
 0x3b2   :  { %v796_v40 = vadd.f32 %v786_v1, %v748_v30 }
 0x3b4   :  { %800 = vst.msk [vmem:[#allocation4 + $0x40] sm:$0xff] %vm81_vm1, %v796_v40 }
 0x3b7   :  { %v746_v60 = vpop.permute.xlu2 %745 }
 0x3b8   :  { %v1022_v19 = vpop.f32.mrf.mxu3  ;;  %v751_v21 = vmul.f32 %v746_v60, %v727_v0 }
 0x3b9   :  { %v1028_v33 = vadd.f32 %v1022_v19, %v980_v15 }
 0x3ba   :  { %v714_v13 = vpop.xlane.xlu0 %713 }
 0x3bb   :  { %1032 = vst.msk [vmem:[#allocation4 + $0x78] sm:$0xff] %vm81_vm1, %v1028_v33  ;;  %v718_v9 = vadd.f32 %v714_v13, %v702_v42 }
 0x3bd   :  { %722 = vst.msk [vmem:[#allocation3 + $0x58] sm:$0xff] %vm3439_vm0, %v718_v9 }
 0x3bf   :  { %v965_v28 = vpop.permute.xlu2 %964 }
 0x3c0   :  { %v978_v32 = vmul.f32 %v965_v28, %v954_v41 }
 0x3c2   :  { %v1026_v61 = vadd.f32 %v1017_v51, %v978_v32  ;;  %v934_v12 = vpop.xlane.xlu0 %933 }
 0x3c3   :  { %v944_v47 = vadd.f32 %v934_v12, %v928_v38 }
 0x3c4   :  { %1030 = vst.msk [vmem:[#allocation4 + $0x68] sm:$0xff] %vm81_vm1, %v1026_v61 }
 0x3c5   :  { %948 = vst.msk [vmem:[#allocation3 + $0x60] sm:$0xff] %vm3439_vm0, %v944_v47 }
 0x3ca   :  { %v943_v53 = vpop.xlane.xlu0 %942 }
 0x3cb   :  { %v947_v24 = vadd.f32 %v943_v53, %v931_v11  ;;  %v791_v56 = vpop.f32.mrf.mxu2 }
 0x3cd   :  { %951 = vst.msk [vmem:[#allocation3 + $0x78] sm:$0xff] %vm3439_vm0, %v947_v24 }
 0x3d3   :  { %v793_v39 = vpop.f32.mrf.mxu2 }
 0x3d4   :  { %v799_v57 = vadd.f32 %v793_v39, %v751_v21 }
 0x3d6   :  { %803 = vst.msk [vmem:[#allocation4 + $0x58] sm:$0xff] %vm81_vm1, %v799_v57 }
 0x3dd   :  { %v507_v62 = vpop.permute.xlu0 %506 }
 0x3de   :  { %v520_v8 = vmul.f32 %v507_v62, %v496_v45 }
 0x3e0   :  { %v568_v46 = vadd.f32 %v2924_v48, %v520_v8 }
 0x3e2   :  { %572 = vst.msk [vmem:[#allocation4 + $0x28] sm:$0xff] %vm81_vm1, %v568_v46 }
 0x3e5   :  { %v741_v49 = vpop.permute.xlu0 %740 }
 0x3e6   :  { %v750_v1 = vmul.f32 %v741_v49, %v726_v43 }
 0x3e8   :  { %v798_v35 = vadd.f32 %v791_v56, %v750_v1 }
 0x3ea   :  { %802 = vst.msk [vmem:[#allocation4 + $0x50] sm:$0xff] %vm81_vm1, %v798_v35 }
 0x3ed   :  { %v970_v59 = vpop.permute.xlu0 %969 }
 0x3ee   :  { %v979_v20 = vmul.f32 %v970_v59, %v955_v4 }
 0x3f0   :  { %v1027_v23 = vadd.f32 %v1020_v6, %v979_v20 }
 0x3f2   :  { %1031 = vst.msk [vmem:[#allocation4 + $0x70] sm:$0xff] %vm81_vm1, %v1027_v23 }
 0x3f3 PF:  { %v1237_v31 = vld [vmem:[#allocation3 + $0x50] sm:$0xff]  ;;  %v1334_v10 = vld [vmem:[#allocation3 + $0x68] sm:$0xff]  ;;  %v2282_v18 = vmov 0   ;;  %v1336_v25 = vld [vmem:[#allocation3 + $0x78] sm:$0xff]  ;;  %s2283_s2 = smov 24   ;;  %s2284_s17 = smov 8  }
 0x3f4   :  { %v1138_v16 = vld [vmem:[#allocation3 + $0x28] sm:$0xff]  ;;  %2211 = vset.pattern.permute.xlu2 %v2282_v18  ;;  %2210 = vset.pattern.permute.xlu1 %v2282_v18  ;;  %v1241_v48 = vmax.f32 %v1237_v31, 1e-30  ;;  %v1338_v26 = vmax.f32 %v1334_v10, 1e-30  ;;  %v1335_v54 = vld [vmem:[#allocation3 + $0x70] sm:$0xff] }
 0x3f5   :  { %v2946_v14 = vmax.f32 %v1138_v16, 1e-30  ;;  %2209 = vset.pattern.permute.xlu0 %v2282_v18  ;;  %v1139_v7 = vld [vmem:[#allocation3 + $0x30] sm:$0xff]  ;;  %v1236_v44 = vld [vmem:[#allocation3 + $0x48] sm:$0xff]  ;;  %v2951_v51 = vmax.f32 %v1335_v54, 1e-30 }
 0x3f6   :  { %2217 = vrcp.f32 %v1241_v48  ;;  %v1282_v58 = vand.u32 2147483647, %v1241_v48  ;;  %v1284_v36 = vand.u32 2147483648, %v1241_v48  ;;  %v1365_v27 = vand.u32 2147483647, %v1338_v26  ;;  %v1238_v29 = vld [vmem:[#allocation3 + $0x58] sm:$0xff] }
 0x3f7   :  { %2219 = vrcp.f32 %v1338_v26  ;;  %v1367_v50 = vand.u32 2147483648, %v1338_v26  ;;  %v1169_v3 = vand.u32 2147483647, %v2946_v14  ;;  %v1171_v63 = vand.u32 2147483648, %v2946_v14  ;;  %s2285_s1 = smov 16   ;;  %s2287_s29 = smov 1  }
 0x3f8   :  { %2221 = vrcp.f32 %v2946_v14  ;;  %vm1278_vm4 = vweird.f32 %v1241_v48  ;;  %v2953_v34 = vmax.f32 %v1139_v7, 1e-30  ;;  %vm2955_vm6 = vcmp.eq.f32.partialorder %v1282_v58, 8.507059e+37  ;;  %s2288_s30 = smov 2   ;;  %s2289_s15 = smov 3  }
 0x3f9   :  { %v1285_v22 = vor.u32 1.1754944e-38, %v1284_v36  ;;  %vm1361_vm7 = vweird.f32 %v1338_v26  ;;  %vm1165_vm8 = vweird.f32 %v2946_v14  ;;  %vm2960_vm9 = vcmp.eq.f32.partialorder %v1365_v27, 8.507059e+37  ;;  %s2290_s18 = smov 4   ;;  %s2291_s19 = smov 5  }
 0x3fa   :  { %v1368_v40 = vor.u32 1.1754944e-38, %v1367_v50  ;;  %v1172_v52 = vor.u32 1.1754944e-38, %v1171_v63  ;;  %2223 = vrcp.f32 %v2951_v51  ;;  %v2965_v5 = vmax.f32 %v1236_v44, 1e-30  ;;  %s2293_s0 = smov 7  }
 0x3fb   :  { %vm2967_vm10 = vcmp.eq.f32.partialorder %v1169_v3, 8.507059e+37  ;;  %v1380_v19 = vand.u32 2147483647, %v2951_v51  ;;  %2225 = vrcp.f32 %v2953_v34  ;;  %v2973_v33 = vmax.f32 %v1336_v25, 1e-30 }
 0x3fc   :  { %v2218_v30 = vpop.eup %2217  ;;  %vm1376_vm11 = vweird.f32 %v2951_v51  ;;  %v1382_v9 = vand.u32 2147483648, %v2951_v51  ;;  %v2977_v41 = vmax.f32 %v1238_v29, 1e-30  ;;  %vm1180_vm13 = vweird.f32 %v2953_v34  ;;  %v1333_v29 = vld [vmem:[#allocation3 + $0x60] sm:$0xff] }
 0x3fd   :  { %v2220_v17 = vpop.eup %2219  ;;  %v1274_v15 = vmul.f32 %v2218_v30, %v1241_v48  ;;  %vm1279_vm12 = vweird.f32 %v2218_v30  ;;  %v1184_v38 = vand.u32 2147483647, %v2953_v34  ;;  %2227 = vrcp.f32 %v2965_v5 }
 0x3fe   :  { %v2222_v42 = vpop.eup %2221  ;;  %v1357_v13 = vmul.f32 %v2220_v17, %v1338_v26  ;;  %vm1362_vm14 = vweird.f32 %v2220_v17  ;;  %vm2983_vm2 = vcmp.eq.f32.partialorder %v1380_v19, 8.507059e+37  ;;  %vm2988_vm3 = vmor %vm1278_vm4, %vm1279_vm12  ;;  %v1383_v24 = vor.u32 1.1754944e-38, %v1382_v9 }
 0x3ff   :  { %v1275_v55 = vsub.f32 1.0, %v1274_v15  ;;  %v1161_v28 = vmul.f32 %v2222_v42, %v2946_v14  ;;  %vm1166_vm15 = vweird.f32 %v2222_v42  ;;  %v1186_v56 = vand.u32 2147483648, %v2953_v34  ;;  %vm2996_vm5 = vmor %vm1361_vm7, %vm1362_vm14 }
 0x400   :  { %v1358_v32 = vsub.f32 1.0, %v1357_v13  ;;  %v2224_v37 = vpop.eup %2223  ;;  %2229 = vrcp.f32 %v2973_v33  ;;  %vm1263_vm4 = vweird.f32 %v2965_v5  ;;  %vm3005_vm12 = vmor %vm1165_vm8, %vm1166_vm15  ;;  %vm3010_vm0 = vcmp.eq.f32.partialorder %v1184_v38, 8.507059e+37 }
 0x401   :  { %v1276_v61 = vmul.f32 %v2218_v30, %v1275_v55  ;;  %v1162_v12 = vsub.f32 1.0, %v1161_v28  ;;  %v2226_v0 = vpop.eup %2225  ;;  %v1372_v45 = vmul.f32 %v2224_v37, %v2951_v51  ;;  %v1267_v49 = vand.u32 2147483647, %v2965_v5 }
 0x402   :  { %v1359_v53 = vmul.f32 %v2220_v17, %v1358_v32  ;;  %v1176_v46 = vmul.f32 %v2226_v0, %v2953_v34  ;;  %vm1377_vm7 = vweird.f32 %v2224_v37  ;;  %vm1181_vm8 = vweird.f32 %v2226_v0 }
 0x403   :  { %v1277_v21 = vadd.f32 %v2218_v30, %v1276_v61  ;;  %v1163_v57 = vmul.f32 %v2222_v42, %v1162_v12  ;;  %v1373_v4 = vsub.f32 1.0, %v1372_v45  ;;  %v2228_v59 = vpop.eup %2227  ;;  %v1187_v36 = vor.u32 1.1754944e-38, %v1186_v56 }
 0x404   :  { %v1360_v62 = vadd.f32 %v2220_v17, %v1359_v53  ;;  %v1177_v31 = vsub.f32 1.0, %v1176_v46  ;;  %v1259_v48 = vmul.f32 %v2228_v59, %v2965_v5  ;;  %v1269_v27 = vand.u32 2147483648, %v2965_v5 }
 0x405   :  { %v1281_v1 = vsel %vm2988_vm3, %v2218_v30, %v1277_v21  ;;  %v1164_v35 = vadd.f32 %v2222_v42, %v1163_v57  ;;  %v1374_v18 = vmul.f32 %v2224_v37, %v1373_v4  ;;  %v1395_v51 = vand.u32 2147483647, %v2973_v33  ;;  %v3100_v21 = vld [vmem:[#allocation3 + $0x20] sm:$0xff]  ;;  %v3118_v4 = vld [vmem:[#allocation3 + $0x10] sm:$0xff] }
 0x406   :  { %v1286_v20 = vsel %vm2955_vm6, %v1285_v22, %v1281_v1  ;;  %v1364_v23 = vsel %vm2996_vm5, %v2220_v17, %v1360_v62  ;;  %v3026_v26 = vpop.eup %2229  ;;  %vm3032_vm6 = vmor %vm1376_vm11, %vm1377_vm7  ;;  %v1178_v58 = vmul.f32 %v2226_v0, %v1177_v31  ;;  %v1260_v3 = vsub.f32 1.0, %v1259_v48  ;;  %v1140_v22 = vld [vmem:[#allocation3 + $0x38] sm:$0xff] }
 0x407   :  { %1320 = vperm.xlu2 %2211, %v1286_v20   ;;  %v1369_v10 = vsel %vm2960_vm9, %v1368_v40, %v1364_v23  ;;  %v1168_v16 = vsel %vm3005_vm12, %v2222_v42, %v1164_v35  ;;  %v1375_v7 = vadd.f32 %v2224_v37, %v1374_v18  ;;  %vm3040_vm9 = vmor %vm1180_vm13, %vm1181_vm8  ;;  %v1387_v63 = vmul.f32 %v3026_v26, %v2973_v33  ;;  %v1235_v42 = vld [vmem:[#allocation3 + $0x40] sm:$0xff]  ;;  %v3103_v62 = vld [vmem:[#allocation3 + $0x18] sm:$0xff] }
 0x408   :  { %1413 = vperm.xlu1 %2210, %v1369_v10   ;;  %v1173_v14 = vsel %vm2967_vm10, %v1172_v52, %v1168_v16  ;;  %vm1264_vm10 = vweird.f32 %v2228_v59  ;;  %v1179_v44 = vadd.f32 %v2226_v0, %v1178_v58  ;;  %vm1391_vm11 = vweird.f32 %v2973_v33 }
 0x409   :  { %1217 = vperm.xlu0 %2209, %v1173_v14   ;;  %2231 = vrcp.f32 %v2977_v41  ;;  %v1379_v25 = vsel %vm3032_vm6, %v2224_v37, %v1375_v7  ;;  %v1261_v34 = vmul.f32 %v2228_v59, %v1260_v3  ;;  %v1388_v2 = vsub.f32 1.0, %v1387_v63  ;;  %vm3058_vm14 = vmor %vm1263_vm4, %vm1264_vm10 }
 0x40a   :  { %vm1392_vm13 = vweird.f32 %v3026_v26  ;;  %v1384_v30 = vsel %vm2983_vm2, %v1383_v24, %v1379_v25  ;;  %v1183_v6 = vsel %vm3040_vm9, %v2226_v0, %v1179_v44  ;;  %v1270_v52 = vor.u32 1.1754944e-38, %v1269_v27 }
 0x40b   :  { %v1397_v17 = vand.u32 2147483648, %v2973_v33  ;;  %v1188_v15 = vsel %vm3010_vm0, %v1187_v36, %v1183_v6  ;;  %v1262_v60 = vadd.f32 %v2228_v59, %v1261_v34  ;;  %vm1268_vm15 = vcmp.eq.f32.partialorder %v1267_v49, 8.507059e+37  ;;  %vm3068_vm2 = vmor %vm1391_vm11, %vm1392_vm13 }
 0x40c   :  { %v1389_v19 = vmul.f32 %v3026_v26, %v1388_v2  ;;  %v1297_v5 = vand.u32 2147483647, %v2977_v41  ;;  %v3073_v9 = vmax.f32 %v1140_v22, 1e-30  ;;  %v3075_v55 = vmax.f32 %v1333_v29, 1e-30 }
 0x40d   :  { %v1266_v28 = vsel %vm3058_vm14, %v2228_v59, %v1262_v60  ;;  %vm3080_vm0 = vcmp.eq.f32.partialorder %v1395_v51, 8.507059e+37  ;;  %v1299_v33 = vand.u32 2147483648, %v2977_v41  ;;  %v1398_v47 = vor.u32 1.1754944e-38, %v1397_v17  ;;  %v1207_v2 = vld [vmem:[#allocation4 + $0x28] sm:$0xff] }
 0x40e   :  { %v1390_v32 = vadd.f32 %v3026_v26, %v1389_v19  ;;  %v1271_v12 = vsel %vm1268_vm15, %v1270_v52, %v1266_v28  ;;  %2233 = vrcp.f32 %v3073_v9  ;;  %v3086_v37 = vmax.f32 %v1235_v42, 1e-30 }
 0x40f   :  { %1418 = vperm.xlu2 %2211, %v1384_v30   ;;  %v2232_v61 = vpop.eup %2231  ;;  %v1199_v24 = vand.u32 2147483647, %v3073_v9  ;;  %v1201_v56 = vand.u32 2147483648, %v3073_v9  ;;  %vm1293_vm3 = vweird.f32 %v2977_v41  ;;  %vm3095_vm5 = vcmp.eq.f32.partialorder %v1297_v5, 8.507059e+37 }
 0x410   :  { %1222 = vperm.xlu1 %2210, %v1188_v15   ;;  %v1394_v11 = vsel %vm3068_vm2, %v3026_v26, %v1390_v32  ;;  %v1289_v53 = vmul.f32 %v2232_v61, %v2977_v41  ;;  %2235 = vrcp.f32 %v3075_v55  ;;  %vm1294_vm4 = vweird.f32 %v2232_v61  ;;  %v1404_v15 = vld [vmem:[#allocation4 + $0x70] sm:$0xff] }
 0x411   :  { %1315 = vperm.xlu0 %2209, %v1271_v12   ;;  %v1300_v57 = vor.u32 1.1754944e-38, %v1299_v33  ;;  %v1350_v45 = vand.u32 2147483647, %v3075_v55  ;;  %v1399_v8 = vsel %vm3080_vm0, %v1398_v47, %v1394_v11  ;;  %vm1195_vm12 = vweird.f32 %v3073_v9  ;;  %vm3123_vm6 = vmor %vm1293_vm3, %vm1294_vm4 }
 0x412   :  { %v1290_v39 = vsub.f32 1.0, %v1289_v53  ;;  %vm1346_vm7 = vweird.f32 %v3075_v55  ;;  %2237 = vrcp.f32 %v3086_v37  ;;  %vm3110_vm8 = vcmp.eq.f32.partialorder %v1199_v24, 8.507059e+37 }
 0x413   :  { %v1202_v49 = vor.u32 1.1754944e-38, %v1201_v56  ;;  %v1352_v1 = vand.u32 2147483648, %v3075_v55  ;;  %v3116_v35 = vmax.f32 %v3100_v21, 1e-30  ;;  %vm1248_vm9 = vweird.f32 %v3086_v37 }
 0x414   :  { %v1291_v46 = vmul.f32 %v2232_v61, %v1290_v39  ;;  %v2234_v59 = vpop.eup %2233  ;;  %v1252_v23 = vand.u32 2147483647, %v3086_v37  ;;  %v1254_v31 = vand.u32 2147483648, %v3086_v37  ;;  %v3131_v10 = vmax.f32 %v3103_v62, 1e-30  ;;  %v1209_v39 = vld [vmem:[#allocation4 + $0x38] sm:$0xff] }
 0x415   :  { %v1191_v18 = vmul.f32 %v2234_v59, %v3073_v9  ;;  %vm3134_vm10 = vcmp.eq.f32.partialorder %v1350_v45, 8.507059e+37  ;;  %2239 = vrcp.f32 %v3116_v35  ;;  %v1154_v26 = vand.u32 2147483647, %v3116_v35 }
 0x416   :  { %v1292_v16 = vadd.f32 %v2232_v61, %v1291_v46  ;;  %v2236_v41 = vpop.eup %2235  ;;  %v1156_v14 = vand.u32 2147483648, %v3116_v35  ;;  %2241 = vrcp.f32 %v3131_v10  ;;  %v3143_v54 = vmax.f32 %v3118_v4, 1e-30 }
 0x417   :  { %1423 = vperm.xlu2 %2211, %v1399_v8   ;;  %v1192_v36 = vsub.f32 1.0, %v1191_v18  ;;  %vm1196_vm11 = vweird.f32 %v2234_v59  ;;  %v1342_v27 = vmul.f32 %v2236_v41, %v3075_v55  ;;  %v1353_v3 = vor.u32 1.1754944e-38, %v1352_v1  ;;  %v3180_v55 = vld [vmem:[#allocation3 + $0x8] sm:$0xff] }
 0x418   :  { %v1296_v58 = vsel %vm3123_vm6, %v2232_v61, %v1292_v16  ;;  %v2238_v7 = vpop.eup %2237  ;;  %vm3150_vm13 = vcmp.eq.f32.partialorder %v1252_v23, 8.507059e+37  ;;  %v1255_v44 = vor.u32 1.1754944e-38, %v1254_v31  ;;  %vm1347_vm14 = vweird.f32 %v2236_v41  ;;  %vm3157_vm15 = vmor %vm1195_vm12, %vm1196_vm11 }
 0x419   :  { %v1301_v50 = vsel %vm3095_vm5, %v1300_v57, %v1296_v58  ;;  %v1193_v51 = vmul.f32 %v2234_v59, %v1192_v36  ;;  %v1343_v25 = vsub.f32 1.0, %v1342_v27  ;;  %v1244_v34 = vmul.f32 %v2238_v7, %v3086_v37  ;;  %vm3169_vm5 = vmor %vm1346_vm7, %vm1347_vm14 }
 0x41a   :  { %1325 = vperm.xlu1 %2210, %v1301_v50   ;;  %vm1150_vm2 = vweird.f32 %v3116_v35  ;;  %vm3162_vm0 = vcmp.eq.f32.partialorder %v1154_v26, 8.507059e+37  ;;  %v1157_v29 = vor.u32 1.1754944e-38, %v1156_v14  ;;  %2243 = vrcp.f32 %v3143_v54 }
 0x41b   :  { %v2240_v30 = vpop.eup %2239  ;;  %v1194_v6 = vadd.f32 %v2234_v59, %v1193_v51  ;;  %v1344_v40 = vmul.f32 %v2236_v41, %v1343_v25  ;;  %v1245_v52 = vsub.f32 1.0, %v1244_v34  ;;  %vm1249_vm3 = vweird.f32 %v2238_v7  ;;  %v1403_v34 = vld [vmem:[#allocation4 + $0x68] sm:$0xff] }
 0x41c   :  { %v2242_v17 = vpop.eup %2241  ;;  %v1146_v60 = vmul.f32 %v2240_v30, %v3116_v35  ;;  %vm1098_vm4 = vweird.f32 %v3131_v10  ;;  %v1102_v19 = vand.u32 2147483647, %v3131_v10  ;;  %v1104_v42 = vand.u32 2147483648, %v3131_v10  ;;  %vm3186_vm12 = vmor %vm1248_vm9, %vm1249_vm3 }
 0x41d   :  { %v1198_v13 = vsel %vm3157_vm15, %v2234_v59, %v1194_v6  ;;  %v1345_v5 = vadd.f32 %v2236_v41, %v1344_v40  ;;  %v1246_v9 = vmul.f32 %v2238_v7, %v1245_v52  ;;  %v1094_v28 = vmul.f32 %v2242_v17, %v3131_v10  ;;  %v1306_v52 = vld [vmem:[#allocation4 + $0x50] sm:$0xff] }
 0x41e   :  { %v1203_v32 = vsel %vm3110_vm8, %v1202_v49, %v1198_v13  ;;  %v1147_v33 = vsub.f32 1.0, %v1146_v60  ;;  %vm1151_vm7 = vweird.f32 %v2240_v30  ;;  %vm1083_vm6 = vweird.f32 %v3143_v54  ;;  %v1305_v60 = vld [vmem:[#allocation4 + $0x48] sm:$0xff] }
 0x41f   :  { %1227 = vperm.xlu0 %2209, %v1203_v32   ;;  %v1349_v61 = vsel %vm3169_vm5, %v2236_v41, %v1345_v5  ;;  %v1247_v12 = vadd.f32 %v2238_v7, %v1246_v9  ;;  %v1095_v47 = vsub.f32 1.0, %v1094_v28  ;;  %vm1099_vm11 = vweird.f32 %v2242_v17  ;;  %vm3201_vm8 = vmor %vm1150_vm2, %vm1151_vm7 }
 0x420   :  { %v2244_v11 = vpop.eup %2243  ;;  %v1354_v53 = vsel %vm3134_vm10, %v1353_v3, %v1349_v61  ;;  %v1148_v37 = vmul.f32 %v2240_v30, %v1147_v33  ;;  %v1087_v24 = vand.u32 2147483647, %v3143_v54  ;;  %v1045_v56 = vmax.f32 %v3180_v55, 1e-30  ;;  %vm1100_vm9 = vmor %vm1098_vm4, %vm1099_vm11  ;;  %v1208_v33 = vld [vmem:[#allocation4 + $0x30] sm:$0xff]  ;;  %v1307_v61 = vld [vmem:[#allocation4 + $0x58] sm:$0xff] }
 0x421   :  { %1408 = vperm.xlu2 %2211, %v1354_v53   ;;  %v1251_v0 = vsel %vm3186_vm12, %v2238_v7, %v1247_v12  ;;  %v1096_v57 = vmul.f32 %v2242_v17, %v1095_v47  ;;  %v1105_v45 = vor.u32 1.1754944e-38, %v1104_v42  ;;  %v1079_v8 = vmul.f32 %v2244_v11, %v3143_v54 }
 0x422   :  { %v1256_v46 = vsel %vm3150_vm13, %v1255_v44, %v1251_v0  ;;  %v1149_v43 = vadd.f32 %v2240_v30, %v1148_v37  ;;  %v1089_v49 = vand.u32 2147483648, %v3143_v54  ;;  %2245 = vrcp.f32 %v1045_v56  ;;  %v3217_v44 = vld [vmem:[#allocation3] sm:$0xff] }
 0x423   :  { %1310 = vperm.xlu1 %2210, %v1256_v46   ;;  %v1097_v1 = vadd.f32 %v2242_v17, %v1096_v57  ;;  %vm1103_vm10 = vcmp.eq.f32.partialorder %v1102_v19, 8.507059e+37  ;;  %v1080_v35 = vsub.f32 1.0, %v1079_v8  ;;  %vm1084_vm14 = vweird.f32 %v2244_v11  ;;  %v1405_v46 = vld [vmem:[#allocation4 + $0x78] sm:$0xff] }
 0x424   :  { %v1153_v59 = vsel %vm3201_vm8, %v2240_v30, %v1149_v43  ;;  %vm1085_vm13 = vmor %vm1083_vm6, %vm1084_vm14  ;;  %v1090_v10 = vor.u32 1.1754944e-38, %v1089_v49  ;;  %vm1088_vm15 = vcmp.eq.f32.partialorder %v1087_v24, 8.507059e+37  ;;  %v1074_v58 = vand.u32 2147483648, %v1045_v56  ;;  %v1206_v49 = vld [vmem:[#allocation4 + $0x20] sm:$0xff] }
 0x425   :  { %v1158_v20 = vsel %vm3162_vm0, %v1157_v29, %v1153_v59  ;;  %v1101_v23 = vsel %vm1100_vm9, %v2242_v17, %v1097_v1  ;;  %v1081_v31 = vmul.f32 %v2244_v11, %v1080_v35  ;;  %vm1068_vm2 = vweird.f32 %v1045_v56  ;;  %v1304_v1 = vld [vmem:[#allocation4 + $0x40] sm:$0xff] }
 0x426   :  { %v1106_v16 = vsel %vm1103_vm10, %v1105_v45, %v1101_v23  ;;  %v1072_v27 = vand.u32 2147483647, %v1045_v56  ;;  %v1075_v50 = vor.u32 1.1754944e-38, %v1074_v58  ;;  %v1044_v51 = vmax.f32 %v3217_v44, 1e-30  ;;  %v1109_v58 = vld [vmem:[#allocation4 + $0x8] sm:$0xff] }
 0x427   :  { %1212 = vperm.xlu0 %2209, %v1158_v20   ;;  %v1082_v18 = vadd.f32 %v2244_v11, %v1081_v31  ;;  %vm1483_vm11 = vcmask 130048   ;;  %vm1488_vm8 = vcmask 195584   ;;  %vm1513_vm10 = vcmask 261120  }
 0x428   :  { %v2246_v48 = vpop.eup %2245  ;;  %vm1073_vm5 = vcmp.eq.f32.partialorder %v1072_v27, 8.507059e+37  ;;  %2247 = vrcp.f32 %v1044_v51  ;;  %vm1053_vm4 = vweird.f32 %v1044_v51  ;;  %v1059_v12 = vand.u32 2147483648, %v1044_v51 }
 0x429   :  { %1129 = vperm.xlu2 %2211, %v1106_v16   ;;  %v1086_v41 = vsel %vm1085_vm13, %v2244_v11, %v1082_v18  ;;  %v1064_v26 = vmul.f32 %v2246_v48, %v1045_v56  ;;  %vm1069_vm0 = vweird.f32 %v2246_v48  ;;  %v1057_v53 = vand.u32 2147483647, %v1044_v51  ;;  %v1402_v16 = vld [vmem:[#allocation4 + $0x60] sm:$0xff] }
 0x42a   :  { %v1091_v14 = vsel %vm1088_vm15, %v1090_v10, %v1086_v41  ;;  %vm1070_vm3 = vmor %vm1068_vm2, %vm1069_vm0  ;;  %v1060_v56 = vor.u32 1.1754944e-38, %v1059_v12 }
 0x42b   :  { %1124 = vperm.xlu1 %2210, %v1091_v14   ;;  %v1065_v36 = vsub.f32 1.0, %v1064_v26  ;;  %vm1058_vm6 = vcmp.eq.f32.partialorder %v1057_v53, 8.507059e+37 }
 0x42d   :  { %v1066_v7 = vmul.f32 %v2246_v48, %v1065_v36 }
 0x42e   :  { %v2248_v40 = vpop.eup %2247 }
 0x42f   :  { %v1067_v54 = vadd.f32 %v2246_v48, %v1066_v7  ;;  %v1049_v17 = vmul.f32 %v2248_v40, %v1044_v51  ;;  %vm1054_vm12 = vweird.f32 %v2248_v40 }
 0x430   :  { %vm1055_vm7 = vmor %vm1053_vm4, %vm1054_vm12 }
 0x431   :  { %v1071_v3 = vsel %vm1070_vm3, %v2246_v48, %v1067_v54  ;;  %v1050_v32 = vsub.f32 1.0, %v1049_v17 }
 0x432   :  { %v1076_v63 = vsel %vm1073_vm5, %v1075_v50, %v1071_v3  ;;  %v2212_v50 = vld [vmem:[%s3429_s5] ss:$0 sm:$0xff]  ;;  %v1110_v3 = vld [vmem:[#allocation4 + $0x10] sm:$0xff] }
 0x433   :  { %1119 = vperm.xlu0 %2209, %v1076_v63   ;;  %v1051_v38 = vmul.f32 %v2248_v40, %v1050_v32 }
 0x435   :  { %v1052_v11 = vadd.f32 %v2248_v40, %v1051_v38 }
 0x437   :  { %v1056_v0 = vsel %vm1055_vm7, %v2248_v40, %v1052_v11 }
 0x438   :  { %v1061_v45 = vsel %vm1058_vm6, %v1060_v56, %v1056_v0 }
 0x461   :  { %v1321_v25 = vpop.permute.xlu2 %1320 }
 0x462   :  { %v1330_v42 = vmul.f32 %v1321_v25, %v1306_v52 }
 0x469   :  { %v1419_v19 = vpop.permute.xlu2 %1418 }
 0x46a   :  { %v1428_v9 = vmul.f32 %v1419_v19, %v1404_v15 }
 0x471   :  { %v1424_v43 = vpop.permute.xlu2 %1423 }
 0x472   :  { %v1429_v20 = vmul.f32 %v1424_v43, %v1405_v46 }
 0x47a   :  { %v1414_v22 = vpop.permute.xlu1 %1413 }
 0x47b   :  { %v1427_v29 = vmul.f32 %v1414_v22, %v1403_v34  ;;  %v1218_v30 = vpop.permute.xlu0 %1217  ;;  %v1409_v10 = vpop.permute.xlu2 %1408 }
 0x47c   :  { %v1231_v6 = vmul.f32 %v1218_v30, %v1207_v2  ;;  %v1426_v18 = vmul.f32 %v1409_v10, %v1402_v16 }
 0x47d   :  { %1468 = vrot.lane.b32.xlu0 %v1427_v29, %s2283_s2 }
 0x47e   :  { %1436 = vrot.lane.b32.xlu1 %v1231_v6, %s2284_s17 }
 0x482   :  { %v1223_v13 = vpop.permute.xlu1 %1222 }
 0x483   :  { %v1316_v5 = vpop.permute.xlu0 %1315  ;;  %v1232_v47 = vmul.f32 %v1223_v13, %v1208_v33  ;;  %v1130_v48 = vpop.permute.xlu2 %1129 }
 0x484   :  { %v1329_v28 = vmul.f32 %v1316_v5, %v1305_v60  ;;  %v1111_v5 = vld [vmem:[#allocation4 + $0x18] sm:$0xff] }
 0x485   :  { %1454 = vrot.lane.b32.xlu0 %v1330_v42, %s2285_s1  ;;  %v1135_v32 = vmul.f32 %v1130_v48, %v1111_v5 }
 0x486   :  { %1452 = vrot.lane.b32.xlu2 %v1329_v28, %s2285_s1  ;;  %1470 = vrot.lane.b32.xlu1 %v1428_v9, %s2283_s2 }
 0x48c   :  { %v1326_v37 = vpop.permute.xlu1 %1325 }
 0x48d   :  { %v1331_v24 = vmul.f32 %v1326_v37, %v1307_v61  ;;  %v1108_v61 = vld [vmem:[#allocation4] sm:$0xff] }
 0x48e   :  { %1438 = vrot.lane.b32.xlu2 %v1232_v47, %s2284_s17 }
 0x48f   :  { %1456 = vrot.lane.b32.xlu1 %v1331_v24, %s2285_s1 }
 0x491   :  { %v1228_v57 = vpop.permute.xlu0 %1227 }
 0x492   :  { %v1233_v8 = vmul.f32 %v1228_v57, %v1209_v39 }
 0x494   :  { %1440 = vrot.lane.b32.xlu0 %v1233_v8, %s2284_s17 }
 0x495   :  { %v1311_v35 = vpop.permute.xlu1 %1310 }
 0x496   :  { %1114 = vperm.xlu2 %2211, %v1061_v45   ;;  %v1328_v31 = vmul.f32 %v1311_v35, %v1304_v1 }
 0x499   :  { %v1213_v59 = vpop.permute.xlu0 %1212 }
 0x49a   :  { %v1230_v23 = vmul.f32 %v1213_v59, %v1206_v49 }
 0x49c   :  { %1434 = vrot.lane.b32.xlu1 %v1230_v23, %s2284_s17  ;;  %1472 = vrot.lane.b32.xlu0 %v1429_v20, %s2283_s2  ;;  %v2286_v20 = vmov 32.0  }
 0x49d   :  { %v1125_v26 = vpop.permute.xlu1 %1124  ;;  %2249 = vrcp.f32 %v2286_v20 }
 0x49e   :  { %1450 = vrot.lane.b32.xlu2 %v1328_v31, %s2285_s1  ;;  %v1134_v2 = vmul.f32 %v1125_v26, %v1110_v3 }
 0x4a3   :  { %v2250_v23 = vpop.eup %2249 }
 0x4a4   :  { %1466 = vrot.lane.b32.xlu0 %v1426_v18, %s2283_s2  ;;  %v1527_v31 = vmul.f32 32.0, %v2250_v23  ;;  %vm1531_vm2 = vweird.f32 %v2250_v23 }
 0x4a5   :  { %v1120_v41 = vpop.permute.xlu0 %1119 }
 0x4a6   :  { %v1133_v36 = vmul.f32 %v1120_v41, %v1109_v58  ;;  %v1528_v16 = vsub.f32 1.0, %v1527_v31  ;;  %v1707_v31 = vld [vmem:[%s3432_s8 + $0x10] sm:$0xff] }
 0x4a8   :  { %v1529_v10 = vmul.f32 %v2250_v23, %v1528_v16 }
 0x4aa   :  { %v1530_v18 = vadd.f32 %v2250_v23, %v1529_v10  ;;  %v1706_v10 = vld [vmem:[%s3432_s8 + $0x8] sm:$0xff] }
 0x4ac   :  { %v3251_v48 = vsel %vm1531_vm2, %v2250_v23, %v1530_v18 }
 0x4e0   :  { %v1453_v14 = vpop.permute.xlu2 %1452 }
 0x4e8   :  { %v1439_v25 = vpop.permute.xlu2 %1438 }
 0x4e9   :  { %v1481_v29 = vsel %vm81_vm1, %v1134_v2, %v1439_v25 }
 0x4ef   :  { %v1469_v27 = vpop.permute.xlu0 %1468 }
 0x4f0   :  { %v1437_v7 = vpop.permute.xlu1 %1436  ;;  %v1115_v38 = vpop.permute.xlu2 %1114 }
 0x4f1   :  { %v1480_v54 = vsel %vm81_vm1, %v1133_v36, %v1437_v7  ;;  %v1132_v24 = vmul.f32 %v1115_v38, %v1108_v61 }
 0x4f2   :  { %v1485_v63 = vsel %vm1483_vm11, %v1480_v54, %v1453_v14 }
 0x4f3   :  { %v1490_v51 = vsel %vm1488_vm8, %v1485_v63, %v1469_v27 }
 0x4f4   :  { %v1498_v34 = vadd.f32 %v2212_v50, %v1490_v51 }
 0x4f6   :  { %vm1502_vm9 = vcmp.gt.f32.partialorder %v1498_v34, 0.0  ;;  %v1506_v22 = vmul.f32 0.01, %v1498_v34 }
 0x4f7   :  { %v1455_v30 = vpop.permute.xlu0 %1454 }
 0x4f8   :  { %v1471_v6 = vpop.permute.xlu1 %1470  ;;  %v1486_v40 = vsel %vm1483_vm11, %v1481_v29, %v1455_v30  ;;  %v1510_v52 = vsel %vm1502_vm9, %v1498_v34, %v1506_v22  ;;  %v1451_v57 = vpop.permute.xlu2 %1450 }
 0x4f9   :  { %v1491_v17 = vsel %vm1488_vm8, %v1486_v40, %v1471_v6  ;;  %v1517_v15 = vsel %vm1513_vm10, %v1510_v52, 0.0 }
 0x4fa   :  { %v1499_v60 = vadd.f32 %v2212_v50, %v1491_v17  ;;  %1518 = vadd.xlane.f32.xlu1 %v1517_v15 }
 0x4fc   :  { %vm1503_vm14 = vcmp.gt.f32.partialorder %v1499_v60, 0.0  ;;  %v1507_v19 = vmul.f32 0.01, %v1499_v60 }
 0x4fe   :  { %v1511_v42 = vsel %vm1503_vm14, %v1499_v60, %v1507_v19 }
 0x4ff   :  { %v1520_v13 = vsel %vm1513_vm10, %v1511_v42, 0.0 }
 0x500   :  { %1521 = vadd.xlane.f32.xlu2 %v1520_v13 }
 0x501   :  { %v1457_v9 = vpop.permute.xlu1 %1456 }
 0x506   :  { %v1441_v28 = vpop.permute.xlu0 %1440 }
 0x507   :  { %v1482_v33 = vsel %vm81_vm1, %v1135_v32, %v1441_v28 }
 0x508   :  { %v1487_v12 = vsel %vm1483_vm11, %v1482_v33, %v1457_v9 }
 0x50e   :  { %v1473_v47 = vpop.permute.xlu0 %1472  ;;  %v1435_v53 = vpop.permute.xlu1 %1434 }
 0x50f   :  { %v1492_v11 = vsel %vm1488_vm8, %v1487_v12, %v1473_v47  ;;  %v1479_v0 = vsel %vm81_vm1, %v1132_v24, %v1435_v53  ;;  %v3274_v47 = vld [vmem:[%s3430_s6] ss:$0 sm:$0xff] }
 0x510   :  { %v1500_v37 = vadd.f32 %v2212_v50, %v1492_v11  ;;  %v1484_v8 = vsel %vm1483_vm11, %v1479_v0, %v1451_v57 }
 0x512   :  { %vm1504_vm13 = vcmp.gt.f32.partialorder %v1500_v37, 0.0  ;;  %v1508_v56 = vmul.f32 0.01, %v1500_v37 }
 0x514   :  { %v1512_v39 = vsel %vm1504_vm13, %v1500_v37, %v1508_v56  ;;  %v3279_v37 = vld [vmem:[%s3431_s7] ss:$0 sm:$0xff] }
 0x515   :  { %v1523_v45 = vsel %vm1513_vm10, %v1512_v39, 0.0 }
 0x516   :  { %1524 = vadd.xlane.f32.xlu0 %v1523_v45  ;;  %v1467_v46 = vpop.permute.xlu0 %1466 }
 0x517   :  { %v1489_v43 = vsel %vm1488_vm8, %v1484_v8, %v1467_v46 }
 0x518   :  { %v1497_v49 = vadd.f32 %v2212_v50, %v1489_v43 }
 0x51a   :  { %vm1501_vm15 = vcmp.gt.f32.partialorder %v1497_v49, 0.0  ;;  %v1505_v1 = vmul.f32 0.01, %v1497_v49 }
 0x51c   :  { %v1509_v35 = vsel %vm1501_vm15, %v1497_v49, %v1505_v1 }
 0x51d   :  { %v1514_v59 = vsel %vm1513_vm10, %v1509_v35, 0.0 }
 0x51e   :  { %1515 = vadd.xlane.f32.xlu2 %v1514_v59  ;;  %v1708_v59 = vld [vmem:[%s3432_s8 + $0x18] sm:$0xff] }
 0x51f   :  { %2110 = vmatpush.msra.mxu3 %v1708_v59  ;;  %1737 = vmatpush.msra.mxu0 %v1708_v59 }
 0x521   :  { %2111 = vmatpush.msra.mxu3 %v1707_v31  ;;  %1738 = vmatpush.msra.mxu0 %v1707_v31  ;;  %v1821_v31 = vld [vmem:[#allocation2 + $0x20] sm:$0xff] }
 0x523   :  { %2112 = vmatpush.msra.mxu3 %v1706_v10  ;;  %1739 = vmatpush.msra.mxu0 %v1706_v10 }
 0x56d   :  { %v1519_v41 = vpop.xlane.xlu1 %1518 }
 0x56e   :  { %v1534_v26 = vmul.f32 %v3251_v48, %v1519_v41  ;;  %v1705_v41 = vld [vmem:[%s3432_s8] sm:$0xff] }
 0x56f   :  { %2113 = vmatpush.msra.mxu3 %v1705_v41  ;;  %1740 = vmatpush.msra.mxu0 %v1705_v41  ;;  %v1826_v41 = vld [vmem:[#allocation2 + $0x40] sm:$0xff] }
 0x570   :  { %v1538_v14 = vsub.f32 %v1510_v52, %v1534_v26 }
 0x572   :  { %v1542_v58 = vmul.f32 %v1538_v14, %v1538_v14 }
 0x573   :  { %v1522_v36 = vpop.xlane.xlu2 %1521 }
 0x574   :  { %v1535_v27 = vmul.f32 %v3251_v48, %v1522_v36  ;;  %v1548_v7 = vsel %vm1513_vm10, %v1542_v58, 0.0 }
 0x575   :  { %1549 = vadd.xlane.f32.xlu1 %v1548_v7 }
 0x576   :  { %v1539_v50 = vsub.f32 %v1511_v42, %v1535_v27 }
 0x578   :  { %v1543_v54 = vmul.f32 %v1539_v50, %v1539_v50 }
 0x57a   :  { %v1551_v3 = vsel %vm1513_vm10, %v1543_v54, 0.0 }
 0x57b   :  { %1552 = vadd.xlane.f32.xlu2 %v1551_v3 }
 0x589   :  { %v1525_v63 = vpop.xlane.xlu0 %1524 }
 0x58a   :  { %v1536_v51 = vmul.f32 %v3251_v48, %v1525_v63 }
 0x58c   :  { %v3258_v25 = vsub.f32 %v1512_v39, %v1536_v51 }
 0x58e   :  { %v1544_v34 = vmul.f32 %v3258_v25, %v3258_v25 }
 0x590   :  { %v1554_v2 = vsel %vm1513_vm10, %v1544_v34, 0.0 }
 0x591   :  { %1555 = vadd.xlane.f32.xlu0 %v1554_v2  ;;  %v1516_v22 = vpop.xlane.xlu2 %1515 }
 0x592   :  { %v1533_v29 = vmul.f32 %v3251_v48, %v1516_v22 }
 0x593   :  { %1855 = vrot.lane.b32.xlu2 %v1821_v31, %s2287_s29 }
 0x594   :  { %v3264_v30 = vsub.f32 %v1509_v35, %v1533_v29 }
 0x596   :  { %v1541_v6 = vmul.f32 %v3264_v30, %v3264_v30 }
 0x598   :  { %v1545_v40 = vsel %vm1513_vm10, %v1541_v6, 0.0 }
 0x599   :  { %1546 = vadd.xlane.f32.xlu1 %v1545_v40 }
 0x59b   :  { %1871 = vrot.lane.b32.xlu2 %v1826_v41, %s2288_s30 }
 0x5e8   :  { %v1550_v52 = vpop.xlane.xlu1 %1549 }
 0x5e9   :  { %v1558_v17 = vmul.f32 %v1550_v52, %v3251_v48 }
 0x5eb   :  { %v1562_v15 = vadd.f32 1e-05, %v1558_v17 }
 0x5ed   :  { %2251 = vrsqrt.f32 %v1562_v15  ;;  %vm1581_vm3 = vweird.f32 %v1562_v15 }
 0x5ee   :  { %v1553_v60 = vpop.xlane.xlu2 %1552 }
 0x5ef   :  { %v1559_v19 = vmul.f32 %v1553_v60, %v3251_v48 }
 0x5f1   :  { %v1563_v42 = vadd.f32 1e-05, %v1559_v19 }
 0x5f3   :  { %v2252_v13 = vpop.eup %2251  ;;  %2253 = vrsqrt.f32 %v1563_v42  ;;  %vm1591_vm12 = vweird.f32 %v1563_v42 }
 0x5f4   :  { %v1576_v5 = vmul.f32 %v2252_v13, %v1562_v15  ;;  %vm1582_vm0 = vweird.f32 %v2252_v13 }
 0x5f5   :  { %vm1583_vm5 = vmor %vm1581_vm3, %vm1582_vm0 }
 0x5f6   :  { %v1577_v9 = vmul.f32 %v2252_v13, %v1576_v5 }
 0x5f8   :  { %v1578_v28 = vmul.f32 0.5, %v1577_v9 }
 0x5f9   :  { %v2254_v32 = vpop.eup %2253 }
 0x5fa   :  { %v1579_v38 = vsub.f32 1.5, %v1578_v28  ;;  %v1586_v33 = vmul.f32 %v2254_v32, %v1563_v42  ;;  %vm1592_vm4 = vweird.f32 %v2254_v32 }
 0x5fb   :  { %vm1593_vm7 = vmor %vm1591_vm12, %vm1592_vm4 }
 0x5fc   :  { %v1580_v61 = vmul.f32 %v2252_v13, %v1579_v38  ;;  %v1587_v12 = vmul.f32 %v2254_v32, %v1586_v33 }
 0x5fe   :  { %v1584_v11 = vsel %vm1583_vm5, %v2252_v13, %v1580_v61  ;;  %v1588_v53 = vmul.f32 0.5, %v1587_v12 }
 0x5ff   :  { %v1606_v24 = vmul.f32 %v1584_v11, %v1538_v14 }
 0x600   :  { %v1589_v56 = vsub.f32 1.5, %v1588_v53 }
 0x601   :  { %v1614_v0 = vmul.f32 %v3274_v47, %v1606_v24 }
 0x602   :  { %v1590_v39 = vmul.f32 %v2254_v32, %v1589_v56 }
 0x603   :  { %v1622_v57 = vadd.f32 %v3279_v37, %v1614_v0 }
 0x604   :  { %v1594_v45 = vsel %vm1593_vm7, %v2254_v32, %v1590_v39  ;;  %v1556_v43 = vpop.xlane.xlu0 %1555 }
 0x605   :  { %v1626_v8 = vsub.f32 0.0, %v1622_v57  ;;  %v1607_v46 = vmul.f32 %v1594_v45, %v1539_v50  ;;  %v1560_v35 = vmul.f32 %v1556_v43, %v3251_v48 }
 0x607   :  { %v1631_v49 = vmul.f32 1.442695, %v1626_v8  ;;  %v1615_v1 = vmul.f32 %v3274_v47, %v1607_v46  ;;  %v1564_v23 = vadd.f32 1e-05, %v1560_v35 }
 0x609   :  { %2255 = vpow2.f32 %v1631_v49  ;;  %v1623_v20 = vadd.f32 %v3279_v37, %v1615_v1  ;;  %vm1601_vm11 = vweird.f32 %v1564_v23 }
 0x60a   :  { %2257 = vrsqrt.f32 %v1564_v23 }
 0x60b   :  { %v1627_v16 = vsub.f32 0.0, %v1623_v20  ;;  %v1822_v20 = vld [vmem:[#allocation2 + $0x28] sm:$0xff] }
 0x60c   :  { %v1547_v26 = vpop.xlane.xlu1 %1546  ;;  %1857 = vrot.lane.b32.xlu0 %v1822_v20, %s2287_s29 }
 0x60d   :  { %v1633_v18 = vmul.f32 1.442695, %v1627_v16  ;;  %v1557_v58 = vmul.f32 %v1547_v26, %v3251_v48 }
 0x60f   :  { %v2256_v14 = vpop.eup %2255  ;;  %2259 = vpow2.f32 %v1633_v18  ;;  %v1561_v7 = vadd.f32 1e-05, %v1557_v58  ;;  %v1827_v18 = vld [vmem:[#allocation2 + $0x48] sm:$0xff] }
 0x610   :  { %v1638_v36 = vadd.f32 1.0, %v2256_v14  ;;  %v2258_v27 = vpop.eup %2257 }
 0x611   :  { %v1596_v50 = vmul.f32 %v2258_v27, %v1564_v23  ;;  %vm1602_vm6 = vweird.f32 %v2258_v27  ;;  %vm1571_vm0 = vweird.f32 %v1561_v7  ;;  %v1823_v23 = vld [vmem:[#allocation2 + $0x30] sm:$0xff] }
 0x612   :  { %2261 = vrcp.f32 %v1638_v36  ;;  %vm1603_vm8 = vmor %vm1601_vm11, %vm1602_vm6  ;;  %v1667_v15 = vand.u32 2147483648, %v1638_v36  ;;  %v1665_v42 = vand.u32 2147483647, %v1638_v36  ;;  %vm1661_vm14 = vweird.f32 %v1638_v36  ;;  %1859 = vrot.lane.b32.xlu1 %v1823_v23, %s2287_s29 }
 0x613   :  { %2263 = vrsqrt.f32 %v1561_v7  ;;  %v1597_v54 = vmul.f32 %v2258_v27, %v1596_v50 }
 0x614   :  { %v1668_v33 = vor.u32 1.1754944e-38, %v1667_v15  ;;  %vm1666_vm2 = vcmp.eq.f32.partialorder %v1665_v42, 8.507059e+37  ;;  %v1833_v15 = vld [vmem:[#allocation2 + $0x70] sm:$0xff] }
 0x615   :  { %v2260_v3 = vpop.eup %2259  ;;  %v1598_v63 = vmul.f32 0.5, %v1597_v54  ;;  %v1829_v54 = vld [vmem:[#allocation2 + $0x58] sm:$0xff] }
 0x616   :  { %v1639_v51 = vadd.f32 1.0, %v2260_v3  ;;  %1877 = vrot.lane.b32.xlu2 %v1829_v54, %s2288_s30 }
 0x617   :  { %v1599_v2 = vsub.f32 1.5, %v1598_v63 }
 0x618   :  { %v2262_v34 = vpop.eup %2261  ;;  %2265 = vrcp.f32 %v1639_v51  ;;  %v1682_v24 = vand.u32 2147483648, %v1639_v51  ;;  %v1680_v39 = vand.u32 2147483647, %v1639_v51  ;;  %vm1676_vm4 = vweird.f32 %v1639_v51 }
 0x619   :  { %v2264_v22 = vpop.eup %2263  ;;  %v1657_v29 = vmul.f32 %v2262_v34, %v1638_v36  ;;  %v1600_v6 = vmul.f32 %v2258_v27, %v1599_v2  ;;  %vm1662_vm9 = vweird.f32 %v2262_v34 }
 0x61a   :  { %v1566_v40 = vmul.f32 %v2264_v22, %v1561_v7  ;;  %vm1572_vm13 = vweird.f32 %v2264_v22  ;;  %vm1663_vm15 = vmor %vm1661_vm14, %vm1662_vm9  ;;  %v1683_v43 = vor.u32 1.1754944e-38, %v1682_v24  ;;  %vm1681_vm7 = vcmp.eq.f32.partialorder %v1680_v39, 8.507059e+37  ;;  %1873 = vrot.lane.b32.xlu1 %v1827_v18, %s2288_s30  ;;  %v1831_v7 = vld [vmem:[#allocation2 + $0x60] sm:$0xff]  ;;  %v1848_v24 = vld [vmem:[#allocation3 + $0x68] sm:$0xff] }
 0x61b   :  { %v1658_v48 = vsub.f32 1.0, %v1657_v29  ;;  %v1604_v52 = vsel %vm1603_vm8, %v2258_v27, %v1600_v6  ;;  %vm1573_vm3 = vmor %vm1571_vm0, %vm1572_vm13  ;;  %v1828_v27 = vld [vmem:[#allocation2 + $0x50] sm:$0xff]  ;;  %vm1770_vm0 = vcmask 523264  }
 0x61c   :  { %v1567_v17 = vmul.f32 %v2264_v22, %v1566_v40  ;;  %v1608_v60 = vmul.f32 %v1604_v52, %v3258_v25  ;;  %v1832_v40 = vld [vmem:[#allocation2 + $0x68] sm:$0xff]  ;;  %v1760_v39 = vld [vmem:[%s3434_s10 + $0x10] sm:$0xff] }
 0x61d   :  { %v1659_v19 = vmul.f32 %v2262_v34, %v1658_v48  ;;  %v1834_v48 = vld [vmem:[#allocation2 + $0x78] sm:$0xff] }
 0x61e   :  { %v2266_v13 = vpop.eup %2265  ;;  %v1568_v5 = vmul.f32 0.5, %v1567_v17  ;;  %v1616_v9 = vmul.f32 %v3274_v47, %v1608_v60  ;;  %1891 = vrot.lane.b32.xlu2 %v1833_v15, %s2289_s15 }
 0x61f   :  { %v1660_v28 = vadd.f32 %v2262_v34, %v1659_v19  ;;  %v1672_v32 = vmul.f32 %v2266_v13, %v1639_v51  ;;  %vm1677_vm5 = vweird.f32 %v2266_v13 }
 0x620   :  { %v1569_v38 = vsub.f32 1.5, %v1568_v5  ;;  %v1624_v61 = vadd.f32 %v3279_v37, %v1616_v9  ;;  %vm1678_vm12 = vmor %vm1676_vm4, %vm1677_vm5  ;;  %vm1968_vm4 = vcmask 15360  }
 0x621   :  { %v1664_v12 = vsel %vm1663_vm15, %v2262_v34, %v1660_v28  ;;  %v1673_v11 = vsub.f32 1.0, %v1672_v32  ;;  %v1840_v32 = vld [vmem:[#allocation3 + $0x28] sm:$0xff] }
 0x622   :  { %v1570_v25 = vmul.f32 %v2264_v22, %v1569_v38  ;;  %v1669_v53 = vsel %vm1666_vm2, %v1668_v33, %v1664_v12  ;;  %v1628_v56 = vsub.f32 0.0, %v1624_v61  ;;  %1887 = vrot.lane.b32.xlu1 %v1831_v7, %s2289_s15  ;;  %v1765_v38 = vld [vmem:[%s3434_s10 + $0x38] sm:$0xff]  ;;  %v1841_v33 = vld [vmem:[#allocation3 + $0x30] sm:$0xff] }
 0x623   :  { %1702 = vst.msk [vmem:[%s3436_s12 + $0x8] sm:$0xff] %vm1513_vm10, %v1669_v53  ;;  %2087 = vmatmul.msk.f32.vlgmr.msra.gmra.mxu3 %vm1513_vm10, %v1669_v53  ;;  %v1674_v0 = vmul.f32 %v2266_v13, %v1673_v11  ;;  %2114 = vmatpush.msra.mxu2 %v1765_v38  ;;  %v1845_v61 = vld [vmem:[#allocation3 + $0x50] sm:$0xff]  ;;  %v2278_v11 = vld [vmem:[#allocation3 + $0x60] sm:$0xff]  ;;  %v1763_v53 = vld [vmem:[%s3434_s10 + $0x28] sm:$0xff] }
 0x624   :  { %v1574_v57 = vsel %vm1573_vm3, %v2264_v22, %v1570_v25  ;;  %v1635_v45 = vmul.f32 1.442695, %v1628_v56  ;;  %1791 = vmatpush.msra.mxu1 %v1765_v38  ;;  %v1849_v12 = vld [vmem:[#allocation3 + $0x70] sm:$0xff]  ;;  %v1850_v25 = vld [vmem:[#allocation3 + $0x78] sm:$0xff]  ;;  %v1762_v56 = vld [vmem:[%s3434_s10 + $0x20] sm:$0xff]  ;;  %vm3488_vm3 = vcmask 7168  }
 0x625   :  { %v1605_v8 = vmul.f32 %v1574_v57, %v3264_v30  ;;  %v1675_v46 = vadd.f32 %v2266_v13, %v1674_v0  ;;  %v1761_v0 = vld [vmem:[%s3434_s10 + $0x18] sm:$0xff]  ;;  %v1759_v57 = vld [vmem:[%s3434_s10 + $0x8] sm:$0xff]  ;;  %vm3489_vm5 = vmmov %vm3488_vm3 }
 0x626   :  { %2267 = vpow2.f32 %v1635_v45  ;;  %1905 = vrot.lane.b32.xlu2 %v3180_v55, %s2290_s18  ;;  %v1844_v55 = vld [vmem:[#allocation3 + $0x48] sm:$0xff]  ;;  %v1758_v45 = vld [vmem:[%s3434_s10] sm:$0xff] }
 0x627   :  { %v1613_v49 = vmul.f32 %v3274_v47, %v1605_v8  ;;  %v1679_v1 = vsel %vm1678_vm12, %v2266_v13, %v1675_v46  ;;  %vm1973_vm12 = vcmask 23552  }
 0x628   :  { %v1684_v35 = vsel %vm1681_vm7, %v1683_v43, %v1679_v1  ;;  %v1856_v43 = vpop.permute.xlu2 %1855  ;;  %vm1978_vm7 = vcmask 31744  }
 0x629   :  { %v1621_v59 = vadd.f32 %v3279_v37, %v1613_v49  ;;  %1703 = vst.msk [vmem:[%s3436_s12 + $0x10] sm:$0xff] %vm1513_vm10, %v1684_v35  ;;  %v1824_v37 = vld [vmem:[#allocation2 + $0x38] sm:$0xff]  ;;  %v2215_v49 = vld [vmem:[%s3433_s9] ss:$0 sm:$0xff] }
 0x62a   :  { %1861 = vrot.lane.b32.xlu0 %v1824_v37, %s2287_s29  ;;  %1893 = vrot.lane.b32.xlu1 %v1834_v48, %s2289_s15 }
 0x62b   :  { %v1625_v30 = vsub.f32 0.0, %v1621_v59  ;;  %2088 = vmatmul.msk.f32.gmra.mxu3 %vm1513_vm10, %v1684_v35 }
 0x62c   :  { %v2268_v47 = vpop.eup %2267 }
 0x62d   :  { %v1629_v16 = vmul.f32 1.442695, %v1625_v30  ;;  %v1640_v10 = vadd.f32 1.0, %v2268_v47 }
 0x62e   :  { %1919 = vrot.lane.b32.xlu2 %v3100_v21, %s2291_s19  ;;  %v1764_v21 = vld [vmem:[%s3434_s10 + $0x30] sm:$0xff] }
 0x62f   :  { %2269 = vpow2.f32 %v1629_v16  ;;  %v1697_v3 = vand.u32 2147483648, %v1640_v10  ;;  %v1695_v51 = vand.u32 2147483647, %v1640_v10  ;;  %vm1691_vm11 = vweird.f32 %v1640_v10  ;;  %2115 = vmatpush.msra.mxu2 %v1764_v21  ;;  %1792 = vmatpush.msra.mxu1 %v1764_v21 }
 0x630   :  { %2271 = vrcp.f32 %v1640_v10  ;;  %v1872_v30 = vpop.permute.xlu2 %1871 }
 0x631   :  { %v1698_v22 = vor.u32 1.1754944e-38, %v1697_v3  ;;  %vm1696_vm9 = vcmp.eq.f32.partialorder %v1695_v51, 8.507059e+37  ;;  %2116 = vmatpush.msra.mxu2 %v1763_v53  ;;  %1793 = vmatpush.msra.mxu1 %v1763_v53 }
 0x632   :  { %1875 = vrot.lane.b32.xlu0 %v1828_v27, %s2288_s30  ;;  %1907 = vrot.lane.b32.xlu1 %v3118_v4, %s2290_s18  ;;  %v2276_v4 = vld [vmem:[#allocation3 + $0x38] sm:$0xff] }
 0x633   :  { %2117 = vmatpush.msra.mxu2 %v1762_v56  ;;  %1794 = vmatpush.msra.mxu1 %v1762_v56 }
 0x635   :  { %v2270_v26 = vpop.eup %2269  ;;  %2118 = vmatpush.msra.mxu2 %v1761_v0  ;;  %1795 = vmatpush.msra.mxu1 %v1761_v0 }
 0x636   :  { %v2272_v14 = vpop.eup %2271  ;;  %v1637_v58 = vadd.f32 1.0, %v2270_v26  ;;  %1925 = vrot.lane.b32.xlu2 %v2276_v4, %s2291_s19 }
 0x637   :  { %v1687_v36 = vmul.f32 %v2272_v14, %v1640_v10  ;;  %vm1692_vm6 = vweird.f32 %v2272_v14  ;;  %2119 = vmatpush.msra.mxu2 %v1760_v39  ;;  %1796 = vmatpush.msra.mxu1 %v1760_v39 }
 0x638   :  { %2273 = vrcp.f32 %v1637_v58  ;;  %vm1693_vm8 = vmor %vm1691_vm11, %vm1692_vm6  ;;  %v1652_v60 = vand.u32 2147483648, %v1637_v58  ;;  %v1650_v42 = vand.u32 2147483647, %v1637_v58  ;;  %vm1646_vm13 = vweird.f32 %v1637_v58 }
 0x639   :  { %v1688_v50 = vsub.f32 1.0, %v1687_v36  ;;  %2120 = vmatpush.msra.mxu2 %v1759_v57  ;;  %1797 = vmatpush.msra.mxu1 %v1759_v57  ;;  %vm3490_vm6 = vmmov %vm3488_vm3 }
 0x63a   :  { %1889 = vrot.lane.b32.xlu0 %v1832_v40, %s2289_s15  ;;  %v1653_v5 = vor.u32 1.1754944e-38, %v1652_v60  ;;  %vm1651_vm2 = vcmp.eq.f32.partialorder %v1650_v42, 8.507059e+37  ;;  %1921 = vrot.lane.b32.xlu1 %v1840_v32, %s2291_s19  ;;  %v1818_v42 = vld [vmem:[#allocation2 + $0x10] sm:$0xff]  ;;  %vm3491_vm11 = vmmov %vm3488_vm3 }
 0x63b   :  { %v1689_v63 = vmul.f32 %v2272_v14, %v1688_v50  ;;  %2121 = vmatpush.msra.mxu2 %v1758_v45  ;;  %1798 = vmatpush.msra.mxu1 %v1758_v45 }
 0x63d   :  { %v1690_v34 = vadd.f32 %v2272_v14, %v1689_v63 }
 0x63e   :  { %v2274_v2 = vpop.eup %2273 }
 0x63f   :  { %v1694_v29 = vsel %vm1693_vm8, %v2272_v14, %v1690_v34  ;;  %v1642_v6 = vmul.f32 %v2274_v2, %v1637_v58  ;;  %vm1647_vm14 = vweird.f32 %v2274_v2  ;;  %vm1983_vm8 = vcmask 39936  }
 0x640   :  { %v1699_v52 = vsel %vm1696_vm9, %v1698_v22, %v1694_v29  ;;  %vm1648_vm15 = vmor %vm1646_vm13, %vm1647_vm14  ;;  %v1816_v22 = vld [vmem:[#allocation2] sm:$0xff]  ;;  %v1817_v29 = vld [vmem:[#allocation2 + $0x8] sm:$0xff]  ;;  %vm1988_vm9 = vcmask 48128   ;;  %vm1993_vm14 = vcmask 56320  }
 0x641   :  { %1704 = vst.msk [vmem:[%s3436_s12 + $0x18] sm:$0xff] %vm1513_vm10, %v1699_v52  ;;  %2089 = vmatmul.msk.f32.gmra.mxu3 %vm1513_vm10, %v1699_v52  ;;  %v1643_v17 = vsub.f32 1.0, %v1642_v6  ;;  %v1964_v6 = vsel %vm3488_vm3, %v1816_v22, %v1856_v43 }
 0x642   :  { %1903 = vrot.lane.b32.xlu0 %v3217_v44, %s2290_s18  ;;  %v2275_v44 = vld [vmem:[#allocation3 + $0x40] sm:$0xff]  ;;  %v1969_v15 = vsel %vm1968_vm4, %v1964_v6, %v1872_v30 }
 0x643   :  { %v1644_v19 = vmul.f32 %v2274_v2, %v1643_v17  ;;  %v2216_v30 = vld [vmem:[%s3435_s11] ss:$0 sm:$0xff] }
 0x645   :  { %v1645_v13 = vadd.f32 %v2274_v2, %v1644_v19  ;;  %v1819_v19 = vld [vmem:[#allocation2 + $0x18] sm:$0xff] }
 0x647   :  { %v1649_v9 = vsel %vm1648_vm15, %v2274_v2, %v1645_v13 }
 0x648   :  { %v1654_v28 = vsel %vm1651_vm2, %v1653_v5, %v1649_v9 }
 0x649   :  { %1701 = vst.msk [vmem:[%s3436_s12] sm:$0xff] %vm1513_vm10, %v1654_v28  ;;  %2086 = vmatmul.msk.f32.vlgmr.msra.gmra.mxu0 %vm1513_vm10, %v1654_v28  ;;  %s2292_s12 = smov 6  }
 0x64a   :  { %1909 = vrot.lane.b32.xlu0 %v3103_v62, %s2290_s18  ;;  %1935 = vrot.lane.b32.xlu1 %v2275_v44, %s2292_s12  ;;  %v2277_v62 = vld [vmem:[#allocation3 + $0x58] sm:$0xff] }
 0x64b   :  { %1939 = vrot.lane.b32.xlu2 %v1845_v61, %s2292_s12 }
 0x652   :  { %1923 = vrot.lane.b32.xlu0 %v1841_v33, %s2291_s19  ;;  %1941 = vrot.lane.b32.xlu1 %v2277_v62, %s2292_s12 }
 0x653   :  { %1953 = vrot.lane.b32.xlu2 %v1848_v24, %s2293_s0 }
 0x65a   :  { %1937 = vrot.lane.b32.xlu0 %v1844_v55, %s2292_s12  ;;  %1955 = vrot.lane.b32.xlu1 %v1849_v12, %s2293_s0 }
 0x662   :  { %1951 = vrot.lane.b32.xlu0 %v2278_v11, %s2293_s0 }
 0x66a   :  { %1957 = vrot.lane.b32.xlu0 %v1850_v25, %s2293_s0 }
 0x670   :  { %v1878_v16 = vpop.permute.xlu2 %1877 }
 0x678   :  { %v1892_v41 = vpop.permute.xlu2 %1891 }
 0x67e   :  { %v1858_v46 = vpop.permute.xlu0 %1857 }
 0x67f   :  { %v1965_v40 = vsel %vm3489_vm5, %v1817_v29, %v1858_v46 }
 0x680   :  { %v1906_v54 = vpop.permute.xlu2 %1905 }
 0x684   :  { %v1860_v23 = vpop.permute.xlu1 %1859 }
 0x685   :  { %v1966_v28 = vsel %vm3491_vm11, %v1818_v42, %v1860_v23 }
 0x688   :  { %v1920_v2 = vpop.permute.xlu2 %1919 }
 0x68c   :  { %v1874_v47 = vpop.permute.xlu1 %1873 }
 0x68d   :  { %v1970_v60 = vsel %vm1968_vm4, %v1965_v40, %v1874_v47 }
 0x690   :  { %v1926_v17 = vpop.permute.xlu2 %1925 }
 0x694   :  { %v1888_v37 = vpop.permute.xlu1 %1887 }
 0x695   :  { %v1974_v13 = vsel %vm1973_vm12, %v1969_v15, %v1888_v37 }
 0x69c   :  { %v1862_v20 = vpop.permute.xlu0 %1861  ;;  %v1894_v50 = vpop.permute.xlu1 %1893 }
 0x69d   :  { %v1967_v9 = vsel %vm3490_vm6, %v1819_v19, %v1862_v20 }
 0x69e   :  { %v1972_v61 = vsel %vm1968_vm4, %v1967_v9, %v1878_v16 }
 0x69f   :  { %v1977_v25 = vsel %vm1973_vm12, %v1972_v61, %v1894_v50 }
 0x6a4   :  { %v1876_v31 = vpop.permute.xlu0 %1875  ;;  %v1908_v34 = vpop.permute.xlu1 %1907 }
 0x6a5   :  { %v1940_v4 = vpop.permute.xlu2 %1939  ;;  %v1971_v55 = vsel %vm1968_vm4, %v1966_v28, %v1876_v31 }
 0x6a6   :  { %v1745_v8 = vpop.f32.mrf.mxu3  ;;  %v1976_v11 = vsel %vm1973_vm12, %v1971_v55, %v1892_v41 }
 0x6a7   :  { %v1746_v3 = vadd.f32 %v2215_v49, %v1745_v8  ;;  %v1981_v56 = vsel %vm1978_vm7, %v1976_v11, %v1908_v34 }
 0x6a9   :  { %v1755_v63 = vmax.f32 %v1746_v3, 0.0 }
 0x6ac   :  { %v1890_v10 = vpop.permute.xlu0 %1889  ;;  %v1922_v52 = vpop.permute.xlu1 %1921 }
 0x6ad   :  { %v1975_v5 = vsel %vm1973_vm12, %v1970_v60, %v1890_v10  ;;  %v1954_v45 = vpop.permute.xlu2 %1953 }
 0x6ae   :  { %v1748_v1 = vpop.f32.mrf.mxu3  ;;  %v1980_v44 = vsel %vm1978_vm7, %v1975_v5, %v1906_v54 }
 0x6af   :  { %v1749_v35 = vadd.f32 %v2215_v49, %v1748_v1  ;;  %v1985_v12 = vsel %vm1983_vm8, %v1980_v44, %v1922_v52 }
 0x6b1   :  { %v1756_v59 = vmax.f32 %v1749_v35, 0.0 }
 0x6b3   :  { %2092 = vmatmul.msk.f32.vlgmr.msra.gmra.mxu2 %vm1770_vm0, %v1756_v59 }
 0x6b4   :  { %v1904_v7 = vpop.permute.xlu0 %1903 }
 0x6b5   :  { %v1979_v32 = vsel %vm1978_vm7, %v1974_v13, %v1904_v7 }
 0x6b6   :  { %v1984_v62 = vsel %vm1983_vm8, %v1979_v32, %v1920_v2 }
 0x6bc   :  { %v1910_v51 = vpop.permute.xlu0 %1909  ;;  %v1936_v33 = vpop.permute.xlu1 %1935 }
 0x6bd   :  { %v1989_v21 = vsel %vm1988_vm9, %v1984_v62, %v1936_v33  ;;  %v1982_v24 = vsel %vm1978_vm7, %v1977_v25, %v1910_v51 }
 0x6be   :  { %v1987_v43 = vsel %vm1983_vm8, %v1982_v24, %v1926_v17 }
 0x6c4   :  { %v1751_v18 = vpop.f32.mrf.mxu3  ;;  %v1924_v48 = vpop.permute.xlu0 %1923 }
 0x6c5   :  { %v1752_v26 = vadd.f32 %v2215_v49, %v1751_v18  ;;  %v1942_v39 = vpop.permute.xlu1 %1941  ;;  %v1986_v46 = vsel %vm1983_vm8, %v1981_v56, %v1924_v48 }
 0x6c6   :  { %v1742_v14 = vpop.f32.mrf.mxu0  ;;  %v1992_v1 = vsel %vm1988_vm9, %v1987_v43, %v1942_v39 }
 0x6c7   :  { %v1757_v58 = vmax.f32 %v1752_v26, 0.0  ;;  %v1743_v36 = vadd.f32 %v2215_v49, %v1742_v14  ;;  %v1991_v49 = vsel %vm1988_vm9, %v1986_v46, %v1940_v4 }
 0x6c9   :  { %v1754_v27 = vmax.f32 %v1743_v36, 0.0  ;;  %2093 = vmatmul.msk.f32.gmra.mxu2 %vm1770_vm0, %v1757_v58 }
 0x6cb   :  { %2090 = vmatmul.msk.f32.vlgmr.msra.gmra.mxu1 %vm1770_vm0, %v1754_v27 }
 0x6cc   :  { %v1938_v38 = vpop.permute.xlu0 %1937 }
 0x6cd   :  { %v1990_v53 = vsel %vm1988_vm9, %v1985_v12, %v1938_v38  ;;  %v1956_v59 = vpop.permute.xlu1 %1955 }
 0x6ce   :  { %v1995_v8 = vsel %vm1993_vm14, %v1990_v53, %v1954_v45  ;;  %v1996_v23 = vsel %vm1993_vm14, %v1991_v49, %v1956_v59 }
 0x6cf   :  { %1999 = vst.msk [vmem:[%s3438_s14 + $0x8] sm:$0xff] %vm81_vm1, %v1995_v8 }
 0x6d0   :  { %2000 = vst.msk [vmem:[%s3438_s14 + $0x10] sm:$0xff] %vm81_vm1, %v1996_v23 }
 0x6d3   :  { %2091 = vmatmul.msk.f32.gmra.mxu1 %vm1770_vm0, %v1755_v63 }
 0x6d4   :  { %v1952_v0 = vpop.permute.xlu0 %1951 }
 0x6d5   :  { %v1994_v57 = vsel %vm1993_vm14, %v1989_v21, %v1952_v0 }
 0x6d6   :  { %1998 = vst.msk [vmem:[%s3438_s14] sm:$0xff] %vm81_vm1, %v1994_v57 }
 0x6dc   :  { %v1958_v35 = vpop.permute.xlu0 %1957 }
 0x6dd   :  { %v1997_v20 = vsel %vm1993_vm14, %v1992_v1, %v1958_v35 }
 0x6de   :  { %2001 = vst.msk [vmem:[%s3438_s14 + $0x18] sm:$0xff] %vm81_vm1, %v1997_v20 }
 0x736   :  { %v1806_v31 = vpop.f32.mrf.mxu2 }
 0x737   :  { %v1807_v47 = vadd.f32 %v2216_v30, %v1806_v31 }
 0x739   :  { %1814 = vst.msk [vmem:[%s3437_s13 + $0x10] sm:$0xff] %vm1513_vm10, %v1807_v47 }
 0x748   :  { %v1800_v16 = vpop.f32.mrf.mxu1 }
 0x749   :  { %v1801_v10 = vadd.f32 %v2216_v30, %v1800_v16 }
 0x74b   :  { %1812 = vst.msk [vmem:[%s3437_s13] sm:$0xff] %vm1513_vm10, %v1801_v10 }
 0x74c   :  { %v1809_v37 = vpop.f32.mrf.mxu2 }
 0x74d   :  { %v1810_v18 = vadd.f32 %v2216_v30, %v1809_v37 }
 0x74f   :  { %1815 = vst.msk [vmem:[%s3437_s13 + $0x18] sm:$0xff] %vm1513_vm10, %v1810_v18 }
 0x750   :  { %v1803_v41 = vpop.f32.mrf.mxu1 }
 0x751   :  { %v1804_v26 = vadd.f32 %v2216_v30, %v1803_v41 }
 0x753   :  { %1813 = vst.msk [vmem:[%s3437_s13 + $0x8] sm:$0xff] %vm1513_vm10, %v1804_v26 }

</bundles_post_ra>
